<compile_context>
chip_gen: v5e
topology: v5e:2x2
jax: 0.10.0
libtpu: 0.0.40
codegen_flags: <defaults>
</compile_context>

<pallas_src>
import functools

import jax
import jax.numpy as jnp
from jax.experimental import pallas as pl
from jax.experimental.pallas import tpu as pltpu

EPS = 1e-5
EXPANSION = 4
LANE = 128                      # channel dims padded to a multiple of this
TILE_M = 512                    # rows per grid step for the row-tiled kernels
VMEM_LIMIT = 40 * 1024 * 1024   # leaves headroom on v7x's 64 MiB / core


# ----------------------------------------------------------------------------
# small helpers
# ----------------------------------------------------------------------------
def _ceil_to(x, m):
    return ((x + m - 1) // m) * m


def _pad_to(a, shape):
    pads = tuple((0, t - s) for s, t in zip(a.shape, shape))
    if all(p == (0, 0) for p in pads):
        return a
    return jnp.pad(a, pads)


def _pad_rows(a, rows):
    return _pad_to(a, (rows,) + a.shape[1:])


def _tile_rows(r):
    """Row tile (multiple of 8, <= TILE_M).  Prefer an exact divisor of the
    8-aligned row count so no padded rows are created at all."""
    r8 = _ceil_to(r, 8)
    cap = min(TILE_M, r8)
    for t in range(cap, 63, -8):
        if r8 % t == 0:
            return t, r8
    return cap, _ceil_to(r8, cap)


def _mosaic_params(grid_len):
    return pltpu.CompilerParams(
        dimension_semantics=("parallel",) * grid_len,
        vmem_limit_bytes=VMEM_LIMIT)


# ----------------------------------------------------------------------------
# Pallas kernels
# ----------------------------------------------------------------------------
def _matmul_stats_kernel(x_ref, w_ref, y_ref, st_ref):
    """y = x @ w (bf16 operands, f32 acc); emit y (bf16) + [sum, sum_sq]."""
    y = jnp.dot(x_ref[...], w_ref[...], preferred_element_type=jnp.float32)
    st_ref[0, :, :] = jnp.concatenate(
        [jnp.sum(y, axis=0, keepdims=True),
         jnp.sum(y * y, axis=0, keepdims=True)], axis=0)      # single store
    y_ref[...] = y.astype(y_ref.dtype)


def _bn1_relu_conv3x3_stats_kernel(y1_ref, sc1_ref, bi1_ref, w_ref,
                                   y2_ref, st_ref, pad_ref, cols_ref):
    """Fused: BN1-apply + ReLU + zero halo (VMEM) + 3x3 stride-1 conv as ONE
    K=9*Cp matmul over a VMEM im2col block + BN2 partial stats.

    y1_ref : (1, H, W, Cp)    bf16  pre-BN conv1 output, one sample
    sc1/bi1: (1, Cp)          f32   folded BN1 scale / bias
    w_ref  : (9*Cp, Coutp)    bf16  3x3 taps flattened along K (tap-major)
    y2_ref : (1, HWp, Coutp)  bf16  conv2 output rows (pre-BN2)
    st_ref : (1, 2, Coutp)    f32   per-sample [sum, sum_sq] for BN2
    pad_ref: (H+2, W+2, Cp)   bf16  VMEM halo scratch
    cols_ref:(HWp, 9*Cp)      bf16  VMEM im2col scratch
    """
    _, h, w, cp = y1_ref.shape
    hw = h * w
    hwp = cols_ref.shape[0]

    # BN1 + ReLU on the VMEM-resident sample (no extra HBM round trip).
    a = y1_ref[0].astype(jnp.float32)
    a = a * sc1_ref[...].reshape(1, 1, cp) + bi1_ref[...].reshape(1, 1, cp)
    a = jnp.maximum(a, 0.0).astype(jnp.bfloat16)

    # 1-pixel zero halo built in VMEM scratch (replaces the XLA jnp.pad pass).
    pad_ref[...] = jnp.zeros_like(pad_ref)
    pad_ref[1:h + 1, 1:w + 1, :] = a

    # im2col block in VMEM: a single big-K matmul keeps the MXU cadence up
    # and avoids 9 read-modify-writes of the f32 output block.
    for dh in range(3):
        for dw in range(3):
            t = dh * 3 + dw
            tap = pad_ref[dh:dh + h, dw:dw + w, :]
            cols_ref[0:hw, t * cp:(t + 1) * cp] = tap.reshape(hw, cp)
    if hwp > hw:   # ragged H*W: keep trailing rows zero so stats stay exact
        cols_ref[hw:hwp, :] = jnp.zeros((hwp - hw, 9 * cp), jnp.bfloat16)

    y = jnp.dot(cols_ref[...], w_ref[...], preferred_element_type=jnp.float32)
    st_ref[0, :, :] = jnp.concatenate(
        [jnp.sum(y, axis=0, keepdims=True),
         jnp.sum(y * y, axis=0, keepdims=True)], axis=0)
    y2_ref[0, :, :] = y.astype(y2_ref.dtype)


def _bn_relu_matmul_stats_kernel(y_ref, sc_ref, bi_ref, w_ref, o_ref, st_ref,
                                 *, rows, tile_m):
    """Fused: BN2-apply + ReLU with conv3's matmul + BN3 partial stats."""
    a = jnp.maximum(
        y_ref[...].astype(jnp.float32) * sc_ref[...] + bi_ref[...], 0.0)
    if rows is not None:  # zero padded rows so they do not pollute BN3 stats
        ridx = (jax.lax.broadcasted_iota(jnp.int32, a.shape, 0)
                + pl.program_id(0) * tile_m)
        a = jnp.where(ridx < rows, a, 0.0)
    y = jnp.dot(a.astype(jnp.bfloat16), w_ref[...],
                preferred_element_type=jnp.float32)
    st_ref[0, :, :] = jnp.concatenate(
        [jnp.sum(y, axis=0, keepdims=True),
         jnp.sum(y * y, axis=0, keepdims=True)], axis=0)
    o_ref[...] = y.astype(o_ref.dtype)


def _bn_act_kernel(y_ref, sc_ref, bi_ref, o_ref, *, relu):
    """out = [relu](y * scale + bias)  (only used by the stride!=1 fallback)."""
    out = y_ref[...].astype(jnp.float32) * sc_ref[...] + bi_ref[...]
    if relu:
        out = jnp.maximum(out, 0.0)
    o_ref[...] = out.astype(o_ref.dtype)


def _bn_add_relu_kernel(y_ref, sc3_ref, bi3_ref, ys_ref, scs_ref, bis_ref,
                        o_ref, *, identity):
    """BN3-apply fused with shortcut-BN, residual add and ReLU."""
    main = y_ref[...].astype(jnp.float32) * sc3_ref[...] + bi3_ref[...]
    short = ys_ref[...].astype(jnp.float32)
    if not identity:                       # identity shortcut skips scale/bias
        short = short * scs_ref[...] + bis_ref[...]
    o_ref[...] = jnp.maximum(main + short, 0.0).astype(o_ref.dtype)


# ----------------------------------------------------------------------------
# pallas_call wrappers (row-tiled, "parallel" grids; constant-index weight /
# scale / bias blocks are revisited by Mosaic so they stay VMEM resident)
# ----------------------------------------------------------------------------
def _matmul_stats(x, w, tile_m):
    rp, kp = x.shape
    cp = w.shape[1]
    grid = (rp // tile_m,)
    return pl.pallas_call(
        _matmul_stats_kernel,
        out_shape=(jax.ShapeDtypeStruct((rp, cp), jnp.bfloat16),
                   jax.ShapeDtypeStruct((grid[0], 2, cp), jnp.float32)),
        grid=grid,
        in_specs=[pl.BlockSpec((tile_m, kp), lambda i: (i, 0)),
                  pl.BlockSpec((kp, cp), lambda i: (0, 0))],
        out_specs=(pl.BlockSpec((tile_m, cp), lambda i: (i, 0)),
                   pl.BlockSpec((1, 2, cp), lambda i: (i, 0, 0))),
        compiler_params=_mosaic_params(1),
        cost_estimate=pl.CostEstimate(
            flops=2 * rp * kp * cp, transcendentals=0,
            bytes_accessed=2 * rp * kp + 2 * kp * cp + 2 * rp * cp),
    )(x, w)


def _bn1_relu_conv3x3_stats(y1_img, sc1, bi1, w_flat):
    n, h, w, cp = y1_img.shape
    hw = h * w
    hwp = _ceil_to(hw, 8)
    coutp = w_flat.shape[1]
    return pl.pallas_call(
        _bn1_relu_conv3x3_stats_kernel,
        out_shape=(jax.ShapeDtypeStruct((n, hwp, coutp), jnp.bfloat16),
                   jax.ShapeDtypeStruct((n, 2, coutp), jnp.float32)),
        grid=(n,),
        in_specs=[pl.BlockSpec((1, h, w, cp), lambda i: (i, 0, 0, 0)),
                  pl.BlockSpec((1, cp), lambda i: (0, 0)),
                  pl.BlockSpec((1, cp), lambda i: (0, 0)),
                  pl.BlockSpec((9 * cp, coutp), lambda i: (0, 0))],
        out_specs=(pl.BlockSpec((1, hwp, coutp), lambda i: (i, 0, 0)),
                   pl.BlockSpec((1, 2, coutp), lambda i: (i, 0, 0))),
        scratch_shapes=[pltpu.VMEM((h + 2, w + 2, cp), jnp.bfloat16),
                        pltpu.VMEM((hwp, 9 * cp), jnp.bfloat16)],
        compiler_params=_mosaic_params(1),
        cost_estimate=pl.CostEstimate(
            flops=2 * 9 * n * hw * cp * coutp, transcendentals=0,
            bytes_accessed=2 * y1_img.size + 2 * w_flat.size
            + 2 * n * hwp * coutp),
    )(y1_img, sc1, bi1, w_flat)


def _bn_relu_matmul_stats(y, scale, bias, w, tile_m, valid_rows):
    rp, kp = y.shape
    cp = w.shape[1]
    grid = (rp // tile_m,)
    kernel = functools.partial(
        _bn_relu_matmul_stats_kernel,
        rows=None if valid_rows == rp else valid_rows,
        tile_m=tile_m)
    return pl.pallas_call(
        kernel,
        out_shape=(jax.ShapeDtypeStruct((rp, cp), jnp.bfloat16),
                   jax.ShapeDtypeStruct((grid[0], 2, cp), jnp.float32)),
        grid=grid,
        in_specs=[pl.BlockSpec((tile_m, kp), lambda i: (i, 0)),
                  pl.BlockSpec((1, kp), lambda i: (0, 0)),
                  pl.BlockSpec((1, kp), lambda i: (0, 0)),
                  pl.BlockSpec((kp, cp), lambda i: (0, 0))],
        out_specs=(pl.BlockSpec((tile_m, cp), lambda i: (i, 0)),
                   pl.BlockSpec((1, 2, cp), lambda i: (i, 0, 0))),
        compiler_params=_mosaic_params(1),
        cost_estimate=pl.CostEstimate(
            flops=2 * rp * kp * cp, transcendentals=0,
            bytes_accessed=2 * rp * kp + 2 * kp * cp + 2 * rp * cp),
    )(y, scale, bias, w)


def _bn_act(y, scale, bias, relu, out_dtype, tile_m):
    rp, cp = y.shape
    grid = (rp // tile_m,)
    return pl.pallas_call(
        functools.partial(_bn_act_kernel, relu=relu),
        out_shape=jax.ShapeDtypeStruct((rp, cp), out_dtype),
        grid=grid,
        in_specs=[pl.BlockSpec((tile_m, cp), lambda i: (i, 0)),
                  pl.BlockSpec((1, cp), lambda i: (0, 0)),
                  pl.BlockSpec((1, cp), lambda i: (0, 0))],
        out_specs=pl.BlockSpec((tile_m, cp), lambda i: (i, 0)),
        compiler_params=_mosaic_params(1),
    )(y, scale, bias)


def _bn_add_relu(y, scale3, bias3, ys, scale_s, bias_s, tile_m, identity):
    rp, cp = y.shape
    grid = (rp // tile_m,)
    return pl.pallas_call(
        functools.partial(_bn_add_relu_kernel, identity=identity),
        out_shape=jax.ShapeDtypeStruct((rp, cp), jnp.float32),
        grid=grid,
        in_specs=[pl.BlockSpec((tile_m, cp), lambda i: (i, 0)),
                  pl.BlockSpec((1, cp), lambda i: (0, 0)),
                  pl.BlockSpec((1, cp), lambda i: (0, 0)),
                  pl.BlockSpec((tile_m, cp), lambda i: (i, 0)),
                  pl.BlockSpec((1, cp), lambda i: (0, 0)),
                  pl.BlockSpec((1, cp), lambda i: (0, 0))],
        out_specs=pl.BlockSpec((tile_m, cp), lambda i: (i, 0)),
        compiler_params=_mosaic_params(1),
    )(y, scale3, bias3, ys, scale_s, bias_s)


# ----------------------------------------------------------------------------
# BN statistics finalisation (tiny (1,C) math, plain XLA)
# ----------------------------------------------------------------------------
def _bn_coeffs(st, count, gamma_p, beta_p):
    s = jnp.sum(st, axis=0)                         # (2, Cp)
    mean = s[0] / count
    var = jnp.maximum(s[1] / count - mean * mean, 0.0)
    scale = gamma_p[0] * jax.lax.rsqrt(var + EPS)
    bias = beta_p[0] - mean * scale
    return scale[None, :], bias[None, :]


# ----------------------------------------------------------------------------
# hoisted parameter preparation (once per module, outside the hot path)
# ----------------------------------------------------------------------------
def prepare_params(params, stride):
    planes, in_planes = params["w1"].shape[0], params["w1"].shape[1]
    cout = EXPANSION * planes
    cin_p, pln_p, co_p = (_ceil_to(c, LANE) for c in (in_planes, planes, cout))

    def mat1x1(w, kp, cp):                 # (out, in, 1, 1) -> (kp, cp) bf16
        m = jnp.transpose(w[:, :, 0, 0], (1, 0))
        return _pad_to(m, (kp, cp)).astype(jnp.bfloat16)

    def vec(v, cp):
        return _pad_to(v.astype(jnp.float32)[None, :], (1, cp))

    # (out,in,3,3) -> (kh,kw,in,out) -> (9, Cp, Cp) -> (9*Cp, Cp), tap-major K
    w2 = jnp.transpose(params["w2"], (2, 3, 1, 0)).reshape(9, planes, planes)
    w2 = _pad_to(w2, (9, pln_p, pln_p)).astype(jnp.bfloat16)

    pp = dict(
        in_planes=in_planes, planes=planes, cout=cout, stride=stride,
        cin_p=cin_p, pln_p=pln_p, co_p=co_p,
        has_sc_conv=(stride != 1 or in_planes != cout),
        w1=mat1x1(params["w1"], cin_p, pln_p),
        w2_flat=w2.reshape(9 * pln_p, pln_p),
        w3=mat1x1(params["w3"], pln_p, co_p),
        g1=vec(params["g1"], pln_p), b1=vec(params["b1"], pln_p),
        g2=vec(params["g2"], pln_p), b2=vec(params["b2"], pln_p),
        g3=vec(params["g3"], co_p), b3=vec(params["b3"], co_p),
    )
    if pp["has_sc_conv"]:
        pp["ws"] = mat1x1(params["ws"], cin_p, co_p)
        pp["gs"] = vec(params["gs"], co_p)
        pp["bs"] = vec(params["bs"], co_p)
    return pp


# ----------------------------------------------------------------------------
# forward pass
# ----------------------------------------------------------------------------
def _im2col_3x3(x_nhwc, stride):
    """Fallback for stride != 1: strided 3x3 patches as (N*Ho*Wo, 9*C)."""
    n, h, w, c = x_nhwc.shape
    xp = jnp.pad(x_nhwc, ((0, 0), (1, 1), (1, 1), (0, 0)))
    ho = (h - 1) // stride + 1
    wo = (w - 1) // stride + 1
    taps = [xp[:, dh:dh + (ho - 1) * stride + 1:stride,
               dw:dw + (wo - 1) * stride + 1:stride, :]
            for dh in range(3) for dw in range(3)]
    return jnp.concatenate(taps, axis=-1).reshape(n * ho * wo, 9 * c), ho, wo


def bottleneck_forward_nhwc(x_nhwc, pp):
    """Bottleneck forward on NHWC activations (keep NHWC across a network)."""
    n, h, w, _ = x_nhwc.shape
    stride = pp["stride"]
    cin_p, pln_p, co_p = pp["cin_p"], pp["pln_p"], pp["co_p"]
    ho = (h - 1) // stride + 1
    wo = (w - 1) // stride + 1

    xb = _pad_to(x_nhwc.astype(jnp.bfloat16), (n, h, w, cin_p))

    r1 = n * h * w
    tile1, rp1 = _tile_rows(r1)
    x_rows = _pad_rows(xb.reshape(r1, cin_p), rp1)

    # --- stage 1: conv1 (1x1) + BN1 partial stats (apply fused downstream) ---
    y1, st1 = _matmul_stats(x_rows, pp["w1"], tile1)            # bf16 rows
    sc1, bi1 = _bn_coeffs(st1, r1, pp["g1"], pp["b1"])

    # --- stage 2: bn1+relu fused into conv2 (3x3, pad=1) + BN2 stats --------
    r2 = n * ho * wo
    tile2, rp2 = _tile_rows(r2)
    if stride == 1:
        y1_img = y1[:r1].reshape(n, h, w, pln_p)
        y2_img, st2 = _bn1_relu_conv3x3_stats(y1_img, sc1, bi1, pp["w2_flat"])
        hwp = y2_img.shape[1]
        if hwp == h * w:
            y2 = y2_img.reshape(r2, pln_p)
        else:
            y2 = y2_img[:, :h * w, :].reshape(r2, pln_p)
        y2 = _pad_rows(y2, rp2)
    else:
        # TODO(synk): fold stride into the fused 3x3 tap loop; for now the
        # strided path applies bn1 separately and uses an XLA im2col.
        out1 = _bn_act(y1, sc1, bi1, relu=True, out_dtype=jnp.bfloat16,
                       tile_m=tile1)
        out1_img = out1[:r1].reshape(n, h, w, pln_p)
        cols, _, _ = _im2col_3x3(out1_img, stride)
        y2, st2 = _matmul_stats(_pad_rows(cols, rp2), pp["w2_flat"], tile2)
    sc2, bi2 = _bn_coeffs(st2, r2, pp["g2"], pp["b2"])

    # --- shortcut ------------------------------------------------------------
    if pp["has_sc_conv"]:
        xs = xb[:, ::stride, ::stride, :].reshape(r2, cin_p)
        ys, sts = _matmul_stats(_pad_rows(xs, rp2), pp["ws"], tile2)  # bf16
        scs, bis = _bn_coeffs(sts, r2, pp["gs"], pp["bs"])
        identity = False
    else:
        # identity: reuse the channel-padded bf16 input rows directly
        ys = _pad_rows(xb.reshape(r1, co_p), rp2)
        scs = jnp.ones((1, co_p), jnp.float32)
        bis = jnp.zeros((1, co_p), jnp.float32)
        identity = True

    # --- stage 3: (bn2+relu fused with conv3) -> bn3 + shortcut + relu -------
    y3, st3 = _bn_relu_matmul_stats(y2, sc2, bi2, pp["w3"], tile2,
                                    valid_rows=r2)
    sc3, bi3 = _bn_coeffs(st3, r2, pp["g3"], pp["b3"])
    out = _bn_add_relu(y3, sc3, bi3, ys, scs, bis, tile2, identity=identity)

    return out[:r2, :pp["cout"]].reshape(n, ho, wo, pp["cout"])


def bottleneck_forward(x_nchw, pp):
    """PyTorch-facing NCHW wrapper (a full network should stay NHWC/bf16)."""
    x_nhwc = jnp.transpose(x_nchw, (0, 2, 3, 1))
    out = bottleneck_forward_nhwc(x_nhwc, pp)
    return jnp.transpose(out, (0, 3, 1, 2))


# ----------------------------------------------------------------------------
# pure-JAX reference (independent lowering; bf16 conv operands, f32 BN)
# ----------------------------------------------------------------------------
def _ref_bottleneck(x, params, stride):
    def bn(y, g, b):
        mean = jnp.mean(y, axis=(0, 2, 3), keepdims=True)
        var = jnp.mean(jnp.square(y - mean), axis=(0, 2, 3), keepdims=True)
        return (y - mean) * jax.lax.rsqrt(var + EPS) * g.reshape(1, -1, 1, 1) \
            + b.reshape(1, -1, 1, 1)

    def conv(y, w, s, pad):
        return jax.lax.conv_general_dilated(
            y.astype(jnp.bfloat16), w.astype(jnp.bfloat16), (s, s), pad,
            dimension_numbers=("NCHW", "OIHW", "NCHW"),
            preferred_element_type=jnp.float32)

    out = jax.nn.relu(bn(conv(x, params["w1"], 1, "VALID"),
                         params["g1"], params["b1"]))
    out = jax.nn.relu(bn(conv(out, params["w2"], stride, [(1, 1), (1, 1)]),
                         params["g2"], params["b2"]))
    out = bn(conv(out, params["w3"], 1, "VALID"), params["g3"], params["b3"])
    cout = params["w3"].shape[0]
    if stride != 1 or x.shape[1] != cout:
        sc = bn(conv(x, params["ws"], stride, "VALID"),
                params["gs"], params["bs"])
    else:
        sc = x
    return jax.nn.relu(out + sc)


def make_params(key, in_planes, planes):
    cout = EXPANSION * planes
    ks = jax.random.split(key, 12)
    return {
        "w1": jax.random.normal(ks[0], (planes, in_planes, 1, 1), jnp.float32) * 0.2,
        "w2": jax.random.normal(ks[1], (planes, planes, 3, 3), jnp.float32) * 0.2,
        "w3": jax.random.normal(ks[2], (cout, planes, 1, 1), jnp.float32) * 0.2,
        "ws": jax.random.normal(ks[3], (cout, in_planes, 1, 1), jnp.float32) * 0.2,
        "g1": 1.0 + 0.1 * jax.random.normal(ks[4], (planes,), jnp.float32),
        "b1": 0.1 * jax.random.normal(ks[5], (planes,), jnp.float32),
        "g2": 1.0 + 0.1 * jax.random.normal(ks[6], (planes,), jnp.float32),
        "b2": 0.1 * jax.random.normal(ks[7], (planes,), jnp.float32),
        "g3": 1.0 + 0.1 * jax.random.normal(ks[8], (cout,), jnp.float32),
        "b3": 0.1 * jax.random.normal(ks[9], (cout,), jnp.float32),
        "gs": 1.0 + 0.1 * jax.random.normal(ks[10], (cout,), jnp.float32),
        "bs": 0.1 * jax.random.normal(ks[11], (cout,), jnp.float32),
    }


if __name__ == "__main__":
    configs = [
        # (name, in_planes, planes, stride, H=W)
        ("conv shortcut, stride=1", 4, 4, 1, 16),
        ("identity shortcut, stride=1", 16, 4, 1, 16),
        ("conv shortcut, stride=2 (im2col fallback)", 4, 4, 2, 16),
        ("conv shortcut, stride=1, 24x24 non-pow2 rows", 4, 4, 1, 24),
    ]
    n = 2
    key = jax.random.PRNGKey(0)
    for name, in_planes, planes, stride, hw in configs:
        key, kx, kp = jax.random.split(key, 3)
        x = jax.random.normal(kx, (n, in_planes, hw, hw), jnp.float32)
        params = make_params(kp, in_planes, planes)
        pp = prepare_params(params, stride)          # hoisted weight prep
        fwd = jax.jit(functools.partial(bottleneck_forward, pp=pp))
        out = jax.block_until_ready(fwd(x))
        ref = jax.block_until_ready(_ref_bottleneck(x, params, stride))
        ho = (hw - 1) // stride + 1
        assert out.shape == (n, EXPANSION * planes, ho, ho), (name, out.shape)
        # Intermediates (y1/y2/y3/ys) are deliberately stored as bf16, so use
        # an atol/rtol check sized by bf16 rounding of O(1..8) activations.
        err_abs = jnp.abs(out - ref)
        ok = bool(jnp.all(err_abs <= 4e-2 + 2e-2 * jnp.abs(ref)))
        assert ok, (name, float(jnp.max(err_abs)))
    print("KERNEL_OK")
</pallas_src>

<mosaic_0001>
module attributes {stable_mosaic.version = 11 : i64} {
  func.func @_matmul_stats_kernel(%arg0: i32, %arg1: memref<512x128xbf16, #tpu.memory_space<vmem>>, %arg2: memref<128x128xbf16, #tpu.memory_space<vmem>>, %arg3: memref<512x128xbf16, #tpu.memory_space<vmem>>, %arg4: memref<1x2x128xf32, #tpu.memory_space<vmem>>) attributes {dimension_semantics = [#tpu.dimension_semantics<parallel>], iteration_bounds = array<i64: 1>, scalar_prefetch = 0 : i64, scratch_operands = 0 : i64, tpu.core_type = #tpu.core_type<tc>, window_params = [{transform_indices = @transform_0, window_bounds = array<i64: 512, 128>}, {pipeline_mode = #tpu.pipeline_mode<synchronous>, transform_indices = @transform_1, window_bounds = array<i64: 128, 128>}, {transform_indices = @transform_2, window_bounds = array<i64: 512, 128>}, {transform_indices = @transform_3, window_bounds = array<i64: 1, 2, 128>}]} {
    %c0 = arith.constant 0 : index
    %c0_0 = arith.constant 0 : index
    %0 = vector.load %arg1[%c0, %c0_0] : memref<512x128xbf16, #tpu.memory_space<vmem>>, vector<512x128xbf16>
    %c0_1 = arith.constant 0 : index
    %c0_2 = arith.constant 0 : index
    %1 = vector.load %arg2[%c0_1, %c0_2] : memref<128x128xbf16, #tpu.memory_space<vmem>>, vector<128x128xbf16>
    %cst = arith.constant dense<0.000000e+00> : vector<512x128xf32>
    %2 = tpu.matmul %0, %1, %cst {dimension_numbers = #tpu.dot_dimension_numbers<[1], [0], [0], [1], [0, 0, 1, 1], [], []>} : vector<512x128xbf16>, vector<128x128xbf16>, vector<512x128xf32> -> vector<512x128xf32>
    %cst_3 = arith.constant dense<0.000000e+00> : vector<128xf32>
    %3 = vector.multi_reduction <add>, %2, %cst_3 [0] : vector<512x128xf32> to vector<128xf32>
    %4 = vector.shape_cast %3 : vector<128xf32> to vector<1x128xf32>
    %5 = arith.mulf %2, %2 : vector<512x128xf32>
    %cst_4 = arith.constant dense<0.000000e+00> : vector<128xf32>
    %6 = vector.multi_reduction <add>, %5, %cst_4 [0] : vector<512x128xf32> to vector<128xf32>
    %7 = vector.shape_cast %6 : vector<128xf32> to vector<1x128xf32>
    %8 = tpu.concatenate %4, %7 in 0 : vector<1x128xf32>, vector<1x128xf32> -> vector<2x128xf32>
    %c0_5 = arith.constant 0 : index
    %c0_6 = arith.constant 0 : index
    %c0_7 = arith.constant 0 : index
    %9 = vector.load %arg4[%c0_5, %c0_6, %c0_7] : memref<1x2x128xf32, #tpu.memory_space<vmem>>, vector<1x2x128xf32>
    %10 = vector.shape_cast %9 : vector<1x2x128xf32> to vector<2x128xf32>
    %11 = vector.shape_cast %8 : vector<2x128xf32> to vector<1x2x128xf32>
    tpu.vector_store %arg4[%c0_5, %c0_6, %c0_7], %11 {strides = array<i32>} : memref<1x2x128xf32, #tpu.memory_space<vmem>>, vector<1x2x128xf32>,
    %12 = arith.truncf %2 : vector<512x128xf32> to vector<512x128xbf16>
    %c0_8 = arith.constant 0 : index
    %c0_9 = arith.constant 0 : index
    %13 = vector.load %arg3[%c0_8, %c0_9] : memref<512x128xbf16, #tpu.memory_space<vmem>>, vector<512x128xbf16>
    tpu.vector_store %arg3[%c0_8, %c0_9], %12 {strides = array<i32>} : memref<512x128xbf16, #tpu.memory_space<vmem>>, vector<512x128xbf16>,
    return
  }
  func.func @transform_0(%arg0: i32) -> (i32, i32) {
    %c0_i32 = arith.constant 0 : i32
    %c0_i32_0 = arith.constant 0 : i32
    return %arg0, %c0_i32 : i32, i32
  }
  func.func @transform_1(%arg0: i32) -> (i32, i32) {
    %c0_i32 = arith.constant 0 : i32
    %c0_i32_0 = arith.constant 0 : i32
    %c0_i32_1 = arith.constant 0 : i32
    return %c0_i32, %c0_i32_0 : i32, i32
  }
  func.func @transform_2(%arg0: i32) -> (i32, i32) {
    %c0_i32 = arith.constant 0 : i32
    %c0_i32_0 = arith.constant 0 : i32
    return %arg0, %c0_i32 : i32, i32
  }
  func.func @transform_3(%arg0: i32) -> (i32, i32, i32) {
    %c0_i32 = arith.constant 0 : i32
    %c0_i32_0 = arith.constant 0 : i32
    %c0_i32_1 = arith.constant 0 : i32
    return %arg0, %c0_i32, %c0_i32_0 : i32, i32, i32
  }
}

module attributes {stable_mosaic.version = 11 : i64} {
  func.func @_bn1_relu_conv3x3_stats_kernel(%arg0: i32, %arg1: memref<1x16x16x128xbf16, #tpu.memory_space<vmem>>, %arg2: memref<1x128xf32, #tpu.memory_space<vmem>>, %arg3: memref<1x128xf32, #tpu.memory_space<vmem>>, %arg4: memref<1152x128xbf16, #tpu.memory_space<vmem>>, %arg5: memref<1x256x128xbf16, #tpu.memory_space<vmem>>, %arg6: memref<1x2x128xf32, #tpu.memory_space<vmem>>, %arg7: memref<18x18x128xbf16, #tpu.memory_space<vmem>>, %arg8: memref<256x1152xbf16, #tpu.memory_space<vmem>>) attributes {dimension_semantics = [#tpu.dimension_semantics<parallel>], iteration_bounds = array<i64: 2>, scalar_prefetch = 0 : i64, scratch_operands = 2 : i64, tpu.core_type = #tpu.core_type<tc>, window_params = [{transform_indices = @transform_0, window_bounds = array<i64: 1, 16, 16, 128>}, {pipeline_mode = #tpu.pipeline_mode<synchronous>, transform_indices = @transform_1, window_bounds = array<i64: 1, 128>}, {pipeline_mode = #tpu.pipeline_mode<synchronous>, transform_indices = @transform_2, window_bounds = array<i64: 1, 128>}, {pipeline_mode = #tpu.pipeline_mode<synchronous>, transform_indices = @transform_3, window_bounds = array<i64: 1152, 128>}, {transform_indices = @transform_4, window_bounds = array<i64: 1, 256, 128>}, {transform_indices = @transform_5, window_bounds = array<i64: 1, 2, 128>}]} {
    %c0 = arith.constant 0 : index
    %c0_0 = arith.constant 0 : index
    %c0_1 = arith.constant 0 : index
    %c0_2 = arith.constant 0 : index
    %0 = vector.load %arg1[%c0, %c0_0, %c0_1, %c0_2] : memref<1x16x16x128xbf16, #tpu.memory_space<vmem>>, vector<1x16x16x128xbf16>
    %1 = vector.shape_cast %0 : vector<1x16x16x128xbf16> to vector<16x16x128xbf16>
    %2 = arith.extf %1 : vector<16x16x128xbf16> to vector<16x16x128xf32>
    %c0_3 = arith.constant 0 : index
    %c0_4 = arith.constant 0 : index
    %3 = vector.load %arg2[%c0_3, %c0_4] : memref<1x128xf32, #tpu.memory_space<vmem>>, vector<1x128xf32>
    %4 = vector.shape_cast %3 : vector<1x128xf32> to vector<1x1x128xf32>
    %5 = vector.broadcast %4 : vector<1x1x128xf32> to vector<16x16x128xf32>
    %6 = arith.mulf %2, %5 : vector<16x16x128xf32>
    %c0_5 = arith.constant 0 : index
    %c0_6 = arith.constant 0 : index
    %7 = vector.load %arg3[%c0_5, %c0_6] : memref<1x128xf32, #tpu.memory_space<vmem>>, vector<1x128xf32>
    %8 = vector.shape_cast %7 : vector<1x128xf32> to vector<1x1x128xf32>
    %9 = vector.broadcast %8 : vector<1x1x128xf32> to vector<16x16x128xf32>
    %10 = arith.addf %6, %9 : vector<16x16x128xf32>
    %cst = arith.constant 0.000000e+00 : f32
    %11 = vector.broadcast %cst : f32 to vector<16x16x128xf32>
    %12 = arith.maximumf %10, %11 : vector<16x16x128xf32>
    %13 = arith.truncf %12 : vector<16x16x128xf32> to vector<16x16x128xbf16>
    %cst_7 = arith.constant 0.000000e+00 : bf16
    %14 = vector.broadcast %cst_7 : bf16 to vector<18x18x128xbf16>
    %c0_8 = arith.constant 0 : index
    %c0_9 = arith.constant 0 : index
    %c0_10 = arith.constant 0 : index
    %15 = vector.load %arg7[%c0_8, %c0_9, %c0_10] : memref<18x18x128xbf16, #tpu.memory_space<vmem>>, vector<18x18x128xbf16>
    tpu.vector_store %arg7[%c0_8, %c0_9, %c0_10], %14 {strides = array<i32>} : memref<18x18x128xbf16, #tpu.memory_space<vmem>>, vector<18x18x128xbf16>,
    %c1 = arith.constant 1 : index
    %c1_11 = arith.constant 1 : index
    %c0_12 = arith.constant 0 : index
    %16 = vector.load %arg7[%c1, %c1_11, %c0_12] : memref<18x18x128xbf16, #tpu.memory_space<vmem>>, vector<16x16x128xbf16>
    tpu.vector_store %arg7[%c1, %c1_11, %c0_12], %13 {strides = array<i32>} : memref<18x18x128xbf16, #tpu.memory_space<vmem>>, vector<16x16x128xbf16>,
    %c0_13 = arith.constant 0 : index
    %c0_14 = arith.constant 0 : index
    %c0_15 = arith.constant 0 : index
    %17 = vector.load %arg7[%c0_13, %c0_14, %c0_15] : memref<18x18x128xbf16, #tpu.memory_space<vmem>>, vector<16x16x128xbf16>
    %18 = vector.shape_cast %17 : vector<16x16x128xbf16> to vector<256x128xbf16>
    %c0_16 = arith.constant 0 : index
    %c0_17 = arith.constant 0 : index
    %19 = vector.load %arg8[%c0_16, %c0_17] : memref<256x1152xbf16, #tpu.memory_space<vmem>>, vector<256x128xbf16>
    tpu.vector_store %arg8[%c0_16, %c0_17], %18 {strides = array<i32>} : memref<256x1152xbf16, #tpu.memory_space<vmem>>, vector<256x128xbf16>,
    %c0_18 = arith.constant 0 : index
    %c1_19 = arith.constant 1 : index
    %c0_20 = arith.constant 0 : index
    %20 = vector.load %arg7[%c0_18, %c1_19, %c0_20] : memref<18x18x128xbf16, #tpu.memory_space<vmem>>, vector<16x16x128xbf16>
    %21 = vector.shape_cast %20 : vector<16x16x128xbf16> to vector<256x128xbf16>
    %c0_21 = arith.constant 0 : index
    %c128 = arith.constant 128 : index
    %22 = vector.load %arg8[%c0_21, %c128] : memref<256x1152xbf16, #tpu.memory_space<vmem>>, vector<256x128xbf16>
    tpu.vector_store %arg8[%c0_21, %c128], %21 {strides = array<i32>} : memref<256x1152xbf16, #tpu.memory_space<vmem>>, vector<256x128xbf16>,
    %c0_22 = arith.constant 0 : index
    %c2 = arith.constant 2 : index
    %c0_23 = arith.constant 0 : index
    %23 = vector.load %arg7[%c0_22, %c2, %c0_23] : memref<18x18x128xbf16, #tpu.memory_space<vmem>>, vector<16x16x128xbf16>
    %24 = vector.shape_cast %23 : vector<16x16x128xbf16> to vector<256x128xbf16>
    %c0_24 = arith.constant 0 : index
    %c256 = arith.constant 256 : index
    %25 = vector.load %arg8[%c0_24, %c256] : memref<256x1152xbf16, #tpu.memory_space<vmem>>, vector<256x128xbf16>
    tpu.vector_store %arg8[%c0_24, %c256], %24 {strides = array<i32>} : memref<256x1152xbf16, #tpu.memory_space<vmem>>, vector<256x128xbf16>,
    %c1_25 = arith.constant 1 : index
    %c0_26 = arith.constant 0 : index
    %c0_27 = arith.constant 0 : index
    %26 = vector.load %arg7[%c1_25, %c0_26, %c0_27] : memref<18x18x128xbf16, #tpu.memory_space<vmem>>, vector<16x16x128xbf16>
    %27 = vector.shape_cast %26 : vector<16x16x128xbf16> to vector<256x128xbf16>
    %c0_28 = arith.constant 0 : index
    %c384 = arith.constant 384 : index
    %28 = vector.load %arg8[%c0_28, %c384] : memref<256x1152xbf16, #tpu.memory_space<vmem>>, vector<256x128xbf16>
    tpu.vector_store %arg8[%c0_28, %c384], %27 {strides = array<i32>} : memref<256x1152xbf16, #tpu.memory_space<vmem>>, vector<256x128xbf16>,
    %c1_29 = arith.constant 1 : index
    %c1_30 = arith.constant 1 : index
    %c0_31 = arith.constant 0 : index
    %29 = vector.load %arg7[%c1_29, %c1_30, %c0_31] : memref<18x18x128xbf16, #tpu.memory_space<vmem>>, vector<16x16x128xbf16>
    %30 = vector.shape_cast %29 : vector<16x16x128xbf16> to vector<256x128xbf16>
    %c0_32 = arith.constant 0 : index
    %c512 = arith.constant 512 : index
    %31 = vector.load %arg8[%c0_32, %c512] : memref<256x1152xbf16, #tpu.memory_space<vmem>>, vector<256x128xbf16>
    tpu.vector_store %arg8[%c0_32, %c512], %30 {strides = array<i32>} : memref<256x1152xbf16, #tpu.memory_space<vmem>>, vector<256x128xbf16>,
    %c1_33 = arith.constant 1 : index
    %c2_34 = arith.constant 2 : index
    %c0_35 = arith.constant 0 : index
    %32 = vector.load %arg7[%c1_33, %c2_34, %c0_35] : memref<18x18x128xbf16, #tpu.memory_space<vmem>>, vector<16x16x128xbf16>
    %33 = vector.shape_cast %32 : vector<16x16x128xbf16> to vector<256x128xbf16>
    %c0_36 = arith.constant 0 : index
    %c640 = arith.constant 640 : index
    %34 = vector.load %arg8[%c0_36, %c640] : memref<256x1152xbf16, #tpu.memory_space<vmem>>, vector<256x128xbf16>
    tpu.vector_store %arg8[%c0_36, %c640], %33 {strides = array<i32>} : memref<256x1152xbf16, #tpu.memory_space<vmem>>, vector<256x128xbf16>,
    %c2_37 = arith.constant 2 : index
    %c0_38 = arith.constant 0 : index
    %c0_39 = arith.constant 0 : index
    %35 = vector.load %arg7[%c2_37, %c0_38, %c0_39] : memref<18x18x128xbf16, #tpu.memory_space<vmem>>, vector<16x16x128xbf16>
    %36 = vector.shape_cast %35 : vector<16x16x128xbf16> to vector<256x128xbf16>
    %c0_40 = arith.constant 0 : index
    %c768 = arith.constant 768 : index
    %37 = vector.load %arg8[%c0_40, %c768] : memref<256x1152xbf16, #tpu.memory_space<vmem>>, vector<256x128xbf16>
    tpu.vector_store %arg8[%c0_40, %c768], %36 {strides = array<i32>} : memref<256x1152xbf16, #tpu.memory_space<vmem>>, vector<256x128xbf16>,
    %c2_41 = arith.constant 2 : index
    %c1_42 = arith.constant 1 : index
    %c0_43 = arith.constant 0 : index
    %38 = vector.load %arg7[%c2_41, %c1_42, %c0_43] : memref<18x18x128xbf16, #tpu.memory_space<vmem>>, vector<16x16x128xbf16>
    %39 = vector.shape_cast %38 : vector<16x16x128xbf16> to vector<256x128xbf16>
    %c0_44 = arith.constant 0 : index
    %c896 = arith.constant 896 : index
    %40 = vector.load %arg8[%c0_44, %c896] : memref<256x1152xbf16, #tpu.memory_space<vmem>>, vector<256x128xbf16>
    tpu.vector_store %arg8[%c0_44, %c896], %39 {strides = array<i32>} : memref<256x1152xbf16, #tpu.memory_space<vmem>>, vector<256x128xbf16>,
    %c2_45 = arith.constant 2 : index
    %c2_46 = arith.constant 2 : index
    %c0_47 = arith.constant 0 : index
    %41 = vector.load %arg7[%c2_45, %c2_46, %c0_47] : memref<18x18x128xbf16, #tpu.memory_space<vmem>>, vector<16x16x128xbf16>
    %42 = vector.shape_cast %41 : vector<16x16x128xbf16> to vector<256x128xbf16>
    %c0_48 = arith.constant 0 : index
    %c1024 = arith.constant 1024 : index
    %43 = vector.load %arg8[%c0_48, %c1024] : memref<256x1152xbf16, #tpu.memory_space<vmem>>, vector<256x128xbf16>
    tpu.vector_store %arg8[%c0_48, %c1024], %42 {strides = array<i32>} : memref<256x1152xbf16, #tpu.memory_space<vmem>>, vector<256x128xbf16>,
    %c0_49 = arith.constant 0 : index
    %c0_50 = arith.constant 0 : index
    %44 = vector.load %arg8[%c0_49, %c0_50] : memref<256x1152xbf16, #tpu.memory_space<vmem>>, vector<256x1152xbf16>
    %c0_51 = arith.constant 0 : index
    %c0_52 = arith.constant 0 : index
    %45 = vector.load %arg4[%c0_51, %c0_52] : memref<1152x128xbf16, #tpu.memory_space<vmem>>, vector<1152x128xbf16>
    %cst_53 = arith.constant dense<0.000000e+00> : vector<256x128xf32>
    %46 = tpu.matmul %44, %45, %cst_53 {dimension_numbers = #tpu.dot_dimension_numbers<[1], [0], [0], [1], [0, 0, 1, 1], [], []>} : vector<256x1152xbf16>, vector<1152x128xbf16>, vector<256x128xf32> -> vector<256x128xf32>
    %cst_54 = arith.constant dense<0.000000e+00> : vector<128xf32>
    %47 = vector.multi_reduction <add>, %46, %cst_54 [0] : vector<256x128xf32> to vector<128xf32>
    %48 = vector.shape_cast %47 : vector<128xf32> to vector<1x128xf32>
    %49 = arith.mulf %46, %46 : vector<256x128xf32>
    %cst_55 = arith.constant dense<0.000000e+00> : vector<128xf32>
    %50 = vector.multi_reduction <add>, %49, %cst_55 [0] : vector<256x128xf32> to vector<128xf32>
    %51 = vector.shape_cast %50 : vector<128xf32> to vector<1x128xf32>
    %52 = tpu.concatenate %48, %51 in 0 : vector<1x128xf32>, vector<1x128xf32> -> vector<2x128xf32>
    %c0_56 = arith.constant 0 : index
    %c0_57 = arith.constant 0 : index
    %c0_58 = arith.constant 0 : index
    %53 = vector.load %arg6[%c0_56, %c0_57, %c0_58] : memref<1x2x128xf32, #tpu.memory_space<vmem>>, vector<1x2x128xf32>
    %54 = vector.shape_cast %53 : vector<1x2x128xf32> to vector<2x128xf32>
    %55 = vector.shape_cast %52 : vector<2x128xf32> to vector<1x2x128xf32>
    tpu.vector_store %arg6[%c0_56, %c0_57, %c0_58], %55 {strides = array<i32>} : memref<1x2x128xf32, #tpu.memory_space<vmem>>, vector<1x2x128xf32>,
    %56 = arith.truncf %46 : vector<256x128xf32> to vector<256x128xbf16>
    %c0_59 = arith.constant 0 : index
    %c0_60 = arith.constant 0 : index
    %c0_61 = arith.constant 0 : index
    %57 = vector.load %arg5[%c0_59, %c0_60, %c0_61] : memref<1x256x128xbf16, #tpu.memory_space<vmem>>, vector<1x256x128xbf16>
    %58 = vector.shape_cast %57 : vector<1x256x128xbf16> to vector<256x128xbf16>
    %59 = vector.shape_cast %56 : vector<256x128xbf16> to vector<1x256x128xbf16>
    tpu.vector_store %arg5[%c0_59, %c0_60, %c0_61], %59 {strides = array<i32>} : memref<1x256x128xbf16, #tpu.memory_space<vmem>>, vector<1x256x128xbf16>,
    return
  }
  func.func @transform_0(%arg0: i32) -> (i32, i32, i32, i32) {
    %c0_i32 = arith.constant 0 : i32
    %c0_i32_0 = arith.constant 0 : i32
    %c0_i32_1 = arith.constant 0 : i32
    %c0_i32_2 = arith.constant 0 : i32
    return %arg0, %c0_i32, %c0_i32_0, %c0_i32_1 : i32, i32, i32, i32
  }
  func.func @transform_1(%arg0: i32) -> (i32, i32) {
    %c0_i32 = arith.constant 0 : i32
    %c0_i32_0 = arith.constant 0 : i32
    %c0_i32_1 = arith.constant 0 : i32
    return %c0_i32, %c0_i32_0 : i32, i32
  }
  func.func @transform_2(%arg0: i32) -> (i32, i32) {
    %c0_i32 = arith.constant 0 : i32
    %c0_i32_0 = arith.constant 0 : i32
    %c0_i32_1 = arith.constant 0 : i32
    return %c0_i32, %c0_i32_0 : i32, i32
  }
  func.func @transform_3(%arg0: i32) -> (i32, i32) {
    %c0_i32 = arith.constant 0 : i32
    %c0_i32_0 = arith.constant 0 : i32
    %c0_i32_1 = arith.constant 0 : i32
    return %c0_i32, %c0_i32_0 : i32, i32
  }
  func.func @transform_4(%arg0: i32) -> (i32, i32, i32) {
    %c0_i32 = arith.constant 0 : i32
    %c0_i32_0 = arith.constant 0 : i32
    %c0_i32_1 = arith.constant 0 : i32
    return %arg0, %c0_i32, %c0_i32_0 : i32, i32, i32
  }
  func.func @transform_5(%arg0: i32) -> (i32, i32, i32) {
    %c0_i32 = arith.constant 0 : i32
    %c0_i32_0 = arith.constant 0 : i32
    %c0_i32_1 = arith.constant 0 : i32
    return %arg0, %c0_i32, %c0_i32_0 : i32, i32, i32
  }
}

module attributes {stable_mosaic.version = 11 : i64} {
  func.func @_bn_add_relu_kernel(%arg0: i32, %arg1: memref<512x128xbf16, #tpu.memory_space<vmem>>, %arg2: memref<1x128xf32, #tpu.memory_space<vmem>>, %arg3: memref<1x128xf32, #tpu.memory_space<vmem>>, %arg4: memref<512x128xbf16, #tpu.memory_space<vmem>>, %arg5: memref<1x128xf32, #tpu.memory_space<vmem>>, %arg6: memref<1x128xf32, #tpu.memory_space<vmem>>, %arg7: memref<512x128xf32, #tpu.memory_space<vmem>>) attributes {dimension_semantics = [#tpu.dimension_semantics<parallel>], iteration_bounds = array<i64: 1>, scalar_prefetch = 0 : i64, scratch_operands = 0 : i64, tpu.core_type = #tpu.core_type<tc>, window_params = [{transform_indices = @transform_0, window_bounds = array<i64: 512, 128>}, {pipeline_mode = #tpu.pipeline_mode<synchronous>, transform_indices = @transform_1, window_bounds = array<i64: 1, 128>}, {pipeline_mode = #tpu.pipeline_mode<synchronous>, transform_indices = @transform_2, window_bounds = array<i64: 1, 128>}, {transform_indices = @transform_3, window_bounds = array<i64: 512, 128>}, {pipeline_mode = #tpu.pipeline_mode<synchronous>, transform_indices = @transform_4, window_bounds = array<i64: 1, 128>}, {pipeline_mode = #tpu.pipeline_mode<synchronous>, transform_indices = @transform_5, window_bounds = array<i64: 1, 128>}, {transform_indices = @transform_6, window_bounds = array<i64: 512, 128>}]} {
    %c0 = arith.constant 0 : index
    %c0_0 = arith.constant 0 : index
    %0 = vector.load %arg1[%c0, %c0_0] : memref<512x128xbf16, #tpu.memory_space<vmem>>, vector<512x128xbf16>
    %1 = arith.extf %0 : vector<512x128xbf16> to vector<512x128xf32>
    %c0_1 = arith.constant 0 : index
    %c0_2 = arith.constant 0 : index
    %2 = vector.load %arg2[%c0_1, %c0_2] : memref<1x128xf32, #tpu.memory_space<vmem>>, vector<1x128xf32>
    %3 = vector.broadcast %2 : vector<1x128xf32> to vector<512x128xf32>
    %4 = arith.mulf %1, %3 : vector<512x128xf32>
    %c0_3 = arith.constant 0 : index
    %c0_4 = arith.constant 0 : index
    %5 = vector.load %arg3[%c0_3, %c0_4] : memref<1x128xf32, #tpu.memory_space<vmem>>, vector<1x128xf32>
    %6 = vector.broadcast %5 : vector<1x128xf32> to vector<512x128xf32>
    %7 = arith.addf %4, %6 : vector<512x128xf32>
    %c0_5 = arith.constant 0 : index
    %c0_6 = arith.constant 0 : index
    %8 = vector.load %arg4[%c0_5, %c0_6] : memref<512x128xbf16, #tpu.memory_space<vmem>>, vector<512x128xbf16>
    %9 = arith.extf %8 : vector<512x128xbf16> to vector<512x128xf32>
    %c0_7 = arith.constant 0 : index
    %c0_8 = arith.constant 0 : index
    %10 = vector.load %arg5[%c0_7, %c0_8] : memref<1x128xf32, #tpu.memory_space<vmem>>, vector<1x128xf32>
    %11 = vector.broadcast %10 : vector<1x128xf32> to vector<512x128xf32>
    %12 = arith.mulf %9, %11 : vector<512x128xf32>
    %c0_9 = arith.constant 0 : index
    %c0_10 = arith.constant 0 : index
    %13 = vector.load %arg6[%c0_9, %c0_10] : memref<1x128xf32, #tpu.memory_space<vmem>>, vector<1x128xf32>
    %14 = vector.broadcast %13 : vector<1x128xf32> to vector<512x128xf32>
    %15 = arith.addf %12, %14 : vector<512x128xf32>
    %16 = arith.addf %7, %15 : vector<512x128xf32>
    %cst = arith.constant 0.000000e+00 : f32
    %17 = vector.broadcast %cst : f32 to vector<512x128xf32>
    %18 = arith.maximumf %16, %17 : vector<512x128xf32>
    %c0_11 = arith.constant 0 : index
    %c0_12 = arith.constant 0 : index
    %19 = vector.load %arg7[%c0_11, %c0_12] : memref<512x128xf32, #tpu.memory_space<vmem>>, vector<512x128xf32>
    tpu.vector_store %arg7[%c0_11, %c0_12], %18 {strides = array<i32>} : memref<512x128xf32, #tpu.memory_space<vmem>>, vector<512x128xf32>,
    return
  }
  func.func @transform_0(%arg0: i32) -> (i32, i32) {
    %c0_i32 = arith.constant 0 : i32
    %c0_i32_0 = arith.constant 0 : i32
    return %arg0, %c0_i32 : i32, i32
  }
  func.func @transform_1(%arg0: i32) -> (i32, i32) {
    %c0_i32 = arith.constant 0 : i32
    %c0_i32_0 = arith.constant 0 : i32
    %c0_i32_1 = arith.constant 0 : i32
    return %c0_i32, %c0_i32_0 : i32, i32
  }
  func.func @transform_2(%arg0: i32) -> (i32, i32) {
    %c0_i32 = arith.constant 0 : i32
    %c0_i32_0 = arith.constant 0 : i32
    %c0_i32_1 = arith.constant 0 : i32
    return %c0_i32, %c0_i32_0 : i32, i32
  }
  func.func @transform_3(%arg0: i32) -> (i32, i32) {
    %c0_i32 = arith.constant 0 : i32
    %c0_i32_0 = arith.constant 0 : i32
    return %arg0, %c0_i32 : i32, i32
  }
  func.func @transform_4(%arg0: i32) -> (i32, i32) {
    %c0_i32 = arith.constant 0 : i32
    %c0_i32_0 = arith.constant 0 : i32
    %c0_i32_1 = arith.constant 0 : i32
    return %c0_i32, %c0_i32_0 : i32, i32
  }
  func.func @transform_5(%arg0: i32) -> (i32, i32) {
    %c0_i32 = arith.constant 0 : i32
    %c0_i32_0 = arith.constant 0 : i32
    %c0_i32_1 = arith.constant 0 : i32
    return %c0_i32, %c0_i32_0 : i32, i32
  }
  func.func @transform_6(%arg0: i32) -> (i32, i32) {
    %c0_i32 = arith.constant 0 : i32
    %c0_i32_0 = arith.constant 0 : i32
    return %arg0, %c0_i32 : i32, i32
  }
}

module attributes {stable_mosaic.version = 11 : i64} {
  func.func @_bn_relu_matmul_stats_kernel(%arg0: i32, %arg1: memref<512x128xbf16, #tpu.memory_space<vmem>>, %arg2: memref<1x128xf32, #tpu.memory_space<vmem>>, %arg3: memref<1x128xf32, #tpu.memory_space<vmem>>, %arg4: memref<128x128xbf16, #tpu.memory_space<vmem>>, %arg5: memref<512x128xbf16, #tpu.memory_space<vmem>>, %arg6: memref<1x2x128xf32, #tpu.memory_space<vmem>>) attributes {dimension_semantics = [#tpu.dimension_semantics<parallel>], iteration_bounds = array<i64: 1>, scalar_prefetch = 0 : i64, scratch_operands = 0 : i64, tpu.core_type = #tpu.core_type<tc>, window_params = [{transform_indices = @transform_0, window_bounds = array<i64: 512, 128>}, {pipeline_mode = #tpu.pipeline_mode<synchronous>, transform_indices = @transform_1, window_bounds = array<i64: 1, 128>}, {pipeline_mode = #tpu.pipeline_mode<synchronous>, transform_indices = @transform_2, window_bounds = array<i64: 1, 128>}, {pipeline_mode = #tpu.pipeline_mode<synchronous>, transform_indices = @transform_3, window_bounds = array<i64: 128, 128>}, {transform_indices = @transform_4, window_bounds = array<i64: 512, 128>}, {transform_indices = @transform_5, window_bounds = array<i64: 1, 2, 128>}]} {
    %c0 = arith.constant 0 : index
    %c0_0 = arith.constant 0 : index
    %0 = vector.load %arg1[%c0, %c0_0] : memref<512x128xbf16, #tpu.memory_space<vmem>>, vector<512x128xbf16>
    %1 = arith.extf %0 : vector<512x128xbf16> to vector<512x128xf32>
    %c0_1 = arith.constant 0 : index
    %c0_2 = arith.constant 0 : index
    %2 = vector.load %arg2[%c0_1, %c0_2] : memref<1x128xf32, #tpu.memory_space<vmem>>, vector<1x128xf32>
    %3 = vector.broadcast %2 : vector<1x128xf32> to vector<512x128xf32>
    %4 = arith.mulf %1, %3 : vector<512x128xf32>
    %c0_3 = arith.constant 0 : index
    %c0_4 = arith.constant 0 : index
    %5 = vector.load %arg3[%c0_3, %c0_4] : memref<1x128xf32, #tpu.memory_space<vmem>>, vector<1x128xf32>
    %6 = vector.broadcast %5 : vector<1x128xf32> to vector<512x128xf32>
    %7 = arith.addf %4, %6 : vector<512x128xf32>
    %cst = arith.constant 0.000000e+00 : f32
    %8 = vector.broadcast %cst : f32 to vector<512x128xf32>
    %9 = arith.maximumf %7, %8 : vector<512x128xf32>
    %10 = arith.truncf %9 : vector<512x128xf32> to vector<512x128xbf16>
    %c0_5 = arith.constant 0 : index
    %c0_6 = arith.constant 0 : index
    %11 = vector.load %arg4[%c0_5, %c0_6] : memref<128x128xbf16, #tpu.memory_space<vmem>>, vector<128x128xbf16>
    %cst_7 = arith.constant dense<0.000000e+00> : vector<512x128xf32>
    %12 = tpu.matmul %10, %11, %cst_7 {dimension_numbers = #tpu.dot_dimension_numbers<[1], [0], [0], [1], [0, 0, 1, 1], [], []>} : vector<512x128xbf16>, vector<128x128xbf16>, vector<512x128xf32> -> vector<512x128xf32>
    %cst_8 = arith.constant dense<0.000000e+00> : vector<128xf32>
    %13 = vector.multi_reduction <add>, %12, %cst_8 [0] : vector<512x128xf32> to vector<128xf32>
    %14 = vector.shape_cast %13 : vector<128xf32> to vector<1x128xf32>
    %15 = arith.mulf %12, %12 : vector<512x128xf32>
    %cst_9 = arith.constant dense<0.000000e+00> : vector<128xf32>
    %16 = vector.multi_reduction <add>, %15, %cst_9 [0] : vector<512x128xf32> to vector<128xf32>
    %17 = vector.shape_cast %16 : vector<128xf32> to vector<1x128xf32>
    %18 = tpu.concatenate %14, %17 in 0 : vector<1x128xf32>, vector<1x128xf32> -> vector<2x128xf32>
    %c0_10 = arith.constant 0 : index
    %c0_11 = arith.constant 0 : index
    %c0_12 = arith.constant 0 : index
    %19 = vector.load %arg6[%c0_10, %c0_11, %c0_12] : memref<1x2x128xf32, #tpu.memory_space<vmem>>, vector<1x2x128xf32>
    %20 = vector.shape_cast %19 : vector<1x2x128xf32> to vector<2x128xf32>
    %21 = vector.shape_cast %18 : vector<2x128xf32> to vector<1x2x128xf32>
    tpu.vector_store %arg6[%c0_10, %c0_11, %c0_12], %21 {strides = array<i32>} : memref<1x2x128xf32, #tpu.memory_space<vmem>>, vector<1x2x128xf32>,
    %22 = arith.truncf %12 : vector<512x128xf32> to vector<512x128xbf16>
    %c0_13 = arith.constant 0 : index
    %c0_14 = arith.constant 0 : index
    %23 = vector.load %arg5[%c0_13, %c0_14] : memref<512x128xbf16, #tpu.memory_space<vmem>>, vector<512x128xbf16>
    tpu.vector_store %arg5[%c0_13, %c0_14], %22 {strides = array<i32>} : memref<512x128xbf16, #tpu.memory_space<vmem>>, vector<512x128xbf16>,
    return
  }
  func.func @transform_0(%arg0: i32) -> (i32, i32) {
    %c0_i32 = arith.constant 0 : i32
    %c0_i32_0 = arith.constant 0 : i32
    return %arg0, %c0_i32 : i32, i32
  }
  func.func @transform_1(%arg0: i32) -> (i32, i32) {
    %c0_i32 = arith.constant 0 : i32
    %c0_i32_0 = arith.constant 0 : i32
    %c0_i32_1 = arith.constant 0 : i32
    return %c0_i32, %c0_i32_0 : i32, i32
  }
  func.func @transform_2(%arg0: i32) -> (i32, i32) {
    %c0_i32 = arith.constant 0 : i32
    %c0_i32_0 = arith.constant 0 : i32
    %c0_i32_1 = arith.constant 0 : i32
    return %c0_i32, %c0_i32_0 : i32, i32
  }
  func.func @transform_3(%arg0: i32) -> (i32, i32) {
    %c0_i32 = arith.constant 0 : i32
    %c0_i32_0 = arith.constant 0 : i32
    %c0_i32_1 = arith.constant 0 : i32
    return %c0_i32, %c0_i32_0 : i32, i32
  }
  func.func @transform_4(%arg0: i32) -> (i32, i32) {
    %c0_i32 = arith.constant 0 : i32
    %c0_i32_0 = arith.constant 0 : i32
    return %arg0, %c0_i32 : i32, i32
  }
  func.func @transform_5(%arg0: i32) -> (i32, i32, i32) {
    %c0_i32 = arith.constant 0 : i32
    %c0_i32_0 = arith.constant 0 : i32
    %c0_i32_1 = arith.constant 0 : i32
    return %arg0, %c0_i32, %c0_i32_0 : i32, i32, i32
  }
}

</mosaic_0001>

<bundles_post_ra>
// kernel: bottleneck_forward.7
= control target key start
LH: loop header
LB: loop body
LE: loop exit
PB: predicated region body
PF: predicated region fallthrough
CT: control target
= control target key end

     0   :  { %vm704_vm0 = vcmask 1040384   ;;  %s1785_s1 = inlined_call_operand.vmem [shape: bf16[128,128], index: 1, kind: input, shape index: {}]   ;;  %s1786_s0 = inlined_call_operand.vmem [shape: bf16[512,128], index: 0, kind: input, shape index: {}]   ;;  %s1787_s2 = inlined_call_operand.vmem [shape: bf16[512,128], index: 2, kind: output, shape index: {0}]   ;;  %s1788_s3 = inlined_call_operand.vmem [shape: f32[1,2,128], index: 3, kind: output, shape index: {1}]  }
   0x1   :  { %v1042_v0 = vld [vmem:[%s1785_s1 + $0x38] sm:$0xff]  ;;  %v1041_v1 = vld [vmem:[%s1785_s1 + $0x30] sm:$0xff]  ;;  %v1040_v2 = vld [vmem:[%s1785_s1 + $0x28] sm:$0xff] }
   0x2   :  { %333 = vmatpush.bf16.msra.mxu0 %v1042_v0  ;;  %1234 = vmatpush.bf16.msra.mxu1 %v1042_v0  ;;  %v1039_v3 = vld [vmem:[%s1785_s1 + $0x20] sm:$0xff]  ;;  %v1038_v4 = vld [vmem:[%s1785_s1 + $0x18] sm:$0xff]  ;;  %v1037_v5 = vld [vmem:[%s1785_s1 + $0x10] sm:$0xff] }
   0x3   :  { %1235 = vmatpush.bf16.msra.mxu2 %v1042_v0  ;;  %1236 = vmatpush.bf16.msra.mxu3 %v1042_v0  ;;  %v1036_v6 = vld [vmem:[%s1785_s1 + $0x8] sm:$0xff]  ;;  %v1035_v7 = vld [vmem:[%s1785_s1] sm:$0xff]  ;;  %v1005_v13 = vld [vmem:[%s1786_s0 + $0x10] sm:$0xff] }
   0x4   :  { %v1003_v8 = vld [vmem:[%s1786_s0] sm:$0xff]  ;;  %v1004_v10 = vld [vmem:[%s1786_s0 + $0x8] sm:$0xff]  ;;  %v1013_v14 = vld [vmem:[%s1786_s0 + $0x50] sm:$0xff] }
   0x5   :  { %v1011_v9 = vld [vmem:[%s1786_s0 + $0x40] sm:$0xff]  ;;  %v1012_v11 = vld [vmem:[%s1786_s0 + $0x48] sm:$0xff]  ;;  %v1006_v16 = vld [vmem:[%s1786_s0 + $0x18] sm:$0xff] }
   0x6   :  { %334 = vmatpush.bf16.msra.mxu0 %v1041_v1  ;;  %1237 = vmatpush.bf16.msra.mxu1 %v1041_v1  ;;  %v1019_v12 = vld [vmem:[%s1786_s0 + $0x80] sm:$0xff]  ;;  %v1020_v15 = vld [vmem:[%s1786_s0 + $0x88] sm:$0xff]  ;;  %v1014_v17 = vld [vmem:[%s1786_s0 + $0x58] sm:$0xff] }
   0x7   :  { %1238 = vmatpush.bf16.msra.mxu2 %v1041_v1  ;;  %1239 = vmatpush.bf16.msra.mxu3 %v1041_v1  ;;  %v1021_v18 = vld [vmem:[%s1786_s0 + $0x90] sm:$0xff]  ;;  %v1027_v19 = vld [vmem:[%s1786_s0 + $0xc0] sm:$0xff]  ;;  %v1022_v22 = vld [vmem:[%s1786_s0 + $0x98] sm:$0xff] }
   0x8   :  { %v1007_v20 = vld [vmem:[%s1786_s0 + $0x20] sm:$0xff]  ;;  %v1028_v23 = vld [vmem:[%s1786_s0 + $0xc8] sm:$0xff]  ;;  %v1029_v27 = vld [vmem:[%s1786_s0 + $0xd0] sm:$0xff] }
   0x9   :  { %v1015_v21 = vld [vmem:[%s1786_s0 + $0x60] sm:$0xff]  ;;  %v1008_v24 = vld [vmem:[%s1786_s0 + $0x28] sm:$0xff]  ;;  %v1009_v28 = vld [vmem:[%s1786_s0 + $0x30] sm:$0xff] }
   0xa   :  { %335 = vmatpush.bf16.msra.mxu0 %v1040_v2  ;;  %1240 = vmatpush.bf16.msra.mxu1 %v1040_v2  ;;  %v1016_v25 = vld [vmem:[%s1786_s0 + $0x68] sm:$0xff]  ;;  %v1023_v26 = vld [vmem:[%s1786_s0 + $0xa0] sm:$0xff]  ;;  %v1017_v29 = vld [vmem:[%s1786_s0 + $0x70] sm:$0xff] }
   0xb   :  { %1241 = vmatpush.bf16.msra.mxu2 %v1040_v2  ;;  %1242 = vmatpush.bf16.msra.mxu3 %v1040_v2  ;;  %v1024_v30 = vld [vmem:[%s1786_s0 + $0xa8] sm:$0xff]  ;;  %v1030_v31 = vld [vmem:[%s1786_s0 + $0xd8] sm:$0xff]  ;;  %v1025_v34 = vld [vmem:[%s1786_s0 + $0xb0] sm:$0xff] }
   0xc   :  { %v1010_v32 = vld [vmem:[%s1786_s0 + $0x38] sm:$0xff]  ;;  %v1031_v35 = vld [vmem:[%s1786_s0 + $0xe0] sm:$0xff]  ;;  %v1032_v39 = vld [vmem:[%s1786_s0 + $0xe8] sm:$0xff] }
   0xd   :  { %v1018_v33 = vld [vmem:[%s1786_s0 + $0x78] sm:$0xff]  ;;  %v1033_v53 = vld [vmem:[%s1786_s0 + $0xf0] sm:$0xff] }
   0xe   :  { %336 = vmatpush.bf16.msra.mxu0 %v1039_v3  ;;  %1243 = vmatpush.bf16.msra.mxu1 %v1039_v3  ;;  %v1026_v38 = vld [vmem:[%s1786_s0 + $0xb8] sm:$0xff] }
   0xf   :  { %1244 = vmatpush.bf16.msra.mxu2 %v1039_v3  ;;  %1245 = vmatpush.bf16.msra.mxu3 %v1039_v3 }
  0x12   :  { %337 = vmatpush.bf16.msra.mxu0 %v1038_v4  ;;  %1246 = vmatpush.bf16.msra.mxu1 %v1038_v4 }
  0x13   :  { %1247 = vmatpush.bf16.msra.mxu2 %v1038_v4  ;;  %1248 = vmatpush.bf16.msra.mxu3 %v1038_v4 }
  0x16   :  { %338 = vmatpush.bf16.msra.mxu0 %v1037_v5  ;;  %1249 = vmatpush.bf16.msra.mxu1 %v1037_v5 }
  0x17   :  { %1250 = vmatpush.bf16.msra.mxu2 %v1037_v5  ;;  %1251 = vmatpush.bf16.msra.mxu3 %v1037_v5  ;;  %v1034_v5 = vld [vmem:[%s1786_s0 + $0xf8] sm:$0xff] }
  0x1a   :  { %339 = vmatpush.bf16.msra.mxu0 %v1036_v6  ;;  %1252 = vmatpush.bf16.msra.mxu1 %v1036_v6 }
  0x1b   :  { %1253 = vmatpush.bf16.msra.mxu2 %v1036_v6  ;;  %1254 = vmatpush.bf16.msra.mxu3 %v1036_v6 }
  0x1e   :  { %340 = vmatpush.bf16.msra.mxu0 %v1035_v7  ;;  %1255 = vmatpush.bf16.msra.mxu1 %v1035_v7 }
  0x1f   :  { %1256 = vmatpush.bf16.msra.mxu2 %v1035_v7  ;;  %1257 = vmatpush.bf16.msra.mxu3 %v1035_v7 }
  0x21   :  { %341 = vmatmul.bf16.vlgmr.msra.gmra.mxu0 %v1003_v8  ;;  %381 = vmatmul.bf16.vlgmr.msra.gmra.mxu1 %v1011_v9 }
  0x22   :  { %421 = vmatmul.bf16.vlgmr.msra.gmra.mxu2 %v1019_v12  ;;  %461 = vmatmul.bf16.vlgmr.msra.gmra.mxu3 %v1027_v19 }
  0x31   :  { %346 = vmatmul.bf16.gmra.mxu0 %v1004_v10  ;;  %386 = vmatmul.bf16.gmra.mxu1 %v1012_v11 }
  0x32   :  { %426 = vmatmul.bf16.gmra.mxu2 %v1020_v15  ;;  %466 = vmatmul.bf16.gmra.mxu3 %v1028_v23 }
  0x41   :  { %351 = vmatmul.bf16.gmra.mxu0 %v1005_v13  ;;  %391 = vmatmul.bf16.gmra.mxu1 %v1013_v14 }
  0x42   :  { %431 = vmatmul.bf16.gmra.mxu2 %v1021_v18  ;;  %471 = vmatmul.bf16.gmra.mxu3 %v1029_v27 }
  0x51   :  { %356 = vmatmul.bf16.gmra.mxu0 %v1006_v16  ;;  %396 = vmatmul.bf16.gmra.mxu1 %v1014_v17 }
  0x52   :  { %436 = vmatmul.bf16.gmra.mxu2 %v1022_v22  ;;  %476 = vmatmul.bf16.gmra.mxu3 %v1030_v31 }
  0x61   :  { %361 = vmatmul.bf16.gmra.mxu0 %v1007_v20  ;;  %401 = vmatmul.bf16.gmra.mxu1 %v1015_v21 }
  0x62   :  { %441 = vmatmul.bf16.gmra.mxu2 %v1023_v26  ;;  %481 = vmatmul.bf16.gmra.mxu3 %v1031_v35 }
  0x71   :  { %366 = vmatmul.bf16.gmra.mxu0 %v1008_v24  ;;  %406 = vmatmul.bf16.gmra.mxu1 %v1016_v25 }
  0x72   :  { %446 = vmatmul.bf16.gmra.mxu2 %v1024_v30  ;;  %486 = vmatmul.bf16.gmra.mxu3 %v1032_v39 }
  0x81   :  { %371 = vmatmul.bf16.gmra.mxu0 %v1009_v28  ;;  %411 = vmatmul.bf16.gmra.mxu1 %v1017_v29 }
  0x82   :  { %451 = vmatmul.bf16.gmra.mxu2 %v1025_v34  ;;  %491 = vmatmul.bf16.gmra.mxu3 %v1033_v53 }
  0x91   :  { %376 = vmatmul.bf16.gmra.mxu0 %v1010_v32  ;;  %416 = vmatmul.bf16.gmra.mxu1 %v1018_v33 }
  0x92   :  { %456 = vmatmul.bf16.gmra.mxu2 %v1026_v38  ;;  %496 = vmatmul.bf16.gmra.mxu3 %v1034_v5 }
  0x9e   :  { %v342_v36 = vpop.f32.mrf.mxu0  ;;  %v1386_v37 = vpop.f32.mrf.mxu1 }
  0x9f   :  { %v571_v42 = vmul.f32 %v342_v36, %v342_v36 }
  0xa5   :  { %v1411_v59 = vpop.f32.mrf.mxu2  ;;  %v1462_v19 = vpop.f32.mrf.mxu3 }
  0xa6   :  { %v344_v40 = vpop.f32.mrf.mxu0  ;;  %v1394_v41 = vpop.f32.mrf.mxu1 }
  0xa7   :  { %v502_v43 = vadd.f32 %v344_v40, %v342_v36  ;;  %v572_v44 = vmul.f32 %v344_v40, %v344_v40  ;;  %v1046_v45 = vpack.c.bf16 %v344_v40, %v342_v36  ;;  %v1086_v46 = vpack.c.bf16 %v1394_v41, %v1386_v37 }
  0xa9   :  { %v635_v47 = vadd.f32 %v572_v44, %v571_v42  ;;  %1047 = vst [vmem:[%s1787_s2] sm:$0xff] %v1046_v45  }
  0xaa   :  { %1210 = vst [vmem:[%s1787_s2 + $0x40] sm:$0xff] %v1086_v46  }
  0xad   :  { %v1425_v2 = vpop.f32.mrf.mxu2  ;;  %v1476_v24 = vpop.f32.mrf.mxu3 }
  0xae   :  { %v347_v48 = vpop.f32.mrf.mxu0  ;;  %v1404_v49 = vpop.f32.mrf.mxu1  ;;  %v1126_v3 = vpack.c.bf16 %v1425_v2, %v1411_v59  ;;  %v1166_v26 = vpack.c.bf16 %v1476_v24, %v1462_v19 }
  0xaf   :  { %v503_v50 = vadd.f32 %v502_v43, %v347_v48  ;;  %v573_v51 = vmul.f32 %v347_v48, %v347_v48 }
  0xb0   :  { %1218 = vst [vmem:[%s1787_s2 + $0x80] sm:$0xff] %v1126_v3  }
  0xb1   :  { %v636_v52 = vadd.f32 %v635_v47, %v573_v51  ;;  %1226 = vst [vmem:[%s1787_s2 + $0xc0] sm:$0xff] %v1166_v26  }
  0xb5   :  { %v1439_v9 = vpop.f32.mrf.mxu2  ;;  %v1492_v31 = vpop.f32.mrf.mxu3 }
  0xb6   :  { %v349_v54 = vpop.f32.mrf.mxu0  ;;  %v1409_v55 = vpop.f32.mrf.mxu1 }
  0xb7   :  { %v504_v56 = vadd.f32 %v503_v50, %v349_v54  ;;  %v574_v57 = vmul.f32 %v349_v54, %v349_v54  ;;  %v1051_v58 = vpack.c.bf16 %v349_v54, %v347_v48  ;;  %v1091_v60 = vpack.c.bf16 %v1409_v55, %v1404_v49 }
  0xb9   :  { %v637_v61 = vadd.f32 %v636_v52, %v574_v57  ;;  %1203 = vst [vmem:[%s1787_s2 + $0x8] sm:$0xff] %v1051_v58  }
  0xba   :  { %1211 = vst [vmem:[%s1787_s2 + $0x48] sm:$0xff] %v1091_v60  }
  0xbd   :  { %v1451_v13 = vpop.f32.mrf.mxu2  ;;  %v1506_v36 = vpop.f32.mrf.mxu3 }
  0xbe   :  { %v352_v62 = vpop.f32.mrf.mxu0  ;;  %v1421_v63 = vpop.f32.mrf.mxu1  ;;  %v1131_v14 = vpack.c.bf16 %v1451_v13, %v1439_v9  ;;  %v1171_v39 = vpack.c.bf16 %v1506_v36, %v1492_v31 }
  0xbf   :  { %v1423_v0 = vadd.f32 %v504_v56, %v352_v62  ;;  %v575_v1 = vmul.f32 %v352_v62, %v352_v62 }
  0xc0   :  { %1219 = vst [vmem:[%s1787_s2 + $0x88] sm:$0xff] %v1131_v14  }
  0xc1   :  { %v1429_v4 = vadd.f32 %v637_v61, %v575_v1  ;;  %1227 = vst [vmem:[%s1787_s2 + $0xc8] sm:$0xff] %v1171_v39  }
  0xc5   :  { %v1460_v18 = vpop.f32.mrf.mxu2  ;;  %v1522_v45 = vpop.f32.mrf.mxu3 }
  0xc6   :  { %v354_v6 = vpop.f32.mrf.mxu0  ;;  %v1437_v7 = vpop.f32.mrf.mxu1 }
  0xc7   :  { %v1056_v8 = vpack.c.bf16 %v354_v6, %v352_v62  ;;  %v1096_v10 = vpack.c.bf16 %v1437_v7, %v1421_v63  ;;  %v576_v53 = vmul.f32 %v354_v6, %v354_v6  ;;  %v506_v56 = vadd.f32 %v1423_v0, %v354_v6 }
  0xc9   :  { %1204 = vst [vmem:[%s1787_s2 + $0x10] sm:$0xff] %v1056_v8   ;;  %v639_v58 = vadd.f32 %v1429_v4, %v576_v53 }
  0xca   :  { %1212 = vst [vmem:[%s1787_s2 + $0x50] sm:$0xff] %v1096_v10  }
  0xcd   :  { %v1474_v23 = vpop.f32.mrf.mxu2  ;;  %v1536_v51 = vpop.f32.mrf.mxu3 }
  0xce   :  { %v357_v11 = vpop.f32.mrf.mxu0  ;;  %v1449_v12 = vpop.f32.mrf.mxu1  ;;  %v1136_v25 = vpack.c.bf16 %v1474_v23, %v1460_v18  ;;  %v1176_v54 = vpack.c.bf16 %v1536_v51, %v1522_v45 }
  0xcf   :  { %v577_v57 = vmul.f32 %v357_v11, %v357_v11  ;;  %v507_v60 = vadd.f32 %v506_v56, %v357_v11 }
  0xd0   :  { %1220 = vst [vmem:[%s1787_s2 + $0x90] sm:$0xff] %v1136_v25  }
  0xd1   :  { %1228 = vst [vmem:[%s1787_s2 + $0xd0] sm:$0xff] %v1176_v54   ;;  %v640_v3 = vadd.f32 %v639_v58, %v577_v57 }
  0xd5   :  { %v1490_v30 = vpop.f32.mrf.mxu2 }
  0xd6   :  { %v359_v15 = vpop.f32.mrf.mxu0  ;;  %v1458_v16 = vpop.f32.mrf.mxu1 }
  0xd7   :  { %v1061_v17 = vpack.c.bf16 %v359_v15, %v357_v11  ;;  %v1101_v20 = vpack.c.bf16 %v1458_v16, %v1449_v12  ;;  %v578_v61 = vmul.f32 %v359_v15, %v359_v15  ;;  %v508_v5 = vadd.f32 %v507_v60, %v359_v15 }
  0xd9   :  { %1205 = vst [vmem:[%s1787_s2 + $0x18] sm:$0xff] %v1061_v17   ;;  %v1554_v17 = vpop.f32.mrf.mxu3  ;;  %v641_v6 = vadd.f32 %v640_v3, %v578_v61 }
  0xda   :  { %1213 = vst [vmem:[%s1787_s2 + $0x58] sm:$0xff] %v1101_v20  }
  0xdd   :  { %v1504_v35 = vpop.f32.mrf.mxu2 }
  0xde   :  { %v362_v21 = vpop.f32.mrf.mxu0  ;;  %v1472_v22 = vpop.f32.mrf.mxu1  ;;  %v1141_v38 = vpack.c.bf16 %v1504_v35, %v1490_v30 }
  0xdf   :  { %v579_v8 = vmul.f32 %v362_v21, %v362_v21  ;;  %v509_v20 = vadd.f32 %v508_v5, %v362_v21 }
  0xe0   :  { %1221 = vst [vmem:[%s1787_s2 + $0x98] sm:$0xff] %v1141_v38  }
  0xe1   :  { %v642_v4 = vadd.f32 %v641_v6, %v579_v8  ;;  %v1568_v53 = vpop.f32.mrf.mxu3 }
  0xe5   :  { %v1520_v44 = vpop.f32.mrf.mxu2 }
  0xe6   :  { %v364_v27 = vpop.f32.mrf.mxu0  ;;  %v1488_v28 = vpop.f32.mrf.mxu1 }
  0xe7   :  { %v1066_v29 = vpack.c.bf16 %v364_v27, %v362_v21  ;;  %v1106_v32 = vpack.c.bf16 %v1488_v28, %v1472_v22  ;;  %v580_v25 = vmul.f32 %v364_v27, %v364_v27  ;;  %v510_v11 = vadd.f32 %v509_v20, %v364_v27 }
  0xe9   :  { %1206 = vst [vmem:[%s1787_s2 + $0x20] sm:$0xff] %v1066_v29   ;;  %v643_v26 = vadd.f32 %v642_v4, %v580_v25  ;;  %v1584_v25 = vpop.f32.mrf.mxu3  ;;  %v587_v4 = vmul.f32 %v1386_v37, %v1386_v37 }
  0xea   :  { %1214 = vst [vmem:[%s1787_s2 + $0x60] sm:$0xff] %v1106_v32  }
  0xed   :  { %v1534_v50 = vpop.f32.mrf.mxu2 }
  0xee   :  { %v367_v33 = vpop.f32.mrf.mxu0  ;;  %v1502_v34 = vpop.f32.mrf.mxu1  ;;  %v1146_v52 = vpack.c.bf16 %v1534_v50, %v1520_v44 }
  0xef   :  { %v581_v15 = vmul.f32 %v367_v33, %v367_v33  ;;  %v511_v29 = vadd.f32 %v510_v11, %v367_v33 }
  0xf0   :  { %1222 = vst [vmem:[%s1787_s2 + $0xa0] sm:$0xff] %v1146_v52  }
  0xf5   :  { %v1552_v14 = vpop.f32.mrf.mxu2 }
  0xf6   :  { %v369_v40 = vpop.f32.mrf.mxu0  ;;  %v1518_v42 = vpop.f32.mrf.mxu1 }
  0xf7   :  { %v1071_v43 = vpack.c.bf16 %v369_v40, %v367_v33  ;;  %v1111_v46 = vpack.c.bf16 %v1518_v42, %v1502_v34  ;;  %v582_v32 = vmul.f32 %v369_v40, %v369_v40  ;;  %v512_v21 = vadd.f32 %v511_v29, %v369_v40 }
  0xf8   :  { %v1181_v33 = vpack.c.bf16 %v1568_v53, %v1554_v17 }
  0xf9   :  { %1207 = vst [vmem:[%s1787_s2 + $0x28] sm:$0xff] %v1071_v43   ;;  %v644_v43 = vadd.f32 %v643_v26, %v581_v15  ;;  %v588_v26 = vmul.f32 %v1394_v41, %v1394_v41 }
  0xfa   :  { %1215 = vst [vmem:[%s1787_s2 + $0x68] sm:$0xff] %v1111_v46  }
  0xfb   :  { %v645_v56 = vadd.f32 %v644_v43, %v582_v32  ;;  %1229 = vst [vmem:[%s1787_s2 + $0xd8] sm:$0xff] %v1181_v33  }
  0xfd   :  { %v1566_v52 = vpop.f32.mrf.mxu2 }
  0xfe   :  { %v372_v47 = vpop.f32.mrf.mxu0  ;;  %v1532_v48 = vpop.f32.mrf.mxu1  ;;  %v1151_v54 = vpack.c.bf16 %v1566_v52, %v1552_v14 }
  0xff   :  { %v583_v46 = vmul.f32 %v372_v47, %v372_v47  ;;  %v513_v57 = vadd.f32 %v512_v21, %v372_v47  ;;  %v590_v21 = vmul.f32 %v1409_v55, %v1409_v55 }
 0x100   :  { %1223 = vst [vmem:[%s1787_s2 + $0xa8] sm:$0xff] %v1151_v54  }
 0x101   :  { %v646_v58 = vadd.f32 %v645_v56, %v583_v46 }
 0x105   :  { %v1582_v20 = vpop.f32.mrf.mxu2 }
 0x106   :  { %v374_v62 = vpop.f32.mrf.mxu0  ;;  %v1550_v1 = vpop.f32.mrf.mxu1 }
 0x107   :  { %v1076_v10 = vpack.c.bf16 %v374_v62, %v372_v47  ;;  %v1116_v0 = vpack.c.bf16 %v1550_v1, %v1532_v48  ;;  %v584_v27 = vmul.f32 %v374_v62, %v374_v62  ;;  %v514_v40 = vadd.f32 %v513_v57, %v374_v62  ;;  %v1608_v57 = vpop.f32.mrf.mxu3 }
 0x109   :  { %1208 = vst [vmem:[%s1787_s2 + $0x30] sm:$0xff] %v1076_v10   ;;  %v647_v61 = vadd.f32 %v646_v58, %v584_v27  ;;  %v1186_v27 = vpack.c.bf16 %v1608_v57, %v1584_v25 }
 0x10a   :  { %1216 = vst [vmem:[%s1787_s2 + $0x70] sm:$0xff] %v1116_v0  }
 0x10b   :  { %1230 = vst [vmem:[%s1787_s2 + $0xe0] sm:$0xff] %v1186_v27   ;;  %v600_v27 = vmul.f32 %v1550_v1, %v1550_v1 }
 0x10d   :  { %v1606_v56 = vpop.f32.mrf.mxu2 }
 0x10e   :  { %v377_v38 = vpop.f32.mrf.mxu0  ;;  %v1564_v39 = vpop.f32.mrf.mxu1 }
 0x10f   :  { %v585_v60 = vmul.f32 %v377_v38, %v377_v38  ;;  %v515_v3 = vadd.f32 %v514_v40, %v377_v38 }
 0x111   :  { %v648_v47 = vadd.f32 %v647_v61, %v585_v60  ;;  %v593_v61 = vmul.f32 %v1449_v12, %v1449_v12 }
 0x116   :  { %v379_v5 = vpop.f32.mrf.mxu0  ;;  %v1580_v8 = vpop.f32.mrf.mxu1 }
 0x117   :  { %v516_v10 = vadd.f32 %v515_v3, %v379_v5  ;;  %v586_v0 = vmul.f32 %v379_v5, %v379_v5  ;;  %v1081_v6 = vpack.c.bf16 %v379_v5, %v377_v38  ;;  %v1121_v62 = vpack.c.bf16 %v1580_v8, %v1564_v39 }
 0x118   :  { %v589_v38 = vmul.f32 %v1404_v49, %v1404_v49  ;;  %v594_v5 = vmul.f32 %v1458_v16, %v1458_v16 }
 0x119   :  { %v517_v11 = vadd.f32 %v516_v10, %v1386_v37  ;;  %v649_v15 = vadd.f32 %v648_v47, %v586_v0  ;;  %1209 = vst [vmem:[%s1787_s2 + $0x38] sm:$0xff] %v1081_v6   ;;  %v1632_v0 = vpop.f32.mrf.mxu2  ;;  %v595_v6 = vmul.f32 %v1472_v22, %v1472_v22 }
 0x11a   :  { %1217 = vst [vmem:[%s1787_s2 + $0x78] sm:$0xff] %v1121_v62  }
 0x11b   :  { %v518_v29 = vadd.f32 %v517_v11, %v1394_v41  ;;  %v650_v32 = vadd.f32 %v649_v15, %v587_v4  ;;  %v1156_v41 = vpack.c.bf16 %v1606_v56, %v1582_v20  ;;  %v596_v11 = vmul.f32 %v1488_v28, %v1488_v28 }
 0x11d   :  { %v519_v37 = vadd.f32 %v518_v29, %v1404_v49  ;;  %v651_v43 = vadd.f32 %v650_v32, %v588_v26  ;;  %v591_v49 = vmul.f32 %v1421_v63, %v1421_v63  ;;  %1224 = vst [vmem:[%s1787_s2 + $0xb0] sm:$0xff] %v1156_v41   ;;  %v598_v32 = vmul.f32 %v1518_v42, %v1518_v42 }
 0x11f   :  { %v520_v46 = vadd.f32 %v519_v37, %v1409_v55  ;;  %v652_v54 = vadd.f32 %v651_v43, %v589_v38  ;;  %v592_v55 = vmul.f32 %v1437_v7, %v1437_v7 }
 0x121   :  { %v521_v33 = vadd.f32 %v520_v46, %v1421_v63  ;;  %v653_v58 = vadd.f32 %v652_v54, %v590_v21 }
 0x123   :  { %v522_v40 = vadd.f32 %v521_v33, %v1437_v7  ;;  %v654_v60 = vadd.f32 %v653_v58, %v591_v49  ;;  %v1634_v7 = vpop.f32.mrf.mxu3 }
 0x125   :  { %v655_v3 = vadd.f32 %v654_v60, %v592_v55  ;;  %v523_v63 = vadd.f32 %v522_v40, %v1449_v12  ;;  %v602_v40 = vmul.f32 %v1580_v8, %v1580_v8 }
 0x127   :  { %v524_v47 = vadd.f32 %v523_v63, %v1458_v16  ;;  %v656_v10 = vadd.f32 %v655_v3, %v593_v61  ;;  %v597_v16 = vmul.f32 %v1502_v34, %v1502_v34  ;;  %v604_v63 = vmul.f32 %v1425_v2, %v1425_v2 }
 0x129   :  { %v525_v62 = vadd.f32 %v524_v47, %v1472_v22  ;;  %v657_v4 = vadd.f32 %v656_v10, %v594_v5  ;;  %v1648_v22 = vpop.f32.mrf.mxu2  ;;  %v605_v47 = vmul.f32 %v1439_v9, %v1439_v9 }
 0x12b   :  { %v526_v12 = vadd.f32 %v525_v62, %v1488_v28  ;;  %v658_v15 = vadd.f32 %v657_v4, %v595_v6  ;;  %v1650_v43 = vpop.f32.mrf.mxu3  ;;  %v1161_v28 = vpack.c.bf16 %v1648_v22, %v1632_v0  ;;  %v606_v6 = vmul.f32 %v1451_v13, %v1451_v13 }
 0x12c   :  { %v1191_v21 = vpack.c.bf16 %v1650_v43, %v1634_v7 }
 0x12d   :  { %v527_v26 = vadd.f32 %v526_v12, %v1502_v34  ;;  %v659_v29 = vadd.f32 %v658_v15, %v596_v11  ;;  %v599_v34 = vmul.f32 %v1532_v48, %v1532_v48  ;;  %1225 = vst [vmem:[%s1787_s2 + $0xb8] sm:$0xff] %v1161_v28  }
 0x12e   :  { %1231 = vst [vmem:[%s1787_s2 + $0xe8] sm:$0xff] %v1191_v21   ;;  %v611_v21 = vmul.f32 %v1520_v44, %v1520_v44 }
 0x12f   :  { %v528_v38 = vadd.f32 %v527_v26, %v1518_v42  ;;  %v660_v37 = vadd.f32 %v659_v29, %v597_v16  ;;  %v609_v26 = vmul.f32 %v1490_v30, %v1490_v30 }
 0x131   :  { %v529_v46 = vadd.f32 %v528_v38, %v1532_v48  ;;  %v661_v54 = vadd.f32 %v660_v37, %v598_v32  ;;  %v601_v48 = vmul.f32 %v1564_v39, %v1564_v39 }
 0x133   :  { %v662_v42 = vadd.f32 %v661_v54, %v599_v34  ;;  %v530_v41 = vadd.f32 %v529_v46, %v1550_v1  ;;  %v1674_v60 = vpop.f32.mrf.mxu3  ;;  %v603_v1 = vmul.f32 %v1411_v59, %v1411_v59  ;;  %v612_v34 = vmul.f32 %v1534_v50, %v1534_v50 }
 0x135   :  { %v663_v49 = vadd.f32 %v662_v42, %v600_v27  ;;  %v531_v33 = vadd.f32 %v530_v41, %v1564_v39  ;;  %v613_v42 = vmul.f32 %v1552_v14, %v1552_v14 }
 0x137   :  { %v664_v58 = vadd.f32 %v663_v49, %v601_v48  ;;  %v532_v55 = vadd.f32 %v531_v33, %v1580_v8  ;;  %v614_v49 = vmul.f32 %v1566_v52, %v1566_v52 }
 0x139   :  { %v533_v61 = vadd.f32 %v532_v55, %v1411_v59  ;;  %v665_v3 = vadd.f32 %v664_v58, %v602_v40 }
 0x13b   :  { %v534_v5 = vadd.f32 %v533_v61, %v1425_v2  ;;  %v666_v39 = vadd.f32 %v665_v3, %v603_v1  ;;  %v1688_v59 = vpop.f32.mrf.mxu3  ;;  %v607_v2 = vmul.f32 %v1460_v18, %v1460_v18  ;;  %v617_v3 = vmul.f32 %v1632_v0, %v1632_v0 }
 0x13c   :  { %v1196_v11 = vpack.c.bf16 %v1688_v59, %v1674_v60 }
 0x13d   :  { %v535_v10 = vadd.f32 %v534_v5, %v1439_v9  ;;  %v667_v8 = vadd.f32 %v666_v39, %v604_v63  ;;  %v608_v9 = vmul.f32 %v1474_v23, %v1474_v23  ;;  %v619_v39 = vmul.f32 %v1462_v19, %v1462_v19 }
 0x13e   :  { %1232 = vst [vmem:[%s1787_s2 + $0xf0] sm:$0xff] %v1196_v11  }
 0x13f   :  { %v536_v62 = vadd.f32 %v535_v10, %v1451_v13  ;;  %v668_v4 = vadd.f32 %v667_v8, %v605_v47 }
 0x141   :  { %v537_v12 = vadd.f32 %v536_v62, %v1460_v18  ;;  %v669_v15 = vadd.f32 %v668_v4, %v606_v6  ;;  %v610_v18 = vmul.f32 %v1504_v35, %v1504_v35 }
 0x143   :  { %v538_v13 = vadd.f32 %v537_v12, %v1474_v23  ;;  %v670_v16 = vadd.f32 %v669_v15, %v607_v2  ;;  %v1707_v28 = vpop.f32.mrf.mxu3 }
 0x145   :  { %v671_v29 = vadd.f32 %v670_v16, %v608_v9  ;;  %v539_v32 = vadd.f32 %v538_v13, %v1490_v30 }
 0x147   :  { %v540_v38 = vadd.f32 %v539_v32, %v1504_v35  ;;  %v672_v37 = vadd.f32 %v671_v29, %v609_v26 }
 0x149   :  { %v541_v23 = vadd.f32 %v540_v38, %v1520_v44  ;;  %v673_v46 = vadd.f32 %v672_v37, %v610_v18 }
 0x14b   :  { %v542_v54 = vadd.f32 %v541_v23, %v1534_v50  ;;  %v674_v30 = vadd.f32 %v673_v46, %v611_v21  ;;  %v499_v44 = vpop.f32.mrf.mxu3  ;;  %v615_v50 = vmul.f32 %v1582_v20, %v1582_v20 }
 0x14c   :  { %v1201_v48 = vpack.c.bf16 %v499_v44, %v1707_v28 }
 0x14d   :  { %v543_v35 = vadd.f32 %v542_v54, %v1552_v14  ;;  %v675_v41 = vadd.f32 %v674_v30, %v612_v34  ;;  %v630_v34 = vmul.f32 %v1650_v43, %v1650_v43 }
 0x14e   :  { %1233 = vst [vmem:[%s1787_s2 + $0xf8] sm:$0xff] %v1201_v48   ;;  %v634_v48 = vmul.f32 %v499_v44, %v499_v44 }
 0x14f   :  { %v544_v27 = vadd.f32 %v543_v35, %v1566_v52  ;;  %v676_v33 = vadd.f32 %v675_v41, %v613_v42  ;;  %v616_v52 = vmul.f32 %v1606_v56, %v1606_v56  ;;  %v631_v42 = vmul.f32 %v1674_v60, %v1674_v60 }
 0x150   :  { %v632_v41 = vmul.f32 %v1688_v59, %v1688_v59 }
 0x151   :  { %v677_v58 = vadd.f32 %v676_v33, %v614_v49  ;;  %v545_v55 = vadd.f32 %v544_v27, %v1582_v20  ;;  %v618_v20 = vmul.f32 %v1648_v22, %v1648_v22  ;;  %v633_v49 = vmul.f32 %v1707_v28, %v1707_v28 }
 0x153   :  { %v678_v14 = vadd.f32 %v677_v58, %v615_v50  ;;  %v546_v40 = vadd.f32 %v545_v55, %v1606_v56  ;;  %v620_v56 = vmul.f32 %v1476_v24, %v1476_v24 }
 0x155   :  { %v679_v1 = vadd.f32 %v678_v14, %v616_v52  ;;  %v547_v61 = vadd.f32 %v546_v40, %v1632_v0  ;;  %v621_v0 = vmul.f32 %v1492_v31, %v1492_v31 }
 0x157   :  { %v680_v63 = vadd.f32 %v679_v1, %v617_v3  ;;  %v548_v5 = vadd.f32 %v547_v61, %v1648_v22  ;;  %v622_v22 = vmul.f32 %v1506_v36, %v1506_v36 }
 0x159   :  { %v549_v47 = vadd.f32 %v548_v5, %v1462_v19  ;;  %v681_v10 = vadd.f32 %v680_v63, %v618_v20  ;;  %v623_v19 = vmul.f32 %v1522_v45, %v1522_v45 }
 0x15b   :  { %v550_v8 = vadd.f32 %v549_v47, %v1476_v24  ;;  %v682_v6 = vadd.f32 %v681_v10, %v619_v39  ;;  %v624_v24 = vmul.f32 %v1536_v51, %v1536_v51 }
 0x15d   :  { %v551_v62 = vadd.f32 %v550_v8, %v1492_v31  ;;  %v683_v4 = vadd.f32 %v682_v6, %v620_v56  ;;  %v625_v31 = vmul.f32 %v1554_v17, %v1554_v17 }
 0x15f   :  { %v552_v11 = vadd.f32 %v551_v62, %v1506_v36  ;;  %v684_v2 = vadd.f32 %v683_v4, %v621_v0  ;;  %v626_v36 = vmul.f32 %v1568_v53, %v1568_v53 }
 0x161   :  { %v553_v12 = vadd.f32 %v552_v11, %v1522_v45  ;;  %v685_v15 = vadd.f32 %v684_v2, %v622_v22  ;;  %v627_v45 = vmul.f32 %v1584_v25, %v1584_v25 }
 0x163   :  { %v554_v9 = vadd.f32 %v553_v12, %v1536_v51  ;;  %v686_v13 = vadd.f32 %v685_v15, %v623_v19  ;;  %v628_v51 = vmul.f32 %v1608_v57, %v1608_v57 }
 0x165   :  { %v687_v16 = vadd.f32 %v686_v13, %v624_v24  ;;  %v555_v26 = vadd.f32 %v554_v9, %v1554_v17  ;;  %v629_v17 = vmul.f32 %v1634_v7, %v1634_v7 }
 0x167   :  { %v556_v29 = vadd.f32 %v555_v26, %v1568_v53  ;;  %v688_v32 = vadd.f32 %v687_v16, %v625_v31 }
 0x169   :  { %v557_v18 = vadd.f32 %v556_v29, %v1584_v25  ;;  %v689_v38 = vadd.f32 %v688_v32, %v626_v36 }
 0x16b   :  { %v558_v37 = vadd.f32 %v557_v18, %v1608_v57  ;;  %v690_v21 = vadd.f32 %v689_v38, %v627_v45 }
 0x16d   :  { %v559_v23 = vadd.f32 %v558_v37, %v1634_v7  ;;  %v691_v46 = vadd.f32 %v690_v21, %v628_v51 }
 0x16f   :  { %v560_v53 = vadd.f32 %v559_v23, %v1650_v43  ;;  %v692_v54 = vadd.f32 %v691_v46, %v629_v17 }
 0x171   :  { %v693_v25 = vadd.f32 %v692_v54, %v630_v34  ;;  %v561_v30 = vadd.f32 %v560_v53, %v1674_v60 }
 0x173   :  { %v694_v57 = vadd.f32 %v693_v25, %v631_v42  ;;  %v562_v35 = vadd.f32 %v561_v30, %v1688_v59 }
 0x175   :  { %v695_v7 = vadd.f32 %v694_v57, %v632_v41  ;;  %v563_v27 = vadd.f32 %v562_v35, %v1707_v28 }
 0x177   :  { %v696_v43 = vadd.f32 %v695_v7, %v633_v49  ;;  %v564_v33 = vadd.f32 %v563_v27, %v499_v44 }
 0x179   :  { %v565_v58 = vrot.slane %v564_v33, 4  ;;  %v697_v55 = vadd.f32 %v696_v43, %v634_v48 }
 0x17b   :  { %v566_v50 = vadd.f32 %v565_v58, %v564_v33  ;;  %v698_v14 = vrot.slane %v697_v55, 4 }
 0x17d   :  { %v567_v60 = vrot.slane %v566_v50, 2  ;;  %v699_v40 = vadd.f32 %v698_v14, %v697_v55 }
 0x17f   :  { %v568_v52 = vadd.f32 %v567_v60, %v566_v50  ;;  %v700_v1 = vrot.slane %v699_v40, 2 }
 0x181   :  { %v569_v61 = vrot.slane %v568_v52, 1  ;;  %v701_v3 = vadd.f32 %v700_v1, %v699_v40 }
 0x183   :  { %v702_v59 = vrot.slane %v701_v3, 1  ;;  %v570_v63 = vadd.f32 %v569_v61, %v568_v52 }
 0x185   :  { %v703_v5 = vadd.f32 %v702_v59, %v701_v3 }
 0x187   :  { %v705_v20 = vsel %vm704_vm0, %v570_v63, %v703_v5 }
 0x188   :  { %706 = vst [vmem:[%s1788_s3] sm:$0x3] %v705_v20 }

// kernel: bottleneck_forward.9
= control target key start
LH: loop header
LB: loop body
LE: loop exit
PB: predicated region body
PF: predicated region fallthrough
CT: control target
= control target key end

     0   :  { %s1788_s0 = inlined_call_operand.vmem [shape: bf16[512,128], index: 0, kind: input, shape index: {}]   ;;  %s1789_s1 = inlined_call_operand.vmem [shape: f32[1,128], index: 1, kind: input, shape index: {}]   ;;  %s1790_s2 = inlined_call_operand.vmem [shape: f32[1,128], index: 2, kind: input, shape index: {}]   ;;  %s1791_s3 = inlined_call_operand.vmem [shape: bf16[512,128], index: 3, kind: input, shape index: {}]   ;;  %s1792_s4 = inlined_call_operand.vmem [shape: f32[1,128], index: 4, kind: input, shape index: {}]   ;;  %s1793_s5 = inlined_call_operand.vmem [shape: f32[1,128], index: 5, kind: input, shape index: {}]   ;;  %s1794_s6 = inlined_call_operand.vmem [shape: f32[512,128], index: 6, kind: output, shape index: {}]  }
   0x1   :  { %v748_v0 = vld [vmem:[%s1788_s0] sm:$0xff]   ;;  %v1003_v12 = vld [vmem:[%s1788_s0 + $0x8] sm:$0xff]   ;;  %v1004_v18 = vld [vmem:[%s1788_s0 + $0x10] sm:$0xff]  }
   0x2   :  { %v1114_v1 = vld [vmem:[%s1789_s1] ss:$0 sm:$0xff]  ;;  %v749_v2 = vunpack.c.l.bf16 %v748_v0  ;;  %v750_v5 = vunpack.c.h.bf16 %v748_v0  ;;  %v1034_v13 = vld [vmem:[%s1791_s3 + $0x8] sm:$0xff]   ;;  %v753_v16 = vunpack.c.l.bf16 %v1003_v12  ;;  %v1035_v19 = vld [vmem:[%s1791_s3 + $0x10] sm:$0xff]   ;;  %v754_v22 = vunpack.c.h.bf16 %v1003_v12 }
   0x3   :  { %v1119_v3 = vld [vmem:[%s1790_s2] ss:$0 sm:$0xff]  ;;  %v881_v17 = vunpack.c.l.bf16 %v1034_v13  ;;  %v882_v23 = vunpack.c.h.bf16 %v1034_v13  ;;  %v757_v30 = vunpack.c.l.bf16 %v1004_v18  ;;  %v885_v31 = vunpack.c.l.bf16 %v1035_v19  ;;  %v1005_v40 = vld [vmem:[%s1788_s0 + $0x18] sm:$0xff]   ;;  %v1007_v12 = vld [vmem:[%s1788_s0 + $0x28] sm:$0xff]  }
   0x4   :  { %v876_v4 = vld [vmem:[%s1791_s3] sm:$0xff]   ;;  %v155_v9 = vmul.f32 %v1114_v1, %v749_v2  ;;  %v156_v11 = vmul.f32 %v1114_v1, %v750_v5  ;;  %v157_v26 = vmul.f32 %v1114_v1, %v753_v16  ;;  %v158_v28 = vmul.f32 %v1114_v1, %v754_v22  ;;  %v1036_v41 = vld [vmem:[%s1791_s3 + $0x18] sm:$0xff]  }
   0x5   :  { %v877_v6 = vunpack.c.l.bf16 %v876_v4  ;;  %v1127_v7 = vld [vmem:[%s1792_s4] ss:$0 sm:$0xff]  ;;  %v878_v8 = vunpack.c.h.bf16 %v876_v4  ;;  %v159_v38 = vmul.f32 %v1114_v1, %v757_v30  ;;  %v758_v45 = vunpack.c.h.bf16 %v1004_v18  ;;  %v1008_v30 = vld [vmem:[%s1788_s0 + $0x30] sm:$0xff]  }
   0x6   :  { %v1133_v10 = vld [vmem:[%s1793_s5] ss:$0 sm:$0xff]  ;;  %v223_v20 = vadd.f32 %v1119_v3, %v155_v9  ;;  %v224_v21 = vadd.f32 %v1119_v3, %v156_v11  ;;  %v421_v27 = vmul.f32 %v1127_v7, %v881_v17  ;;  %v422_v29 = vmul.f32 %v1127_v7, %v882_v23 }
   0x7   :  { %v419_v14 = vmul.f32 %v1127_v7, %v877_v6  ;;  %v420_v15 = vmul.f32 %v1127_v7, %v878_v8  ;;  %v225_v34 = vadd.f32 %v1119_v3, %v157_v26  ;;  %v226_v36 = vadd.f32 %v1119_v3, %v158_v28  ;;  %v1006_v54 = vld [vmem:[%s1788_s0 + $0x20] sm:$0xff]  }
   0x8   :  { %v489_v35 = vadd.f32 %v1133_v10, %v421_v27  ;;  %v490_v37 = vadd.f32 %v1133_v10, %v422_v29  ;;  %v423_v39 = vmul.f32 %v1127_v7, %v885_v31  ;;  %v227_v47 = vadd.f32 %v1119_v3, %v159_v38  ;;  %v1037_v59 = vld [vmem:[%s1791_s3 + $0x20] sm:$0xff]  }
   0x9   :  { %v487_v24 = vadd.f32 %v1133_v10, %v419_v14  ;;  %v488_v25 = vadd.f32 %v1133_v10, %v420_v15  ;;  %v886_v49 = vunpack.c.h.bf16 %v1035_v19  ;;  %v160_v51 = vmul.f32 %v1114_v1, %v758_v45 }
   0xa   :  { %v553_v44 = vadd.f32 %v489_v35, %v225_v34  ;;  %v554_v46 = vadd.f32 %v490_v37, %v226_v36  ;;  %v491_v48 = vadd.f32 %v1133_v10, %v423_v39  ;;  %v761_v52 = vunpack.c.l.bf16 %v1005_v40  ;;  %v1039_v35 = vld [vmem:[%s1791_s3 + $0x30] sm:$0xff]  }
   0xb   :  { %v551_v32 = vadd.f32 %v487_v24, %v223_v20  ;;  %v552_v33 = vadd.f32 %v488_v25, %v224_v21  ;;  %v889_v53 = vunpack.c.l.bf16 %v1036_v41  ;;  %v424_v57 = vmul.f32 %v1127_v7, %v886_v49  ;;  %v1038_v21 = vld [vmem:[%s1791_s3 + $0x28] sm:$0xff]  }
   0xc   :  { %v617_v50 = vmax.f32 %v553_v44, 0.0  ;;  %v618_v55 = vmax.f32 %v554_v46, 0.0  ;;  %v555_v56 = vadd.f32 %v491_v48, %v227_v47  ;;  %v762_v58 = vunpack.c.h.bf16 %v1005_v40  ;;  %v1009_v48 = vld [vmem:[%s1788_s0 + $0x38] sm:$0xff]  }
   0xd   :  { %v615_v42 = vmax.f32 %v551_v32, 0.0  ;;  %v616_v43 = vmax.f32 %v552_v33, 0.0  ;;  %v228_v60 = vadd.f32 %v1119_v3, %v160_v51  ;;  %v161_v61 = vmul.f32 %v1114_v1, %v761_v52 }
   0xe   :  { %681 = vst [vmem:[%s1794_s6 + $0x10] sm:$0xff] %v617_v50  ;;  %v425_v62 = vmul.f32 %v1127_v7, %v889_v53  ;;  %v890_v63 = vunpack.c.h.bf16 %v1036_v41  ;;  %v619_v0 = vmax.f32 %v555_v56, 0.0  ;;  %v492_v2 = vadd.f32 %v1133_v10, %v424_v57  ;;  %v1040_v53 = vld [vmem:[%s1791_s3 + $0x38] sm:$0xff]  }
   0xf   :  { %679 = vst [vmem:[%s1794_s6] sm:$0xff] %v615_v42  ;;  %v162_v4 = vmul.f32 %v1114_v1, %v762_v58  ;;  %v765_v5 = vunpack.c.l.bf16 %v1006_v54  ;;  %v229_v6 = vadd.f32 %v1119_v3, %v161_v61  ;;  %v893_v11 = vunpack.c.l.bf16 %v1037_v59 }
  0x10   :  { %680 = vst [vmem:[%s1794_s6 + $0x8] sm:$0xff] %v616_v43  ;;  %v493_v8 = vadd.f32 %v1133_v10, %v425_v62  ;;  %v426_v9 = vmul.f32 %v1127_v7, %v890_v63  ;;  %v556_v13 = vadd.f32 %v492_v2, %v228_v60  ;;  %v766_v16 = vunpack.c.h.bf16 %v1006_v54 }
  0x11   :  { %682 = vst [vmem:[%s1794_s6 + $0x18] sm:$0xff] %v618_v55  ;;  %v230_v14 = vadd.f32 %v1119_v3, %v162_v4  ;;  %v163_v15 = vmul.f32 %v1114_v1, %v765_v5  ;;  %v427_v19 = vmul.f32 %v1127_v7, %v893_v11  ;;  %v894_v20 = vunpack.c.h.bf16 %v1037_v59  ;;  %v1010_v4 = vld [vmem:[%s1788_s0 + $0x40] sm:$0xff]  }
  0x12   :  { %683 = vst [vmem:[%s1794_s6 + $0x20] sm:$0xff] %v619_v0  ;;  %v557_v17 = vadd.f32 %v493_v8, %v229_v6  ;;  %v494_v18 = vadd.f32 %v1133_v10, %v426_v9  ;;  %v620_v22 = vmax.f32 %v556_v13, 0.0  ;;  %v164_v24 = vmul.f32 %v1114_v1, %v766_v16  ;;  %v1041_v11 = vld [vmem:[%s1791_s3 + $0x40] sm:$0xff]  }
  0x13   :  { %v231_v23 = vadd.f32 %v1119_v3, %v163_v15  ;;  %v769_v25 = vunpack.c.l.bf16 %v1007_v12  ;;  %v495_v28 = vadd.f32 %v1133_v10, %v427_v19  ;;  %v428_v29 = vmul.f32 %v1127_v7, %v894_v20 }
  0x14   :  { %v621_v26 = vmax.f32 %v557_v17, 0.0  ;;  %v558_v27 = vadd.f32 %v494_v18, %v230_v14  ;;  %684 = vst [vmem:[%s1794_s6 + $0x28] sm:$0xff] %v620_v22  ;;  %v232_v31 = vadd.f32 %v1119_v3, %v164_v24  ;;  %v897_v33 = vunpack.c.l.bf16 %v1038_v21  ;;  %v1011_v24 = vld [vmem:[%s1788_s0 + $0x48] sm:$0xff]  }
  0x15   :  { %v165_v32 = vmul.f32 %v1114_v1, %v769_v25  ;;  %v770_v34 = vunpack.c.h.bf16 %v1007_v12  ;;  %v559_v37 = vadd.f32 %v495_v28, %v231_v23  ;;  %v496_v38 = vadd.f32 %v1133_v10, %v428_v29  ;;  %v1042_v29 = vld [vmem:[%s1791_s3 + $0x48] sm:$0xff]  }
  0x16   :  { %685 = vst [vmem:[%s1794_s6 + $0x30] sm:$0xff] %v621_v26  ;;  %v622_v36 = vmax.f32 %v558_v27, 0.0  ;;  %v898_v39 = vunpack.c.h.bf16 %v1038_v21  ;;  %v429_v41 = vmul.f32 %v1127_v7, %v897_v33  ;;  %v773_v43 = vunpack.c.l.bf16 %v1008_v30 }
  0x17   :  { %v233_v40 = vadd.f32 %v1119_v3, %v165_v32  ;;  %v166_v42 = vmul.f32 %v1114_v1, %v770_v34  ;;  %v623_v44 = vmax.f32 %v559_v37, 0.0  ;;  %v560_v45 = vadd.f32 %v496_v38, %v232_v31 }
  0x18   :  { %686 = vst [vmem:[%s1794_s6 + $0x38] sm:$0xff] %v622_v36  ;;  %v430_v46 = vmul.f32 %v1127_v7, %v898_v39  ;;  %v901_v47 = vunpack.c.l.bf16 %v1039_v35  ;;  %v497_v49 = vadd.f32 %v1133_v10, %v429_v41  ;;  %v167_v51 = vmul.f32 %v1114_v1, %v773_v43 }
  0x19   :  { %v234_v50 = vadd.f32 %v1119_v3, %v166_v42  ;;  %v774_v52 = vunpack.c.h.bf16 %v1008_v30  ;;  %687 = vst [vmem:[%s1794_s6 + $0x40] sm:$0xff] %v623_v44  ;;  %v624_v54 = vmax.f32 %v560_v45, 0.0  ;;  %v902_v57 = vunpack.c.h.bf16 %v1039_v35  ;;  %v1012_v42 = vld [vmem:[%s1788_s0 + $0x50] sm:$0xff]  }
  0x1a   :  { %v498_v55 = vadd.f32 %v1133_v10, %v430_v46  ;;  %v431_v56 = vmul.f32 %v1127_v7, %v901_v47  ;;  %v561_v58 = vadd.f32 %v497_v49, %v233_v40  ;;  %v235_v59 = vadd.f32 %v1119_v3, %v167_v51  ;;  %v1043_v51 = vld [vmem:[%s1791_s3 + $0x50] sm:$0xff]  }
  0x1b   :  { %v168_v60 = vmul.f32 %v1114_v1, %v774_v52  ;;  %v777_v61 = vunpack.c.l.bf16 %v1009_v48  ;;  %688 = vst [vmem:[%s1794_s6 + $0x48] sm:$0xff] %v624_v54  ;;  %v432_v0 = vmul.f32 %v1127_v7, %v902_v57  ;;  %v905_v2 = vunpack.c.l.bf16 %v1040_v53 }
  0x1c   :  { %v562_v62 = vadd.f32 %v498_v55, %v234_v50  ;;  %v499_v63 = vadd.f32 %v1133_v10, %v431_v56  ;;  %v625_v5 = vmax.f32 %v561_v58, 0.0  ;;  %v778_v9 = vunpack.c.h.bf16 %v1009_v48 }
  0x1d   :  { %v236_v6 = vadd.f32 %v1119_v3, %v168_v60  ;;  %v169_v8 = vmul.f32 %v1114_v1, %v777_v61  ;;  %v500_v14 = vadd.f32 %v1133_v10, %v432_v0  ;;  %v433_v15 = vmul.f32 %v1127_v7, %v905_v2  ;;  %v1013_v60 = vld [vmem:[%s1788_s0 + $0x58] sm:$0xff]  }
  0x1e   :  { %v626_v12 = vmax.f32 %v562_v62, 0.0  ;;  %v563_v13 = vadd.f32 %v499_v63, %v235_v59  ;;  %689 = vst [vmem:[%s1794_s6 + $0x50] sm:$0xff] %v625_v5  ;;  %v170_v17 = vmul.f32 %v1114_v1, %v778_v9  ;;  %v906_v18 = vunpack.c.h.bf16 %v1040_v53  ;;  %v1044_v2 = vld [vmem:[%s1791_s3 + $0x58] sm:$0xff]  }
  0x1f   :  { %v237_v16 = vadd.f32 %v1119_v3, %v169_v8  ;;  %v781_v19 = vunpack.c.l.bf16 %v1010_v4  ;;  %v564_v21 = vadd.f32 %v500_v14, %v236_v6  ;;  %v501_v22 = vadd.f32 %v1133_v10, %v433_v15 }
  0x20   :  { %690 = vst [vmem:[%s1794_s6 + $0x58] sm:$0xff] %v626_v12  ;;  %v627_v20 = vmax.f32 %v563_v13, 0.0  ;;  %v909_v23 = vunpack.c.l.bf16 %v1041_v11  ;;  %v238_v25 = vadd.f32 %v1119_v3, %v170_v17  ;;  %v434_v26 = vmul.f32 %v1127_v7, %v906_v18  ;;  %v1014_v18 = vld [vmem:[%s1788_s0 + $0x60] sm:$0xff]  }
  0x21   :  { %v171_v27 = vmul.f32 %v1114_v1, %v781_v19  ;;  %v782_v28 = vunpack.c.h.bf16 %v1010_v4  ;;  %v628_v30 = vmax.f32 %v564_v21, 0.0  ;;  %v565_v31 = vadd.f32 %v501_v22, %v237_v16 }
  0x22   :  { %691 = vst [vmem:[%s1794_s6 + $0x60] sm:$0xff] %v627_v20  ;;  %v435_v32 = vmul.f32 %v1127_v7, %v909_v23  ;;  %v910_v33 = vunpack.c.h.bf16 %v1041_v11  ;;  %v502_v34 = vadd.f32 %v1133_v10, %v434_v26  ;;  %v785_v37 = vunpack.c.l.bf16 %v1011_v24  ;;  %v1045_v23 = vld [vmem:[%s1791_s3 + $0x60] sm:$0xff]  }
  0x23   :  { %v239_v35 = vadd.f32 %v1119_v3, %v171_v27  ;;  %v172_v36 = vmul.f32 %v1114_v1, %v782_v28  ;;  %692 = vst [vmem:[%s1794_s6 + $0x68] sm:$0xff] %v628_v30  ;;  %v629_v38 = vmax.f32 %v565_v31, 0.0  ;;  %v913_v41 = vunpack.c.l.bf16 %v1042_v29 }
  0x24   :  { %v503_v39 = vadd.f32 %v1133_v10, %v435_v32  ;;  %v436_v40 = vmul.f32 %v1127_v7, %v910_v33  ;;  %v566_v43 = vadd.f32 %v502_v34, %v238_v25  ;;  %v173_v45 = vmul.f32 %v1114_v1, %v785_v37 }
  0x25   :  { %v240_v44 = vadd.f32 %v1119_v3, %v172_v36  ;;  %v786_v46 = vunpack.c.h.bf16 %v1011_v24  ;;  %693 = vst [vmem:[%s1794_s6 + $0x70] sm:$0xff] %v629_v38  ;;  %v437_v49 = vmul.f32 %v1127_v7, %v913_v41  ;;  %v914_v50 = vunpack.c.h.bf16 %v1042_v29  ;;  %v1015_v36 = vld [vmem:[%s1788_s0 + $0x68] sm:$0xff]  }
  0x26   :  { %v567_v47 = vadd.f32 %v503_v39, %v239_v35  ;;  %v504_v48 = vadd.f32 %v1133_v10, %v436_v40  ;;  %v630_v52 = vmax.f32 %v566_v43, 0.0  ;;  %v241_v53 = vadd.f32 %v1119_v3, %v173_v45  ;;  %v1046_v41 = vld [vmem:[%s1791_s3 + $0x68] sm:$0xff]  }
  0x27   :  { %v174_v54 = vmul.f32 %v1114_v1, %v786_v46  ;;  %v789_v55 = vunpack.c.l.bf16 %v1012_v42  ;;  %v505_v58 = vadd.f32 %v1133_v10, %v437_v49  ;;  %v438_v59 = vmul.f32 %v1127_v7, %v914_v50 }
  0x28   :  { %v631_v56 = vmax.f32 %v567_v47, 0.0  ;;  %v568_v57 = vadd.f32 %v504_v48, %v240_v44  ;;  %694 = vst [vmem:[%s1794_s6 + $0x78] sm:$0xff] %v630_v52  ;;  %v917_v63 = vunpack.c.l.bf16 %v1043_v51  ;;  %v790_v0 = vunpack.c.h.bf16 %v1012_v42 }
  0x29   :  { %v242_v61 = vadd.f32 %v1119_v3, %v174_v54  ;;  %v175_v62 = vmul.f32 %v1114_v1, %v789_v55  ;;  %v569_v5 = vadd.f32 %v505_v58, %v241_v53  ;;  %v506_v6 = vadd.f32 %v1133_v10, %v438_v59  ;;  %v1016_v54 = vld [vmem:[%s1788_s0 + $0x70] sm:$0xff]  }
  0x2a   :  { %695 = vst [vmem:[%s1794_s6 + $0x80] sm:$0xff] %v631_v56  ;;  %v632_v4 = vmax.f32 %v568_v57, 0.0  ;;  %v918_v8 = vunpack.c.h.bf16 %v1043_v51  ;;  %v439_v11 = vmul.f32 %v1127_v7, %v917_v63  ;;  %v176_v12 = vmul.f32 %v1114_v1, %v790_v0  ;;  %v1047_v59 = vld [vmem:[%s1791_s3 + $0x70] sm:$0xff]  }
  0x2b   :  { %v243_v9 = vadd.f32 %v1119_v3, %v175_v62  ;;  %v793_v13 = vunpack.c.l.bf16 %v1013_v60  ;;  %v633_v14 = vmax.f32 %v569_v5, 0.0  ;;  %v570_v15 = vadd.f32 %v506_v6, %v242_v61 }
  0x2c   :  { %696 = vst [vmem:[%s1794_s6 + $0x88] sm:$0xff] %v632_v4  ;;  %v440_v16 = vmul.f32 %v1127_v7, %v918_v8  ;;  %v921_v17 = vunpack.c.l.bf16 %v1044_v2  ;;  %v507_v19 = vadd.f32 %v1133_v10, %v439_v11  ;;  %v244_v20 = vadd.f32 %v1119_v3, %v176_v12  ;;  %v1017_v12 = vld [vmem:[%s1788_s0 + $0x78] sm:$0xff]  }
  0x2d   :  { %v177_v21 = vmul.f32 %v1114_v1, %v793_v13  ;;  %v794_v22 = vunpack.c.h.bf16 %v1013_v60  ;;  %697 = vst [vmem:[%s1794_s6 + $0x90] sm:$0xff] %v633_v14  ;;  %v634_v24 = vmax.f32 %v570_v15, 0.0  ;;  %v922_v27 = vunpack.c.h.bf16 %v1044_v2 }
  0x2e   :  { %v508_v25 = vadd.f32 %v1133_v10, %v440_v16  ;;  %v441_v26 = vmul.f32 %v1127_v7, %v921_v17  ;;  %v571_v28 = vadd.f32 %v507_v19, %v243_v9  ;;  %v797_v31 = vunpack.c.l.bf16 %v1014_v18 }
  0x2f   :  { %v245_v29 = vadd.f32 %v1119_v3, %v177_v21  ;;  %v178_v30 = vmul.f32 %v1114_v1, %v794_v22  ;;  %698 = vst [vmem:[%s1794_s6 + $0x98] sm:$0xff] %v634_v24  ;;  %v442_v34 = vmul.f32 %v1127_v7, %v922_v27  ;;  %v925_v35 = vunpack.c.l.bf16 %v1045_v23  ;;  %v1048_v21 = vld [vmem:[%s1791_s3 + $0x78] sm:$0xff]  }
  0x30   :  { %v572_v32 = vadd.f32 %v508_v25, %v244_v20  ;;  %v509_v33 = vadd.f32 %v1133_v10, %v441_v26  ;;  %v635_v37 = vmax.f32 %v571_v28, 0.0  ;;  %v179_v39 = vmul.f32 %v1114_v1, %v797_v31 }
  0x31   :  { %v246_v38 = vadd.f32 %v1119_v3, %v178_v30  ;;  %v798_v40 = vunpack.c.h.bf16 %v1014_v18  ;;  %v510_v44 = vadd.f32 %v1133_v10, %v442_v34  ;;  %v443_v45 = vmul.f32 %v1127_v7, %v925_v35  ;;  %v1018_v30 = vld [vmem:[%s1788_s0 + $0x80] sm:$0xff]  }
  0x32   :  { %v636_v42 = vmax.f32 %v572_v32, 0.0  ;;  %v573_v43 = vadd.f32 %v509_v33, %v245_v29  ;;  %699 = vst [vmem:[%s1794_s6 + $0xa0] sm:$0xff] %v635_v37  ;;  %v247_v46 = vadd.f32 %v1119_v3, %v179_v39  ;;  %v926_v48 = vunpack.c.h.bf16 %v1045_v23  ;;  %v1049_v35 = vld [vmem:[%s1791_s3 + $0x80] sm:$0xff]  }
  0x33   :  { %v180_v47 = vmul.f32 %v1114_v1, %v798_v40  ;;  %v801_v49 = vunpack.c.l.bf16 %v1015_v36  ;;  %v574_v51 = vadd.f32 %v510_v44, %v246_v38  ;;  %v511_v52 = vadd.f32 %v1133_v10, %v443_v45 }
  0x34   :  { %700 = vst [vmem:[%s1794_s6 + $0xa8] sm:$0xff] %v636_v42  ;;  %v637_v50 = vmax.f32 %v573_v43, 0.0  ;;  %v929_v53 = vunpack.c.l.bf16 %v1046_v41  ;;  %v444_v56 = vmul.f32 %v1127_v7, %v926_v48  ;;  %v802_v58 = vunpack.c.h.bf16 %v1015_v36  ;;  %v1019_v48 = vld [vmem:[%s1788_s0 + $0x88] sm:$0xff]  }
  0x35   :  { %v248_v55 = vadd.f32 %v1119_v3, %v180_v47  ;;  %v181_v57 = vmul.f32 %v1114_v1, %v801_v49  ;;  %v638_v60 = vmax.f32 %v574_v51, 0.0  ;;  %v575_v61 = vadd.f32 %v511_v52, %v247_v46 }
  0x36   :  { %701 = vst [vmem:[%s1794_s6 + $0xb0] sm:$0xff] %v637_v50  ;;  %v445_v62 = vmul.f32 %v1127_v7, %v929_v53  ;;  %v930_v63 = vunpack.c.h.bf16 %v1046_v41  ;;  %v512_v0 = vadd.f32 %v1133_v10, %v444_v56  ;;  %v182_v4 = vmul.f32 %v1114_v1, %v802_v58  ;;  %v1050_v53 = vld [vmem:[%s1791_s3 + $0x88] sm:$0xff]  }
  0x37   :  { %v249_v2 = vadd.f32 %v1119_v3, %v181_v57  ;;  %v805_v5 = vunpack.c.l.bf16 %v1016_v54  ;;  %702 = vst [vmem:[%s1794_s6 + $0xb8] sm:$0xff] %v638_v60  ;;  %v639_v6 = vmax.f32 %v575_v61, 0.0  ;;  %v933_v11 = vunpack.c.l.bf16 %v1047_v59 }
  0x38   :  { %v513_v8 = vadd.f32 %v1133_v10, %v445_v62  ;;  %v446_v9 = vmul.f32 %v1127_v7, %v930_v63  ;;  %v576_v13 = vadd.f32 %v512_v0, %v248_v55  ;;  %v250_v14 = vadd.f32 %v1119_v3, %v182_v4  ;;  %v1020_v4 = vld [vmem:[%s1788_s0 + $0x90] sm:$0xff]  }
  0x39   :  { %v183_v15 = vmul.f32 %v1114_v1, %v805_v5  ;;  %v806_v16 = vunpack.c.h.bf16 %v1016_v54  ;;  %703 = vst [vmem:[%s1794_s6 + $0xc0] sm:$0xff] %v639_v6  ;;  %v447_v19 = vmul.f32 %v1127_v7, %v933_v11  ;;  %v934_v20 = vunpack.c.h.bf16 %v1047_v59  ;;  %v1051_v11 = vld [vmem:[%s1791_s3 + $0x90] sm:$0xff]  }
  0x3a   :  { %v577_v17 = vadd.f32 %v513_v8, %v249_v2  ;;  %v514_v18 = vadd.f32 %v1133_v10, %v446_v9  ;;  %v640_v22 = vmax.f32 %v576_v13, 0.0  ;;  %v809_v25 = vunpack.c.l.bf16 %v1017_v12 }
  0x3b   :  { %v251_v23 = vadd.f32 %v1119_v3, %v183_v15  ;;  %v184_v24 = vmul.f32 %v1114_v1, %v806_v16  ;;  %v515_v28 = vadd.f32 %v1133_v10, %v447_v19  ;;  %v448_v29 = vmul.f32 %v1127_v7, %v934_v20 }
  0x3c   :  { %v641_v26 = vmax.f32 %v577_v17, 0.0  ;;  %v578_v27 = vadd.f32 %v514_v18, %v250_v14  ;;  %704 = vst [vmem:[%s1794_s6 + $0xc8] sm:$0xff] %v640_v22  ;;  %v185_v32 = vmul.f32 %v1114_v1, %v809_v25  ;;  %v937_v33 = vunpack.c.l.bf16 %v1048_v21 }
  0x3d   :  { %v252_v31 = vadd.f32 %v1119_v3, %v184_v24  ;;  %v810_v34 = vunpack.c.h.bf16 %v1017_v12  ;;  %v579_v37 = vadd.f32 %v515_v28, %v251_v23  ;;  %v516_v38 = vadd.f32 %v1133_v10, %v448_v29  ;;  %v1021_v24 = vld [vmem:[%s1788_s0 + $0x98] sm:$0xff]  }
  0x3e   :  { %705 = vst [vmem:[%s1794_s6 + $0xd0] sm:$0xff] %v641_v26  ;;  %v642_v36 = vmax.f32 %v578_v27, 0.0  ;;  %v938_v39 = vunpack.c.h.bf16 %v1048_v21  ;;  %v253_v40 = vadd.f32 %v1119_v3, %v185_v32  ;;  %v449_v41 = vmul.f32 %v1127_v7, %v937_v33  ;;  %v1052_v29 = vld [vmem:[%s1791_s3 + $0x98] sm:$0xff]  }
  0x3f   :  { %v186_v42 = vmul.f32 %v1114_v1, %v810_v34  ;;  %v813_v43 = vunpack.c.l.bf16 %v1018_v30  ;;  %v643_v44 = vmax.f32 %v579_v37, 0.0  ;;  %v580_v45 = vadd.f32 %v516_v38, %v252_v31 }
  0x40   :  { %706 = vst [vmem:[%s1794_s6 + $0xd8] sm:$0xff] %v642_v36  ;;  %v450_v46 = vmul.f32 %v1127_v7, %v938_v39  ;;  %v941_v47 = vunpack.c.l.bf16 %v1049_v35  ;;  %v517_v49 = vadd.f32 %v1133_v10, %v449_v41  ;;  %v814_v52 = vunpack.c.h.bf16 %v1018_v30 }
  0x41   :  { %v254_v50 = vadd.f32 %v1119_v3, %v186_v42  ;;  %v187_v51 = vmul.f32 %v1114_v1, %v813_v43  ;;  %707 = vst [vmem:[%s1794_s6 + $0xe0] sm:$0xff] %v643_v44  ;;  %v644_v54 = vmax.f32 %v580_v45, 0.0  ;;  %v942_v57 = vunpack.c.h.bf16 %v1049_v35  ;;  %v1022_v42 = vld [vmem:[%s1788_s0 + $0xa0] sm:$0xff]  }
  0x42   :  { %v518_v55 = vadd.f32 %v1133_v10, %v450_v46  ;;  %v451_v56 = vmul.f32 %v1127_v7, %v941_v47  ;;  %v581_v58 = vadd.f32 %v517_v49, %v253_v40  ;;  %v188_v60 = vmul.f32 %v1114_v1, %v814_v52 }
  0x43   :  { %v255_v59 = vadd.f32 %v1119_v3, %v187_v51  ;;  %v817_v61 = vunpack.c.l.bf16 %v1019_v48  ;;  %708 = vst [vmem:[%s1794_s6 + $0xe8] sm:$0xff] %v644_v54  ;;  %v452_v0 = vmul.f32 %v1127_v7, %v942_v57  ;;  %v945_v2 = vunpack.c.l.bf16 %v1050_v53  ;;  %v1053_v51 = vld [vmem:[%s1791_s3 + $0xa0] sm:$0xff]  }
  0x44   :  { %v582_v62 = vadd.f32 %v518_v55, %v254_v50  ;;  %v519_v63 = vadd.f32 %v1133_v10, %v451_v56  ;;  %v645_v5 = vmax.f32 %v581_v58, 0.0  ;;  %v256_v6 = vadd.f32 %v1119_v3, %v188_v60  ;;  %v1023_v60 = vld [vmem:[%s1788_s0 + $0xa8] sm:$0xff]  }
  0x45   :  { %v189_v8 = vmul.f32 %v1114_v1, %v817_v61  ;;  %v818_v9 = vunpack.c.h.bf16 %v1019_v48  ;;  %v520_v14 = vadd.f32 %v1133_v10, %v452_v0  ;;  %v453_v15 = vmul.f32 %v1127_v7, %v945_v2  ;;  %v1054_v2 = vld [vmem:[%s1791_s3 + $0xa8] sm:$0xff]  }
  0x46   :  { %v646_v12 = vmax.f32 %v582_v62, 0.0  ;;  %v583_v13 = vadd.f32 %v519_v63, %v255_v59  ;;  %709 = vst [vmem:[%s1794_s6 + $0xf0] sm:$0xff] %v645_v5  ;;  %v946_v18 = vunpack.c.h.bf16 %v1050_v53  ;;  %v821_v19 = vunpack.c.l.bf16 %v1020_v4 }
  0x47   :  { %v257_v16 = vadd.f32 %v1119_v3, %v189_v8  ;;  %v190_v17 = vmul.f32 %v1114_v1, %v818_v9  ;;  %v584_v21 = vadd.f32 %v520_v14, %v256_v6  ;;  %v521_v22 = vadd.f32 %v1133_v10, %v453_v15 }
  0x48   :  { %710 = vst [vmem:[%s1794_s6 + $0xf8] sm:$0xff] %v646_v12  ;;  %v647_v20 = vmax.f32 %v583_v13, 0.0  ;;  %v949_v23 = vunpack.c.l.bf16 %v1051_v11  ;;  %v454_v26 = vmul.f32 %v1127_v7, %v946_v18  ;;  %v191_v27 = vmul.f32 %v1114_v1, %v821_v19  ;;  %v1024_v18 = vld [vmem:[%s1788_s0 + $0xb0] sm:$0xff]  }
  0x49   :  { %v258_v25 = vadd.f32 %v1119_v3, %v190_v17  ;;  %v822_v28 = vunpack.c.h.bf16 %v1020_v4  ;;  %v648_v30 = vmax.f32 %v584_v21, 0.0  ;;  %v585_v31 = vadd.f32 %v521_v22, %v257_v16 }
  0x4a   :  { %711 = vst [vmem:[%s1794_s6 + $0x100] sm:$0xff] %v647_v20  ;;  %v455_v32 = vmul.f32 %v1127_v7, %v949_v23  ;;  %v950_v33 = vunpack.c.h.bf16 %v1051_v11  ;;  %v522_v34 = vadd.f32 %v1133_v10, %v454_v26  ;;  %v259_v35 = vadd.f32 %v1119_v3, %v191_v27  ;;  %v1055_v23 = vld [vmem:[%s1791_s3 + $0xb0] sm:$0xff]  }
  0x4b   :  { %v192_v36 = vmul.f32 %v1114_v1, %v822_v28  ;;  %v825_v37 = vunpack.c.l.bf16 %v1021_v24  ;;  %712 = vst [vmem:[%s1794_s6 + $0x108] sm:$0xff] %v648_v30  ;;  %v649_v38 = vmax.f32 %v585_v31, 0.0  ;;  %v953_v41 = vunpack.c.l.bf16 %v1052_v29 }
  0x4c   :  { %v523_v39 = vadd.f32 %v1133_v10, %v455_v32  ;;  %v456_v40 = vmul.f32 %v1127_v7, %v950_v33  ;;  %v586_v43 = vadd.f32 %v522_v34, %v258_v25  ;;  %v826_v46 = vunpack.c.h.bf16 %v1021_v24 }
  0x4d   :  { %v260_v44 = vadd.f32 %v1119_v3, %v192_v36  ;;  %v193_v45 = vmul.f32 %v1114_v1, %v825_v37  ;;  %713 = vst [vmem:[%s1794_s6 + $0x110] sm:$0xff] %v649_v38  ;;  %v457_v49 = vmul.f32 %v1127_v7, %v953_v41  ;;  %v954_v50 = vunpack.c.h.bf16 %v1052_v29  ;;  %v1025_v36 = vld [vmem:[%s1788_s0 + $0xb8] sm:$0xff]  }
  0x4e   :  { %v587_v47 = vadd.f32 %v523_v39, %v259_v35  ;;  %v524_v48 = vadd.f32 %v1133_v10, %v456_v40  ;;  %v650_v52 = vmax.f32 %v586_v43, 0.0  ;;  %v194_v54 = vmul.f32 %v1114_v1, %v826_v46  ;;  %v1056_v41 = vld [vmem:[%s1791_s3 + $0xb8] sm:$0xff]  }
  0x4f   :  { %v261_v53 = vadd.f32 %v1119_v3, %v193_v45  ;;  %v829_v55 = vunpack.c.l.bf16 %v1022_v42  ;;  %v525_v58 = vadd.f32 %v1133_v10, %v457_v49  ;;  %v458_v59 = vmul.f32 %v1127_v7, %v954_v50 }
  0x50   :  { %v651_v56 = vmax.f32 %v587_v47, 0.0  ;;  %v588_v57 = vadd.f32 %v524_v48, %v260_v44  ;;  %714 = vst [vmem:[%s1794_s6 + $0x118] sm:$0xff] %v650_v52  ;;  %v262_v61 = vadd.f32 %v1119_v3, %v194_v54  ;;  %v957_v63 = vunpack.c.l.bf16 %v1053_v51  ;;  %v1026_v54 = vld [vmem:[%s1788_s0 + $0xc0] sm:$0xff]  }
  0x51   :  { %v195_v62 = vmul.f32 %v1114_v1, %v829_v55  ;;  %v830_v0 = vunpack.c.h.bf16 %v1022_v42  ;;  %v589_v5 = vadd.f32 %v525_v58, %v261_v53  ;;  %v526_v6 = vadd.f32 %v1133_v10, %v458_v59  ;;  %v1057_v59 = vld [vmem:[%s1791_s3 + $0xc0] sm:$0xff]  }
  0x52   :  { %715 = vst [vmem:[%s1794_s6 + $0x120] sm:$0xff] %v651_v56  ;;  %v652_v4 = vmax.f32 %v588_v57, 0.0  ;;  %v958_v8 = vunpack.c.h.bf16 %v1053_v51  ;;  %v459_v11 = vmul.f32 %v1127_v7, %v957_v63  ;;  %v833_v13 = vunpack.c.l.bf16 %v1023_v60 }
  0x53   :  { %v263_v9 = vadd.f32 %v1119_v3, %v195_v62  ;;  %v196_v12 = vmul.f32 %v1114_v1, %v830_v0  ;;  %v653_v14 = vmax.f32 %v589_v5, 0.0  ;;  %v590_v15 = vadd.f32 %v526_v6, %v262_v61 }
  0x54   :  { %716 = vst [vmem:[%s1794_s6 + $0x128] sm:$0xff] %v652_v4  ;;  %v460_v16 = vmul.f32 %v1127_v7, %v958_v8  ;;  %v961_v17 = vunpack.c.l.bf16 %v1054_v2  ;;  %v527_v19 = vadd.f32 %v1133_v10, %v459_v11  ;;  %v197_v21 = vmul.f32 %v1114_v1, %v833_v13 }
  0x55   :  { %v264_v20 = vadd.f32 %v1119_v3, %v196_v12  ;;  %v834_v22 = vunpack.c.h.bf16 %v1023_v60  ;;  %717 = vst [vmem:[%s1794_s6 + $0x130] sm:$0xff] %v653_v14  ;;  %v654_v24 = vmax.f32 %v590_v15, 0.0  ;;  %v962_v27 = vunpack.c.h.bf16 %v1054_v2  ;;  %v1027_v12 = vld [vmem:[%s1788_s0 + $0xc8] sm:$0xff]  }
  0x56   :  { %v528_v25 = vadd.f32 %v1133_v10, %v460_v16  ;;  %v461_v26 = vmul.f32 %v1127_v7, %v961_v17  ;;  %v591_v28 = vadd.f32 %v527_v19, %v263_v9  ;;  %v265_v29 = vadd.f32 %v1119_v3, %v197_v21  ;;  %v1058_v21 = vld [vmem:[%s1791_s3 + $0xc8] sm:$0xff]  }
  0x57   :  { %v198_v30 = vmul.f32 %v1114_v1, %v834_v22  ;;  %v837_v31 = vunpack.c.l.bf16 %v1024_v18  ;;  %718 = vst [vmem:[%s1794_s6 + $0x138] sm:$0xff] %v654_v24  ;;  %v462_v34 = vmul.f32 %v1127_v7, %v962_v27  ;;  %v965_v35 = vunpack.c.l.bf16 %v1055_v23 }
  0x58   :  { %v592_v32 = vadd.f32 %v528_v25, %v264_v20  ;;  %v529_v33 = vadd.f32 %v1133_v10, %v461_v26  ;;  %v655_v37 = vmax.f32 %v591_v28, 0.0  ;;  %v838_v40 = vunpack.c.h.bf16 %v1024_v18 }
  0x59   :  { %v266_v38 = vadd.f32 %v1119_v3, %v198_v30  ;;  %v199_v39 = vmul.f32 %v1114_v1, %v837_v31  ;;  %v530_v44 = vadd.f32 %v1133_v10, %v462_v34  ;;  %v463_v45 = vmul.f32 %v1127_v7, %v965_v35  ;;  %v1028_v30 = vld [vmem:[%s1788_s0 + $0xd0] sm:$0xff]  }
  0x5a   :  { %v656_v42 = vmax.f32 %v592_v32, 0.0  ;;  %v593_v43 = vadd.f32 %v529_v33, %v265_v29  ;;  %719 = vst [vmem:[%s1794_s6 + $0x140] sm:$0xff] %v655_v37  ;;  %v200_v47 = vmul.f32 %v1114_v1, %v838_v40  ;;  %v966_v48 = vunpack.c.h.bf16 %v1055_v23  ;;  %v1059_v35 = vld [vmem:[%s1791_s3 + $0xd0] sm:$0xff]  }
  0x5b   :  { %v267_v46 = vadd.f32 %v1119_v3, %v199_v39  ;;  %v841_v49 = vunpack.c.l.bf16 %v1025_v36  ;;  %v594_v51 = vadd.f32 %v530_v44, %v266_v38  ;;  %v531_v52 = vadd.f32 %v1133_v10, %v463_v45 }
  0x5c   :  { %720 = vst [vmem:[%s1794_s6 + $0x148] sm:$0xff] %v656_v42  ;;  %v657_v50 = vmax.f32 %v593_v43, 0.0  ;;  %v969_v53 = vunpack.c.l.bf16 %v1056_v41  ;;  %v268_v55 = vadd.f32 %v1119_v3, %v200_v47  ;;  %v464_v56 = vmul.f32 %v1127_v7, %v966_v48 }
  0x5d   :  { %v201_v57 = vmul.f32 %v1114_v1, %v841_v49  ;;  %v842_v58 = vunpack.c.h.bf16 %v1025_v36  ;;  %v658_v60 = vmax.f32 %v594_v51, 0.0  ;;  %v595_v61 = vadd.f32 %v531_v52, %v267_v46  ;;  %v1651_v49 = vld [vmem:[%s1790_s2] ss:$0 sm:$0xff] }
  0x5e   :  { %721 = vst [vmem:[%s1794_s6 + $0x150] sm:$0xff] %v657_v50  ;;  %v465_v62 = vmul.f32 %v1127_v7, %v969_v53  ;;  %v970_v63 = vunpack.c.h.bf16 %v1056_v41  ;;  %v532_v0 = vadd.f32 %v1133_v10, %v464_v56  ;;  %v845_v5 = vunpack.c.l.bf16 %v1026_v54 }
  0x5f   :  { %v269_v2 = vadd.f32 %v1119_v3, %v201_v57  ;;  %v202_v4 = vmul.f32 %v1114_v1, %v842_v58  ;;  %722 = vst [vmem:[%s1794_s6 + $0x158] sm:$0xff] %v658_v60  ;;  %v659_v6 = vmax.f32 %v595_v61, 0.0  ;;  %v973_v11 = vunpack.c.l.bf16 %v1057_v59 }
  0x60   :  { %v533_v8 = vadd.f32 %v1133_v10, %v465_v62  ;;  %v466_v9 = vmul.f32 %v1127_v7, %v970_v63  ;;  %v596_v13 = vadd.f32 %v532_v0, %v268_v55  ;;  %v203_v15 = vmul.f32 %v1114_v1, %v845_v5  ;;  %v1670_v55 = vld [vmem:[%s1792_s4] ss:$0 sm:$0xff] }
  0x61   :  { %v270_v14 = vadd.f32 %v1119_v3, %v202_v4  ;;  %v846_v16 = vunpack.c.h.bf16 %v1026_v54  ;;  %723 = vst [vmem:[%s1794_s6 + $0x160] sm:$0xff] %v659_v6  ;;  %v467_v19 = vmul.f32 %v1127_v7, %v973_v11  ;;  %v974_v20 = vunpack.c.h.bf16 %v1057_v59  ;;  %v1030_v4 = vld [vmem:[%s1788_s0 + $0xe0] sm:$0xff]  }
  0x62   :  { %v597_v17 = vadd.f32 %v533_v8, %v269_v2  ;;  %v534_v18 = vadd.f32 %v1133_v10, %v466_v9  ;;  %v660_v22 = vmax.f32 %v596_v13, 0.0  ;;  %v271_v23 = vadd.f32 %v1119_v3, %v203_v15  ;;  %v1061_v11 = vld [vmem:[%s1791_s3 + $0xe0] sm:$0xff]  }
  0x63   :  { %v204_v24 = vmul.f32 %v1114_v1, %v846_v16  ;;  %v849_v25 = vunpack.c.l.bf16 %v1027_v12  ;;  %v535_v28 = vadd.f32 %v1133_v10, %v467_v19  ;;  %v468_v29 = vmul.f32 %v1127_v7, %v974_v20 }
  0x64   :  { %v661_v26 = vmax.f32 %v597_v17, 0.0  ;;  %v598_v27 = vadd.f32 %v534_v18, %v270_v14  ;;  %724 = vst [vmem:[%s1794_s6 + $0x168] sm:$0xff] %v660_v22  ;;  %v977_v33 = vunpack.c.l.bf16 %v1058_v21  ;;  %v850_v34 = vunpack.c.h.bf16 %v1027_v12 }
  0x65   :  { %v272_v31 = vadd.f32 %v1119_v3, %v204_v24  ;;  %v205_v32 = vmul.f32 %v1114_v1, %v849_v25  ;;  %v599_v37 = vadd.f32 %v535_v28, %v271_v23  ;;  %v536_v38 = vadd.f32 %v1133_v10, %v468_v29  ;;  %v1637_v1 = vld [vmem:[%s1789_s1] ss:$0 sm:$0xff]  ;;  %v1031_v24 = vld [vmem:[%s1788_s0 + $0xe8] sm:$0xff]  }
  0x66   :  { %725 = vst [vmem:[%s1794_s6 + $0x170] sm:$0xff] %v661_v26  ;;  %v662_v36 = vmax.f32 %v598_v27, 0.0  ;;  %v978_v39 = vunpack.c.h.bf16 %v1058_v21  ;;  %v469_v41 = vmul.f32 %v1127_v7, %v977_v33  ;;  %v206_v42 = vmul.f32 %v1637_v1, %v850_v34  ;;  %v1062_v29 = vld [vmem:[%s1791_s3 + $0xe8] sm:$0xff]  }
  0x67   :  { %v273_v40 = vadd.f32 %v1119_v3, %v205_v32  ;;  %v853_v43 = vunpack.c.l.bf16 %v1028_v30  ;;  %v663_v44 = vmax.f32 %v599_v37, 0.0  ;;  %v600_v45 = vadd.f32 %v536_v38, %v272_v31  ;;  %v1029_v3 = vld [vmem:[%s1788_s0 + $0xd8] sm:$0xff]  }
  0x68   :  { %726 = vst [vmem:[%s1794_s6 + $0x178] sm:$0xff] %v662_v36  ;;  %v470_v46 = vmul.f32 %v1127_v7, %v978_v39  ;;  %v981_v47 = vunpack.c.l.bf16 %v1059_v35  ;;  %v537_v48 = vadd.f32 %v1133_v10, %v469_v41  ;;  %v274_v50 = vadd.f32 %v1651_v49, %v206_v42  ;;  %v1060_v7 = vld [vmem:[%s1791_s3 + $0xd8] sm:$0xff]   ;;  %v1664_v10 = vld [vmem:[%s1793_s5] ss:$0 sm:$0xff]  ;;  %v1032_v42 = vld [vmem:[%s1788_s0 + $0xf0] sm:$0xff]  }
  0x69   :  { %v207_v51 = vmul.f32 %v1637_v1, %v853_v43  ;;  %v854_v52 = vunpack.c.h.bf16 %v1028_v30  ;;  %727 = vst [vmem:[%s1794_s6 + $0x180] sm:$0xff] %v663_v44  ;;  %v664_v53 = vmax.f32 %v600_v45, 0.0  ;;  %v982_v57 = vunpack.c.h.bf16 %v1059_v35 }
  0x6a   :  { %v538_v54 = vadd.f32 %v1664_v10, %v470_v46  ;;  %v471_v56 = vmul.f32 %v1670_v55, %v981_v47  ;;  %v601_v58 = vadd.f32 %v537_v48, %v273_v40  ;;  %v857_v61 = vunpack.c.l.bf16 %v1029_v3 }
  0x6b   :  { %v275_v59 = vadd.f32 %v1651_v49, %v207_v51  ;;  %v208_v60 = vmul.f32 %v1637_v1, %v854_v52  ;;  %728 = vst [vmem:[%s1794_s6 + $0x188] sm:$0xff] %v664_v53  ;;  %v472_v0 = vmul.f32 %v1670_v55, %v982_v57  ;;  %v985_v2 = vunpack.c.l.bf16 %v1060_v7  ;;  %v1063_v51 = vld [vmem:[%s1791_s3 + $0xf0] sm:$0xff]  }
  0x6c   :  { %v602_v62 = vadd.f32 %v538_v54, %v274_v50  ;;  %v539_v63 = vadd.f32 %v1664_v10, %v471_v56  ;;  %v665_v5 = vmax.f32 %v601_v58, 0.0  ;;  %v209_v8 = vmul.f32 %v1637_v1, %v857_v61 }
  0x6d   :  { %v276_v6 = vadd.f32 %v1651_v49, %v208_v60  ;;  %v858_v9 = vunpack.c.h.bf16 %v1029_v3  ;;  %v540_v14 = vadd.f32 %v1664_v10, %v472_v0  ;;  %v473_v15 = vmul.f32 %v1670_v55, %v985_v2  ;;  %v1033_v60 = vld [vmem:[%s1788_s0 + $0xf8] sm:$0xff]  }
  0x6e   :  { %v666_v12 = vmax.f32 %v602_v62, 0.0  ;;  %v603_v13 = vadd.f32 %v539_v63, %v275_v59  ;;  %729 = vst [vmem:[%s1794_s6 + $0x190] sm:$0xff] %v665_v5  ;;  %v277_v16 = vadd.f32 %v1651_v49, %v209_v8  ;;  %v986_v18 = vunpack.c.h.bf16 %v1060_v7  ;;  %v1064_v2 = vld [vmem:[%s1791_s3 + $0xf8] sm:$0xff]  }
  0x6f   :  { %v210_v17 = vmul.f32 %v1637_v1, %v858_v9  ;;  %v861_v19 = vunpack.c.l.bf16 %v1030_v4  ;;  %v604_v21 = vadd.f32 %v540_v14, %v276_v6  ;;  %v541_v22 = vadd.f32 %v1664_v10, %v473_v15 }
  0x70   :  { %730 = vst [vmem:[%s1794_s6 + $0x198] sm:$0xff] %v666_v12  ;;  %v667_v20 = vmax.f32 %v603_v13, 0.0  ;;  %v989_v23 = vunpack.c.l.bf16 %v1061_v11  ;;  %v474_v26 = vmul.f32 %v1670_v55, %v986_v18  ;;  %v862_v28 = vunpack.c.h.bf16 %v1030_v4 }
  0x71   :  { %v278_v25 = vadd.f32 %v1651_v49, %v210_v17  ;;  %v211_v27 = vmul.f32 %v1637_v1, %v861_v19  ;;  %v668_v30 = vmax.f32 %v604_v21, 0.0  ;;  %v605_v31 = vadd.f32 %v541_v22, %v277_v16 }
  0x72   :  { %731 = vst [vmem:[%s1794_s6 + $0x1a0] sm:$0xff] %v667_v20  ;;  %v475_v32 = vmul.f32 %v1670_v55, %v989_v23  ;;  %v990_v33 = vunpack.c.h.bf16 %v1061_v11  ;;  %v542_v34 = vadd.f32 %v1664_v10, %v474_v26  ;;  %v212_v36 = vmul.f32 %v1637_v1, %v862_v28 }
  0x73   :  { %v279_v35 = vadd.f32 %v1651_v49, %v211_v27  ;;  %v865_v37 = vunpack.c.l.bf16 %v1031_v24  ;;  %732 = vst [vmem:[%s1794_s6 + $0x1a8] sm:$0xff] %v668_v30  ;;  %v669_v38 = vmax.f32 %v605_v31, 0.0  ;;  %v993_v41 = vunpack.c.l.bf16 %v1062_v29 }
  0x74   :  { %v543_v39 = vadd.f32 %v1664_v10, %v475_v32  ;;  %v476_v40 = vmul.f32 %v1670_v55, %v990_v33  ;;  %v606_v43 = vadd.f32 %v542_v34, %v278_v25  ;;  %v280_v44 = vadd.f32 %v1651_v49, %v212_v36 }
  0x75   :  { %v213_v45 = vmul.f32 %v1637_v1, %v865_v37  ;;  %v866_v46 = vunpack.c.h.bf16 %v1031_v24  ;;  %733 = vst [vmem:[%s1794_s6 + $0x1b0] sm:$0xff] %v669_v38  ;;  %v477_v48 = vmul.f32 %v1670_v55, %v993_v41  ;;  %v994_v50 = vunpack.c.h.bf16 %v1062_v29 }
  0x76   :  { %v607_v47 = vadd.f32 %v543_v39, %v279_v35  ;;  %v544_v3 = vadd.f32 %v1664_v10, %v476_v40  ;;  %v670_v52 = vmax.f32 %v606_v43, 0.0  ;;  %v869_v54 = vunpack.c.l.bf16 %v1032_v42 }
  0x77   :  { %v281_v7 = vadd.f32 %v1651_v49, %v213_v45  ;;  %v214_v53 = vmul.f32 %v1637_v1, %v866_v46  ;;  %v545_v58 = vadd.f32 %v1664_v10, %v477_v48  ;;  %v478_v59 = vmul.f32 %v1670_v55, %v994_v50 }
  0x78   :  { %v671_v56 = vmax.f32 %v607_v47, 0.0  ;;  %v608_v57 = vadd.f32 %v544_v3, %v280_v44  ;;  %734 = vst [vmem:[%s1794_s6 + $0x1b8] sm:$0xff] %v670_v52  ;;  %v215_v62 = vmul.f32 %v1637_v1, %v869_v54  ;;  %v997_v63 = vunpack.c.l.bf16 %v1063_v51 }
  0x79   :  { %v282_v61 = vadd.f32 %v1651_v49, %v214_v53  ;;  %v870_v0 = vunpack.c.h.bf16 %v1032_v42  ;;  %v609_v5 = vadd.f32 %v545_v58, %v281_v7  ;;  %v546_v6 = vadd.f32 %v1664_v10, %v478_v59 }
  0x7a   :  { %735 = vst [vmem:[%s1794_s6 + $0x1c0] sm:$0xff] %v671_v56  ;;  %v672_v4 = vmax.f32 %v608_v57, 0.0  ;;  %v998_v8 = vunpack.c.h.bf16 %v1063_v51  ;;  %v283_v9 = vadd.f32 %v1651_v49, %v215_v62  ;;  %v479_v11 = vmul.f32 %v1670_v55, %v997_v63 }
  0x7b   :  { %v216_v12 = vmul.f32 %v1637_v1, %v870_v0  ;;  %v873_v13 = vunpack.c.l.bf16 %v1033_v60  ;;  %v673_v14 = vmax.f32 %v609_v5, 0.0  ;;  %v610_v15 = vadd.f32 %v546_v6, %v282_v61 }
  0x7c   :  { %736 = vst [vmem:[%s1794_s6 + $0x1c8] sm:$0xff] %v672_v4  ;;  %v480_v16 = vmul.f32 %v1670_v55, %v998_v8  ;;  %v1001_v17 = vunpack.c.l.bf16 %v1064_v2  ;;  %v547_v18 = vadd.f32 %v1664_v10, %v479_v11  ;;  %v874_v21 = vunpack.c.h.bf16 %v1033_v60 }
  0x7d   :  { %v284_v19 = vadd.f32 %v1651_v49, %v216_v12  ;;  %v217_v20 = vmul.f32 %v1637_v1, %v873_v13  ;;  %737 = vst [vmem:[%s1794_s6 + $0x1d0] sm:$0xff] %v673_v14  ;;  %v674_v22 = vmax.f32 %v610_v15, 0.0  ;;  %v1002_v25 = vunpack.c.h.bf16 %v1064_v2 }
  0x7e   :  { %v548_v23 = vadd.f32 %v1664_v10, %v480_v16  ;;  %v481_v24 = vmul.f32 %v1670_v55, %v1001_v17  ;;  %v611_v26 = vadd.f32 %v547_v18, %v283_v9  ;;  %v218_v28 = vmul.f32 %v1637_v1, %v874_v21 }
  0x7f   :  { %v285_v27 = vadd.f32 %v1651_v49, %v217_v20  ;;  %738 = vst [vmem:[%s1794_s6 + $0x1d8] sm:$0xff] %v674_v22  ;;  %v482_v31 = vmul.f32 %v1670_v55, %v1002_v25 }
  0x80   :  { %v612_v29 = vadd.f32 %v548_v23, %v284_v19  ;;  %v549_v30 = vadd.f32 %v1664_v10, %v481_v24  ;;  %v675_v32 = vmax.f32 %v611_v26, 0.0  ;;  %v286_v33 = vadd.f32 %v1651_v49, %v218_v28 }
  0x81   :  { %v550_v36 = vadd.f32 %v1664_v10, %v482_v31 }
  0x82   :  { %v676_v34 = vmax.f32 %v612_v29, 0.0  ;;  %v613_v35 = vadd.f32 %v549_v30, %v285_v27  ;;  %739 = vst [vmem:[%s1794_s6 + $0x1e0] sm:$0xff] %v675_v32 }
  0x83   :  { %v614_v37 = vadd.f32 %v550_v36, %v286_v33 }
  0x84   :  { %740 = vst [vmem:[%s1794_s6 + $0x1e8] sm:$0xff] %v676_v34  ;;  %v677_v1 = vmax.f32 %v613_v35, 0.0 }
  0x85   :  { %v678_v55 = vmax.f32 %v614_v37, 0.0 }
  0x86   :  { %741 = vst [vmem:[%s1794_s6 + $0x1f0] sm:$0xff] %v677_v1 }
  0x87   :  { %742 = vst [vmem:[%s1794_s6 + $0x1f8] sm:$0xff] %v678_v55 }

// kernel: bottleneck_forward.8
= control target key start
LH: loop header
LB: loop body
LE: loop exit
PB: predicated region body
PF: predicated region fallthrough
CT: control target
= control target key end

     0   :  { %vm814_vm0 = vcmask 1040384   ;;  %s2044_s3 = inlined_call_operand.vmem [shape: bf16[128,128], index: 3, kind: input, shape index: {}]   ;;  %s2045_s1 = inlined_call_operand.vmem [shape: f32[1,128], index: 1, kind: input, shape index: {}]   ;;  %s2046_s2 = inlined_call_operand.vmem [shape: f32[1,128], index: 2, kind: input, shape index: {}]   ;;  %s2047_s0 = inlined_call_operand.vmem [shape: bf16[512,128], index: 0, kind: input, shape index: {}]   ;;  %s2048_s4 = inlined_call_operand.vmem [shape: bf16[512,128], index: 4, kind: output, shape index: {0}]   ;;  %s2049_s5 = inlined_call_operand.vmem [shape: f32[1,2,128], index: 5, kind: output, shape index: {1}]  }
   0x1   :  { %v992_v0 = vld [vmem:[%s2044_s3 + $0x38] sm:$0xff]  ;;  %v991_v1 = vld [vmem:[%s2044_s3 + $0x30] sm:$0xff]  ;;  %v990_v2 = vld [vmem:[%s2044_s3 + $0x28] sm:$0xff] }
   0x2   :  { %443 = vmatpush.bf16.msra.mxu0 %v992_v0  ;;  %1343 = vmatpush.bf16.msra.mxu1 %v992_v0  ;;  %v989_v3 = vld [vmem:[%s2044_s3 + $0x20] sm:$0xff]  ;;  %v988_v8 = vld [vmem:[%s2044_s3 + $0x18] sm:$0xff]  ;;  %v987_v17 = vld [vmem:[%s2044_s3 + $0x10] sm:$0xff] }
   0x3   :  { %1344 = vmatpush.bf16.msra.mxu2 %v992_v0  ;;  %1345 = vmatpush.bf16.msra.mxu3 %v992_v0  ;;  %v994_v4 = vld [vmem:[%s2047_s0] sm:$0xff]   ;;  %v986_v22 = vld [vmem:[%s2044_s3 + $0x8] sm:$0xff]  ;;  %v1282_v47 = vld [vmem:[%s2047_s0 + $0x10] sm:$0xff]  }
   0x4   :  { %v995_v5 = vunpack.c.l.bf16 %v994_v4  ;;  %v996_v6 = vunpack.c.h.bf16 %v994_v4  ;;  %v1417_v7 = vld [vmem:[%s2045_s1] ss:$0 sm:$0xff]  ;;  %v1281_v25 = vld [vmem:[%s2047_s0 + $0x8] sm:$0xff]   ;;  %v1003_v54 = vunpack.c.l.bf16 %v1282_v47  ;;  %v1004_v55 = vunpack.c.h.bf16 %v1282_v47  ;;  %v1290_v60 = vld [vmem:[%s2047_s0 + $0x50] sm:$0xff]  }
   0x5   :  { %v1288_v9 = vld [vmem:[%s2047_s0 + $0x40] sm:$0xff]   ;;  %v999_v29 = vunpack.c.l.bf16 %v1281_v25  ;;  %v1000_v30 = vunpack.c.h.bf16 %v1281_v25  ;;  %v1289_v33 = vld [vmem:[%s2047_s0 + $0x48] sm:$0xff]   ;;  %v1035_v63 = vunpack.c.l.bf16 %v1290_v60  ;;  %v1036_v0 = vunpack.c.h.bf16 %v1290_v60 }
   0x6   :  { %444 = vmatpush.bf16.msra.mxu0 %v991_v1  ;;  %1346 = vmatpush.bf16.msra.mxu1 %v991_v1  ;;  %v1027_v10 = vunpack.c.l.bf16 %v1288_v9  ;;  %v1028_v11 = vunpack.c.h.bf16 %v1288_v9  ;;  %v151_v12 = vmul.f32 %v1417_v7, %v995_v5  ;;  %v152_v13 = vmul.f32 %v1417_v7, %v996_v6  ;;  %v1430_v14 = vld [vmem:[%s2046_s2] ss:$0 sm:$0xff] }
   0x7   :  { %1347 = vmatpush.bf16.msra.mxu2 %v991_v1  ;;  %1348 = vmatpush.bf16.msra.mxu3 %v991_v1  ;;  %v985_v28 = vld [vmem:[%s2044_s3] sm:$0xff]  ;;  %v1031_v34 = vunpack.c.l.bf16 %v1289_v33  ;;  %v1032_v35 = vunpack.c.h.bf16 %v1289_v33  ;;  %v153_v36 = vmul.f32 %v1417_v7, %v999_v29  ;;  %v154_v37 = vmul.f32 %v1417_v7, %v1000_v30 }
   0x8   :  { %v167_v15 = vmul.f32 %v1417_v7, %v1027_v10  ;;  %v168_v16 = vmul.f32 %v1417_v7, %v1028_v11  ;;  %v219_v18 = vadd.f32 %v1430_v14, %v151_v12  ;;  %v220_v19 = vadd.f32 %v1430_v14, %v152_v13  ;;  %v1296_v46 = vld [vmem:[%s2047_s0 + $0x80] sm:$0xff]   ;;  %v1297_v13 = vld [vmem:[%s2047_s0 + $0x88] sm:$0xff]  }
   0x9   :  { %v169_v38 = vmul.f32 %v1417_v7, %v1031_v34  ;;  %v170_v39 = vmul.f32 %v1417_v7, %v1032_v35  ;;  %v221_v40 = vadd.f32 %v1430_v14, %v153_v36  ;;  %v222_v41 = vadd.f32 %v1430_v14, %v154_v37  ;;  %v1304_v47 = vld [vmem:[%s2047_s0 + $0xc0] sm:$0xff]  }
   0xa   :  { %445 = vmatpush.bf16.msra.mxu0 %v990_v2  ;;  %1349 = vmatpush.bf16.msra.mxu1 %v990_v2  ;;  %v235_v20 = vadd.f32 %v1430_v14, %v167_v15  ;;  %v236_v21 = vadd.f32 %v1430_v14, %v168_v16  ;;  %v283_v23 = vmax.f32 %v219_v18, 0.0  ;;  %v284_v24 = vmax.f32 %v220_v19, 0.0  ;;  %v1283_v15 = vld [vmem:[%s2047_s0 + $0x18] sm:$0xff]  }
   0xb   :  { %1350 = vmatpush.bf16.msra.mxu2 %v990_v2  ;;  %1351 = vmatpush.bf16.msra.mxu3 %v990_v2  ;;  %v237_v42 = vadd.f32 %v1430_v14, %v169_v38  ;;  %v238_v43 = vadd.f32 %v1430_v14, %v170_v39  ;;  %v285_v44 = vmax.f32 %v221_v40, 0.0  ;;  %v286_v45 = vmax.f32 %v222_v41, 0.0 }
   0xc   :  { %v299_v26 = vmax.f32 %v235_v20, 0.0  ;;  %v300_v27 = vmax.f32 %v236_v21, 0.0  ;;  %v347_v31 = vpack.c.bf16 %v284_v24, %v283_v23  ;;  %v1059_v50 = vunpack.c.l.bf16 %v1296_v46 }
   0xd   :  { %v301_v48 = vmax.f32 %v237_v42, 0.0  ;;  %v302_v49 = vmax.f32 %v238_v43, 0.0  ;;  %v1060_v51 = vunpack.c.h.bf16 %v1296_v46  ;;  %v348_v56 = vpack.c.bf16 %v286_v45, %v285_v44  ;;  %v1298_v46 = vld [vmem:[%s2047_s0 + $0x90] sm:$0xff]  }
   0xe   :  { %446 = vmatpush.bf16.msra.mxu0 %v989_v3  ;;  %1352 = vmatpush.bf16.msra.mxu1 %v989_v3  ;;  %v355_v32 = vpack.c.bf16 %v300_v27, %v299_v26  ;;  %v183_v52 = vmul.f32 %v1417_v7, %v1059_v50  ;;  %v155_v1 = vmul.f32 %v1417_v7, %v1003_v54  ;;  %v1063_v18 = vunpack.c.l.bf16 %v1297_v13 }
   0xf   :  { %1353 = vmatpush.bf16.msra.mxu2 %v989_v3  ;;  %1354 = vmatpush.bf16.msra.mxu3 %v989_v3  ;;  %v184_v53 = vmul.f32 %v1417_v7, %v1060_v51  ;;  %v356_v57 = vpack.c.bf16 %v302_v49, %v301_v48  ;;  %v156_v2 = vmul.f32 %v1417_v7, %v1004_v55  ;;  %v1064_v19 = vunpack.c.h.bf16 %v1297_v13  ;;  %v1284_v48 = vld [vmem:[%s2047_s0 + $0x20] sm:$0xff]  }
  0x10   :  { %v251_v58 = vadd.f32 %v1430_v14, %v183_v52  ;;  %v171_v4 = vmul.f32 %v1417_v7, %v1035_v63  ;;  %v172_v5 = vmul.f32 %v1417_v7, %v1036_v0  ;;  %v223_v6 = vadd.f32 %v1430_v14, %v155_v1  ;;  %v1292_v1 = vld [vmem:[%s2047_s0 + $0x60] sm:$0xff]  }
  0x11   :  { %v252_v59 = vadd.f32 %v1430_v14, %v184_v53  ;;  %v185_v20 = vmul.f32 %v1417_v7, %v1063_v18  ;;  %v186_v21 = vmul.f32 %v1417_v7, %v1064_v19  ;;  %v1008_v23 = vunpack.c.h.bf16 %v1283_v15 }
  0x12   :  { %447 = vmatpush.bf16.msra.mxu0 %v988_v8  ;;  %1355 = vmatpush.bf16.msra.mxu1 %v988_v8  ;;  %v315_v61 = vmax.f32 %v251_v58, 0.0  ;;  %v239_v9 = vadd.f32 %v1430_v14, %v171_v4  ;;  %v240_v10 = vadd.f32 %v1430_v14, %v172_v5  ;;  %v287_v11 = vmax.f32 %v223_v6, 0.0 }
  0x13   :  { %1356 = vmatpush.bf16.msra.mxu2 %v988_v8  ;;  %1357 = vmatpush.bf16.msra.mxu3 %v988_v8  ;;  %v316_v62 = vmax.f32 %v252_v59, 0.0  ;;  %v224_v8 = vadd.f32 %v1430_v14, %v156_v2  ;;  %v253_v26 = vadd.f32 %v1430_v14, %v185_v20  ;;  %v254_v27 = vadd.f32 %v1430_v14, %v186_v21 }
  0x14   :  { %v303_v16 = vmax.f32 %v239_v9, 0.0  ;;  %v158_v34 = vmul.f32 %v1417_v7, %v1008_v23  ;;  %v1067_v49 = vunpack.c.l.bf16 %v1298_v46  ;;  %v1068_v50 = vunpack.c.h.bf16 %v1298_v46 }
  0x15   :  { %v363_v3 = vpack.c.bf16 %v316_v62, %v315_v61  ;;  %v288_v12 = vmax.f32 %v224_v8, 0.0  ;;  %v317_v29 = vmax.f32 %v253_v26, 0.0  ;;  %v318_v30 = vmax.f32 %v254_v27, 0.0  ;;  %v1285_v26 = vld [vmem:[%s2047_s0 + $0x28] sm:$0xff]  }
  0x16   :  { %448 = vmatpush.bf16.msra.mxu0 %v987_v17  ;;  %1358 = vmatpush.bf16.msra.mxu1 %v987_v17  ;;  %v226_v39 = vadd.f32 %v1430_v14, %v158_v34  ;;  %v1091_v51 = vunpack.c.l.bf16 %v1304_v47  ;;  %v1092_v52 = vunpack.c.h.bf16 %v1304_v47  ;;  %v187_v53 = vmul.f32 %v1417_v7, %v1067_v49 }
  0x17   :  { %1359 = vmatpush.bf16.msra.mxu2 %v987_v17  ;;  %1360 = vmatpush.bf16.msra.mxu3 %v987_v17  ;;  %v304_v17 = vmax.f32 %v240_v10, 0.0  ;;  %v349_v24 = vpack.c.bf16 %v288_v12, %v287_v11  ;;  %v364_v35 = vpack.c.bf16 %v318_v30, %v317_v29  ;;  %v188_v54 = vmul.f32 %v1417_v7, %v1068_v50 }
  0x18   :  { %v290_v43 = vmax.f32 %v226_v39, 0.0  ;;  %v199_v55 = vmul.f32 %v1417_v7, %v1091_v51  ;;  %v1011_v58 = vunpack.c.l.bf16 %v1284_v48  ;;  %v1012_v59 = vunpack.c.h.bf16 %v1284_v48 }
  0x19   :  { %v357_v25 = vpack.c.bf16 %v304_v17, %v303_v16  ;;  %v255_v61 = vadd.f32 %v1430_v14, %v187_v53  ;;  %v256_v62 = vadd.f32 %v1430_v14, %v188_v54  ;;  %v1043_v9 = vunpack.c.l.bf16 %v1292_v1 }
  0x1a   :  { %449 = vmatpush.bf16.msra.mxu0 %v986_v22  ;;  %1361 = vmatpush.bf16.msra.mxu1 %v986_v22  ;;  %v267_v63 = vadd.f32 %v1430_v14, %v199_v55  ;;  %v159_v6 = vmul.f32 %v1417_v7, %v1011_v58  ;;  %v160_v8 = vmul.f32 %v1417_v7, %v1012_v59  ;;  %v1044_v10 = vunpack.c.h.bf16 %v1292_v1  ;;  %v1306_v1 = vld [vmem:[%s2047_s0 + $0xd0] sm:$0xff]  }
  0x1b   :  { %1362 = vmatpush.bf16.msra.mxu2 %v986_v22  ;;  %1363 = vmatpush.bf16.msra.mxu3 %v986_v22  ;;  %v1007_v22 = vunpack.c.l.bf16 %v1283_v15  ;;  %v319_v2 = vmax.f32 %v255_v61, 0.0  ;;  %v175_v13 = vmul.f32 %v1417_v7, %v1043_v9 }
  0x1c   :  { %v331_v4 = vmax.f32 %v267_v63, 0.0  ;;  %v176_v15 = vmul.f32 %v1417_v7, %v1044_v10  ;;  %v227_v16 = vadd.f32 %v1430_v14, %v159_v6  ;;  %v228_v17 = vadd.f32 %v1430_v14, %v160_v8 }
  0x1d   :  { %v157_v33 = vmul.f32 %v1417_v7, %v1007_v22  ;;  %v243_v18 = vadd.f32 %v1430_v14, %v175_v13  ;;  %v1100_v6 = vunpack.c.h.bf16 %v1306_v1 }
  0x1e   :  { %450 = vmatpush.bf16.msra.mxu0 %v985_v28  ;;  %1364 = vmatpush.bf16.msra.mxu1 %v985_v28  ;;  %v244_v19 = vadd.f32 %v1430_v14, %v176_v15  ;;  %v291_v20 = vmax.f32 %v227_v16, 0.0  ;;  %v292_v21 = vmax.f32 %v228_v17, 0.0 }
  0x1f   :  { %1365 = vmatpush.bf16.msra.mxu2 %v985_v28  ;;  %1366 = vmatpush.bf16.msra.mxu3 %v985_v28  ;;  %v1291_v28 = vld [vmem:[%s2047_s0 + $0x58] sm:$0xff]   ;;  %v225_v38 = vadd.f32 %v1430_v14, %v157_v33  ;;  %v307_v22 = vmax.f32 %v243_v18, 0.0 }
  0x20   :  { %v308_v23 = vmax.f32 %v244_v19, 0.0 }
  0x21   :  { %451 = vmatmul.bf16.vlgmr.msra.gmra.mxu0 %v347_v31  ;;  %491 = vmatmul.bf16.vlgmr.msra.gmra.mxu1 %v355_v32  ;;  %v1039_v31 = vunpack.c.l.bf16 %v1291_v28  ;;  %v1040_v32 = vunpack.c.h.bf16 %v1291_v28  ;;  %v289_v42 = vmax.f32 %v225_v38, 0.0 }
  0x22   :  { %531 = vmatmul.bf16.vlgmr.msra.gmra.mxu2 %v363_v3  ;;  %v320_v3 = vmax.f32 %v256_v62, 0.0  ;;  %v359_v38 = vpack.c.bf16 %v308_v23, %v307_v22 }
  0x23   :  { %v173_v36 = vmul.f32 %v1417_v7, %v1039_v31  ;;  %v174_v37 = vmul.f32 %v1417_v7, %v1040_v32 }
  0x24   :  { %v365_v11 = vpack.c.bf16 %v320_v3, %v319_v2  ;;  %v1286_v2 = vld [vmem:[%s2047_s0 + $0x30] sm:$0xff]  }
  0x25   :  { %v241_v40 = vadd.f32 %v1430_v14, %v173_v36  ;;  %v242_v41 = vadd.f32 %v1430_v14, %v174_v37  ;;  %v1015_v36 = vunpack.c.l.bf16 %v1285_v26  ;;  %v1016_v37 = vunpack.c.h.bf16 %v1285_v26 }
  0x26   :  { %v1019_v13 = vunpack.c.l.bf16 %v1286_v2  ;;  %v1020_v15 = vunpack.c.h.bf16 %v1286_v2 }
  0x27   :  { %v305_v44 = vmax.f32 %v241_v40, 0.0  ;;  %v306_v45 = vmax.f32 %v242_v41, 0.0  ;;  %v161_v48 = vmul.f32 %v1417_v7, %v1015_v36  ;;  %v162_v49 = vmul.f32 %v1417_v7, %v1016_v37 }
  0x28   :  { %v163_v26 = vmul.f32 %v1417_v7, %v1019_v13 }
  0x29   :  { %v358_v60 = vpack.c.bf16 %v306_v45, %v305_v44 }
  0x31   :  { %456 = vmatmul.bf16.gmra.mxu0 %v348_v56  ;;  %496 = vmatmul.bf16.gmra.mxu1 %v356_v57  ;;  %v200_v56 = vmul.f32 %v1417_v7, %v1092_v52  ;;  %v350_v57 = vpack.c.bf16 %v290_v43, %v289_v42  ;;  %v1293_v43 = vld [vmem:[%s2047_s0 + $0x68] sm:$0xff]  }
  0x32   :  { %536 = vmatmul.bf16.gmra.mxu2 %v364_v35  ;;  %v351_v35 = vpack.c.bf16 %v292_v21, %v291_v20  ;;  %v1047_v50 = vunpack.c.l.bf16 %v1293_v43  ;;  %v1048_v51 = vunpack.c.h.bf16 %v1293_v43  ;;  %v1294_v21 = vld [vmem:[%s2047_s0 + $0x70] sm:$0xff]   ;;  %v1307_v43 = vld [vmem:[%s2047_s0 + $0xd8] sm:$0xff]  }
  0x33   :  { %v268_v0 = vadd.f32 %v1430_v14, %v200_v56  ;;  %v229_v56 = vadd.f32 %v1430_v14, %v161_v48  ;;  %v1104_v48 = vunpack.c.h.bf16 %v1307_v43 }
  0x34   :  { %v177_v54 = vmul.f32 %v1417_v7, %v1047_v50  ;;  %v178_v55 = vmul.f32 %v1417_v7, %v1048_v51 }
  0x35   :  { %v332_v5 = vmax.f32 %v268_v0, 0.0  ;;  %v1300_v0 = vld [vmem:[%s2047_s0 + $0xa0] sm:$0xff]  }
  0x36   :  { %v245_v58 = vadd.f32 %v1430_v14, %v177_v54  ;;  %v246_v59 = vadd.f32 %v1430_v14, %v178_v55  ;;  %v1075_v3 = vunpack.c.l.bf16 %v1300_v0 }
  0x37   :  { %v371_v12 = vpack.c.bf16 %v332_v5, %v331_v4  ;;  %v1076_v4 = vunpack.c.h.bf16 %v1300_v0  ;;  %v1099_v5 = vunpack.c.l.bf16 %v1306_v1 }
  0x38   :  { %v309_v62 = vmax.f32 %v245_v58, 0.0  ;;  %v310_v63 = vmax.f32 %v246_v59, 0.0  ;;  %v191_v8 = vmul.f32 %v1417_v7, %v1075_v3 }
  0x39   :  { %571 = vmatmul.bf16.vlgmr.msra.gmra.mxu3 %v371_v12  ;;  %v192_v9 = vmul.f32 %v1417_v7, %v1076_v4  ;;  %v203_v10 = vmul.f32 %v1417_v7, %v1099_v5 }
  0x3a   :  { %v360_v16 = vpack.c.bf16 %v310_v63, %v309_v62  ;;  %v259_v17 = vadd.f32 %v1430_v14, %v191_v8 }
  0x3b   :  { %v260_v18 = vadd.f32 %v1430_v14, %v192_v9  ;;  %v271_v19 = vadd.f32 %v1430_v14, %v203_v10 }
  0x3c   :  { %v323_v22 = vmax.f32 %v259_v17, 0.0 }
  0x3d   :  { %v324_v23 = vmax.f32 %v260_v18, 0.0 }
  0x41   :  { %461 = vmatmul.bf16.gmra.mxu0 %v349_v24  ;;  %501 = vmatmul.bf16.gmra.mxu1 %v357_v25  ;;  %v1299_v24 = vld [vmem:[%s2047_s0 + $0x98] sm:$0xff]   ;;  %v1305_v25 = vld [vmem:[%s2047_s0 + $0xc8] sm:$0xff]  }
  0x42   :  { %541 = vmatmul.bf16.gmra.mxu2 %v365_v11  ;;  %v1071_v27 = vunpack.c.l.bf16 %v1299_v24  ;;  %v1072_v28 = vunpack.c.h.bf16 %v1299_v24  ;;  %v1095_v29 = vunpack.c.l.bf16 %v1305_v25  ;;  %v1096_v30 = vunpack.c.h.bf16 %v1305_v25 }
  0x43   :  { %v204_v11 = vmul.f32 %v1417_v7, %v1100_v6  ;;  %v335_v24 = vmax.f32 %v271_v19, 0.0 }
  0x44   :  { %v189_v31 = vmul.f32 %v1417_v7, %v1071_v27  ;;  %v190_v32 = vmul.f32 %v1417_v7, %v1072_v28  ;;  %v201_v33 = vmul.f32 %v1417_v7, %v1095_v29  ;;  %v202_v34 = vmul.f32 %v1417_v7, %v1096_v30 }
  0x45   :  { %v272_v20 = vadd.f32 %v1430_v14, %v204_v11  ;;  %v164_v27 = vmul.f32 %v1417_v7, %v1020_v15  ;;  %v1051_v28 = vunpack.c.l.bf16 %v1294_v21  ;;  %v1052_v29 = vunpack.c.h.bf16 %v1294_v21  ;;  %v1308_v21 = vld [vmem:[%s2047_s0 + $0xe0] sm:$0xff]  }
  0x46   :  { %v257_v39 = vadd.f32 %v1430_v14, %v189_v31  ;;  %v258_v40 = vadd.f32 %v1430_v14, %v190_v32  ;;  %v269_v41 = vadd.f32 %v1430_v14, %v201_v33  ;;  %v270_v42 = vadd.f32 %v1430_v14, %v202_v34 }
  0x47   :  { %v336_v25 = vmax.f32 %v272_v20, 0.0  ;;  %v367_v30 = vpack.c.bf16 %v324_v23, %v323_v22  ;;  %v179_v32 = vmul.f32 %v1417_v7, %v1051_v28  ;;  %v180_v33 = vmul.f32 %v1417_v7, %v1052_v29  ;;  %v1302_v20 = vld [vmem:[%s2047_s0 + $0xb0] sm:$0xff]  }
  0x48   :  { %v321_v44 = vmax.f32 %v257_v39, 0.0  ;;  %v322_v45 = vmax.f32 %v258_v40, 0.0  ;;  %v333_v46 = vmax.f32 %v269_v41, 0.0  ;;  %v334_v47 = vmax.f32 %v270_v42, 0.0  ;;  %v1301_v42 = vld [vmem:[%s2047_s0 + $0xa8] sm:$0xff]  }
  0x49   :  { %v373_v31 = vpack.c.bf16 %v336_v25, %v335_v24  ;;  %v231_v34 = vadd.f32 %v1430_v14, %v163_v26  ;;  %v247_v36 = vadd.f32 %v1430_v14, %v179_v32  ;;  %v248_v37 = vadd.f32 %v1430_v14, %v180_v33 }
  0x4a   :  { %v366_v52 = vpack.c.bf16 %v322_v45, %v321_v44  ;;  %v372_v53 = vpack.c.bf16 %v334_v47, %v333_v46  ;;  %v1287_v44 = vld [vmem:[%s2047_s0 + $0x38] sm:$0xff]   ;;  %v1079_v45 = vunpack.c.l.bf16 %v1301_v42  ;;  %v1080_v46 = vunpack.c.h.bf16 %v1301_v42 }
  0x4b   :  { %v311_v40 = vmax.f32 %v247_v36, 0.0  ;;  %v312_v41 = vmax.f32 %v248_v37, 0.0  ;;  %v1103_v47 = vunpack.c.l.bf16 %v1307_v43  ;;  %v1023_v54 = vunpack.c.l.bf16 %v1287_v44  ;;  %v1303_v42 = vld [vmem:[%s2047_s0 + $0xb8] sm:$0xff]   ;;  %v1309_v43 = vld [vmem:[%s2047_s0 + $0xe8] sm:$0xff]  }
  0x4c   :  { %576 = vmatmul.bf16.gmra.mxu3 %v372_v53  ;;  %v194_v50 = vmul.f32 %v1417_v7, %v1080_v46  ;;  %v1024_v55 = vunpack.c.h.bf16 %v1287_v44  ;;  %v1083_v22 = vunpack.c.l.bf16 %v1302_v20  ;;  %v1084_v23 = vunpack.c.h.bf16 %v1302_v20 }
  0x4d   :  { %v205_v51 = vmul.f32 %v1417_v7, %v1103_v47  ;;  %v165_v2 = vmul.f32 %v1417_v7, %v1023_v54  ;;  %v1107_v24 = vunpack.c.l.bf16 %v1308_v21  ;;  %v1108_v25 = vunpack.c.h.bf16 %v1308_v21 }
  0x4e   :  { %v262_v58 = vadd.f32 %v1430_v14, %v194_v50  ;;  %v166_v3 = vmul.f32 %v1417_v7, %v1024_v55  ;;  %v195_v26 = vmul.f32 %v1417_v7, %v1083_v22  ;;  %v1087_v44 = vunpack.c.l.bf16 %v1303_v42 }
  0x4f   :  { %v273_v59 = vadd.f32 %v1430_v14, %v205_v51  ;;  %v233_v11 = vadd.f32 %v1430_v14, %v165_v2  ;;  %v207_v28 = vmul.f32 %v1417_v7, %v1107_v24  ;;  %v208_v29 = vmul.f32 %v1417_v7, %v1108_v25 }
  0x50   :  { %v326_v63 = vmax.f32 %v262_v58, 0.0  ;;  %v263_v32 = vadd.f32 %v1430_v14, %v195_v26  ;;  %v1111_v46 = vunpack.c.l.bf16 %v1309_v43  ;;  %v1112_v47 = vunpack.c.h.bf16 %v1309_v43 }
  0x51   :  { %466 = vmatmul.bf16.gmra.mxu0 %v350_v57  ;;  %506 = vmatmul.bf16.gmra.mxu1 %v358_v60  ;;  %v230_v57 = vadd.f32 %v1430_v14, %v162_v49  ;;  %v293_v60 = vmax.f32 %v229_v56, 0.0  ;;  %v193_v49 = vmul.f32 %v1417_v7, %v1079_v45  ;;  %v361_v56 = vpack.c.bf16 %v312_v41, %v311_v40 }
  0x52   :  { %546 = vmatmul.bf16.gmra.mxu2 %v366_v52  ;;  %v206_v52 = vmul.f32 %v1417_v7, %v1104_v48  ;;  %v337_v0 = vmax.f32 %v273_v59, 0.0  ;;  %v327_v36 = vmax.f32 %v263_v32, 0.0  ;;  %v1088_v45 = vunpack.c.h.bf16 %v1303_v42  ;;  %v1311_v32 = vld [vmem:[%s2047_s0 + $0xf8] sm:$0xff]  }
  0x53   :  { %v294_v61 = vmax.f32 %v230_v57, 0.0  ;;  %v261_v57 = vadd.f32 %v1430_v14, %v193_v49  ;;  %v197_v48 = vmul.f32 %v1417_v7, %v1087_v44  ;;  %v209_v50 = vmul.f32 %v1417_v7, %v1111_v46 }
  0x54   :  { %v198_v49 = vmul.f32 %v1417_v7, %v1088_v45  ;;  %v210_v51 = vmul.f32 %v1417_v7, %v1112_v47 }
  0x55   :  { %v352_v12 = vpack.c.bf16 %v294_v61, %v293_v60  ;;  %v274_v60 = vadd.f32 %v1430_v14, %v206_v52  ;;  %v1295_v61 = vld [vmem:[%s2047_s0 + $0x78] sm:$0xff]   ;;  %v325_v62 = vmax.f32 %v261_v57, 0.0  ;;  %v265_v52 = vadd.f32 %v1430_v14, %v197_v48 }
  0x56   :  { %v1055_v4 = vunpack.c.l.bf16 %v1295_v61  ;;  %v1056_v5 = vunpack.c.h.bf16 %v1295_v61  ;;  %v277_v54 = vadd.f32 %v1430_v14, %v209_v50  ;;  %v278_v55 = vadd.f32 %v1430_v14, %v210_v51 }
  0x57   :  { %v338_v1 = vmax.f32 %v274_v60, 0.0  ;;  %v368_v6 = vpack.c.bf16 %v326_v63, %v325_v62  ;;  %v329_v58 = vmax.f32 %v265_v52, 0.0 }
  0x58   :  { %v181_v9 = vmul.f32 %v1417_v7, %v1055_v4  ;;  %v182_v10 = vmul.f32 %v1417_v7, %v1056_v5  ;;  %v341_v60 = vmax.f32 %v277_v54, 0.0  ;;  %v342_v61 = vmax.f32 %v278_v55, 0.0 }
  0x59   :  { %v374_v8 = vpack.c.bf16 %v338_v1, %v337_v0 }
  0x5a   :  { %v249_v13 = vadd.f32 %v1430_v14, %v181_v9  ;;  %v250_v15 = vadd.f32 %v1430_v14, %v182_v10  ;;  %v376_v63 = vpack.c.bf16 %v342_v61, %v341_v60 }
  0x5c   :  { %581 = vmatmul.bf16.gmra.mxu3 %v373_v31  ;;  %v313_v18 = vmax.f32 %v249_v13, 0.0  ;;  %v314_v19 = vmax.f32 %v250_v15, 0.0 }
  0x5e   :  { %v362_v31 = vpack.c.bf16 %v314_v19, %v313_v18 }
  0x61   :  { %471 = vmatmul.bf16.gmra.mxu0 %v351_v35  ;;  %511 = vmatmul.bf16.gmra.mxu1 %v359_v38  ;;  %v232_v35 = vadd.f32 %v1430_v14, %v164_v27  ;;  %v295_v38 = vmax.f32 %v231_v34, 0.0  ;;  %v196_v27 = vmul.f32 %v1417_v7, %v1084_v23  ;;  %v275_v34 = vadd.f32 %v1430_v14, %v207_v28 }
  0x62   :  { %551 = vmatmul.bf16.gmra.mxu2 %v367_v30 }
  0x63   :  { %v296_v39 = vmax.f32 %v232_v35, 0.0  ;;  %v264_v33 = vadd.f32 %v1430_v14, %v196_v27  ;;  %v276_v35 = vadd.f32 %v1430_v14, %v208_v29 }
  0x65   :  { %v353_v53 = vpack.c.bf16 %v296_v39, %v295_v38  ;;  %v328_v37 = vmax.f32 %v264_v33, 0.0  ;;  %v339_v38 = vmax.f32 %v275_v34, 0.0  ;;  %v340_v39 = vmax.f32 %v276_v35, 0.0 }
  0x66   :  { %v1119_v34 = vunpack.c.l.bf16 %v1311_v32  ;;  %v1120_v35 = vunpack.c.h.bf16 %v1311_v32 }
  0x67   :  { %v369_v40 = vpack.c.bf16 %v328_v37, %v327_v36  ;;  %v375_v41 = vpack.c.bf16 %v340_v39, %v339_v38 }
  0x68   :  { %v213_v36 = vmul.f32 %v1417_v7, %v1119_v34  ;;  %v214_v37 = vmul.f32 %v1417_v7, %v1120_v35 }
  0x6a   :  { %v281_v38 = vadd.f32 %v1430_v14, %v213_v36  ;;  %v282_v39 = vadd.f32 %v1430_v14, %v214_v37 }
  0x6c   :  { %586 = vmatmul.bf16.gmra.mxu3 %v374_v8  ;;  %v1310_v8 = vld [vmem:[%s2047_s0 + $0xf0] sm:$0xff]   ;;  %v345_v45 = vmax.f32 %v281_v38, 0.0  ;;  %v346_v47 = vmax.f32 %v282_v39, 0.0 }
  0x6d   :  { %v1115_v10 = vunpack.c.l.bf16 %v1310_v8 }
  0x71   :  { %476 = vmatmul.bf16.gmra.mxu0 %v352_v12  ;;  %516 = vmatmul.bf16.gmra.mxu1 %v360_v16  ;;  %v234_v12 = vadd.f32 %v1430_v14, %v166_v3  ;;  %v297_v16 = vmax.f32 %v233_v11, 0.0  ;;  %v1116_v11 = vunpack.c.h.bf16 %v1310_v8 }
  0x72   :  { %556 = vmatmul.bf16.gmra.mxu2 %v368_v6 }
  0x73   :  { %v298_v17 = vmax.f32 %v234_v12, 0.0  ;;  %v211_v12 = vmul.f32 %v1417_v7, %v1115_v10  ;;  %v212_v13 = vmul.f32 %v1417_v7, %v1116_v11  ;;  %v378_v7 = vpack.c.bf16 %v346_v47, %v345_v45 }
  0x75   :  { %v354_v30 = vpack.c.bf16 %v298_v17, %v297_v16  ;;  %v279_v15 = vadd.f32 %v1430_v14, %v211_v12  ;;  %v280_v16 = vadd.f32 %v1430_v14, %v212_v13 }
  0x77   :  { %v343_v21 = vmax.f32 %v279_v15, 0.0  ;;  %v344_v22 = vmax.f32 %v280_v16, 0.0 }
  0x79   :  { %v377_v24 = vpack.c.bf16 %v344_v22, %v343_v21 }
  0x7c   :  { %591 = vmatmul.bf16.gmra.mxu3 %v375_v41 }
  0x81   :  { %481 = vmatmul.bf16.gmra.mxu0 %v353_v53  ;;  %521 = vmatmul.bf16.gmra.mxu1 %v361_v56  ;;  %v266_v53 = vadd.f32 %v1430_v14, %v198_v49 }
  0x82   :  { %561 = vmatmul.bf16.gmra.mxu2 %v369_v40 }
  0x83   :  { %v330_v59 = vmax.f32 %v266_v53, 0.0 }
  0x85   :  { %v370_v62 = vpack.c.bf16 %v330_v59, %v329_v58 }
  0x8c   :  { %596 = vmatmul.bf16.gmra.mxu3 %v376_v63 }
  0x91   :  { %486 = vmatmul.bf16.gmra.mxu0 %v354_v30  ;;  %526 = vmatmul.bf16.gmra.mxu1 %v362_v31 }
  0x92   :  { %566 = vmatmul.bf16.gmra.mxu2 %v370_v62 }
  0x9c   :  { %601 = vmatmul.bf16.gmra.mxu3 %v377_v24 }
  0x9e   :  { %v452_v56 = vpop.f32.mrf.mxu0  ;;  %v1643_v57 = vpop.f32.mrf.mxu1 }
  0x9f   :  { %v681_v2 = vmul.f32 %v452_v56, %v452_v56 }
  0xa5   :  { %v1666_v30 = vpop.f32.mrf.mxu2 }
  0xa6   :  { %v454_v0 = vpop.f32.mrf.mxu0  ;;  %v1645_v1 = vpop.f32.mrf.mxu1 }
  0xa7   :  { %v612_v3 = vadd.f32 %v454_v0, %v452_v56  ;;  %v682_v4 = vmul.f32 %v454_v0, %v454_v0  ;;  %v1124_v5 = vpack.c.bf16 %v454_v0, %v452_v56  ;;  %v1164_v6 = vpack.c.bf16 %v1645_v1, %v1643_v57 }
  0xa9   :  { %v745_v9 = vadd.f32 %v682_v4, %v681_v2  ;;  %1125 = vst [vmem:[%s2048_s4] sm:$0xff] %v1124_v5  }
  0xaa   :  { %1319 = vst [vmem:[%s2048_s4 + $0x40] sm:$0xff] %v1164_v6  }
  0xac   :  { %606 = vmatmul.bf16.gmra.mxu3 %v378_v7 }
  0xad   :  { %v1687_v44 = vpop.f32.mrf.mxu2 }
  0xae   :  { %v457_v17 = vpop.f32.mrf.mxu0  ;;  %v1662_v18 = vpop.f32.mrf.mxu1  ;;  %v1204_v46 = vpack.c.bf16 %v1687_v44, %v1666_v30 }
  0xaf   :  { %v613_v19 = vadd.f32 %v612_v3, %v457_v17  ;;  %v683_v20 = vmul.f32 %v457_v17, %v457_v17 }
  0xb0   :  { %1327 = vst [vmem:[%s2048_s4 + $0x80] sm:$0xff] %v1204_v46  }
  0xb1   :  { %v746_v23 = vadd.f32 %v745_v9, %v683_v20 }
  0xb5   :  { %v1698_v51 = vpop.f32.mrf.mxu2 }
  0xb6   :  { %v459_v25 = vpop.f32.mrf.mxu0  ;;  %v1664_v26 = vpop.f32.mrf.mxu1 }
  0xb7   :  { %v614_v27 = vadd.f32 %v613_v19, %v459_v25  ;;  %v684_v28 = vmul.f32 %v459_v25, %v459_v25  ;;  %v1129_v29 = vpack.c.bf16 %v459_v25, %v457_v17  ;;  %v1169_v31 = vpack.c.bf16 %v1664_v26, %v1662_v18 }
  0xb9   :  { %v747_v33 = vadd.f32 %v746_v23, %v684_v28  ;;  %1312 = vst [vmem:[%s2048_s4 + $0x8] sm:$0xff] %v1129_v29  }
  0xba   :  { %1320 = vst [vmem:[%s2048_s4 + $0x48] sm:$0xff] %v1169_v31  }
  0xbc   :  { %v1721_v62 = vpop.f32.mrf.mxu3 }
  0xbd   :  { %v1710_v55 = vpop.f32.mrf.mxu2 }
  0xbe   :  { %v462_v40 = vpop.f32.mrf.mxu0  ;;  %v1683_v41 = vpop.f32.mrf.mxu1  ;;  %v1209_v56 = vpack.c.bf16 %v1710_v55, %v1698_v51 }
  0xbf   :  { %v1685_v42 = vadd.f32 %v614_v27, %v462_v40  ;;  %v685_v43 = vmul.f32 %v462_v40, %v462_v40 }
  0xc0   :  { %1328 = vst [vmem:[%s2048_s4 + $0x88] sm:$0xff] %v1209_v56  }
  0xc1   :  { %v1691_v48 = vadd.f32 %v747_v33, %v685_v43 }
  0xc4   :  { %v1735_v4 = vpop.f32.mrf.mxu3 }
  0xc5   :  { %v1719_v61 = vpop.f32.mrf.mxu2  ;;  %v1244_v6 = vpack.c.bf16 %v1735_v4, %v1721_v62 }
  0xc6   :  { %v464_v14 = vpop.f32.mrf.mxu0  ;;  %v1696_v49 = vpop.f32.mrf.mxu1 }
  0xc7   :  { %v1134_v50 = vpack.c.bf16 %v464_v14, %v462_v40  ;;  %v1174_v52 = vpack.c.bf16 %v1696_v49, %v1683_v41  ;;  %1335 = vst [vmem:[%s2048_s4 + $0xc0] sm:$0xff] %v1244_v6   ;;  %v686_v35 = vmul.f32 %v464_v14, %v464_v14  ;;  %v616_v37 = vadd.f32 %v1685_v42, %v464_v14 }
  0xc9   :  { %1313 = vst [vmem:[%s2048_s4 + $0x10] sm:$0xff] %v1134_v50   ;;  %v749_v39 = vadd.f32 %v1691_v48, %v686_v35 }
  0xca   :  { %1321 = vst [vmem:[%s2048_s4 + $0x50] sm:$0xff] %v1174_v52  }
  0xcd   :  { %v1733_v3 = vpop.f32.mrf.mxu2 }
  0xce   :  { %v467_v53 = vpop.f32.mrf.mxu0  ;;  %v1708_v54 = vpop.f32.mrf.mxu1  ;;  %v1214_v5 = vpack.c.bf16 %v1733_v3, %v1719_v61 }
  0xcf   :  { %v1751_v12 = vpop.f32.mrf.mxu3  ;;  %v687_v38 = vmul.f32 %v467_v53, %v467_v53  ;;  %v617_v40 = vadd.f32 %v616_v37, %v467_v53 }
  0xd0   :  { %1329 = vst [vmem:[%s2048_s4 + $0x90] sm:$0xff] %v1214_v5  }
  0xd1   :  { %v750_v47 = vadd.f32 %v749_v39, %v687_v38 }
  0xd5   :  { %v1749_v11 = vpop.f32.mrf.mxu2 }
  0xd6   :  { %v469_v58 = vpop.f32.mrf.mxu0  ;;  %v1717_v59 = vpop.f32.mrf.mxu1 }
  0xd7   :  { %v1139_v60 = vpack.c.bf16 %v469_v58, %v467_v53  ;;  %v1179_v63 = vpack.c.bf16 %v1717_v59, %v1708_v54  ;;  %v1765_v19 = vpop.f32.mrf.mxu3  ;;  %v688_v43 = vmul.f32 %v469_v58, %v469_v58  ;;  %v618_v7 = vadd.f32 %v617_v40, %v469_v58 }
  0xd8   :  { %v1249_v21 = vpack.c.bf16 %v1765_v19, %v1751_v12 }
  0xd9   :  { %1314 = vst [vmem:[%s2048_s4 + $0x18] sm:$0xff] %v1139_v60   ;;  %v751_v14 = vadd.f32 %v750_v47, %v688_v43 }
  0xda   :  { %1322 = vst [vmem:[%s2048_s4 + $0x58] sm:$0xff] %v1179_v63  }
  0xdb   :  { %1336 = vst [vmem:[%s2048_s4 + $0xc8] sm:$0xff] %v1249_v21  }
  0xdd   :  { %v1763_v17 = vpop.f32.mrf.mxu2 }
  0xde   :  { %v472_v0 = vpop.f32.mrf.mxu0  ;;  %v1731_v2 = vpop.f32.mrf.mxu1  ;;  %v1219_v20 = vpack.c.bf16 %v1763_v17, %v1749_v11 }
  0xdf   :  { %v1781_v27 = vpop.f32.mrf.mxu3  ;;  %v689_v50 = vmul.f32 %v472_v0, %v472_v0  ;;  %v619_v63 = vadd.f32 %v618_v7, %v472_v0 }
  0xe0   :  { %1330 = vst [vmem:[%s2048_s4 + $0x98] sm:$0xff] %v1219_v20  }
  0xe1   :  { %v752_v48 = vadd.f32 %v751_v14, %v689_v50 }
  0xe5   :  { %v1779_v25 = vpop.f32.mrf.mxu2 }
  0xe6   :  { %v474_v8 = vpop.f32.mrf.mxu0  ;;  %v1747_v9 = vpop.f32.mrf.mxu1 }
  0xe7   :  { %v1144_v10 = vpack.c.bf16 %v474_v8, %v472_v0  ;;  %v1184_v13 = vpack.c.bf16 %v1747_v9, %v1731_v2  ;;  %v1795_v33 = vpop.f32.mrf.mxu3  ;;  %v690_v5 = vmul.f32 %v474_v8, %v474_v8  ;;  %v620_v53 = vadd.f32 %v619_v63, %v474_v8 }
  0xe8   :  { %v1254_v36 = vpack.c.bf16 %v1795_v33, %v1781_v27 }
  0xe9   :  { %1315 = vst [vmem:[%s2048_s4 + $0x20] sm:$0xff] %v1144_v10   ;;  %v753_v6 = vadd.f32 %v752_v48, %v690_v5  ;;  %v697_v48 = vmul.f32 %v1643_v57, %v1643_v57 }
  0xea   :  { %1323 = vst [vmem:[%s2048_s4 + $0x60] sm:$0xff] %v1184_v13  }
  0xeb   :  { %1337 = vst [vmem:[%s2048_s4 + $0xd0] sm:$0xff] %v1254_v36  }
  0xed   :  { %v1793_v32 = vpop.f32.mrf.mxu2 }
  0xee   :  { %v477_v15 = vpop.f32.mrf.mxu0  ;;  %v1761_v16 = vpop.f32.mrf.mxu1  ;;  %v1224_v34 = vpack.c.bf16 %v1793_v32, %v1779_v25 }
  0xef   :  { %v1813_v60 = vpop.f32.mrf.mxu3  ;;  %v691_v58 = vmul.f32 %v477_v15, %v477_v15  ;;  %v621_v10 = vadd.f32 %v620_v53, %v477_v15 }
  0xf0   :  { %1331 = vst [vmem:[%s2048_s4 + $0xa0] sm:$0xff] %v1224_v34  }
  0xf5   :  { %v1811_v56 = vpop.f32.mrf.mxu2 }
  0xf6   :  { %v479_v22 = vpop.f32.mrf.mxu0  ;;  %v1777_v23 = vpop.f32.mrf.mxu1 }
  0xf7   :  { %v1149_v24 = vpack.c.bf16 %v479_v22, %v477_v15  ;;  %v1189_v28 = vpack.c.bf16 %v1777_v23, %v1761_v16  ;;  %v692_v13 = vmul.f32 %v479_v22, %v479_v22  ;;  %v622_v0 = vadd.f32 %v621_v10, %v479_v22  ;;  %v1827_v35 = vpop.f32.mrf.mxu3 }
  0xf8   :  { %v1259_v15 = vpack.c.bf16 %v1827_v35, %v1813_v60 }
  0xf9   :  { %1316 = vst [vmem:[%s2048_s4 + $0x28] sm:$0xff] %v1149_v24   ;;  %v754_v24 = vadd.f32 %v753_v6, %v691_v58  ;;  %v698_v6 = vmul.f32 %v1645_v1, %v1645_v1 }
  0xfa   :  { %1324 = vst [vmem:[%s2048_s4 + $0x68] sm:$0xff] %v1189_v28  }
  0xfb   :  { %v755_v37 = vadd.f32 %v754_v24, %v692_v13  ;;  %1338 = vst [vmem:[%s2048_s4 + $0xd8] sm:$0xff] %v1259_v15  }
  0xfd   :  { %v1825_v34 = vpop.f32.mrf.mxu2 }
  0xfe   :  { %v482_v29 = vpop.f32.mrf.mxu0  ;;  %v1791_v31 = vpop.f32.mrf.mxu1  ;;  %v1229_v36 = vpack.c.bf16 %v1825_v34, %v1811_v56 }
  0xff   :  { %v693_v28 = vmul.f32 %v482_v29, %v482_v29  ;;  %v623_v38 = vadd.f32 %v622_v0, %v482_v29  ;;  %v1843_v5 = vpop.f32.mrf.mxu3  ;;  %v700_v0 = vmul.f32 %v1664_v26, %v1664_v26 }
 0x100   :  { %1332 = vst [vmem:[%s2048_s4 + $0xa8] sm:$0xff] %v1229_v36  }
 0x101   :  { %v756_v39 = vadd.f32 %v755_v37, %v693_v28 }
 0x105   :  { %v1841_v63 = vpop.f32.mrf.mxu2 }
 0x106   :  { %v484_v45 = vpop.f32.mrf.mxu0  ;;  %v1809_v46 = vpop.f32.mrf.mxu1 }
 0x107   :  { %v1154_v52 = vpack.c.bf16 %v484_v45, %v482_v29  ;;  %v1194_v42 = vpack.c.bf16 %v1809_v46, %v1791_v31  ;;  %v694_v8 = vmul.f32 %v484_v45, %v484_v45  ;;  %v624_v22 = vadd.f32 %v623_v38, %v484_v45  ;;  %v1867_v38 = vpop.f32.mrf.mxu3 }
 0x109   :  { %1317 = vst [vmem:[%s2048_s4 + $0x30] sm:$0xff] %v1154_v52   ;;  %v757_v43 = vadd.f32 %v756_v39, %v694_v8  ;;  %v1264_v8 = vpack.c.bf16 %v1867_v38, %v1843_v5 }
 0x10a   :  { %1325 = vst [vmem:[%s2048_s4 + $0x70] sm:$0xff] %v1194_v42  }
 0x10b   :  { %1339 = vst [vmem:[%s2048_s4 + $0xe0] sm:$0xff] %v1264_v8   ;;  %v710_v8 = vmul.f32 %v1809_v46, %v1809_v46 }
 0x10d   :  { %v1865_v37 = vpop.f32.mrf.mxu2 }
 0x10e   :  { %v487_v20 = vpop.f32.mrf.mxu0  ;;  %v1823_v21 = vpop.f32.mrf.mxu1 }
 0x10f   :  { %v695_v40 = vmul.f32 %v487_v20, %v487_v20  ;;  %v625_v47 = vadd.f32 %v624_v22, %v487_v20 }
 0x111   :  { %v758_v29 = vadd.f32 %v757_v43, %v695_v40  ;;  %v703_v43 = vmul.f32 %v1708_v54, %v1708_v54 }
 0x116   :  { %v489_v7 = vpop.f32.mrf.mxu0  ;;  %v1839_v50 = vpop.f32.mrf.mxu1 }
 0x117   :  { %v626_v52 = vadd.f32 %v625_v47, %v489_v7  ;;  %v696_v42 = vmul.f32 %v489_v7, %v489_v7  ;;  %v1159_v14 = vpack.c.bf16 %v489_v7, %v487_v20  ;;  %v1199_v45 = vpack.c.bf16 %v1839_v50, %v1823_v21 }
 0x118   :  { %v699_v20 = vmul.f32 %v1662_v18, %v1662_v18  ;;  %v704_v7 = vmul.f32 %v1717_v59, %v1717_v59 }
 0x119   :  { %v627_v53 = vadd.f32 %v626_v52, %v1643_v57  ;;  %v759_v58 = vadd.f32 %v758_v29, %v696_v42  ;;  %1318 = vst [vmem:[%s2048_s4 + $0x38] sm:$0xff] %v1159_v14   ;;  %v1891_v42 = vpop.f32.mrf.mxu2  ;;  %v705_v14 = vmul.f32 %v1731_v2, %v1731_v2 }
 0x11a   :  { %1326 = vst [vmem:[%s2048_s4 + $0x78] sm:$0xff] %v1199_v45  }
 0x11b   :  { %v628_v10 = vadd.f32 %v627_v53, %v1645_v1  ;;  %v760_v13 = vadd.f32 %v759_v58, %v697_v48  ;;  %v1234_v1 = vpack.c.bf16 %v1865_v37, %v1841_v63  ;;  %v706_v53 = vmul.f32 %v1747_v9, %v1747_v9 }
 0x11d   :  { %v629_v57 = vadd.f32 %v628_v10, %v1662_v18  ;;  %v761_v24 = vadd.f32 %v760_v13, %v698_v6  ;;  %v701_v18 = vmul.f32 %v1683_v41, %v1683_v41  ;;  %1333 = vst [vmem:[%s2048_s4 + $0xb0] sm:$0xff] %v1234_v1   ;;  %v708_v13 = vmul.f32 %v1777_v23, %v1777_v23 }
 0x11f   :  { %v630_v28 = vadd.f32 %v629_v57, %v1664_v26  ;;  %v762_v36 = vadd.f32 %v761_v24, %v699_v20  ;;  %v702_v26 = vmul.f32 %v1696_v49, %v1696_v49 }
 0x121   :  { %v631_v15 = vadd.f32 %v630_v28, %v1683_v41  ;;  %v763_v39 = vadd.f32 %v762_v36, %v700_v0 }
 0x123   :  { %v632_v22 = vadd.f32 %v631_v15, %v1696_v49  ;;  %v764_v40 = vadd.f32 %v763_v39, %v701_v18  ;;  %v1893_v49 = vpop.f32.mrf.mxu3 }
 0x125   :  { %v765_v47 = vadd.f32 %v764_v40, %v702_v26  ;;  %v633_v41 = vadd.f32 %v632_v22, %v1708_v54  ;;  %v712_v22 = vmul.f32 %v1839_v50, %v1839_v50 }
 0x127   :  { %v634_v29 = vadd.f32 %v633_v41, %v1717_v59  ;;  %v766_v52 = vadd.f32 %v765_v47, %v703_v43  ;;  %v707_v59 = vmul.f32 %v1761_v16, %v1761_v16  ;;  %v714_v41 = vmul.f32 %v1687_v44, %v1687_v44 }
 0x129   :  { %v635_v45 = vadd.f32 %v634_v29, %v1731_v2  ;;  %v767_v48 = vadd.f32 %v766_v52, %v704_v7  ;;  %v1907_v2 = vpop.f32.mrf.mxu2  ;;  %v715_v29 = vmul.f32 %v1698_v51, %v1698_v51 }
 0x12b   :  { %v636_v54 = vadd.f32 %v635_v45, %v1747_v9  ;;  %v768_v58 = vadd.f32 %v767_v48, %v705_v14  ;;  %v1909_v24 = vpop.f32.mrf.mxu3  ;;  %v1239_v9 = vpack.c.bf16 %v1907_v2, %v1891_v42  ;;  %v716_v14 = vmul.f32 %v1710_v55, %v1710_v55 }
 0x12c   :  { %v1269_v0 = vpack.c.bf16 %v1909_v24, %v1893_v49 }
 0x12d   :  { %v637_v6 = vadd.f32 %v636_v54, %v1761_v16  ;;  %v769_v10 = vadd.f32 %v768_v58, %v706_v53  ;;  %v709_v16 = vmul.f32 %v1791_v31, %v1791_v31  ;;  %1334 = vst [vmem:[%s2048_s4 + $0xb8] sm:$0xff] %v1239_v9  }
 0x12e   :  { %1340 = vst [vmem:[%s2048_s4 + $0xe8] sm:$0xff] %v1269_v0   ;;  %v721_v0 = vmul.f32 %v1779_v25, %v1779_v25 }
 0x12f   :  { %v638_v20 = vadd.f32 %v637_v6, %v1777_v23  ;;  %v770_v57 = vadd.f32 %v769_v10, %v707_v59  ;;  %v719_v6 = vmul.f32 %v1749_v11, %v1749_v11 }
 0x131   :  { %v639_v28 = vadd.f32 %v638_v20, %v1791_v31  ;;  %v771_v36 = vadd.f32 %v770_v57, %v708_v13  ;;  %v711_v31 = vmul.f32 %v1823_v21, %v1823_v21 }
 0x133   :  { %v772_v23 = vadd.f32 %v771_v36, %v709_v16  ;;  %v640_v1 = vadd.f32 %v639_v28, %v1809_v46  ;;  %v1933_v40 = vpop.f32.mrf.mxu3  ;;  %v713_v46 = vmul.f32 %v1666_v30, %v1666_v30  ;;  %v722_v16 = vmul.f32 %v1793_v32, %v1793_v32 }
 0x135   :  { %v773_v18 = vadd.f32 %v772_v23, %v710_v8  ;;  %v641_v15 = vadd.f32 %v640_v1, %v1823_v21  ;;  %v723_v23 = vmul.f32 %v1811_v56, %v1811_v56 }
 0x137   :  { %v774_v39 = vadd.f32 %v773_v18, %v711_v31  ;;  %v642_v26 = vadd.f32 %v641_v15, %v1839_v50  ;;  %v724_v18 = vmul.f32 %v1825_v34, %v1825_v34 }
 0x139   :  { %v643_v43 = vadd.f32 %v642_v26, %v1666_v30  ;;  %v775_v47 = vadd.f32 %v774_v39, %v712_v22 }
 0x13b   :  { %v644_v7 = vadd.f32 %v643_v43, %v1687_v44  ;;  %v776_v21 = vadd.f32 %v775_v47, %v713_v46  ;;  %v1947_v30 = vpop.f32.mrf.mxu3  ;;  %v717_v44 = vmul.f32 %v1719_v61, %v1719_v61  ;;  %v727_v47 = vmul.f32 %v1891_v42, %v1891_v42 }
 0x13c   :  { %v1274_v53 = vpack.c.bf16 %v1947_v30, %v1933_v40 }
 0x13d   :  { %v645_v52 = vadd.f32 %v644_v7, %v1698_v51  ;;  %v777_v50 = vadd.f32 %v776_v21, %v714_v41  ;;  %v718_v51 = vmul.f32 %v1733_v3, %v1733_v3  ;;  %v729_v21 = vmul.f32 %v1721_v62, %v1721_v62 }
 0x13e   :  { %1341 = vst [vmem:[%s2048_s4 + $0xf0] sm:$0xff] %v1274_v53  }
 0x13f   :  { %v646_v45 = vadd.f32 %v645_v52, %v1710_v55  ;;  %v778_v48 = vadd.f32 %v777_v50, %v715_v29 }
 0x141   :  { %v647_v54 = vadd.f32 %v646_v45, %v1719_v61  ;;  %v779_v58 = vadd.f32 %v778_v48, %v716_v14  ;;  %v720_v61 = vmul.f32 %v1763_v17, %v1763_v17 }
 0x143   :  { %v648_v55 = vadd.f32 %v647_v54, %v1733_v3  ;;  %v780_v59 = vadd.f32 %v779_v58, %v717_v44  ;;  %v1966_v9 = vpop.f32.mrf.mxu3 }
 0x145   :  { %v781_v10 = vadd.f32 %v780_v59, %v718_v51  ;;  %v649_v13 = vadd.f32 %v648_v55, %v1749_v11 }
 0x147   :  { %v650_v20 = vadd.f32 %v649_v13, %v1763_v17  ;;  %v782_v57 = vadd.f32 %v781_v10, %v719_v6 }
 0x149   :  { %v651_v3 = vadd.f32 %v650_v20, %v1779_v25  ;;  %v783_v28 = vadd.f32 %v782_v57, %v720_v61 }
 0x14b   :  { %v652_v36 = vadd.f32 %v651_v3, %v1793_v32  ;;  %v784_v11 = vadd.f32 %v783_v28, %v721_v0  ;;  %v609_v25 = vpop.f32.mrf.mxu3  ;;  %v725_v32 = vmul.f32 %v1841_v63, %v1841_v63 }
 0x14c   :  { %v1279_v31 = vpack.c.bf16 %v609_v25, %v1966_v9 }
 0x14d   :  { %v653_v17 = vadd.f32 %v652_v36, %v1811_v56  ;;  %v785_v1 = vadd.f32 %v784_v11, %v722_v16  ;;  %v740_v16 = vmul.f32 %v1909_v24, %v1909_v24 }
 0x14e   :  { %1342 = vst [vmem:[%s2048_s4 + $0xf8] sm:$0xff] %v1279_v31   ;;  %v744_v31 = vmul.f32 %v609_v25, %v609_v25 }
 0x14f   :  { %v654_v8 = vadd.f32 %v653_v17, %v1825_v34  ;;  %v786_v15 = vadd.f32 %v785_v1, %v723_v23  ;;  %v726_v34 = vmul.f32 %v1865_v37, %v1865_v37  ;;  %v741_v23 = vmul.f32 %v1933_v40, %v1933_v40 }
 0x150   :  { %v742_v1 = vmul.f32 %v1947_v30, %v1947_v30 }
 0x151   :  { %v787_v39 = vadd.f32 %v786_v15, %v724_v18  ;;  %v655_v26 = vadd.f32 %v654_v8, %v1841_v63  ;;  %v728_v63 = vmul.f32 %v1907_v2, %v1907_v2  ;;  %v743_v18 = vmul.f32 %v1966_v9, %v1966_v9 }
 0x153   :  { %v788_v56 = vadd.f32 %v787_v39, %v725_v32  ;;  %v656_v22 = vadd.f32 %v655_v26, %v1865_v37  ;;  %v730_v37 = vmul.f32 %v1735_v4, %v1735_v4 }
 0x155   :  { %v789_v46 = vadd.f32 %v788_v56, %v726_v34  ;;  %v657_v43 = vadd.f32 %v656_v22, %v1891_v42  ;;  %v731_v42 = vmul.f32 %v1751_v12, %v1751_v12 }
 0x157   :  { %v790_v41 = vadd.f32 %v789_v46, %v727_v47  ;;  %v658_v7 = vadd.f32 %v657_v43, %v1907_v2  ;;  %v732_v2 = vmul.f32 %v1765_v19, %v1765_v19 }
 0x159   :  { %v659_v29 = vadd.f32 %v658_v7, %v1721_v62  ;;  %v791_v52 = vadd.f32 %v790_v41, %v728_v63  ;;  %v733_v62 = vmul.f32 %v1781_v27, %v1781_v27 }
 0x15b   :  { %v660_v50 = vadd.f32 %v659_v29, %v1735_v4  ;;  %v792_v14 = vadd.f32 %v791_v52, %v729_v21  ;;  %v734_v4 = vmul.f32 %v1795_v33, %v1795_v33 }
 0x15d   :  { %v661_v45 = vadd.f32 %v660_v50, %v1751_v12  ;;  %v793_v48 = vadd.f32 %v792_v14, %v730_v37  ;;  %v735_v12 = vmul.f32 %v1813_v60, %v1813_v60 }
 0x15f   :  { %v662_v53 = vadd.f32 %v661_v45, %v1765_v19  ;;  %v794_v44 = vadd.f32 %v793_v48, %v731_v42  ;;  %v736_v19 = vmul.f32 %v1827_v35, %v1827_v35 }
 0x161   :  { %v663_v54 = vadd.f32 %v662_v53, %v1781_v27  ;;  %v795_v58 = vadd.f32 %v794_v44, %v732_v2  ;;  %v737_v27 = vmul.f32 %v1843_v5, %v1843_v5 }
 0x163   :  { %v664_v51 = vadd.f32 %v663_v54, %v1795_v33  ;;  %v796_v55 = vadd.f32 %v795_v58, %v733_v62  ;;  %v738_v33 = vmul.f32 %v1867_v38, %v1867_v38 }
 0x165   :  { %v797_v59 = vadd.f32 %v796_v55, %v734_v4  ;;  %v665_v6 = vadd.f32 %v664_v51, %v1813_v60  ;;  %v739_v60 = vmul.f32 %v1893_v49, %v1893_v49 }
 0x167   :  { %v666_v10 = vadd.f32 %v665_v6, %v1827_v35  ;;  %v798_v13 = vadd.f32 %v797_v59, %v735_v12 }
 0x169   :  { %v667_v61 = vadd.f32 %v666_v10, %v1843_v5  ;;  %v799_v20 = vadd.f32 %v798_v13, %v736_v19 }
 0x16b   :  { %v668_v57 = vadd.f32 %v667_v61, %v1867_v38  ;;  %v800_v0 = vadd.f32 %v799_v20, %v737_v27 }
 0x16d   :  { %v669_v3 = vadd.f32 %v668_v57, %v1893_v49  ;;  %v801_v28 = vadd.f32 %v800_v0, %v738_v33 }
 0x16f   :  { %v670_v35 = vadd.f32 %v669_v3, %v1909_v24  ;;  %v802_v36 = vadd.f32 %v801_v28, %v739_v60 }
 0x171   :  { %v803_v5 = vadd.f32 %v802_v36, %v740_v16  ;;  %v671_v11 = vadd.f32 %v670_v35, %v1933_v40 }
 0x173   :  { %v804_v38 = vadd.f32 %v803_v5, %v741_v23  ;;  %v672_v17 = vadd.f32 %v671_v11, %v1947_v30 }
 0x175   :  { %v805_v49 = vadd.f32 %v804_v38, %v742_v1  ;;  %v673_v8 = vadd.f32 %v672_v17, %v1966_v9 }
 0x177   :  { %v806_v24 = vadd.f32 %v805_v49, %v743_v18  ;;  %v674_v15 = vadd.f32 %v673_v8, %v609_v25 }
 0x179   :  { %v675_v39 = vrot.slane %v674_v15, 4  ;;  %v807_v26 = vadd.f32 %v806_v24, %v744_v31 }
 0x17b   :  { %v676_v32 = vadd.f32 %v675_v39, %v674_v15  ;;  %v808_v56 = vrot.slane %v807_v26, 4 }
 0x17d   :  { %v677_v40 = vrot.slane %v676_v32, 2  ;;  %v809_v22 = vadd.f32 %v808_v56, %v807_v26 }
 0x17f   :  { %v678_v34 = vadd.f32 %v677_v40, %v676_v32  ;;  %v810_v46 = vrot.slane %v809_v22, 2 }
 0x181   :  { %v679_v43 = vrot.slane %v678_v34, 1  ;;  %v811_v47 = vadd.f32 %v810_v46, %v809_v22 }
 0x183   :  { %v812_v30 = vrot.slane %v811_v47, 1  ;;  %v680_v41 = vadd.f32 %v679_v43, %v678_v34 }
 0x185   :  { %v813_v7 = vadd.f32 %v812_v30, %v811_v47 }
 0x187   :  { %v815_v63 = vsel %vm814_vm0, %v680_v41, %v813_v7 }
 0x188   :  { %816 = vst [vmem:[%s2049_s5] sm:$0x3] %v815_v63 }

// kernel: bottleneck_forward.6
= control target key start
LH: loop header
LB: loop body
LE: loop exit
PB: predicated region body
PF: predicated region fallthrough
CT: control target
= control target key end

     0   :  { %s7361_s18 = smov 0   ;;  %s8839_s0 = inlined_call_operand.vmem [shape: bf16[2,16,16,128], index: 0, kind: input, shape index: {}]   ;;  %s8840_s1 = inlined_call_operand.vmem [shape: f32[1,128], index: 1, kind: input, shape index: {}]   ;;  %s8841_s2 = inlined_call_operand.vmem [shape: f32[1,128], index: 2, kind: input, shape index: {}]   ;;  %s8842_s3 = inlined_call_operand.vmem [shape: bf16[1152,128], index: 3, kind: input, shape index: {}]   ;;  %s8843_s4 = inlined_call_operand.vmem [shape: bf16[2,256,128], index: 4, kind: output, shape index: {0}]   ;;  %s8844_s5 = inlined_call_operand.vmem [shape: f32[2,2,128], index: 5, kind: output, shape index: {1}]  }
   0x1 LB: > { %s5967_s19 = sadd.s32 4294967295, %s7328_s18   ;;  %p5971_p0 = scmp.ge.s32.totalorder %s7328_s18, 1  ;;  %s7328_s18 = sphi %s7361_s18, %s16_s18  }
   0x2   : > { %p190_p1 = scmp.lt.s32.totalorder %s7328_s18, 3 }
   0x4   : > { %p191_p2 = pnand %p5971_p0, %p190_p1 }
   0x6   : > { %194 = sbr.rel (%p191_p2) target bundleno = 814 (0x32e), region = 36 }
   0xb   : > { %v7044_v0 = vld [vmem:[%s8842_s3 + $0x38] sm:$0xff]  ;;  %p222_p3 = scmp.lt.s32.totalorder %s5967_s19, 1  ;;  %v7330_v1 = vmov 0   ;;  %v7043_v2 = vld [vmem:[%s8842_s3 + $0x30] sm:$0xff]  ;;  %v7390_v3 = vld [vmem:[%s8840_s1] ss:$0 sm:$0xff] }
   0xc   : > { %449 = vst [vmem:[#allocation2 + $0x30] sm:$0xf] %v7330_v1  ;;  %7283 = vmatpush.bf16.msra.mxu1 %v7044_v0  ;;  %7284 = vmatpush.bf16.msra.mxu2 %v7044_v0  ;;  %v7042_v4 = vld [vmem:[%s8842_s3 + $0x28] sm:$0xff]  ;;  %v7401_v8 = vld [vmem:[%s8841_s2] ss:$0 sm:$0xff]  ;;  %v7040_v17 = vld [vmem:[%s8842_s3 + $0x18] sm:$0xff] }
   0xd   : > { %s8878_s19 = smov (!%p222_p3, %s5967_s19), 1  ;;  %7285 = vmatpush.bf16.msra.mxu3 %v7044_v0  ;;  %4907 = vmatpush.bf16.msra.mxu0 %v7044_v0  ;;  %450 = vst [vmem:[#allocation2 + $0x34] sm:$0xf] %v7330_v1  ;;  %v7041_v11 = vld [vmem:[%s8842_s3 + $0x20] sm:$0xff]  ;;  %vm491_vm0 = vsmask.f32 256 }
   0xe   : > { %s6891_s24 = sshll.u32 %s8878_s19, 7  ;;  %437 = vst [vmem:[#allocation2] sm:$0xf] %v7330_v1  ;;  %vm815_vm1 = vcmask 1043456   ;;  %vm492_vm2 = vsmask.f32 4368 }
   0xf   : > { %s7385_s27 = scalar_lea.vmem %s8839_s0, %s6891_s24  ;;  %438 = vst [vmem:[#allocation2 + $0x4] sm:$0xf] %v7330_v1  ;;  %vm816_vm3 = vsmask.f32 7938  ;;  %v7039_v27 = vld [vmem:[%s8842_s3 + $0x10] sm:$0xff]  ;;  %vm7434_vm4 = vmor %vm491_vm0, %vm492_vm2  ;;  %v7038_v40 = vld [vmem:[%s8842_s3 + $0x8] sm:$0xff]  ;;  %s8705_s9 = scalar_lea.vmem %s8843_s4, %s6891_s24 }
  0x10   : > { %7286 = vmatpush.bf16.msra.mxu1 %v7043_v2  ;;  %7287 = vmatpush.bf16.msra.mxu2 %v7043_v2  ;;  %v7255_v5 = vld [vmem:[%s7385_s27 + $0x18] sm:$0xff]   ;;  %439 = vst [vmem:[#allocation2 + $0x8] sm:$0x1] %v7330_v1  ;;  %vm7443_vm5 = vmand %vm815_vm1, %vm816_vm3  ;;  %v7037_v47 = vld [vmem:[%s8842_s3] sm:$0xff]  ;;  %vm1591_vm6 = vcmask 1042432   ;;  %vm822_vm7 = vcmask 1040384  }
  0x11   : > { %7288 = vmatpush.bf16.msra.mxu3 %v7043_v2  ;;  %4908 = vmatpush.bf16.msra.mxu0 %v7043_v2  ;;  %v7123_v6 = vunpack.c.l.bf16 %v7255_v5  ;;  %v7124_v7 = vunpack.c.h.bf16 %v7255_v5  ;;  %440 = vst [vmem:[#allocation2 + $0xc] sm:$0xf] %v7330_v1  ;;  %v7259_v14 = vld [vmem:[%s7385_s27 + $0x38] sm:$0xff]   ;;  %v7256_v55 = vld [vmem:[%s7385_s27 + $0x20] sm:$0xff]   ;;  %vm1592_vm8 = vcmask 1046532   ;;  %vm7969_vm13 = vmand %vm822_vm7, %vm491_vm0  ;;  %s5976_s24 = sshll.u32 %s8878_s19, 1 }
  0x12   : > { %441 = vst [vmem:[#allocation2 + $0x10] sm:$0xf] %v7330_v1  ;;  %v7139_v18 = vunpack.c.l.bf16 %v7259_v14  ;;  %v7140_v19 = vunpack.c.h.bf16 %v7259_v14  ;;  %v7263_v22 = vld [vmem:[%s7385_s27 + $0x58] sm:$0xff]   ;;  %v7260_v56 = vld [vmem:[%s7385_s27 + $0x40] sm:$0xff]   ;;  %v7127_v60 = vunpack.c.l.bf16 %v7256_v55  ;;  %v7128_v61 = vunpack.c.h.bf16 %v7256_v55  ;;  %vm7949_vm11 = vmor %vm1591_vm6, %vm1592_vm8  ;;  %s235_s12 = scalar_lea.vmem %s8844_s5, %s5976_s24 }
  0x13   : > { %v311_v9 = vmul.f32 %v7390_v3, %v7123_v6  ;;  %v312_v10 = vmul.f32 %v7390_v3, %v7124_v7  ;;  %442 = vst [vmem:[#allocation2 + $0x14] sm:$0x1] %v7330_v1  ;;  %v7155_v30 = vunpack.c.l.bf16 %v7263_v22  ;;  %v7156_v34 = vunpack.c.h.bf16 %v7263_v22  ;;  %v841_v36 = vld [vmem:[#allocation2 + $0x30] sm:$0xf]  ;;  %v7264_v57 = vld [vmem:[%s7385_s27 + $0x60] sm:$0xff]  }
  0x14   : > { %7289 = vmatpush.bf16.msra.mxu1 %v7042_v4  ;;  %7290 = vmatpush.bf16.msra.mxu2 %v7042_v4  ;;  %443 = vst [vmem:[#allocation2 + $0x18] sm:$0xf] %v7330_v1  ;;  %v319_v28 = vmul.f32 %v7390_v3, %v7139_v18  ;;  %v320_v29 = vmul.f32 %v7390_v3, %v7140_v19  ;;  %v7143_v62 = vunpack.c.l.bf16 %v7260_v56  ;;  %v7144_v0 = vunpack.c.h.bf16 %v7260_v56  ;;  %v7110_v19 = vld [vmem:[%s7385_s27] sm:$0xff]  }
  0x15   : > { %7291 = vmatpush.bf16.msra.mxu3 %v7042_v4  ;;  %4909 = vmatpush.bf16.msra.mxu0 %v7042_v4  ;;  %v347_v12 = vadd.f32 %v7401_v8, %v311_v9  ;;  %v348_v13 = vadd.f32 %v7401_v8, %v312_v10  ;;  %444 = vst [vmem:[#allocation2 + $0x1c] sm:$0xf] %v7330_v1  ;;  %v7159_v2 = vunpack.c.l.bf16 %v7264_v57  ;;  %v7160_v14 = vunpack.c.h.bf16 %v7264_v57 }
  0x16   : > { %445 = vst [vmem:[#allocation2 + $0x20] sm:$0x1] %v7330_v1  ;;  %v355_v41 = vadd.f32 %v7401_v8, %v319_v28  ;;  %v356_v42 = vadd.f32 %v7401_v8, %v320_v29  ;;  %v327_v43 = vmul.f32 %v7390_v3, %v7155_v30  ;;  %v328_v46 = vmul.f32 %v7390_v3, %v7156_v34 }
  0x17   : > { %v379_v15 = vmax.f32 %v347_v12, 0.0  ;;  %v380_v16 = vmax.f32 %v348_v13, 0.0  ;;  %446 = vst [vmem:[#allocation2 + $0x24] sm:$0xf] %v7330_v1  ;;  %v313_v4 = vmul.f32 %v7390_v3, %v7127_v60  ;;  %v314_v5 = vmul.f32 %v7390_v3, %v7128_v61 }
  0x18   : > { %7292 = vmatpush.bf16.msra.mxu1 %v7041_v11  ;;  %7293 = vmatpush.bf16.msra.mxu2 %v7041_v11  ;;  %447 = vst [vmem:[#allocation2 + $0x28] sm:$0xf] %v7330_v1  ;;  %v387_v48 = vmax.f32 %v355_v41, 0.0  ;;  %v388_v49 = vmax.f32 %v356_v42, 0.0  ;;  %v363_v50 = vadd.f32 %v7401_v8, %v327_v43  ;;  %v364_v51 = vadd.f32 %v7401_v8, %v328_v46 }
  0x19   : > { %7294 = vmatpush.bf16.msra.mxu3 %v7041_v11  ;;  %4910 = vmatpush.bf16.msra.mxu0 %v7041_v11  ;;  %v411_v20 = vpack.c.bf16 %v379_v15, %v379_v15  ;;  %v412_v21 = vpack.c.bf16 %v380_v16, %v380_v16  ;;  %448 = vst [vmem:[#allocation2 + $0x2c] sm:$0x1] %v7330_v1  ;;  %v7112_v34 = vunpack.c.h.bf16 %v7110_v19  ;;  %vm1044_vm9 = vsmask.f32 3328 }
  0x1a   : > { %451 = vst [vmem:[#allocation2 + $0x38] sm:$0x1] %v7330_v1  ;;  %v7473_v52 = vpack.c.bf16 %v387_v48, %v387_v48  ;;  %v420_v53 = vpack.c.bf16 %v388_v49, %v388_v49  ;;  %v395_v54 = vmax.f32 %v363_v50, 0.0  ;;  %v396_v59 = vmax.f32 %v364_v51, 0.0 }
  0x1b   : > { %v546_v23 = vshrl.u32 %v411_v20, 16  ;;  %v549_v24 = vshll.u32 %v411_v20, 16  ;;  %v554_v25 = vshrl.u32 %v412_v21, 16  ;;  %v557_v26 = vshll.u32 %v412_v21, 16  ;;  %452 = vst [vmem:[#allocation2 + $0x3c] sm:$0xf] %v7330_v1 }
  0x1c   : > { %7295 = vmatpush.bf16.msra.mxu1 %v7040_v17  ;;  %7296 = vmatpush.bf16.msra.mxu2 %v7040_v17  ;;  %453 = vst [vmem:[#allocation2 + $0x40] sm:$0xf] %v7330_v1  ;;  %v321_v6 = vmul.f32 %v7390_v3, %v7143_v62  ;;  %v614_v7 = vshrl.u32 %v7473_v52, 16  ;;  %v622_v9 = vshrl.u32 %v420_v53, 16  ;;  %v427_v10 = vpack.c.bf16 %v395_v54, %v395_v54 }
  0x1d   : > { %7297 = vmatpush.bf16.msra.mxu3 %v7040_v17  ;;  %4911 = vmatpush.bf16.msra.mxu0 %v7040_v17  ;;  %v548_v32 = vrot.slane %v546_v23, 7  ;;  %v7438_v33 = vrot.slane %v554_v25, 7  ;;  %454 = vst [vmem:[#allocation2 + $0x44] sm:$0x1] %v7330_v1  ;;  %v322_v11 = vmul.f32 %v7390_v3, %v7144_v0  ;;  %v428_v12 = vpack.c.bf16 %v396_v59, %v396_v59 }
  0x1e   : > { %455 = vst [vmem:[#allocation2 + $0x48] sm:$0xf] %v7330_v1  ;;  %v349_v13 = vadd.f32 %v7401_v8, %v313_v4  ;;  %v350_v15 = vadd.f32 %v7401_v8, %v314_v5  ;;  %v329_v16 = vmul.f32 %v7390_v3, %v7159_v2  ;;  %v357_v17 = vadd.f32 %v7401_v8, %v321_v6  ;;  %v7261_v6 = vld [vmem:[%s7385_s27 + $0x48] sm:$0xff]  }
  0x1f   : > { %v551_v37 = vor.u32 %v549_v24, %v548_v32  ;;  %v552_v38 = vrot.slane %v548_v32, 4  ;;  %v559_v39 = vor.u32 %v557_v26, %v7438_v33  ;;  %456 = vst [vmem:[#allocation2 + $0x4c] sm:$0xf] %v7330_v1  ;;  %v358_v18 = vadd.f32 %v7401_v8, %v322_v11 }
  0x20   : > { %7298 = vmatpush.bf16.msra.mxu1 %v7039_v27  ;;  %7299 = vmatpush.bf16.msra.mxu2 %v7039_v27  ;;  %457 = vst [vmem:[#allocation2 + $0x50] sm:$0x1] %v7330_v1  ;;  %v616_v20 = vrot.slane %v614_v7, 7  ;;  %v7495_v21 = vrot.slane %v622_v9, 7  ;;  %v625_v22 = vshll.u32 %v420_v53, 16  ;;  %v682_v23 = vshrl.u32 %v427_v10, 16 }
  0x21   : > { %7300 = vmatpush.bf16.msra.mxu3 %v7039_v27  ;;  %4912 = vmatpush.bf16.msra.mxu0 %v7039_v27  ;;  %v560_v44 = vsel %vm7434_vm4, %v552_v38, %v559_v39  ;;  %v842_v45 = vsel %vm7443_vm5, %v551_v37, %v841_v36  ;;  %458 = vst [vmem:[#allocation2 + $0x54] sm:$0xf] %v7330_v1  ;;  %v690_v25 = vshrl.u32 %v428_v12, 16  ;;  %v381_v26 = vmax.f32 %v349_v13, 0.0  ;;  %v7068_v13 = vld [vmem:[%s8842_s3 + $0xf8] sm:$0xff] }
  0x22   : > { %843 = vst [vmem:[#allocation2 + $0x30] sm:$0xf] %v842_v45  ;;  %v330_v27 = vmul.f32 %v7390_v3, %v7160_v14  ;;  %v382_v29 = vmax.f32 %v350_v15, 0.0  ;;  %v365_v30 = vadd.f32 %v7401_v8, %v329_v16  ;;  %v7111_v32 = vunpack.c.l.bf16 %v7110_v19  ;;  %v7052_v19 = vld [vmem:[%s8842_s3 + $0x78] sm:$0xff] }
  0x23   : > { %844 = vst [vmem:[#allocation2 + $0x34] sm:$0xf] %v560_v44  ;;  %v617_v37 = vshll.u32 %v7473_v52, 16  ;;  %v389_v38 = vmax.f32 %v357_v17, 0.0  ;;  %v390_v39 = vmax.f32 %v358_v18, 0.0  ;;  %v627_v41 = vor.u32 %v625_v22, %v7495_v21 }
  0x24   : > { %7301 = vmatpush.bf16.msra.mxu1 %v7038_v40  ;;  %7302 = vmatpush.bf16.msra.mxu2 %v7038_v40  ;;  %459 = vst [vmem:[#allocation2 + $0x58] sm:$0xf] %v7330_v1  ;;  %v7505_v42 = vrot.slane %v682_v23, 7  ;;  %v685_v43 = vshll.u32 %v427_v10, 16  ;;  %v7508_v44 = vrot.slane %v690_v25, 7  ;;  %v693_v45 = vshll.u32 %v428_v12, 16 }
  0x25   : > { %7303 = vmatpush.bf16.msra.mxu3 %v7038_v40  ;;  %4913 = vmatpush.bf16.msra.mxu0 %v7038_v40  ;;  %460 = vst [vmem:[#allocation2 + $0x5c] sm:$0x1] %v7330_v1  ;;  %v620_v40 = vrot.slane %v616_v20, 4  ;;  %v7510_v46 = vpack.c.bf16 %v381_v26, %v381_v26  ;;  %v7514_v48 = vpack.c.bf16 %v382_v29, %v382_v29  ;;  %v397_v49 = vmax.f32 %v365_v30, 0.0  ;;  %v7060_v12 = vld [vmem:[%s8842_s3 + $0xb8] sm:$0xff]  ;;  %v7067_v25 = vld [vmem:[%s8842_s3 + $0xf0] sm:$0xff] }
  0x26   : > { %461 = vst [vmem:[#allocation2 + $0x60] sm:$0xf] %v7330_v1  ;;  %v305_v50 = vmul.f32 %v7390_v3, %v7111_v32  ;;  %v306_v51 = vmul.f32 %v7390_v3, %v7112_v34  ;;  %v7519_v52 = vpack.c.bf16 %v389_v38, %v389_v38  ;;  %v7521_v53 = vpack.c.bf16 %v390_v39, %v390_v39  ;;  %v7076_v26 = vld [vmem:[%s8842_s3 + $0x138] sm:$0xff]  ;;  %v7051_v32 = vld [vmem:[%s8842_s3 + $0x70] sm:$0xff] }
  0x27   : > { %462 = vst [vmem:[#allocation2 + $0x64] sm:$0xf] %v7330_v1  ;;  %v7524_v54 = vor.u32 %v617_v37, %v616_v20  ;;  %v7528_v55 = vsel %vm7434_vm4, %v620_v40, %v627_v41  ;;  %v7531_v56 = vor.u32 %v685_v43, %v7505_v42  ;;  %v688_v57 = vrot.slane %v7505_v42, 4  ;;  %v7059_v20 = vld [vmem:[%s8842_s3 + $0xb0] sm:$0xff] }
  0x28   : > { %7304 = vmatpush.bf16.msra.mxu1 %v7037_v47  ;;  %7305 = vmatpush.bf16.msra.mxu2 %v7037_v47  ;;  %463 = vst [vmem:[#allocation2 + $0x68] sm:$0x1] %v7330_v1  ;;  %v7537_v59 = vor.u32 %v693_v45, %v7508_v44  ;;  %v563_v60 = vshrl.u32 %v7510_v46, 16  ;;  %v571_v0 = vshrl.u32 %v7514_v48, 16  ;;  %v7544_v2 = vpack.c.bf16 %v397_v49, %v397_v49  ;;  %v7265_v45 = vld [vmem:[%s7385_s27 + $0x68] sm:$0xff]  }
  0x29   : > { %7306 = vmatpush.bf16.msra.mxu3 %v7037_v47  ;;  %4914 = vmatpush.bf16.msra.mxu0 %v7037_v47  ;;  %v940_v58 = vld [vmem:[#allocation2 + $0x30] sm:$0xf]  ;;  %464 = vst [vmem:[#allocation2 + $0x6c] sm:$0xf] %v7330_v1  ;;  %v366_v47 = vadd.f32 %v7401_v8, %v330_v27  ;;  %v341_v4 = vadd.f32 %v7401_v8, %v305_v50  ;;  %v566_v7 = vshll.u32 %v7510_v46, 16  ;;  %v574_v9 = vshll.u32 %v7514_v48, 16 }
  0x2a   : > { %v941_v63 = vld [vmem:[#allocation2 + $0x34] sm:$0xf]  ;;  %972 = vst [vmem:[#allocation3 + $0x120] sm:$0xf] %v940_v58  ;;  %v7257_v58 = vld [vmem:[%s7385_s27 + $0x28] sm:$0xff]   ;;  %v342_v5 = vadd.f32 %v7401_v8, %v306_v51  ;;  %v631_v10 = vshrl.u32 %v7519_v52, 16  ;;  %v7147_v16 = vunpack.c.l.bf16 %v7261_v6  ;;  %v7148_v17 = vunpack.c.h.bf16 %v7261_v6 }
  0x2b   : > { %973 = vst [vmem:[#allocation3 + $0x144] sm:$0xf] %v941_v63  ;;  %v398_v61 = vmax.f32 %v366_v47, 0.0  ;;  %v7131_v62 = vunpack.c.l.bf16 %v7257_v58  ;;  %v639_v11 = vshrl.u32 %v7521_v53, 16  ;;  %v7132_v14 = vunpack.c.h.bf16 %v7257_v58 }
  0x2c   : > { %465 = vst [vmem:[#allocation2 + $0x70] sm:$0xf] %v7330_v1  ;;  %v7573_v22 = vrot.slane %v563_v60, 7  ;;  %v634_v23 = vshll.u32 %v7519_v52, 16  ;;  %5085 = vmatpush.bf16.msrb.mxu2 %v7060_v12  ;;  %v373_v27 = vmax.f32 %v341_v4, 0.0  ;;  %4996 = vmatpush.bf16.msrb.mxu1 %v7052_v19  ;;  %v7591_v34 = vrot.slane %v571_v0, 7 }
  0x2d   : > { %466 = vst [vmem:[#allocation2 + $0x74] sm:$0x1] %v7330_v1  ;;  %v7541_v63 = vld [vmem:[#allocation2 + $0x60] sm:$0xf]  ;;  %v315_v15 = vmul.f32 %v7390_v3, %v7131_v62  ;;  %5174 = vmatpush.bf16.msrb.mxu3 %v7068_v13  ;;  %v316_v29 = vmul.f32 %v7390_v3, %v7132_v14  ;;  %v642_v37 = vshll.u32 %v7521_v53, 16  ;;  %v323_v38 = vmul.f32 %v7390_v3, %v7147_v16 }
  0x2e   : > { %467 = vst [vmem:[#allocation2 + $0x78] sm:$0xf] %v7330_v1  ;;  %v870_v18 = vsel %vm7443_vm5, %v7524_v54, %v7541_v63  ;;  %5263 = vmatpush.bf16.msrb.mxu0 %v7076_v26  ;;  %v7598_v39 = vrot.slane %v639_v11, 7  ;;  %v699_v40 = vshrl.u32 %v7544_v2, 16  ;;  %v7601_v41 = vpack.c.bf16 %v373_v27, %v373_v27  ;;  %v848_v11 = vld [vmem:[#allocation2 + $0x3c] sm:$0xf] }
  0x2f   : > { %468 = vst [vmem:[#allocation2 + $0x7c] sm:$0xf] %v7330_v1  ;;  %v351_v30 = vadd.f32 %v7401_v8, %v315_v15  ;;  %v324_v43 = vmul.f32 %v7390_v3, %v7148_v17  ;;  %v702_v46 = vshll.u32 %v7544_v2, 16  ;;  %v352_v47 = vadd.f32 %v7401_v8, %v316_v29  ;;  %v7253_v27 = vld [vmem:[%s7385_s27 + $0x8] sm:$0xff]  }
  0x30   : > { %469 = vst [vmem:[#allocation2 + $0x80] sm:$0x1] %v7330_v1  ;;  %v359_v49 = vadd.f32 %v7401_v8, %v323_v38  ;;  %5086 = vmatpush.bf16.msrb.mxu2 %v7059_v20  ;;  %v7611_v50 = vor.u32 %v566_v7, %v7573_v22  ;;  %4997 = vmatpush.bf16.msrb.mxu1 %v7051_v32  ;;  %v495_v60 = vshrl.u32 %v7601_v41, 16  ;;  %v7163_v0 = vunpack.c.l.bf16 %v7265_v45  ;;  %v7642_v16 = vld [vmem:[#allocation2 + $0x6c] sm:$0xf] }
  0x31   : > { %v6171_v24 = vld [vmem:[#allocation3 + $0x120] sm:$0xf]  ;;  %470 = vst [vmem:[#allocation2 + $0x84] sm:$0xf] %v7330_v1  ;;  %v383_v48 = vmax.f32 %v351_v30, 0.0  ;;  %5175 = vmatpush.bf16.msrb.mxu3 %v7067_v25  ;;  %v569_v4 = vrot.slane %v7573_v22, 4  ;;  %v360_v6 = vadd.f32 %v7401_v8, %v324_v43  ;;  %v7164_v7 = vunpack.c.h.bf16 %v7265_v45 }
  0x32   : > { %v6933_v28 = vld [vmem:[#allocation3 + $0x140] sm:$0xf0]  ;;  %471 = vst [vmem:[#allocation2 + $0x88] sm:$0xf] %v7330_v1  ;;  %v7634_v13 = vrot.slane %v699_v40, 7  ;;  %v391_v14 = vmax.f32 %v359_v49, 0.0  ;;  %v644_v42 = vor.u32 %v642_v37, %v7598_v39  ;;  %v331_v19 = vmul.f32 %v7390_v3, %v7163_v0 }
  0x33   : > { %v6172_v36 = vor.u32 %v6933_v28, %v6171_v24  ;;  %472 = vst [vmem:[#allocation2 + $0x8c] sm:$0x1] %v7330_v1  ;;  %v7576_v24 = vpack.c.bf16 %v398_v61, %v398_v61  ;;  %v374_v28 = vmax.f32 %v342_v5, 0.0  ;;  %v384_v61 = vmax.f32 %v352_v47, 0.0  ;;  %v933_v20 = vld [vmem:[#allocation2 + $0x4] sm:$0xf] }
  0x34   : > { %473 = vst [vmem:[#allocation2 + $0x90] sm:$0xf] %v7330_v1  ;;  %v7619_v62 = vpack.c.bf16 %v383_v48, %v383_v48  ;;  %v576_v5 = vor.u32 %v574_v9, %v7591_v34  ;;  %v849_v54 = vsel %vm7443_vm5, %v7611_v50, %v848_v11  ;;  %v392_v63 = vmax.f32 %v360_v6, 0.0  ;;  %v7684_v43 = vld [vmem:[%s7385_s27 + $0x30] sm:$0xff]   ;;  %v7066_v45 = vld [vmem:[%s8842_s3 + $0xe8] sm:$0xff]  ;;  %v7065_v0 = vld [vmem:[%s8842_s3 + $0xe0] sm:$0xff] }
  0x35   : > { %4935 = vmatmul.bf16.vlgmr.msra.gmra.mxu1 %v6172_v36  ;;  %474 = vst [vmem:[#allocation2 + $0x94] sm:$0xf] %v7330_v1  ;;  %v7593_v36 = vrot.slane %v631_v10, 7  ;;  %v707_v51 = vshrl.u32 %v7576_v24, 16  ;;  %v710_v52 = vshll.u32 %v7576_v24, 16  ;;  %v7615_v53 = vpack.c.bf16 %v374_v28, %v374_v28  ;;  %v7075_v47 = vld [vmem:[%s8842_s3 + $0x130] sm:$0xff]  ;;  %5176 = vmatpush.bf16.msrb.mxu3 %v7066_v45 }
  0x36   : > { %475 = vst [vmem:[#allocation2 + $0x98] sm:$0x1] %v7330_v1  ;;  %v696_v10 = vsel %vm7434_vm4, %v688_v57, %v7537_v59  ;;  %v932_v59 = vld [vmem:[#allocation2] sm:$0xf]  ;;  %v7652_v17 = vpack.c.bf16 %v384_v61, %v384_v61  ;;  %v577_v22 = vsel %vm7434_vm4, %v569_v4, %v576_v5  ;;  %v7670_v26 = vpack.c.bf16 %v391_v14, %v391_v14 }
  0x37   : > { %476 = vst [vmem:[#allocation2 + $0x9c] sm:$0xf] %v7330_v1  ;;  %v7632_v12 = vor.u32 %v634_v23, %v7593_v36  ;;  %v637_v15 = vrot.slane %v7593_v36, 4  ;;  %v503_v57 = vshrl.u32 %v7615_v53, 16  ;;  %v7668_v25 = vrot.slane %v707_v51, 7  ;;  %v7057_v61 = vld [vmem:[%s8842_s3 + $0xa0] sm:$0xff]  ;;  %5264 = vmatpush.bf16.msrb.mxu0 %v7075_v47 }
  0x38   : > { %477 = vst [vmem:[#allocation2 + $0xa0] sm:$0xf] %v7330_v1  ;;  %v498_v28 = vshll.u32 %v7601_v41, 16  ;;  %v506_v30 = vshll.u32 %v7615_v53, 16  ;;  %v583_v32 = vshll.u32 %v7619_v62, 16  ;;  %v588_v38 = vshrl.u32 %v7652_v17, 16 }
  0x39   : > { %478 = vst [vmem:[#allocation2 + $0xa4] sm:$0x1] %v7330_v1  ;;  %v877_v23 = vsel %vm7443_vm5, %v7632_v12, %v7642_v16  ;;  %v7674_v29 = vrot.slane %v503_v57, 7  ;;  %v367_v40 = vadd.f32 %v7401_v8, %v331_v19  ;;  %v7058_v41 = vld [vmem:[%s8842_s3 + $0xa8] sm:$0xff]  ;;  %v591_v48 = vshll.u32 %v7652_v17, 16  ;;  %5177 = vmatpush.bf16.msrb.mxu3 %v7065_v0  ;;  %v7262_v0 = vld [vmem:[%s7385_s27 + $0x50] sm:$0xff]  }
  0x3a   : > { %479 = vst [vmem:[#allocation2 + $0xa8] sm:$0xf] %v7330_v1  ;;  %v7696_v49 = vpack.c.bf16 %v392_v63, %v392_v63  ;;  %v7115_v51 = vunpack.c.l.bf16 %v7253_v27  ;;  %v645_v53 = vsel %vm7434_vm4, %v637_v15, %v644_v42  ;;  %v648_v4 = vshrl.u32 %v7670_v26, 16  ;;  %5087 = vmatpush.bf16.msrb.mxu2 %v7058_v41 }
  0x3b   : > { %480 = vst [vmem:[#allocation2 + $0xac] sm:$0xf] %v7330_v1  ;;  %v897_v58 = vld [vmem:[#allocation2 + $0x90] sm:$0xf]  ;;  %v7116_v5 = vunpack.c.h.bf16 %v7253_v27  ;;  %v712_v2 = vor.u32 %v710_v52, %v7668_v25  ;;  %v7135_v14 = vunpack.c.l.bf16 %v7684_v43  ;;  %v7732_v52 = vld [vmem:[#allocation2 + $0xc] sm:$0xf] }
  0x3c   : > { %481 = vst [vmem:[#allocation2 + $0xb0] sm:$0x1] %v7330_v1  ;;  %v898_v9 = vsel %vm7443_vm5, %v7531_v56, %v897_v58  ;;  %v580_v56 = vshrl.u32 %v7619_v62, 16  ;;  %v7704_v58 = vor.u32 %v702_v46, %v7634_v13  ;;  %v307_v11 = vmul.f32 %v7390_v3, %v7115_v51 }
  0x3d   : > { %482 = vst [vmem:[#allocation2 + $0xb4] sm:$0xf] %v7330_v1  ;;  %v399_v15 = vmax.f32 %v367_v40, 0.0  ;;  %v308_v57 = vmul.f32 %v7390_v3, %v7116_v5  ;;  %v651_v19 = vshll.u32 %v7670_v26, 16  ;;  %v7739_v63 = vrot.slane %v588_v38, 7 }
  0x3e   : > { %483 = vst [vmem:[#allocation2 + $0xb8] sm:$0xf] %v7330_v1  ;;  %v7679_v37 = vrot.slane %v580_v56, 7  ;;  %v7719_v46 = vld [vmem:[#allocation2 + $0x9c] sm:$0xf]  ;;  %v508_v56 = vor.u32 %v506_v30, %v7674_v29  ;;  %5088 = vmatpush.bf16.msrb.mxu2 %v7057_v61  ;;  %v7750_v41 = vrot.slane %v648_v4, 7  ;;  %v317_v38 = vmul.f32 %v7390_v3, %v7135_v14 }
  0x3f   : > { %484 = vst [vmem:[#allocation2 + $0xbc] sm:$0x1] %v7330_v1  ;;  %v7136_v51 = vunpack.c.h.bf16 %v7684_v43  ;;  %v7794_v14 = vld [vmem:[%s7385_s27 + $0x70] sm:$0xff]   ;;  %vm1045_vm10 = vsmask.f32 7440 }
  0x40   : > { %485 = vst [vmem:[#allocation2 + $0xc0] sm:$0xf] %v7330_v1  ;;  %v585_v43 = vor.u32 %v583_v32, %v7679_v37  ;;  %v353_v62 = vadd.f32 %v7401_v8, %v317_v38  ;;  %vm7958_vm12 = vmor %vm1044_vm9, %vm1045_vm10 }
  0x41   : > { %486 = vst [vmem:[#allocation2 + $0xc4] sm:$0xf] %v7330_v1  ;;  %v7815_v38 = vld [vmem:[#allocation2 + $0xa8] sm:$0xf] }
  0x42   : > { %487 = vst [vmem:[#allocation2 + $0xc8] sm:$0x1] %v7330_v1 }
  0x43   : > { %488 = vst [vmem:[#allocation2 + $0xcc] sm:$0xf] %v7330_v1 }
  0x44   : > { %489 = vst [vmem:[#allocation2 + $0xd0] sm:$0xf] %v7330_v1 }
  0x45   : > { %490 = vst [vmem:[#allocation2 + $0xd4] sm:$0x1] %v7330_v1  ;;  %v7650_v1 = vrot.slane %v495_v60, 7  ;;  %v7050_v60 = vld [vmem:[%s8842_s3 + $0x68] sm:$0xff] }
  0x46   : > { %871 = vst [vmem:[#allocation2 + $0x60] sm:$0xf] %v870_v18  ;;  %v332_v18 = vmul.f32 %v7390_v3, %v7164_v7  ;;  %v7074_v7 = vld [vmem:[%s8842_s3 + $0x128] sm:$0xff]  ;;  %4998 = vmatpush.bf16.msrb.mxu1 %v7050_v60 }
  0x47   : > { %872 = vst [vmem:[#allocation2 + $0x64] sm:$0xf] %v7528_v55  ;;  %v705_v55 = vrot.slane %v7634_v13, 4  ;;  %v501_v36 = vrot.slane %v7650_v1, 4  ;;  %v7730_v24 = vor.u32 %v498_v28, %v7650_v1  ;;  %v344_v28 = vadd.f32 %v7401_v8, %v308_v57  ;;  %5265 = vmatpush.bf16.msrb.mxu0 %v7074_v7 }
  0x48   : > { %899 = vst [vmem:[#allocation2 + $0x90] sm:$0xf] %v898_v9  ;;  %v368_v50 = vadd.f32 %v7401_v8, %v332_v18  ;;  %v7741_v18 = vpack.c.bf16 %v399_v15, %v399_v15  ;;  %v905_v13 = vsel %vm7443_vm5, %v7704_v58, %v7719_v46  ;;  %v659_v46 = vshll.u32 %v7696_v49, 16 }
  0x49   : > { %900 = vst [vmem:[#allocation2 + $0x94] sm:$0xf] %v696_v10  ;;  %v7049_v10 = vld [vmem:[%s8842_s3 + $0x60] sm:$0xff]  ;;  %v713_v30 = vsel %vm7434_vm4, %v705_v55, %v712_v2  ;;  %v586_v55 = vrot.slane %v7679_v37, 4  ;;  %v509_v12 = vsel %vm7434_vm4, %v501_v36, %v508_v56  ;;  %v819_v16 = vsel %vm7443_vm5, %v7730_v24, %v7732_v52 }
  0x4a   : > { %964 = vst [vmem:[#allocation3] sm:$0xf] %v932_v59  ;;  %v400_v42 = vmax.f32 %v368_v50, 0.0  ;;  %4999 = vmatpush.bf16.msrb.mxu1 %v7049_v10  ;;  %v716_v50 = vshrl.u32 %v7741_v18, 16  ;;  %v654_v2 = vrot.slane %v7750_v41, 4  ;;  %v318_v10 = vmul.f32 %v7390_v3, %v7136_v51 }
  0x4b   : > { %965 = vst [vmem:[#allocation3 + $0x24] sm:$0xf] %v933_v20  ;;  %v656_v20 = vshrl.u32 %v7696_v49, 16  ;;  %v7152_v24 = vunpack.c.h.bf16 %v7262_v0 }
  0x4c   : > { %850 = vst [vmem:[#allocation2 + $0x3c] sm:$0xf] %v849_v54  ;;  %v7743_v27 = vpack.c.bf16 %v400_v42, %v400_v42  ;;  %v7788_v37 = vrot.slane %v716_v50, 7  ;;  %v7803_v42 = vor.u32 %v651_v19, %v7750_v41  ;;  %v883_v19 = vld [vmem:[#allocation2 + $0x78] sm:$0xf] }
  0x4d   : > { %v948_v6 = vld [vmem:[#allocation2 + $0x60] sm:$0xf]  ;;  %851 = vst [vmem:[#allocation2 + $0x40] sm:$0xf] %v577_v22  ;;  %v343_v22 = vadd.f32 %v7401_v8, %v307_v11  ;;  %v7773_v58 = vrot.slane %v656_v20, 7  ;;  %v7151_v11 = vunpack.c.l.bf16 %v7262_v0  ;;  %v326_v51 = vmul.f32 %v7390_v3, %v7152_v24 }
  0x4e   : > { %v949_v9 = vld [vmem:[#allocation2 + $0x64] sm:$0xf]  ;;  %980 = vst [vmem:[#allocation3 + $0x240] sm:$0xf] %v948_v6  ;;  %v724_v1 = vshrl.u32 %v7743_v27, 16  ;;  %v593_v6 = vor.u32 %v591_v48, %v7739_v63  ;;  %v719_v48 = vshll.u32 %v7741_v18, 16  ;;  %v7168_v0 = vunpack.c.h.bf16 %v7794_v14 }
  0x4f   : > { %981 = vst [vmem:[#allocation3 + $0x264] sm:$0xf] %v949_v9  ;;  %v956_v59 = vld [vmem:[#allocation2 + $0x90] sm:$0xf]  ;;  %v375_v45 = vmax.f32 %v343_v22, 0.0  ;;  %v727_v49 = vshll.u32 %v7743_v27, 16  ;;  %v661_v22 = vor.u32 %v659_v46, %v7773_v58  ;;  %v325_v50 = vmul.f32 %v7390_v3, %v7151_v11 }
  0x50   : > { %v957_v54 = vld [vmem:[#allocation2 + $0x94] sm:$0xf]  ;;  %988 = vst [vmem:[#allocation3 + $0x360] sm:$0xf] %v956_v59  ;;  %v7805_v57 = vrot.slane %v724_v1, 7  ;;  %v385_v18 = vmax.f32 %v353_v62, 0.0  ;;  %v594_v26 = vsel %vm7434_vm4, %v586_v55, %v593_v6  ;;  %v354_v55 = vadd.f32 %v7401_v8, %v318_v10 }
  0x51   : > { %989 = vst [vmem:[#allocation3 + $0x384] sm:$0xf] %v957_v54  ;;  %v6027_v40 = vld [vmem:[#allocation3] sm:$0xf]  ;;  %v7780_v36 = vpack.c.bf16 %v375_v45, %v375_v45  ;;  %v7055_v46 = vld [vmem:[%s8842_s3 + $0x90] sm:$0xff]  ;;  %v884_v10 = vsel %vm7443_vm5, %v7803_v42, %v883_v19 }
  0x52   : > { %v6897_v47 = vld [vmem:[#allocation3 + $0x20] sm:$0xf0]  ;;  %878 = vst [vmem:[#allocation2 + $0x6c] sm:$0xf] %v877_v23  ;;  %v855_v23 = vld [vmem:[#allocation2 + $0x48] sm:$0xf] }
  0x53   : > { %v6028_v60 = vor.u32 %v6897_v47, %v6027_v40  ;;  %v942_v61 = vld [vmem:[#allocation2 + $0x3c] sm:$0xf]  ;;  %879 = vst [vmem:[#allocation2 + $0x70] sm:$0xf] %v645_v53  ;;  %v376_v53 = vmax.f32 %v344_v28, 0.0  ;;  %v856_v15 = vsel %vm7443_vm5, %v585_v43, %v855_v23  ;;  %v512_v59 = vshrl.u32 %v7780_v36, 16 }
  0x54   : > { %v943_v4 = vld [vmem:[#allocation2 + $0x40] sm:$0xf]  ;;  %974 = vst [vmem:[#allocation3 + $0x168] sm:$0xf] %v942_v61  ;;  %v722_v28 = vrot.slane %v7788_v37, 4  ;;  %v515_v40 = vshll.u32 %v7780_v36, 16  ;;  %v7827_v61 = vor.u32 %v719_v48, %v7788_v37  ;;  %v417_v36 = vpack.c.bf16 %v385_v18, %v385_v18 }
  0x55   : > { %v6315_v5 = vld [vmem:[#allocation3 + $0x240] sm:$0xf]  ;;  %4915 = vmatmul.bf16.vlgmr.msra.gmra.mxu0 %v6028_v60  ;;  %975 = vst [vmem:[#allocation3 + $0x18c] sm:$0xf] %v943_v4  ;;  %v7790_v7 = vpack.c.bf16 %v376_v53, %v376_v53  ;;  %v7073_v23 = vld [vmem:[%s8842_s3 + $0x120] sm:$0xff]  ;;  %v386_v24 = vmax.f32 %v354_v55, 0.0 }
  0x56   : > { %v6969_v32 = vld [vmem:[#allocation3 + $0x260] sm:$0xf0]  ;;  %906 = vst [vmem:[#allocation2 + $0x9c] sm:$0xf] %v905_v13  ;;  %5266 = vmatpush.bf16.msrb.mxu0 %v7073_v23  ;;  %v827_v11 = vld [vmem:[#allocation2 + $0x18] sm:$0xf]  ;;  %v912_v41 = vsel %vm7443_vm5, %v7827_v61, %v7815_v38 }
  0x57   : > { %v6316_v9 = vor.u32 %v6969_v32, %v6315_v5  ;;  %v6459_v17 = vld [vmem:[#allocation3 + $0x360] sm:$0xf]  ;;  %907 = vst [vmem:[#allocation2 + $0xa0] sm:$0xf] %v713_v30  ;;  %v520_v54 = vshrl.u32 %v7790_v7, 16  ;;  %v7167_v30 = vunpack.c.l.bf16 %v7794_v14  ;;  %v523_v53 = vshll.u32 %v7790_v7, 16 }
  0x58   : > { %v7005_v52 = vld [vmem:[#allocation3 + $0x380] sm:$0xf0]  ;;  %820 = vst [vmem:[#allocation2 + $0xc] sm:$0xf] %v819_v16  ;;  %v7830_v16 = vrot.slane %v512_v59, 7  ;;  %v7847_v32 = vld [vmem:[%s7385_s27 + $0x10] sm:$0xff]   ;;  %v662_v7 = vsel %vm7434_vm4, %v654_v2, %v661_v22 }
  0x59   : > { %4955 = vmatmul.bf16.vlgmr.msra.gmra.mxu2 %v6316_v9  ;;  %v6460_v56 = vor.u32 %v7005_v52, %v6459_v17  ;;  %v950_v20 = vld [vmem:[#allocation2 + $0x6c] sm:$0xf]  ;;  %821 = vst [vmem:[#allocation2 + $0x10] sm:$0xf] %v509_v12  ;;  %v7056_v47 = vld [vmem:[%s8842_s3 + $0x98] sm:$0xff]  ;;  %v729_v12 = vor.u32 %v727_v49, %v7805_v57  ;;  %v7836_v1 = vrot.slane %v520_v54, 7  ;;  %v333_v62 = vmul.f32 %v7390_v3, %v7167_v30 }
  0x5a   : > { %v951_v27 = vld [vmem:[#allocation2 + $0x70] sm:$0xf]  ;;  %982 = vst [vmem:[#allocation3 + $0x288] sm:$0xf] %v950_v20  ;;  %v7064_v13 = vld [vmem:[%s8842_s3 + $0xd8] sm:$0xff]  ;;  %5089 = vmatpush.bf16.msrb.mxu2 %v7056_v47  ;;  %v361_v17 = vadd.f32 %v7401_v8, %v325_v50  ;;  %v517_v2 = vor.u32 %v515_v40, %v7830_v16  ;;  %v362_v52 = vadd.f32 %v7401_v8, %v326_v51  ;;  %v597_v59 = vshrl.u32 %v417_v36, 16 }
  0x5b   : > { %4975 = vmatmul.bf16.vlgmr.msra.gmra.mxu3 %v6460_v56  ;;  %v6207_v45 = vld [vmem:[#allocation3 + $0x168] sm:$0xf]  ;;  %983 = vst [vmem:[#allocation3 + $0x2ac] sm:$0xf] %v951_v27  ;;  %v7048_v6 = vld [vmem:[%s8842_s3 + $0x58] sm:$0xff]  ;;  %v7063_v14 = vld [vmem:[%s8842_s3 + $0xd0] sm:$0xff]  ;;  %v730_v42 = vsel %vm7434_vm4, %v722_v28, %v729_v12  ;;  %v334_v20 = vmul.f32 %v7390_v3, %v7168_v0  ;;  %v525_v18 = vor.u32 %v523_v53, %v7836_v1  ;;  %v7119_v30 = vunpack.c.l.bf16 %v7847_v32 }
  0x5c   : > { %v6942_v60 = vld [vmem:[#allocation3 + $0x188] sm:$0xf0]  ;;  %857 = vst [vmem:[#allocation2 + $0x48] sm:$0xf] %v856_v15  ;;  %5178 = vmatpush.bf16.msrb.mxu3 %v7064_v13  ;;  %v7072_v9 = vld [vmem:[%s8842_s3 + $0x118] sm:$0xff]  ;;  %5000 = vmatpush.bf16.msrb.mxu1 %v7048_v6  ;;  %v7047_v49 = vld [vmem:[%s8842_s3 + $0x50] sm:$0xff]  ;;  %v418_v27 = vpack.c.bf16 %v386_v24, %v386_v24  ;;  %v828_v47 = vsel %vm7443_vm5, %v517_v2, %v827_v11 }
  0x5d   : > { %v6208_v4 = vor.u32 %v6942_v60, %v6207_v45  ;;  %v958_v43 = vld [vmem:[#allocation2 + $0x9c] sm:$0xf]  ;;  %858 = vst [vmem:[#allocation2 + $0x4c] sm:$0xf] %v594_v26  ;;  %v600_v56 = vshll.u32 %v417_v36, 16  ;;  %v518_v54 = vrot.slane %v7830_v16, 4  ;;  %5267 = vmatpush.bf16.msrb.mxu0 %v7072_v9  ;;  %v369_v26 = vadd.f32 %v7401_v8, %v333_v62 }
  0x5e   : > { %v959_v5 = vld [vmem:[#allocation2 + $0xa0] sm:$0xf]  ;;  %990 = vst [vmem:[#allocation3 + $0x3a8] sm:$0xf] %v958_v43  ;;  %5090 = vmatpush.bf16.msrb.mxu2 %v7055_v46  ;;  %v599_v40 = vrot.slane %v597_v59, 7  ;;  %v393_v28 = vmax.f32 %v361_v17, 0.0  ;;  %v7120_v45 = vunpack.c.h.bf16 %v7847_v32  ;;  %v370_v43 = vadd.f32 %v7401_v8, %v334_v20 }
  0x5f   : > { %4940 = vmatmul.bf16.gmra.mxu1 %v6208_v4  ;;  %991 = vst [vmem:[#allocation3 + $0x3cc] sm:$0xf] %v959_v5  ;;  %v934_v37 = vld [vmem:[#allocation2 + $0xc] sm:$0xf]  ;;  %v605_v13 = vshrl.u32 %v418_v27, 16  ;;  %v608_v55 = vshll.u32 %v418_v27, 16  ;;  %v526_v0 = vsel %vm7434_vm4, %v518_v54, %v525_v18 }
  0x60   : > { %v935_v48 = vld [vmem:[#allocation2 + $0x10] sm:$0xf]  ;;  %966 = vst [vmem:[#allocation3 + $0x48] sm:$0xf] %v934_v37  ;;  %5179 = vmatpush.bf16.msrb.mxu3 %v7063_v14  ;;  %5001 = vmatpush.bf16.msrb.mxu1 %v7047_v49  ;;  %v862_v50 = vld [vmem:[#allocation2 + $0x54] sm:$0xf]  ;;  %v602_v60 = vor.u32 %v600_v56, %v599_v40  ;;  %v425_v16 = vpack.c.bf16 %v393_v28, %v393_v28 }
  0x61   : > { %v6351_v15 = vld [vmem:[#allocation3 + $0x288] sm:$0xf]  ;;  %967 = vst [vmem:[#allocation3 + $0x6c] sm:$0xf] %v935_v48  ;;  %v603_v61 = vrot.slane %v599_v40, 4  ;;  %v394_v12 = vmax.f32 %v362_v52, 0.0 }
  0x62   : > { %v6978_v22 = vld [vmem:[#allocation3 + $0x2a8] sm:$0xf0]  ;;  %885 = vst [vmem:[#allocation2 + $0x78] sm:$0xf] %v884_v10  ;;  %v7884_v4 = vrot.slane %v605_v13, 7  ;;  %v401_v53 = vmax.f32 %v369_v26, 0.0  ;;  %v863_v9 = vsel %vm7443_vm5, %v602_v60, %v862_v50 }
  0x63   : > { %v944_v19 = vld [vmem:[#allocation2 + $0x48] sm:$0xf]  ;;  %886 = vst [vmem:[#allocation2 + $0x7c] sm:$0xf] %v662_v7  ;;  %v6352_v38 = vor.u32 %v6978_v22, %v6351_v15  ;;  %v426_v6 = vpack.c.bf16 %v394_v12, %v394_v12  ;;  %v665_v46 = vshrl.u32 %v425_v16, 16  ;;  %v668_v37 = vshll.u32 %v425_v16, 16 }
  0x64   : > { %v945_v3 = vld [vmem:[#allocation2 + $0x4c] sm:$0xf]  ;;  %976 = vst [vmem:[#allocation3 + $0x1b0] sm:$0xf] %v944_v19  ;;  %v610_v32 = vor.u32 %v608_v55, %v7884_v4  ;;  %v7318_v7 = vld [vmem:[%s8840_s1] ss:$0 sm:$0xff]  ;;  %v433_v52 = vpack.c.bf16 %v401_v53, %v401_v53 }
  0x65   : > { %v6495_v51 = vld [vmem:[#allocation3 + $0x3a8] sm:$0xf]  ;;  %977 = vst [vmem:[#allocation3 + $0x1d4] sm:$0xf] %v945_v3  ;;  %v309_v10 = vmul.f32 %v7318_v7, %v7119_v30  ;;  %v310_v11 = vmul.f32 %v7318_v7, %v7120_v45  ;;  %v667_v17 = vrot.slane %v665_v46, 7  ;;  %v673_v48 = vshrl.u32 %v426_v6, 16 }
  0x66   : > { %v7014_v23 = vld [vmem:[#allocation3 + $0x3c8] sm:$0xf0]  ;;  %913 = vst [vmem:[#allocation2 + $0xa8] sm:$0xf] %v912_v41  ;;  %v611_v2 = vsel %vm7434_vm4, %v603_v61, %v610_v32  ;;  %v676_v49 = vshll.u32 %v426_v6, 16  ;;  %v402_v24 = vmax.f32 %v370_v43, 0.0 }
  0x67   : > { %v6496_v36 = vor.u32 %v7014_v23, %v6495_v51  ;;  %v6063_v5 = vld [vmem:[#allocation3 + $0x48] sm:$0xf]  ;;  %914 = vst [vmem:[#allocation2 + $0xac] sm:$0xf] %v730_v42  ;;  %v670_v42 = vor.u32 %v668_v37, %v667_v17  ;;  %v671_v59 = vrot.slane %v667_v17, 4  ;;  %v7895_v56 = vrot.slane %v673_v48, 7 }
  0x68   : > { %v6906_v62 = vld [vmem:[#allocation3 + $0x68] sm:$0xf0]  ;;  %829 = vst [vmem:[#allocation2 + $0x18] sm:$0xf] %v828_v47  ;;  %v434_v54 = vpack.c.bf16 %v402_v24, %v402_v24  ;;  %v7319_v18 = vld [vmem:[%s8841_s2] ss:$0 sm:$0xff] }
  0x69   : > { %4960 = vmatmul.bf16.gmra.mxu2 %v6352_v38  ;;  %v6064_v14 = vor.u32 %v6906_v62, %v6063_v5  ;;  %v952_v8 = vld [vmem:[#allocation2 + $0x78] sm:$0xf]  ;;  %830 = vst [vmem:[#allocation2 + $0x1c] sm:$0xf] %v526_v0  ;;  %v890_v22 = vld [vmem:[#allocation2 + $0x84] sm:$0xf]  ;;  %v345_v27 = vadd.f32 %v7319_v18, %v309_v10  ;;  %v678_v40 = vor.u32 %v676_v49, %v7895_v56 }
  0x6a   : > { %v953_v41 = vld [vmem:[#allocation2 + $0x7c] sm:$0xf]  ;;  %984 = vst [vmem:[#allocation3 + $0x2d0] sm:$0xf] %v952_v8  ;;  %v7054_v28 = vld [vmem:[%s8842_s3 + $0x88] sm:$0xff]  ;;  %v346_v30 = vadd.f32 %v7319_v18, %v310_v11  ;;  %v733_v38 = vshrl.u32 %v433_v52, 16  ;;  %v891_v13 = vsel %vm7443_vm5, %v670_v42, %v890_v22 }
  0x6b   : > { %4980 = vmatmul.bf16.gmra.mxu3 %v6496_v36  ;;  %4920 = vmatmul.bf16.gmra.mxu0 %v6064_v14  ;;  %v6243_v15 = vld [vmem:[#allocation3 + $0x1b0] sm:$0xf]  ;;  %985 = vst [vmem:[#allocation3 + $0x2f4] sm:$0xf] %v953_v41  ;;  %v736_v3 = vshll.u32 %v433_v52, 16  ;;  %v741_v55 = vshrl.u32 %v434_v54, 16  ;;  %v679_v60 = vsel %vm7434_vm4, %v671_v59, %v678_v40 }
  0x6c   : > { %v6951_v20 = vld [vmem:[#allocation3 + $0x1d0] sm:$0xf0]  ;;  %864 = vst [vmem:[#allocation2 + $0x54] sm:$0xf] %v863_v9  ;;  %v744_v50 = vshll.u32 %v434_v54, 16  ;;  %5091 = vmatpush.bf16.msrb.mxu2 %v7054_v28  ;;  %v735_v61 = vrot.slane %v733_v38, 7 }
  0x6d   : > { %v6244_v26 = vor.u32 %v6951_v20, %v6243_v15  ;;  %v960_v19 = vld [vmem:[#allocation2 + $0xa8] sm:$0xf]  ;;  %865 = vst [vmem:[#allocation2 + $0x58] sm:$0xf] %v611_v2  ;;  %v377_v12 = vmax.f32 %v345_v27, 0.0  ;;  %v7908_v23 = vrot.slane %v741_v55, 7 }
  0x6e   : > { %v961_v45 = vld [vmem:[#allocation2 + $0xac] sm:$0xf]  ;;  %992 = vst [vmem:[#allocation3 + $0x3f0] sm:$0xf] %v960_v19  ;;  %v378_v0 = vmax.f32 %v346_v30, 0.0  ;;  %v738_v53 = vor.u32 %v736_v3, %v735_v61  ;;  %v739_v36 = vrot.slane %v735_v61, 4 }
  0x6f   : > { %4945 = vmatmul.bf16.gmra.mxu1 %v6244_v26  ;;  %993 = vst [vmem:[#allocation3 + $0x414] sm:$0xf] %v961_v45  ;;  %v936_v47 = vld [vmem:[#allocation2 + $0x18] sm:$0xf]  ;;  %v409_v5 = vpack.c.bf16 %v377_v12, %v377_v12  ;;  %v7062_v6 = vld [vmem:[%s8842_s3 + $0xc8] sm:$0xff]  ;;  %v746_v62 = vor.u32 %v744_v50, %v7908_v23  ;;  %v7071_v37 = vld [vmem:[%s8842_s3 + $0x110] sm:$0xff] }
  0x70   : > { %v937_v51 = vld [vmem:[#allocation2 + $0x1c] sm:$0xf]  ;;  %968 = vst [vmem:[#allocation3 + $0x90] sm:$0xf] %v936_v47  ;;  %v410_v32 = vpack.c.bf16 %v378_v0, %v378_v0  ;;  %v918_v11 = vld [vmem:[#allocation2 + $0xb4] sm:$0xf]  ;;  %5180 = vmatpush.bf16.msrb.mxu3 %v7062_v6  ;;  %5268 = vmatpush.bf16.msrb.mxu0 %v7071_v37 }
  0x71   : > { %v6387_v16 = vld [vmem:[#allocation3 + $0x2d0] sm:$0xf]  ;;  %969 = vst [vmem:[#allocation3 + $0xb4] sm:$0xf] %v937_v51  ;;  %v747_v8 = vsel %vm7434_vm4, %v739_v36, %v746_v62  ;;  %v919_v9 = vsel %vm7443_vm5, %v738_v53, %v918_v11  ;;  %v529_v17 = vshrl.u32 %v409_v5, 16  ;;  %v532_v48 = vshll.u32 %v409_v5, 16 }
  0x72   : > { %v6987_v43 = vld [vmem:[#allocation3 + $0x2f0] sm:$0xf0]  ;;  %892 = vst [vmem:[#allocation2 + $0x84] sm:$0xf] %v891_v13  ;;  %v537_v2 = vshrl.u32 %v410_v32, 16  ;;  %v540_v49 = vshll.u32 %v410_v32, 16 }
  0x73   : > { %v946_v46 = vld [vmem:[#allocation2 + $0x54] sm:$0xf]  ;;  %893 = vst [vmem:[#allocation2 + $0x88] sm:$0xf] %v679_v60  ;;  %v6388_v7 = vor.u32 %v6987_v43, %v6387_v16  ;;  %v531_v15 = vrot.slane %v529_v17, 7  ;;  %v7046_v42 = vld [vmem:[%s8842_s3 + $0x48] sm:$0xff] }
  0x74   : > { %v947_v10 = vld [vmem:[#allocation2 + $0x58] sm:$0xf]  ;;  %978 = vst [vmem:[#allocation3 + $0x1f8] sm:$0xf] %v946_v46  ;;  %v7924_v20 = vrot.slane %v537_v2, 7  ;;  %v7053_v54 = vld [vmem:[%s8842_s3 + $0x80] sm:$0xff]  ;;  %5002 = vmatpush.bf16.msrb.mxu1 %v7046_v42 }
  0x75   : > { %v6531_v14 = vld [vmem:[#allocation3 + $0x3f0] sm:$0xf]  ;;  %979 = vst [vmem:[#allocation3 + $0x21c] sm:$0xf] %v947_v10  ;;  %v834_v22 = vld [vmem:[#allocation2 + $0x24] sm:$0xf]  ;;  %v534_v19 = vor.u32 %v532_v48, %v531_v15  ;;  %5092 = vmatpush.bf16.msrb.mxu2 %v7053_v54 }
  0x76   : > { %v7023_v41 = vld [vmem:[#allocation3 + $0x410] sm:$0xf0]  ;;  %920 = vst [vmem:[#allocation2 + $0xb4] sm:$0xf] %v919_v9  ;;  %v510_v18 = vrot.slane %v7674_v29, 4  ;;  %v535_v40 = vrot.slane %v531_v15, 4  ;;  %v542_v38 = vor.u32 %v540_v49, %v7924_v20 }
  0x77   : > { %v6532_v24 = vor.u32 %v7023_v41, %v6531_v14  ;;  %v6099_v52 = vld [vmem:[#allocation3 + $0x90] sm:$0xf]  ;;  %921 = vst [vmem:[#allocation2 + $0xb8] sm:$0xf] %v747_v8  ;;  %v7061_v28 = vld [vmem:[%s8842_s3 + $0xc0] sm:$0xff]  ;;  %v835_v13 = vsel %vm7443_vm5, %v534_v19, %v834_v22 }
  0x78   : > { %v6915_v59 = vld [vmem:[#allocation3 + $0xb0] sm:$0xf0]  ;;  %v7045_v3 = vld [vmem:[%s8842_s3 + $0x40] sm:$0xff]  ;;  %v543_v51 = vsel %vm7434_vm4, %v535_v40, %v542_v38  ;;  %836 = vst [vmem:[#allocation2 + $0x24] sm:$0xf] %v835_v13  ;;  %5181 = vmatpush.bf16.msrb.mxu3 %v7061_v28  ;;  %v7100_v40 = vld [vmem:[%s8842_s3 + $0x1f8] sm:$0xff] }
  0x79   : > { %4965 = vmatmul.bf16.gmra.mxu2 %v6388_v7  ;;  %v6100_v27 = vor.u32 %v6915_v59, %v6099_v52  ;;  %v954_v26 = vld [vmem:[#allocation2 + $0x84] sm:$0xf]  ;;  %v7070_v30 = vld [vmem:[%s8842_s3 + $0x108] sm:$0xff]  ;;  %v996_v60 = vld [vmem:[#allocation2] sm:$0xf]  ;;  %5003 = vmatpush.bf16.msrb.mxu1 %v7045_v3 }
  0x7a   : > { %v955_v45 = vld [vmem:[#allocation2 + $0x88] sm:$0xf]  ;;  %986 = vst [vmem:[#allocation3 + $0x318] sm:$0xf] %v954_v26  ;;  %v7069_v55 = vld [vmem:[%s8842_s3 + $0x100] sm:$0xff]  ;;  %5269 = vmatpush.bf16.msrb.mxu0 %v7070_v30  ;;  %v1048_v53 = vshrl.u32 %v996_v60, 16 }
  0x7b   : > { %4985 = vmatmul.bf16.gmra.mxu3 %v6532_v24  ;;  %4925 = vmatmul.bf16.gmra.mxu0 %v6100_v27  ;;  %v6279_v47 = vld [vmem:[#allocation3 + $0x1f8] sm:$0xf]  ;;  %987 = vst [vmem:[#allocation3 + $0x33c] sm:$0xf] %v955_v45  ;;  %v997_v16 = vld [vmem:[#allocation2 + $0x4] sm:$0xf] }
  0x7c   : > { %v6960_v50 = vld [vmem:[#allocation3 + $0x218] sm:$0xf0]  ;;  %837 = vst [vmem:[#allocation2 + $0x28] sm:$0xf] %v543_v51  ;;  %v998_v43 = vld [vmem:[#allocation2 + $0x8] sm:$0x1]  ;;  %5530 = vmatpush.bf16.msra.mxu3 %v7100_v40 }
  0x7d   : > { %v6280_v61 = vor.u32 %v6960_v50, %v6279_v47  ;;  %v962_v12 = vld [vmem:[#allocation2 + $0xb4] sm:$0xf]  ;;  %v1051_v36 = vshll.u32 %v996_v60, 16  ;;  %v1057_v5 = vshll.u32 %v997_v16, 16  ;;  %v1061_v6 = vshrl.u32 %v997_v16, 16  ;;  %v7092_v59 = vld [vmem:[%s8842_s3 + $0x1b8] sm:$0xff] }
  0x7e   : > { %v963_v0 = vld [vmem:[#allocation2 + $0xb8] sm:$0xf]  ;;  %994 = vst [vmem:[#allocation3 + $0x438] sm:$0xf] %v962_v12  ;;  %5270 = vmatpush.bf16.msrb.mxu0 %v7069_v55  ;;  %v1495_v46 = vld [vmem:[#allocation2] sm:$0xe]  ;;  %5441 = vmatpush.bf16.msra.mxu2 %v7092_v59 }
  0x7f   : > { %4950 = vmatmul.bf16.gmra.mxu1 %v6280_v61  ;;  %995 = vst [vmem:[#allocation3 + $0x45c] sm:$0xf] %v963_v0  ;;  %v1067_v32 = vshll.u32 %v998_v43, 16  ;;  %v1496_v37 = vld [vmem:[#allocation2 + $0x4] sm:$0xf]  ;;  %v5977_v7 = vrot.slane %v1495_v46, 9 }
  0x80   : > { %v1050_v11 = vrot.slane %v1048_v53, 4  ;;  %v1053_v14 = vrot.slane %v1051_v36, 5  ;;  %v1059_v8 = vrot.slane %v1057_v5, 5  ;;  %v1063_v9 = vrot.slane %v1061_v6, 4  ;;  %v938_v48 = vld [vmem:[#allocation2 + $0x24] sm:$0xf] }
  0x81   : > { %v6423_v62 = vld [vmem:[#allocation3 + $0x318] sm:$0xf]  ;;  %v1069_v41 = vrot.slane %v1067_v32, 5  ;;  %v1497_v2 = vld [vmem:[#allocation2 + $0x8] sm:$0x1]  ;;  %v1596_v49 = vrot.slane %v1496_v37, 5 }
  0x82   : > { %v6996_v10 = vld [vmem:[#allocation3 + $0x338] sm:$0xf0]  ;;  %970 = vst [vmem:[#allocation3 + $0xd8] sm:$0xf] %v938_v48  ;;  %v1054_v52 = vor.u32 %v1053_v14, %v1050_v11  ;;  %v1064_v15 = vor.u32 %v1063_v9, %v1059_v8  ;;  %v1599_v42 = vrot.slane %v1497_v2, 5  ;;  %v7084_v5 = vld [vmem:[%s8842_s3 + $0x178] sm:$0xff] }
  0x83   : > { %v939_v24 = vld [vmem:[#allocation2 + $0x28] sm:$0xf]  ;;  %v6424_v22 = vor.u32 %v6996_v10, %v6423_v62  ;;  %v1597_v26 = vsel %vm7949_vm11, %v5977_v7, %v1596_v49  ;;  %v1598_v19 = vrot.slane %v1596_v49, 4  ;;  %v1770_v13 = vld [vmem:[#allocation2 + $0xc] sm:$0xf]  ;;  %v7108_v6 = vld [vmem:[%s8842_s3 + $0x238] sm:$0xff]  ;;  %5352 = vmatpush.bf16.msra.mxu1 %v7084_v5 }
  0x84   : > { %971 = vst [vmem:[#allocation3 + $0xfc] sm:$0xf] %v939_v24  ;;  %v1055_v45 = vrot.slane %v1054_v52, 4  ;;  %v1065_v38 = vrot.slane %v1064_v15, 4  ;;  %v1771_v55 = vld [vmem:[#allocation2 + $0x10] sm:$0xf]  ;;  %5619 = vmatpush.bf16.msra.mxu0 %v7108_v6 }
  0x85   : > { %v6567_v54 = vld [vmem:[#allocation3 + $0x438] sm:$0xf]  ;;  %1738 = vst [vmem:[#allocation3 + $0x8] sm:$0xf] %v1597_v26  ;;  %v1600_v47 = vsel %vm7949_vm11, %v1598_v19, %v1599_v42  ;;  %v824_v50 = vld [vmem:[#allocation2 + $0x14] sm:$0x1] }
  0x86   : > { %v7032_v30 = vld [vmem:[#allocation3 + $0x458] sm:$0xf0]  ;;  %v1060_v51 = vsel %vm7958_vm12, %v1055_v45, %v1059_v8  ;;  %v1070_v60 = vsel %vm7958_vm12, %v1065_v38, %v1069_v41  ;;  %1739 = vst [vmem:[#allocation3 + $0x2c] sm:$0xf] %v1600_v47  ;;  %v1834_v61 = vld [vmem:[#allocation2 + $0xc] sm:$0xf]  ;;  %v825_v36 = vsel %vm7969_vm13, %v510_v18, %v824_v50 }
  0x87   : > { %v6568_v3 = vor.u32 %v7032_v30, %v6567_v54  ;;  %v1835_v12 = vld [vmem:[#allocation2 + $0x10] sm:$0xf]  ;;  %1463 = vst [vmem:[#allocation3 + $0x4] sm:$0xf] %v1060_v51  ;;  %v1883_v16 = vshrl.u32 %v1834_v61, 16  ;;  %v1886_v0 = vshll.u32 %v1834_v61, 16 }
  0x88   : > { %v1892_v43 = vshll.u32 %v1835_v12, 16  ;;  %v1896_v53 = vshrl.u32 %v1835_v12, 16  ;;  %1464 = vst [vmem:[#allocation3 + $0x28] sm:$0xf] %v1070_v60  ;;  %v999_v46 = vld [vmem:[#allocation2 + $0xc] sm:$0xf] }
  0x89   : > { %4970 = vmatmul.bf16.gmra.mxu2 %v6424_v22  ;;  %v6135_v62 = vld [vmem:[#allocation3 + $0xd8] sm:$0xf]  ;;  %1802 = vst [vmem:[#allocation3 + $0xc] sm:$0xf] %v1770_v13  ;;  %v1885_v32 = vrot.slane %v1883_v16, 4  ;;  %v1888_v37 = vrot.slane %v1886_v0, 5 }
  0x8a   : > { %1803 = vst [vmem:[#allocation3 + $0x30] sm:$0xf] %v1771_v55  ;;  %v1894_v29 = vrot.slane %v1892_v43, 5  ;;  %v1898_v10 = vrot.slane %v1896_v53, 4  ;;  %v1000_v14 = vld [vmem:[#allocation2 + $0x10] sm:$0xf] }
  0x8b   : > { %4990 = vmatmul.bf16.gmra.mxu3 %v6568_v3  ;;  %v6924_v7 = vld [vmem:[#allocation3 + $0xf8] sm:$0xf0]  ;;  %826 = vst [vmem:[#allocation2 + $0x14] sm:$0x1] %v825_v36  ;;  %v1889_v11 = vor.u32 %v1888_v37, %v1885_v32  ;;  %v1072_v8 = vshrl.u32 %v999_v46, 16  ;;  %v1075_v9 = vshll.u32 %v999_v46, 16 }
  0x8c   : > { %v6136_v18 = vor.u32 %v6924_v7, %v6135_v62  ;;  %v1081_v48 = vshll.u32 %v1000_v14, 16  ;;  %v1498_v41 = vld [vmem:[#allocation2 + $0xc] sm:$0xe]  ;;  %v6035_v2 = vld [vmem:[#allocation3 + $0x8] sm:$0xf]  ;;  %v1085_v24 = vshrl.u32 %v1000_v14, 16  ;;  %v1899_v59 = vor.u32 %v1898_v10, %v1894_v29 }
  0x8d   : > { %v1890_v49 = vrot.slane %v1889_v11, 4  ;;  %v1499_v52 = vld [vmem:[#allocation2 + $0x10] sm:$0xf]  ;;  %v6898_v42 = vld [vmem:[#allocation3 + $0x28] sm:$0xf0]  ;;  %v1074_v22 = vrot.slane %v1072_v8, 4 }
  0x8e   : > { %4930 = vmatmul.bf16.gmra.mxu0 %v6136_v18  ;;  %v6893_v15 = vld [vmem:[#allocation3 + $0x4] sm:$0xf]  ;;  %v1077_v54 = vrot.slane %v1075_v9, 5  ;;  %v1083_v40 = vrot.slane %v1081_v48, 5  ;;  %v1087_v30 = vrot.slane %v1085_v24, 4  ;;  %v5978_v45 = vrot.slane %v1498_v41, 9 }
  0x8f   : > { %v6029_v26 = vld [vmem:[#allocation3 + $0x24] sm:$0xf0]  ;;  %v1895_v19 = vsel %vm7958_vm12, %v1890_v49, %v1894_v29  ;;  %v1603_v47 = vrot.slane %v1499_v52, 5  ;;  %v1772_v51 = vld [vmem:[#allocation2 + $0x18] sm:$0xf]  ;;  %v6036_v60 = vor.u32 %v6898_v42, %v6035_v2  ;;  %v1900_v53 = vrot.slane %v1899_v59, 4 }
  0x90   : > { %v6032_v38 = vor.u32 %v6893_v15, %v6029_v26  ;;  %2298 = vst [vmem:[#allocation3 + $0x10] sm:$0xf] %v1895_v19  ;;  %v1078_v3 = vor.u32 %v1077_v54, %v1074_v22  ;;  %v6894_v13 = vld [vmem:[#allocation3 + $0xc] sm:$0xf]  ;;  %v1088_v50 = vor.u32 %v1087_v30, %v1083_v40  ;;  %v527_v62 = vrot.slane %v7836_v1, 4 }
  0x91   : > { %v6037_v55 = vld [vmem:[#allocation3 + $0x2c] sm:$0xf0]  ;;  %v1604_v0 = vsel %vm7949_vm11, %v5978_v45, %v1603_v47  ;;  %v1605_v43 = vrot.slane %v1603_v47, 4  ;;  %v831_v7 = vld [vmem:[#allocation2 + $0x20] sm:$0x1] }
  0x92   : > { %5004 = vmatmul.bf16.vlgmr.msrb.gmra.mxu1 %v6032_v38  ;;  %v1836_v61 = vld [vmem:[#allocation2 + $0x14] sm:$0x1]  ;;  %v1079_v16 = vrot.slane %v1078_v3, 4  ;;  %v1089_v5 = vrot.slane %v1088_v50, 4  ;;  %1740 = vst [vmem:[#allocation3 + $0x50] sm:$0xf] %v1604_v0  ;;  %v6040_v29 = vor.u32 %v6894_v13, %v6037_v55  ;;  %v832_v52 = vsel %vm7969_vm13, %v527_v62, %v831_v7 }
  0x93   : > { %v1001_v12 = vld [vmem:[#allocation2 + $0x14] sm:$0x1]  ;;  %v1902_v36 = vshll.u32 %v1836_v61, 16  ;;  %v1837_v11 = vld [vmem:[#allocation2 + $0x18] sm:$0xf] }
  0x94   : > { %v1091_v6 = vshll.u32 %v1001_v12, 16  ;;  %v1500_v46 = vld [vmem:[#allocation2 + $0x14] sm:$0x1]  ;;  %v1084_v32 = vsel %vm7958_vm12, %v1079_v16, %v1083_v40  ;;  %1804 = vst [vmem:[#allocation3 + $0x54] sm:$0xf] %v1772_v51  ;;  %v1907_v9 = vshrl.u32 %v1837_v11, 16 }
  0x95   : > { %v1606_v37 = vrot.slane %v1500_v46, 5  ;;  %v1904_v10 = vrot.slane %v1902_v36, 5  ;;  %1465 = vst [vmem:[#allocation3 + $0x4c] sm:$0xf] %v1084_v32  ;;  %v1838_v8 = vld [vmem:[#allocation2 + $0x1c] sm:$0xf] }
  0x96   : > { %v1093_v18 = vrot.slane %v1091_v6, 5  ;;  %v1910_v48 = vshll.u32 %v1837_v11, 16  ;;  %v1773_v2 = vld [vmem:[#allocation2 + $0x1c] sm:$0xf]  ;;  %v1916_v49 = vshll.u32 %v1838_v8, 16  ;;  %v1920_v24 = vshrl.u32 %v1838_v8, 16 }
  0x97   : > { %v1607_v14 = vsel %vm7949_vm11, %v1605_v43, %v1606_v37  ;;  %v1905_v1 = vsel %vm7958_vm12, %v1900_v53, %v1904_v10  ;;  %v1909_v15 = vrot.slane %v1907_v9, 4  ;;  %v1002_v59 = vld [vmem:[#allocation2 + $0x18] sm:$0xf]  ;;  %v1003_v26 = vld [vmem:[#allocation2 + $0x1c] sm:$0xf]  ;;  %v7091_v38 = vld [vmem:[%s8842_s3 + $0x1b0] sm:$0xff] }
  0x98   : > { %v1094_v41 = vsel %vm7958_vm12, %v1089_v5, %v1093_v18  ;;  %1741 = vst [vmem:[#allocation3 + $0x74] sm:$0xf] %v1607_v14  ;;  %v1912_v42 = vrot.slane %v1910_v48, 5  ;;  %v1918_v22 = vrot.slane %v1916_v49, 5  ;;  %v1922_v54 = vrot.slane %v1920_v24, 4  ;;  %5442 = vmatpush.bf16.msra.mxu2 %v7091_v38 }
  0x99   : > { %5093 = vmatmul.bf16.vlgmr.msrb.gmra.mxu2 %v6036_v60  ;;  %2299 = vst [vmem:[#allocation3 + $0x34] sm:$0xf] %v1905_v1  ;;  %v1096_v40 = vshrl.u32 %v1002_v59, 16  ;;  %v1099_v30 = vshll.u32 %v1002_v59, 16  ;;  %v1105_v45 = vshll.u32 %v1003_v26, 16  ;;  %v1109_v47 = vshrl.u32 %v1003_v26, 16 }
  0x9a   : > { %1466 = vst [vmem:[#allocation3 + $0x70] sm:$0xf] %v1094_v41  ;;  %v1913_v19 = vor.u32 %v1912_v42, %v1909_v15  ;;  %v1923_v3 = vor.u32 %v1922_v54, %v1918_v22  ;;  %v6043_v60 = vld [vmem:[#allocation3 + $0x10] sm:$0xf]  ;;  %v1501_v12 = vld [vmem:[#allocation2 + $0x18] sm:$0xe] }
  0x9b   : > { %5182 = vmatmul.bf16.vlgmr.msrb.gmra.mxu3 %v6040_v29  ;;  %1805 = vst [vmem:[#allocation3 + $0x78] sm:$0xf] %v1773_v2  ;;  %v1098_v55 = vrot.slane %v1096_v40, 4  ;;  %v1101_v50 = vrot.slane %v1099_v30, 5  ;;  %v1107_v51 = vrot.slane %v1105_v45, 5  ;;  %v1111_v61 = vrot.slane %v1109_v47, 4 }
  0x9c   : > { %833 = vst [vmem:[#allocation2 + $0x20] sm:$0x1] %v832_v52  ;;  %v1914_v13 = vrot.slane %v1913_v19, 4  ;;  %v6902_v16 = vld [vmem:[#allocation3 + $0x4c] sm:$0xf]  ;;  %v5979_v5 = vrot.slane %v1501_v12, 9 }
  0x9d   : > { %v6071_v0 = vld [vmem:[#allocation3 + $0x50] sm:$0xf]  ;;  %v1102_v53 = vor.u32 %v1101_v50, %v1098_v55  ;;  %v1502_v36 = vld [vmem:[#allocation2 + $0x1c] sm:$0xf]  ;;  %v544_v6 = vrot.slane %v7924_v20, 4  ;;  %v1112_v62 = vor.u32 %v1111_v61, %v1107_v51  ;;  %v1924_v18 = vrot.slane %v1923_v3, 4 }
  0x9e   : > { %v1919_v43 = vsel %vm7958_vm12, %v1914_v13, %v1918_v22  ;;  %v1610_v32 = vrot.slane %v1502_v36, 5  ;;  %v6903_v10 = vld [vmem:[#allocation3 + $0x54] sm:$0xf]  ;;  %v1774_v41 = vld [vmem:[#allocation2 + $0x24] sm:$0xf]  ;;  %v7099_v54 = vld [vmem:[%s8842_s3 + $0x1f0] sm:$0xff] }
  0x9f   : > { %2300 = vst [vmem:[#allocation3 + $0x58] sm:$0xf] %v1919_v43  ;;  %v6907_v29 = vld [vmem:[#allocation3 + $0x70] sm:$0xf0]  ;;  %v1103_v11 = vrot.slane %v1102_v53, 4  ;;  %v1113_v9 = vrot.slane %v1112_v62, 4  ;;  %5531 = vmatpush.bf16.msra.mxu3 %v7099_v54 }
  0xa0   : > { %v6899_v46 = vld [vmem:[#allocation3 + $0x30] sm:$0xf0]  ;;  %v1611_v48 = vsel %vm7949_vm11, %v5979_v5, %v1610_v32  ;;  %v1612_v1 = vrot.slane %v1610_v32, 4  ;;  %v1775_v52 = vld [vmem:[#allocation2 + $0x28] sm:$0xf]  ;;  %v6072_v15 = vor.u32 %v6907_v29, %v6071_v0  ;;  %v7083_v12 = vld [vmem:[%s8842_s3 + $0x170] sm:$0xff] }
  0xa1   : > { %v6044_v37 = vor.u32 %v6899_v46, %v6043_v60  ;;  %v6065_v7 = vld [vmem:[#allocation3 + $0x6c] sm:$0xf0]  ;;  %v1108_v49 = vsel %vm7958_vm12, %v1103_v11, %v1107_v51  ;;  %1742 = vst [vmem:[#allocation3 + $0x98] sm:$0xf] %v1611_v48  ;;  %v838_v26 = vld [vmem:[#allocation2 + $0x2c] sm:$0x1]  ;;  %5353 = vmatpush.bf16.msra.mxu1 %v7083_v12 }
  0xa2   : > { %v6068_v14 = vor.u32 %v6902_v16, %v6065_v7  ;;  %v6073_v8 = vld [vmem:[#allocation3 + $0x74] sm:$0xf0]  ;;  %1467 = vst [vmem:[#allocation3 + $0x94] sm:$0xf] %v1108_v49  ;;  %v1840_v19 = vld [vmem:[#allocation2 + $0x24] sm:$0xf]  ;;  %v839_v47 = vsel %vm7969_vm13, %v544_v6, %v838_v26 }
  0xa3   : > { %5271 = vmatmul.bf16.vlgmr.msrb.gmra.mxu0 %v6044_v37  ;;  %v1839_v20 = vld [vmem:[#allocation2 + $0x20] sm:$0x1]  ;;  %v6076_v40 = vor.u32 %v6903_v10, %v6073_v8  ;;  %1806 = vst [vmem:[#allocation3 + $0x9c] sm:$0xf] %v1774_v41  ;;  %v1841_v3 = vld [vmem:[#allocation2 + $0x28] sm:$0xf] }
  0xa4   : > { %v1004_v2 = vld [vmem:[#allocation2 + $0x20] sm:$0x1]  ;;  %5009 = vmatmul.bf16.gmra.mxu1 %v6068_v14  ;;  %v1926_v42 = vshll.u32 %v1839_v20, 16  ;;  %v1931_v13 = vshrl.u32 %v1840_v19, 16  ;;  %v1934_v55 = vshll.u32 %v1840_v19, 16  ;;  %v1940_v60 = vshll.u32 %v1841_v3, 16 }
  0xa5   : > { %v1503_v24 = vld [vmem:[#allocation2 + $0x20] sm:$0x1]  ;;  %v1115_v59 = vshll.u32 %v1004_v2, 16  ;;  %1807 = vst [vmem:[#allocation3 + $0xc0] sm:$0xf] %v1775_v52  ;;  %v1944_v61 = vshrl.u32 %v1841_v3, 16 }
  0xa6   : > { %v1613_v22 = vrot.slane %v1503_v24, 5  ;;  %v1928_v30 = vrot.slane %v1926_v42, 5  ;;  %v7107_v16 = vld [vmem:[%s8842_s3 + $0x230] sm:$0xff]  ;;  %v1933_v0 = vrot.slane %v1931_v13, 4  ;;  %v1936_v43 = vrot.slane %v1934_v55, 5 }
  0xa7   : > { %v1117_v45 = vrot.slane %v1115_v59, 5  ;;  %v1005_v53 = vld [vmem:[#allocation2 + $0x24] sm:$0xf]  ;;  %v1942_v36 = vrot.slane %v1940_v60, 5  ;;  %v1946_v5 = vrot.slane %v1944_v61, 4  ;;  %5620 = vmatpush.bf16.msra.mxu0 %v7107_v16 }
  0xa8   : > { %v1614_v38 = vsel %vm7949_vm11, %v1612_v1, %v1613_v22  ;;  %v1929_v50 = vsel %vm7958_vm12, %v1924_v18, %v1928_v30  ;;  %v1006_v6 = vld [vmem:[#allocation2 + $0x28] sm:$0xf]  ;;  %840 = vst [vmem:[#allocation2 + $0x2c] sm:$0x1] %v839_v47  ;;  %v1937_v46 = vor.u32 %v1936_v43, %v1933_v0  ;;  %v1120_v62 = vshrl.u32 %v1005_v53, 16 }
  0xa9   : > { %1743 = vst [vmem:[#allocation3 + $0xbc] sm:$0xf] %v1614_v38  ;;  %5098 = vmatmul.bf16.gmra.mxu2 %v6072_v15  ;;  %v1118_v51 = vsel %vm7958_vm12, %v1113_v9, %v1117_v45  ;;  %v1123_v32 = vshll.u32 %v1005_v53, 16  ;;  %v1129_v37 = vshll.u32 %v1006_v6, 16  ;;  %v1133_v7 = vshrl.u32 %v1006_v6, 16 }
  0xaa   : > { %2301 = vst [vmem:[#allocation3 + $0x7c] sm:$0xf] %v1929_v50  ;;  %v1504_v29 = vld [vmem:[#allocation2 + $0x24] sm:$0xe]  ;;  %v6079_v10 = vld [vmem:[#allocation3 + $0x58] sm:$0xf]  ;;  %v1947_v11 = vor.u32 %v1946_v5, %v1942_v36 }
  0xab   : > { %5187 = vmatmul.bf16.gmra.mxu3 %v6076_v40  ;;  %1468 = vst [vmem:[#allocation3 + $0xb8] sm:$0xf] %v1118_v51  ;;  %v1938_v18 = vrot.slane %v1937_v46, 4  ;;  %v1122_v14 = vrot.slane %v1120_v62, 4  ;;  %v1125_v8 = vrot.slane %v1123_v32, 5  ;;  %v1131_v48 = vrot.slane %v1129_v37, 5 }
  0xac   : > { %v6911_v9 = vld [vmem:[#allocation3 + $0x94] sm:$0xf]  ;;  %v1135_v1 = vrot.slane %v1133_v7, 4  ;;  %v5980_v41 = vrot.slane %v1504_v29, 9  ;;  %v6107_v20 = vld [vmem:[#allocation3 + $0x98] sm:$0xf] }
  0xad   : > { %v1943_v49 = vsel %vm7958_vm12, %v1938_v18, %v1942_v36  ;;  %v1126_v24 = vor.u32 %v1125_v8, %v1122_v14  ;;  %v1505_v52 = vld [vmem:[#allocation2 + $0x28] sm:$0xf]  ;;  %v561_v15 = vrot.slane %v7438_v33, 4  ;;  %v6912_v59 = vld [vmem:[#allocation3 + $0x9c] sm:$0xf]  ;;  %v1948_v45 = vrot.slane %v1947_v11, 4 }
  0xae   : > { %v6109_v22 = vld [vmem:[#allocation3 + $0xbc] sm:$0xf0]  ;;  %2302 = vst [vmem:[#allocation3 + $0xa0] sm:$0xf] %v1943_v49  ;;  %v1136_v54 = vor.u32 %v1135_v1, %v1131_v48  ;;  %v1617_v26 = vrot.slane %v1505_v52, 5 }
  0xaf   : > { %v1776_v19 = vld [vmem:[#allocation2 + $0x30] sm:$0xf]  ;;  %v1127_v38 = vrot.slane %v1126_v24, 4  ;;  %v1777_v3 = vld [vmem:[#allocation2 + $0x34] sm:$0xf]  ;;  %v6112_v36 = vor.u32 %v6912_v59, %v6109_v22 }
  0xb0   : > { %v6916_v2 = vld [vmem:[#allocation3 + $0xb8] sm:$0xf0]  ;;  %v1842_v13 = vld [vmem:[#allocation2 + $0x2c] sm:$0x1]  ;;  %v1137_v50 = vrot.slane %v1136_v54, 4  ;;  %v1618_v51 = vsel %vm7949_vm11, %v5980_v41, %v1617_v26  ;;  %v1619_v33 = vrot.slane %v1617_v26, 4 }
  0xb1   : > { %v6908_v42 = vld [vmem:[#allocation3 + $0x78] sm:$0xf0]  ;;  %v1007_v55 = vld [vmem:[#allocation2 + $0x2c] sm:$0x1]  ;;  %v1950_v60 = vshll.u32 %v1842_v13, 16  ;;  %v1132_v61 = vsel %vm7958_vm12, %v1127_v38, %v1131_v48  ;;  %v6108_v0 = vor.u32 %v6916_v2, %v6107_v20 }
  0xb2   : > { %v6080_v40 = vor.u32 %v6908_v42, %v6079_v10  ;;  %v6101_v30 = vld [vmem:[#allocation3 + $0xb4] sm:$0xf0]  ;;  %v1139_v12 = vshll.u32 %v1007_v55, 16  ;;  %v1506_v16 = vld [vmem:[#allocation2 + $0x2c] sm:$0x1] }
  0xb3   : > { %v6104_v47 = vor.u32 %v6911_v9, %v6101_v30  ;;  %1744 = vst [vmem:[#allocation3 + $0xe0] sm:$0xf] %v1618_v51  ;;  %v1620_v43 = vrot.slane %v1506_v16, 5  ;;  %v845_v53 = vld [vmem:[#allocation2 + $0x38] sm:$0x1]  ;;  %v1952_v5 = vrot.slane %v1950_v60, 5 }
  0xb4   : > { %5276 = vmatmul.bf16.gmra.mxu0 %v6080_v40  ;;  %1469 = vst [vmem:[#allocation3 + $0xdc] sm:$0xf] %v1132_v61  ;;  %v1141_v6 = vrot.slane %v1139_v12, 5  ;;  %v1843_v46 = vld [vmem:[#allocation2 + $0x30] sm:$0xf]  ;;  %v846_v32 = vsel %vm7969_vm13, %v561_v15, %v845_v53  ;;  %v7090_v38 = vld [vmem:[%s8842_s3 + $0x1a8] sm:$0xff] }
  0xb5   : > { %5014 = vmatmul.bf16.gmra.mxu1 %v6104_v47  ;;  %1808 = vst [vmem:[#allocation3 + $0xe4] sm:$0xf] %v1776_v19  ;;  %v1621_v62 = vsel %vm7949_vm11, %v1619_v33, %v1620_v43  ;;  %v1844_v37 = vld [vmem:[#allocation2 + $0x34] sm:$0xf]  ;;  %v1955_v7 = vshrl.u32 %v1843_v46, 16  ;;  %v1958_v29 = vshll.u32 %v1843_v46, 16  ;;  %v1953_v10 = vsel %vm7958_vm12, %v1948_v45, %v1952_v5  ;;  %5443 = vmatpush.bf16.msra.mxu2 %v7090_v38 }
  0xb6   : > { %1809 = vst [vmem:[#allocation3 + $0x108] sm:$0xf] %v1777_v3  ;;  %v1142_v18 = vsel %vm7958_vm12, %v1137_v50, %v1141_v6  ;;  %v1964_v11 = vshll.u32 %v1844_v37, 16  ;;  %v1968_v14 = vshrl.u32 %v1844_v37, 16  ;;  %v1008_v48 = vld [vmem:[#allocation2 + $0x30] sm:$0xf] }
  0xb7   : > { %1745 = vst [vmem:[#allocation3 + $0x104] sm:$0xf] %v1621_v62  ;;  %v1957_v8 = vrot.slane %v1955_v7, 4  ;;  %v1960_v9 = vrot.slane %v1958_v29, 5  ;;  %v1009_v20 = vld [vmem:[#allocation2 + $0x34] sm:$0xf] }
  0xb8   : > { %2303 = vst [vmem:[#allocation3 + $0xc4] sm:$0xf] %v1953_v10  ;;  %v1966_v1 = vrot.slane %v1964_v11, 5  ;;  %v1970_v41 = vrot.slane %v1968_v14, 4  ;;  %v1144_v49 = vshrl.u32 %v1008_v48, 16  ;;  %v1147_v24 = vshll.u32 %v1008_v48, 16 }
  0xb9   : > { %5103 = vmatmul.bf16.gmra.mxu2 %v6108_v0  ;;  %1470 = vst [vmem:[#allocation3 + $0x100] sm:$0xf] %v1142_v18  ;;  %v1961_v2 = vor.u32 %v1960_v9, %v1957_v8  ;;  %v1153_v52 = vshll.u32 %v1009_v20, 16  ;;  %v1157_v15 = vshrl.u32 %v1009_v20, 16  ;;  %v1507_v42 = vld [vmem:[#allocation2 + $0x30] sm:$0xe] }
  0xba   : > { %847 = vst [vmem:[#allocation2 + $0x38] sm:$0x1] %v846_v32  ;;  %v1971_v22 = vor.u32 %v1970_v41, %v1966_v1  ;;  %v1146_v54 = vrot.slane %v1144_v49, 4  ;;  %v1149_v26 = vrot.slane %v1147_v24, 5  ;;  %v6115_v19 = vld [vmem:[#allocation3 + $0xa0] sm:$0xf] }
  0xbb   : > { %5192 = vmatmul.bf16.gmra.mxu3 %v6112_v36  ;;  %v1962_v59 = vrot.slane %v1961_v2, 4  ;;  %v1155_v40 = vrot.slane %v1153_v52, 5  ;;  %v1159_v30 = vrot.slane %v1157_v15, 4  ;;  %v5981_v45 = vrot.slane %v1507_v42, 9  ;;  %v6920_v3 = vld [vmem:[#allocation3 + $0xdc] sm:$0xf] }
  0xbc   : > { %v1150_v13 = vor.u32 %v1149_v26, %v1146_v54  ;;  %v1508_v55 = vld [vmem:[#allocation2 + $0x34] sm:$0xf]  ;;  %v578_v50 = vrot.slane %v7591_v34, 4  ;;  %v6143_v33 = vld [vmem:[#allocation3 + $0xe0] sm:$0xf]  ;;  %v1972_v5 = vrot.slane %v1971_v22, 4 }
  0xbd   : > { %v1967_v47 = vsel %vm7958_vm12, %v1962_v59, %v1966_v1  ;;  %v8052_v61 = vld [vmem:[#allocation3 + $0xe4] sm:$0xf]  ;;  %v6145_v12 = vld [vmem:[#allocation3 + $0x104] sm:$0xf0]  ;;  %v1160_v16 = vor.u32 %v1159_v30, %v1155_v40  ;;  %v1624_v0 = vrot.slane %v1508_v55, 5  ;;  %v7098_v48 = vld [vmem:[%s8842_s3 + $0x1e8] sm:$0xff] }
  0xbe   : > { %v6925_v60 = vld [vmem:[#allocation3 + $0x100] sm:$0xf0]  ;;  %2304 = vst [vmem:[#allocation3 + $0xe8] sm:$0xf] %v1967_v47  ;;  %v1151_v6 = vrot.slane %v1150_v13, 4  ;;  %v6148_v41 = vor.u32 %v8052_v61, %v6145_v12  ;;  %5532 = vmatpush.bf16.msra.mxu3 %v7098_v48  ;;  %v7082_v38 = vld [vmem:[%s8842_s3 + $0x168] sm:$0xff] }
  0xbf   : > { %v6917_v51 = vld [vmem:[#allocation3 + $0xc0] sm:$0xf0]  ;;  %v1779_v46 = vld [vmem:[#allocation2 + $0x40] sm:$0xf]  ;;  %v1161_v34 = vrot.slane %v1160_v16, 4  ;;  %v1625_v7 = vsel %vm7949_vm11, %v5981_v45, %v1624_v0  ;;  %v1626_v29 = vrot.slane %v1624_v0, 4  ;;  %v6144_v1 = vor.u32 %v6925_v60, %v6143_v33  ;;  %5354 = vmatpush.bf16.msra.mxu1 %v7082_v38 }
  0xc0   : > { %v1778_v43 = vld [vmem:[#allocation2 + $0x3c] sm:$0xf]  ;;  %v6116_v53 = vor.u32 %v6917_v51, %v6115_v19  ;;  %v6137_v36 = vld [vmem:[#allocation3 + $0xfc] sm:$0xf0]  ;;  %v1156_v18 = vsel %vm7958_vm12, %v1151_v6, %v1155_v40  ;;  %1746 = vst [vmem:[#allocation3 + $0x128] sm:$0xf] %v1625_v7  ;;  %v8070_v40 = vpop.f32.mrf.mxu1 }
  0xc1   : > { %v6140_v62 = vor.u32 %v6920_v3, %v6137_v36  ;;  %v1845_v32 = vld [vmem:[#allocation2 + $0x38] sm:$0x1]  ;;  %1471 = vst [vmem:[#allocation3 + $0x124] sm:$0xf] %v1156_v18  ;;  %v852_v9 = vld [vmem:[#allocation2 + $0x44] sm:$0x1] }
  0xc2   : > { %v1010_v37 = vld [vmem:[#allocation2 + $0x38] sm:$0x1]  ;;  %v1974_v10 = vshll.u32 %v1845_v32, 16  ;;  %1810 = vst [vmem:[#allocation3 + $0x12c] sm:$0xf] %v1778_v43  ;;  %v853_v52 = vsel %vm7969_vm13, %v578_v50, %v852_v9  ;;  %v7106_v3 = vld [vmem:[%s8842_s3 + $0x228] sm:$0xff] }
  0xc3   : > { %v1163_v11 = vshll.u32 %v1010_v37, 16  ;;  %v1509_v14 = vld [vmem:[#allocation2 + $0x38] sm:$0x1]  ;;  %v1846_v49 = vld [vmem:[#allocation2 + $0x3c] sm:$0xf]  ;;  %5621 = vmatpush.bf16.msra.mxu0 %v7106_v3 }
  0xc4   : > { %5281 = vmatmul.bf16.gmra.mxu0 %v6116_v53  ;;  %v1627_v8 = vrot.slane %v1509_v14, 5  ;;  %v1976_v20 = vrot.slane %v1974_v10, 5  ;;  %1811 = vst [vmem:[#allocation3 + $0x150] sm:$0xf] %v1779_v46  ;;  %v1847_v15 = vld [vmem:[#allocation2 + $0x40] sm:$0xf] }
  0xc5   : > { %5019 = vmatmul.bf16.gmra.mxu1 %v6140_v62  ;;  %v1165_v2 = vrot.slane %v1163_v11, 5  ;;  %v1979_v42 = vshrl.u32 %v1846_v49, 16  ;;  %v1982_v59 = vshll.u32 %v1846_v49, 16  ;;  %v1988_v26 = vshll.u32 %v1847_v15, 16  ;;  %v1011_v47 = vld [vmem:[#allocation2 + $0x3c] sm:$0xf] }
  0xc6   : > { %v1628_v24 = vsel %vm7949_vm11, %v1626_v29, %v1627_v8  ;;  %v1977_v22 = vsel %vm7958_vm12, %v1972_v5, %v1976_v20  ;;  %v1992_v19 = vshrl.u32 %v1847_v15, 16  ;;  %854 = vst [vmem:[#allocation2 + $0x44] sm:$0x1] %v853_v52  ;;  %v1012_v51 = vld [vmem:[#allocation2 + $0x40] sm:$0xf]  ;;  %v1168_v33 = vshrl.u32 %v1011_v47, 16 }
  0xc7   : > { %v1166_v54 = vsel %vm7958_vm12, %v1161_v34, %v1165_v2  ;;  %1747 = vst [vmem:[#allocation3 + $0x14c] sm:$0xf] %v1628_v24  ;;  %v1981_v30 = vrot.slane %v1979_v42, 4  ;;  %v1984_v45 = vrot.slane %v1982_v59, 5  ;;  %v1990_v55 = vrot.slane %v1988_v26, 5 }
  0xc8   : > { %2305 = vst [vmem:[#allocation3 + $0x10c] sm:$0xf] %v1977_v22  ;;  %v1994_v50 = vrot.slane %v1992_v19, 4  ;;  %v1171_v60 = vshll.u32 %v1011_v47, 16  ;;  %v1177_v61 = vshll.u32 %v1012_v51, 16  ;;  %v1181_v16 = vshrl.u32 %v1012_v51, 16  ;;  %v8082_v22 = vpop.f32.mrf.mxu1 }
  0xc9   : > { %5108 = vmatmul.bf16.gmra.mxu2 %v6144_v1  ;;  %1472 = vst [vmem:[#allocation3 + $0x148] sm:$0xf] %v1166_v54  ;;  %v1985_v13 = vor.u32 %v1984_v45, %v1981_v30  ;;  %v1510_v0 = vld [vmem:[#allocation2 + $0x3c] sm:$0xe]  ;;  %v6151_v43 = vld [vmem:[#allocation3 + $0xe8] sm:$0xf] }
  0xca   : > { %v1170_v53 = vrot.slane %v1168_v33, 4  ;;  %v1173_v36 = vrot.slane %v1171_v60, 5  ;;  %v1179_v5 = vrot.slane %v1177_v61, 5  ;;  %v6929_v6 = vld [vmem:[#allocation3 + $0x124] sm:$0xf]  ;;  %v1995_v62 = vor.u32 %v1994_v50, %v1990_v55 }
  0xcb   : > { %5197 = vmatmul.bf16.gmra.mxu3 %v6148_v41  ;;  %v1986_v12 = vrot.slane %v1985_v13, 4  ;;  %v1183_v32 = vrot.slane %v1181_v16, 4  ;;  %v1511_v37 = vld [vmem:[#allocation2 + $0x40] sm:$0xf]  ;;  %v5982_v34 = vrot.slane %v1510_v0, 9  ;;  %v595_v30 = vrot.slane %v7739_v63, 4 }
  0xcc   : > { %v1174_v29 = vor.u32 %v1173_v36, %v1170_v53  ;;  %v1631_v10 = vrot.slane %v1511_v37, 5  ;;  %v6179_v14 = vld [vmem:[#allocation3 + $0x128] sm:$0xf]  ;;  %v1780_v48 = vld [vmem:[#allocation2 + $0x48] sm:$0xf]  ;;  %v1996_v42 = vrot.slane %v1995_v62, 4 }
  0xcd   : > { %v1991_v46 = vsel %vm7958_vm12, %v1986_v12, %v1990_v55  ;;  %v1184_v9 = vor.u32 %v1183_v32, %v1179_v5  ;;  %v1848_v41 = vld [vmem:[#allocation2 + $0x44] sm:$0x1]  ;;  %v6181_v15 = vld [vmem:[#allocation3 + $0x14c] sm:$0xf0]  ;;  %v859_v3 = vld [vmem:[#allocation2 + $0x50] sm:$0x1] }
  0xce   : > { %2306 = vst [vmem:[#allocation3 + $0x130] sm:$0xf] %v1991_v46  ;;  %v6934_v8 = vld [vmem:[#allocation3 + $0x148] sm:$0xf0]  ;;  %v1175_v2 = vrot.slane %v1174_v29, 4  ;;  %v1632_v49 = vsel %vm7949_vm11, %v5982_v34, %v1631_v10  ;;  %v1633_v24 = vrot.slane %v1631_v10, 4 }
  0xcf   : > { %v6926_v7 = vld [vmem:[#allocation3 + $0x108] sm:$0xf0]  ;;  %v1998_v59 = vshll.u32 %v1848_v41, 16  ;;  %v1185_v54 = vrot.slane %v1184_v9, 4  ;;  %1748 = vst [vmem:[#allocation3 + $0x170] sm:$0xf] %v1632_v49  ;;  %v6180_v51 = vor.u32 %v6934_v8, %v6179_v14 }
  0xd0   : > { %v6152_v18 = vor.u32 %v6926_v7, %v6151_v43  ;;  %v6173_v11 = vld [vmem:[#allocation3 + $0x144] sm:$0xf0]  ;;  %v1013_v20 = vld [vmem:[#allocation2 + $0x44] sm:$0x1]  ;;  %v1180_v45 = vsel %vm7958_vm12, %v1175_v2, %v1179_v5  ;;  %v1849_v50 = vld [vmem:[#allocation2 + $0x48] sm:$0xf]  ;;  %v860_v5 = vsel %vm7969_vm13, %v595_v30, %v859_v3 }
  0xd1   : > { %v6176_v1 = vor.u32 %v6929_v6, %v6173_v11  ;;  %v6930_v52 = vld [vmem:[#allocation3 + $0x12c] sm:$0xf]  ;;  %v1187_v26 = vshll.u32 %v1013_v20, 16  ;;  %v2000_v13 = vrot.slane %v1998_v59, 5  ;;  %1473 = vst [vmem:[#allocation3 + $0x16c] sm:$0xf] %v1180_v45 }
  0xd2   : > { %v1512_v19 = vld [vmem:[#allocation2 + $0x44] sm:$0x1]  ;;  %v8087_v47 = vpop.f32.mrf.mxu0  ;;  %1812 = vst [vmem:[#allocation3 + $0x174] sm:$0xf] %v1780_v48  ;;  %v1850_v63 = vld [vmem:[#allocation2 + $0x4c] sm:$0xf]  ;;  %v6184_v36 = vor.u32 %v6930_v52, %v6181_v15 }
  0xd3   : > { %v1634_v38 = vrot.slane %v1512_v19, 5  ;;  %v1189_v55 = vrot.slane %v1187_v26, 5  ;;  %v2003_v60 = vshrl.u32 %v1849_v50, 16  ;;  %v2006_v61 = vshll.u32 %v1849_v50, 16  ;;  %v1781_v0 = vld [vmem:[#allocation2 + $0x4c] sm:$0xf] }
  0xd4   : > { %5286 = vmatmul.bf16.gmra.mxu0 %v6152_v18  ;;  %v2001_v12 = vsel %vm7958_vm12, %v1996_v42, %v2000_v13  ;;  %v2012_v43 = vshll.u32 %v1850_v63, 16  ;;  %v2016_v53 = vshrl.u32 %v1850_v63, 16  ;;  %v1014_v62 = vld [vmem:[#allocation2 + $0x48] sm:$0xf]  ;;  %v1015_v34 = vld [vmem:[#allocation2 + $0x4c] sm:$0xf] }
  0xd5   : > { %5024 = vmatmul.bf16.gmra.mxu1 %v6176_v1  ;;  %v1635_v33 = vsel %vm7949_vm11, %v1633_v24, %v1634_v38  ;;  %v1190_v16 = vsel %vm7958_vm12, %v1185_v54, %v1189_v55  ;;  %2307 = vst [vmem:[#allocation3 + $0x154] sm:$0xf] %v2001_v12  ;;  %v2005_v6 = vrot.slane %v2003_v60, 4  ;;  %v2008_v46 = vrot.slane %v2006_v61, 5  ;;  %v6187_v1 = vld [vmem:[#allocation3 + $0x130] sm:$0xf] }
  0xd6   : > { %1749 = vst [vmem:[#allocation3 + $0x194] sm:$0xf] %v1635_v33  ;;  %v2014_v32 = vrot.slane %v2012_v43, 5  ;;  %v2018_v37 = vrot.slane %v2016_v53, 4  ;;  %v1192_v29 = vshrl.u32 %v1014_v62, 16  ;;  %v1195_v10 = vshll.u32 %v1014_v62, 16 }
  0xd7   : > { %1474 = vst [vmem:[#allocation3 + $0x190] sm:$0xf] %v1190_v16  ;;  %v2009_v7 = vor.u32 %v2008_v46, %v2005_v6  ;;  %v1201_v18 = vshll.u32 %v1015_v34, 16  ;;  %v1205_v11 = vshrl.u32 %v1015_v34, 16  ;;  %v1513_v24 = vld [vmem:[#allocation2 + $0x48] sm:$0xe] }
  0xd8   : > { %1813 = vst [vmem:[#allocation3 + $0x198] sm:$0xf] %v1781_v0  ;;  %v1194_v8 = vrot.slane %v1192_v29, 4  ;;  %v1197_v9 = vrot.slane %v1195_v10, 5  ;;  %v2019_v2 = vor.u32 %v2018_v37, %v2014_v32  ;;  %v6938_v52 = vld [vmem:[#allocation3 + $0x16c] sm:$0xf] }
  0xd9   : > { %5113 = vmatmul.bf16.gmra.mxu2 %v6180_v51  ;;  %861 = vst [vmem:[#allocation2 + $0x50] sm:$0x1] %v860_v5  ;;  %v2010_v14 = vrot.slane %v2009_v7, 4  ;;  %v1203_v48 = vrot.slane %v1201_v18, 5  ;;  %v1207_v49 = vrot.slane %v1205_v11, 4  ;;  %v5983_v54 = vrot.slane %v1513_v24, 9 }
  0xda   : > { %v1198_v42 = vor.u32 %v1197_v9, %v1194_v8  ;;  %v1514_v59 = vld [vmem:[#allocation2 + $0x4c] sm:$0xf]  ;;  %v7089_v26 = vld [vmem:[%s8842_s3 + $0x1a0] sm:$0xff]  ;;  %v8108_v45 = vpop.f32.mrf.mxu0  ;;  %v612_v13 = vrot.slane %v7884_v4, 4  ;;  %v6215_v33 = vld [vmem:[#allocation3 + $0x170] sm:$0xf] }
  0xdb   : > { %5202 = vmatmul.bf16.gmra.mxu3 %v6184_v36  ;;  %v2015_v15 = vsel %vm7958_vm12, %v2010_v14, %v2014_v32  ;;  %v1208_v38 = vor.u32 %v1207_v49, %v1203_v48  ;;  %v1638_v3 = vrot.slane %v1514_v59, 5  ;;  %5444 = vmatpush.bf16.msra.mxu2 %v7089_v26  ;;  %v2020_v60 = vrot.slane %v2019_v2, 4  ;;  %v1782_v16 = vld [vmem:[#allocation2 + $0x54] sm:$0xf]  ;;  %v1783_v4 = vld [vmem:[#allocation2 + $0x58] sm:$0xf] }
  0xdc   : > { %v8097_v41 = vpop.f32.mrf.mxu2  ;;  %v8099_v20 = vpop.f32.mrf.mxu1  ;;  %v6935_v19 = vld [vmem:[#allocation3 + $0x150] sm:$0xf0]  ;;  %2308 = vst [vmem:[#allocation3 + $0x178] sm:$0xf] %v2015_v15  ;;  %v1199_v50 = vrot.slane %v1198_v42, 4  ;;  %v7081_v26 = vld [vmem:[%s8842_s3 + $0x160] sm:$0xff] }
  0xdd   : > { %v6188_v51 = vor.u32 %v6935_v19, %v6187_v1  ;;  %v6943_v63 = vld [vmem:[#allocation3 + $0x190] sm:$0xf0]  ;;  %v1639_v61 = vsel %vm7949_vm11, %v5983_v54, %v1638_v3  ;;  %v1640_v12 = vrot.slane %v1638_v3, 4  ;;  %v1209_v32 = vrot.slane %v1208_v38, 4  ;;  %v866_v7 = vld [vmem:[#allocation2 + $0x5c] sm:$0x1]  ;;  %5355 = vmatpush.bf16.msra.mxu1 %v7081_v26 }
  0xde   : > { %v8106_v30 = vpop.f32.mrf.mxu3  ;;  %v6209_v55 = vld [vmem:[#allocation3 + $0x18c] sm:$0xf0]  ;;  %v1204_v36 = vsel %vm7958_vm12, %v1199_v50, %v1203_v48  ;;  %v6939_v6 = vld [vmem:[#allocation3 + $0x174] sm:$0xf]  ;;  %1750 = vst [vmem:[#allocation3 + $0x1b8] sm:$0xf] %v1639_v61  ;;  %v6216_v48 = vor.u32 %v6943_v63, %v6215_v33  ;;  %v867_v1 = vsel %vm7969_vm13, %v612_v13, %v866_v7 }
  0xdf   : > { %8855 = vst [vmem:[#allocation4_spill] sm:$0xff] %v8106_v30  ;;  %v6212_v0 = vor.u32 %v6938_v52, %v6209_v55  ;;  %v6217_v46 = vld [vmem:[#allocation3 + $0x194] sm:$0xf0]  ;;  %v1852_v29 = vld [vmem:[#allocation2 + $0x54] sm:$0xf]  ;;  %v7097_v54 = vld [vmem:[%s8842_s3 + $0x1e0] sm:$0xff] }
  0xe0   : > { %v1851_v43 = vld [vmem:[#allocation2 + $0x50] sm:$0x1]  ;;  %1475 = vst [vmem:[#allocation3 + $0x1b4] sm:$0xf] %v1204_v36  ;;  %v1853_v9 = vld [vmem:[#allocation2 + $0x58] sm:$0xf]  ;;  %v6220_v19 = vor.u32 %v6939_v6, %v6217_v46  ;;  %5533 = vmatpush.bf16.msra.mxu3 %v7097_v54 }
  0xe1   : > { %v1016_v53 = vld [vmem:[#allocation2 + $0x50] sm:$0x1]  ;;  %v2022_v62 = vshll.u32 %v1851_v43, 16  ;;  %1814 = vst [vmem:[#allocation3 + $0x1bc] sm:$0xf] %v1782_v16  ;;  %v2027_v2 = vshrl.u32 %v1852_v29, 16 }
  0xe2   : > { %v1515_v5 = vld [vmem:[#allocation2 + $0x50] sm:$0x1]  ;;  %v1211_v37 = vshll.u32 %v1016_v53, 16  ;;  %v2030_v49 = vshll.u32 %v1852_v29, 16  ;;  %1815 = vst [vmem:[#allocation3 + $0x1e0] sm:$0xf] %v1783_v4 }
  0xe3   : > { %v1641_v34 = vrot.slane %v1515_v5, 5  ;;  %v2024_v18 = vrot.slane %v2022_v62, 5  ;;  %v2036_v42 = vshll.u32 %v1853_v9, 16  ;;  %v2040_v59 = vshrl.u32 %v1853_v9, 16  ;;  %v7105_v13 = vld [vmem:[%s8842_s3 + $0x220] sm:$0xff] }
  0xe4   : > { %5291 = vmatmul.bf16.gmra.mxu0 %v6188_v51  ;;  %v8115_v10 = vpop.f32.mrf.mxu2  ;;  %v8117_v11 = vpop.f32.mrf.mxu1  ;;  %v1213_v14 = vrot.slane %v1211_v37, 5  ;;  %v2029_v38 = vrot.slane %v2027_v2, 4  ;;  %v2032_v3 = vrot.slane %v2030_v49, 5  ;;  %v1017_v33 = vld [vmem:[#allocation2 + $0x54] sm:$0xf] }
  0xe5   : > { %v1642_v8 = vsel %vm7949_vm11, %v1640_v12, %v1641_v34  ;;  %5029 = vmatmul.bf16.gmra.mxu1 %v6212_v0  ;;  %v2025_v52 = vsel %vm7958_vm12, %v2020_v60, %v2024_v18  ;;  %v2038_v50 = vrot.slane %v2036_v42, 5  ;;  %v2042_v51 = vrot.slane %v2040_v59, 4  ;;  %868 = vst [vmem:[#allocation2 + $0x5c] sm:$0x1] %v867_v1  ;;  %5622 = vmatpush.bf16.msra.mxu0 %v7105_v13  ;;  %v1018_v60 = vld [vmem:[#allocation2 + $0x58] sm:$0xf] }
  0xe6   : > { %1751 = vst [vmem:[#allocation3 + $0x1dc] sm:$0xf] %v1642_v8  ;;  %v8123_v24 = vpop.f32.mrf.mxu3  ;;  %v1214_v15 = vsel %vm7958_vm12, %v1209_v32, %v1213_v14  ;;  %v2033_v63 = vor.u32 %v2032_v3, %v2029_v38  ;;  %v1216_v61 = vshrl.u32 %v1017_v33, 16  ;;  %v1219_v12 = vshll.u32 %v1017_v33, 16  ;;  %v1516_v36 = vld [vmem:[#allocation2 + $0x54] sm:$0xe] }
  0xe7   : > { %8856 = vst [vmem:[#allocation5_spill] sm:$0xff] %v8123_v24  ;;  %v1225_v16 = vshll.u32 %v1018_v60, 16  ;;  %v2043_v43 = vor.u32 %v2042_v51, %v2038_v50  ;;  %v1229_v53 = vshrl.u32 %v1018_v60, 16  ;;  %v6223_v5 = vld [vmem:[#allocation3 + $0x178] sm:$0xf]  ;;  %v5984_v18 = vrot.slane %v1516_v36, 9 }
  0xe8   : > { %2309 = vst [vmem:[#allocation3 + $0x19c] sm:$0xf] %v2025_v52  ;;  %v8138_v55 = vpop.f32.mrf.mxu0  ;;  %v2034_v0 = vrot.slane %v2033_v63, 4  ;;  %v1218_v46 = vrot.slane %v1216_v61, 4  ;;  %v1221_v62 = vrot.slane %v1219_v12, 5  ;;  %v629_v61 = vrot.slane %v7495_v21, 4 }
  0xe9   : > { %1476 = vst [vmem:[#allocation3 + $0x1d8] sm:$0xf] %v1214_v15  ;;  %5118 = vmatmul.bf16.gmra.mxu2 %v6216_v48  ;;  %v1227_v32 = vrot.slane %v1225_v16, 5  ;;  %v6947_v37 = vld [vmem:[#allocation3 + $0x1b4] sm:$0xf]  ;;  %v1231_v7 = vrot.slane %v1229_v53, 4 }
  0xea   : > { %v2039_v34 = vsel %vm7958_vm12, %v2034_v0, %v2038_v50  ;;  %v1517_v29 = vld [vmem:[#allocation2 + $0x58] sm:$0xf]  ;;  %v1222_v9 = vor.u32 %v1221_v62, %v1218_v46  ;;  %v6251_v2 = vld [vmem:[#allocation3 + $0x1b8] sm:$0xf]  ;;  %v2044_v52 = vrot.slane %v2043_v43, 4 }
  0xeb   : > { %5207 = vmatmul.bf16.gmra.mxu3 %v6220_v19  ;;  %2310 = vst [vmem:[#allocation3 + $0x1c0] sm:$0xf] %v2039_v34  ;;  %v1645_v48 = vrot.slane %v1517_v29, 5  ;;  %v1232_v15 = vor.u32 %v1231_v7, %v1227_v32  ;;  %v1784_v42 = vld [vmem:[#allocation2 + $0x60] sm:$0xf] }
  0xec   : > { %v8140_v4 = vpop.f32.mrf.mxu2  ;;  %v8142_v6 = vpop.f32.mrf.mxu1  ;;  %v1854_v26 = vld [vmem:[#allocation2 + $0x5c] sm:$0x1]  ;;  %v1223_v38 = vrot.slane %v1222_v9, 4  ;;  %v6948_v12 = vld [vmem:[#allocation3 + $0x1bc] sm:$0xf] }
  0xed   : > { %v6952_v49 = vld [vmem:[#allocation3 + $0x1d8] sm:$0xf0]  ;;  %v1019_v19 = vld [vmem:[#allocation2 + $0x5c] sm:$0x1]  ;;  %v1646_v3 = vsel %vm7949_vm11, %v5984_v18, %v1645_v48  ;;  %v1647_v13 = vrot.slane %v1645_v48, 4  ;;  %v2046_v51 = vshll.u32 %v1854_v26, 16 }
  0xee   : > { %v8146_v8 = vpop.f32.mrf.mxu3  ;;  %v1233_v33 = vrot.slane %v1232_v15, 4  ;;  %v1235_v63 = vshll.u32 %v1019_v19, 16  ;;  %v1518_v60 = vld [vmem:[#allocation2 + $0x5c] sm:$0x1]  ;;  %v6253_v16 = vld [vmem:[#allocation3 + $0x1dc] sm:$0xf0]  ;;  %v1228_v0 = vsel %vm7958_vm12, %v1223_v38, %v1227_v32 }
  0xef   : > { %v6944_v14 = vld [vmem:[#allocation3 + $0x198] sm:$0xf0]  ;;  %8857 = vst [vmem:[#allocation6_spill] sm:$0xff] %v8146_v8  ;;  %v1648_v43 = vrot.slane %v1518_v60, 5  ;;  %v873_v53 = vld [vmem:[#allocation2 + $0x68] sm:$0x1]  ;;  %v6256_v26 = vor.u32 %v6948_v12, %v6253_v16 }
  0xf0   : > { %v6245_v1 = vld [vmem:[#allocation3 + $0x1d4] sm:$0xf0]  ;;  %v6224_v59 = vor.u32 %v6944_v14, %v6223_v5  ;;  %v8148_v54 = vpop.f32.mrf.mxu0  ;;  %1752 = vst [vmem:[#allocation3 + $0x200] sm:$0xf] %v1646_v3  ;;  %v2048_v36 = vrot.slane %v2046_v51, 5  ;;  %v1237_v5 = vrot.slane %v1235_v63, 5 }
  0xf1   : > { %v6248_v50 = vor.u32 %v6947_v37, %v6245_v1  ;;  %1477 = vst [vmem:[#allocation3 + $0x1fc] sm:$0xf] %v1228_v0  ;;  %v1855_v46 = vld [vmem:[#allocation2 + $0x60] sm:$0xf]  ;;  %v6252_v37 = vor.u32 %v6952_v49, %v6251_v2  ;;  %v1649_v21 = vsel %vm7949_vm11, %v1647_v13, %v1648_v43  ;;  %v1856_v7 = vld [vmem:[#allocation2 + $0x64] sm:$0xf]  ;;  %v874_v49 = vsel %vm7969_vm13, %v629_v61, %v873_v53 }
  0xf2   : > { %1816 = vst [vmem:[#allocation3 + $0x204] sm:$0xf] %v1784_v42  ;;  %v2051_v29 = vshrl.u32 %v1855_v46, 16  ;;  %v2054_v32 = vshll.u32 %v1855_v46, 16  ;;  %v2049_v18 = vsel %vm7958_vm12, %v2044_v52, %v2048_v36  ;;  %v1238_v14 = vsel %vm7958_vm12, %v1233_v33, %v1237_v5  ;;  %v1785_v9 = vld [vmem:[#allocation2 + $0x64] sm:$0xf] }
  0xf3   : > { %1753 = vst [vmem:[#allocation3 + $0x224] sm:$0xf] %v1649_v21  ;;  %v2060_v48 = vshll.u32 %v1856_v7, 16  ;;  %v2064_v1 = vshrl.u32 %v1856_v7, 16  ;;  %v1021_v38 = vld [vmem:[#allocation2 + $0x64] sm:$0xf] }
  0xf4   : > { %5296 = vmatmul.bf16.gmra.mxu0 %v6224_v59  ;;  %v8155_v62 = vpop.f32.mrf.mxu2  ;;  %v8157_v34 = vpop.f32.mrf.mxu1  ;;  %2311 = vst [vmem:[#allocation3 + $0x1e4] sm:$0xf] %v2049_v18  ;;  %v2053_v15 = vrot.slane %v2051_v29, 4  ;;  %v2056_v42 = vrot.slane %v2054_v32, 5  ;;  %v1020_v59 = vld [vmem:[#allocation2 + $0x60] sm:$0xf] }
  0xf5   : > { %5034 = vmatmul.bf16.gmra.mxu1 %v6248_v50  ;;  %1478 = vst [vmem:[#allocation3 + $0x220] sm:$0xf] %v1238_v14  ;;  %v2062_v19 = vrot.slane %v2060_v48, 5  ;;  %v2066_v52 = vrot.slane %v2064_v1, 4  ;;  %v1240_v13 = vshrl.u32 %v1020_v59, 16  ;;  %v1243_v50 = vshll.u32 %v1020_v59, 16 }
  0xf6   : > { %v8165_v2 = vpop.f32.mrf.mxu3  ;;  %1817 = vst [vmem:[#allocation3 + $0x228] sm:$0xf] %v1785_v9  ;;  %v2057_v3 = vor.u32 %v2056_v42, %v2053_v15  ;;  %v1249_v51 = vshll.u32 %v1021_v38, 16  ;;  %v1253_v60 = vshrl.u32 %v1021_v38, 16  ;;  %v1519_v16 = vld [vmem:[#allocation2 + $0x60] sm:$0xe] }
  0xf7   : > { %8858 = vst [vmem:[#allocation7_spill] sm:$0xff] %v8165_v2  ;;  %v2067_v63 = vor.u32 %v2066_v52, %v2062_v19  ;;  %v1242_v0 = vrot.slane %v1240_v13, 4  ;;  %v1245_v43 = vrot.slane %v1243_v50, 5  ;;  %v6259_v36 = vld [vmem:[#allocation3 + $0x1c0] sm:$0xf]  ;;  %v5985_v29 = vrot.slane %v1519_v16, 9 }
  0xf8   : > { %v8169_v33 = vpop.f32.mrf.mxu0  ;;  %875 = vst [vmem:[#allocation2 + $0x68] sm:$0x1] %v874_v49  ;;  %v2058_v61 = vrot.slane %v2057_v3, 4  ;;  %v1251_v53 = vrot.slane %v1249_v51, 5  ;;  %v1255_v12 = vrot.slane %v1253_v60, 4  ;;  %v7088_v16 = vld [vmem:[%s8842_s3 + $0x198] sm:$0xff] }
  0xf9   : > { %5123 = vmatmul.bf16.gmra.mxu2 %v6252_v37  ;;  %v1246_v21 = vor.u32 %v1245_v43, %v1242_v0  ;;  %v1520_v7 = vld [vmem:[#allocation2 + $0x64] sm:$0xf]  ;;  %v646_v37 = vrot.slane %v7598_v39, 4  ;;  %v6956_v1 = vld [vmem:[#allocation3 + $0x1fc] sm:$0xf]  ;;  %v2068_v15 = vrot.slane %v2067_v63, 4 }
  0xfa   : > { %v2063_v46 = vsel %vm7958_vm12, %v2058_v61, %v2062_v19  ;;  %v1256_v14 = vor.u32 %v1255_v12, %v1251_v53  ;;  %v1652_v9 = vrot.slane %v1520_v7, 5  ;;  %v6287_v59 = vld [vmem:[#allocation3 + $0x200] sm:$0xf]  ;;  %v1786_v39 = vld [vmem:[#allocation2 + $0x6c] sm:$0xf]  ;;  %5445 = vmatpush.bf16.msra.mxu2 %v7088_v16 }
  0xfb   : > { %5212 = vmatmul.bf16.gmra.mxu3 %v6256_v26  ;;  %v6953_v32 = vld [vmem:[#allocation3 + $0x1e0] sm:$0xf0]  ;;  %2312 = vst [vmem:[#allocation3 + $0x208] sm:$0xf] %v2063_v46  ;;  %v1247_v42 = vrot.slane %v1246_v21, 4 }
  0xfc   : > { %v8171_v5 = vpop.f32.mrf.mxu2  ;;  %v8176_v18 = vpop.f32.mrf.mxu1  ;;  %v6281_v49 = vld [vmem:[#allocation3 + $0x21c] sm:$0xf0]  ;;  %v6961_v26 = vld [vmem:[#allocation3 + $0x220] sm:$0xf0]  ;;  %v1257_v19 = vrot.slane %v1256_v14, 4  ;;  %v1653_v52 = vsel %vm7949_vm11, %v5985_v29, %v1652_v9  ;;  %v1654_v38 = vrot.slane %v1652_v9, 4  ;;  %v6260_v3 = vor.u32 %v6953_v32, %v6259_v36 }
  0xfd   : > { %v1252_v51 = vsel %vm7958_vm12, %v1247_v42, %v1251_v53  ;;  %v1787_v61 = vld [vmem:[#allocation2 + $0x70] sm:$0xf]  ;;  %v6284_v0 = vor.u32 %v6956_v1, %v6281_v49  ;;  %v6957_v46 = vld [vmem:[#allocation3 + $0x204] sm:$0xf]  ;;  %1754 = vst [vmem:[#allocation3 + $0x248] sm:$0xf] %v1653_v52  ;;  %v6288_v1 = vor.u32 %v6961_v26, %v6287_v59 }
  0xfe   : > { %v8178_v48 = vpop.f32.mrf.mxu3  ;;  %1479 = vst [vmem:[#allocation3 + $0x244] sm:$0xf] %v1252_v51  ;;  %v880_v21 = vld [vmem:[#allocation2 + $0x74] sm:$0x1]  ;;  %v1858_v36 = vld [vmem:[#allocation2 + $0x6c] sm:$0xf] }
  0xff   : > { %8859 = vst [vmem:[#allocation8_spill] sm:$0xff] %v8178_v48  ;;  %v1857_v13 = vld [vmem:[#allocation2 + $0x68] sm:$0x1]  ;;  %v1859_v14 = vld [vmem:[#allocation2 + $0x70] sm:$0xf]  ;;  %v881_v42 = vsel %vm7969_vm13, %v646_v37, %v880_v21  ;;  %v2075_v52 = vshrl.u32 %v1858_v36, 16 }
 0x100   : > { %v1022_v50 = vld [vmem:[#allocation2 + $0x68] sm:$0x1]  ;;  %v2070_v43 = vshll.u32 %v1857_v13, 16  ;;  %v8187_v7 = vpop.f32.mrf.mxu0  ;;  %1818 = vst [vmem:[#allocation3 + $0x24c] sm:$0xf] %v1786_v39  ;;  %v2078_v13 = vshll.u32 %v1858_v36, 16 }
 0x101   : > { %v1521_v60 = vld [vmem:[#allocation2 + $0x68] sm:$0x1]  ;;  %v1259_v63 = vshll.u32 %v1022_v50, 16  ;;  %v6289_v49 = vld [vmem:[#allocation3 + $0x224] sm:$0xf0]  ;;  %v2084_v39 = vshll.u32 %v1859_v14, 16 }
 0x102   : > { %v1655_v12 = vrot.slane %v1521_v60, 5  ;;  %v2072_v29 = vrot.slane %v2070_v43, 5  ;;  %1819 = vst [vmem:[#allocation3 + $0x270] sm:$0xf] %v1787_v61  ;;  %v7096_v59 = vld [vmem:[%s8842_s3 + $0x1d8] sm:$0xff]  ;;  %v2077_v51 = vrot.slane %v2075_v52, 4 }
 0x103   : > { %v1261_v32 = vrot.slane %v1259_v63, 5  ;;  %v7080_v37 = vld [vmem:[%s8842_s3 + $0x158] sm:$0xff]  ;;  %v2080_v60 = vrot.slane %v2078_v13, 5  ;;  %5534 = vmatpush.bf16.msra.mxu3 %v7096_v59  ;;  %v1024_v63 = vld [vmem:[#allocation2 + $0x70] sm:$0xf]  ;;  %v663_v52 = vrot.slane %v7773_v58, 4 }
 0x104   : > { %v1656_v53 = vsel %vm7949_vm11, %v1654_v38, %v1655_v12  ;;  %5301 = vmatmul.bf16.gmra.mxu0 %v6260_v3  ;;  %v8191_v9 = vpop.f32.mrf.mxu2  ;;  %v2073_v50 = vsel %vm7958_vm12, %v2068_v15, %v2072_v29  ;;  %v2088_v3 = vshrl.u32 %v1859_v14, 16  ;;  %v1023_v15 = vld [vmem:[#allocation2 + $0x6c] sm:$0xf]  ;;  %v8207_v43 = vpop.f32.mrf.mxu1  ;;  %5356 = vmatpush.bf16.msra.mxu1 %v7080_v37  ;;  %882 = vst [vmem:[#allocation2 + $0x74] sm:$0x1] %v881_v42  ;;  %v7104_v36 = vld [vmem:[%s8842_s3 + $0x218] sm:$0xff] }
 0x105   : > { %1755 = vst [vmem:[#allocation3 + $0x26c] sm:$0xf] %v1656_v53  ;;  %5039 = vmatmul.bf16.gmra.mxu1 %v6284_v0  ;;  %v1262_v38 = vsel %vm7958_vm12, %v1257_v19, %v1261_v32  ;;  %v6292_v0 = vor.u32 %v6957_v46, %v6289_v49  ;;  %v2086_v19 = vrot.slane %v2084_v39, 5  ;;  %v2081_v12 = vor.u32 %v2080_v60, %v2077_v51  ;;  %v6295_v13 = vld [vmem:[#allocation3 + $0x208] sm:$0xf] }
 0x106   : > { %v8205_v26 = vpop.f32.mrf.mxu3  ;;  %2313 = vst [vmem:[#allocation3 + $0x22c] sm:$0xf] %v2073_v50  ;;  %v2090_v61 = vrot.slane %v2088_v3, 4  ;;  %v1264_v16 = vshrl.u32 %v1023_v15, 16  ;;  %v1267_v21 = vshll.u32 %v1023_v15, 16  ;;  %v1273_v29 = vshll.u32 %v1024_v63, 16  ;;  %5623 = vmatpush.bf16.msra.mxu0 %v7104_v36 }
 0x107   : > { %8860 = vst [vmem:[#allocation9_spill] sm:$0xff] %v8205_v26  ;;  %v1277_v32 = vshrl.u32 %v1024_v63, 16  ;;  %v2082_v46 = vrot.slane %v2081_v12, 4  ;;  %v1522_v59 = vld [vmem:[#allocation2 + $0x6c] sm:$0xe] }
 0x108   : > { %1480 = vst [vmem:[#allocation3 + $0x268] sm:$0xf] %v1262_v38  ;;  %v2091_v53 = vor.u32 %v2090_v61, %v2086_v19  ;;  %v1266_v14 = vrot.slane %v1264_v16, 4  ;;  %v1269_v49 = vrot.slane %v1267_v21, 5  ;;  %v1275_v42 = vrot.slane %v1273_v29, 5 }
 0x109   : > { %5128 = vmatmul.bf16.gmra.mxu2 %v6288_v1  ;;  %v1279_v50 = vrot.slane %v1277_v32, 4  ;;  %v6965_v1 = vld [vmem:[#allocation3 + $0x244] sm:$0xf]  ;;  %v2087_v39 = vsel %vm7958_vm12, %v2082_v46, %v2086_v19  ;;  %v1523_v37 = vld [vmem:[#allocation2 + $0x70] sm:$0xf]  ;;  %v5986_v58 = vrot.slane %v1522_v59, 9 }
 0x10a   : > { %v1270_v3 = vor.u32 %v1269_v49, %v1266_v14  ;;  %2314 = vst [vmem:[#allocation3 + $0x250] sm:$0xf] %v2087_v39  ;;  %v2092_v12 = vrot.slane %v2091_v53, 4  ;;  %v1788_v21 = vld [vmem:[#allocation2 + $0x78] sm:$0xf] }
 0x10b   : > { %5217 = vmatmul.bf16.gmra.mxu3 %v6292_v0  ;;  %v8217_v51 = vpop.f32.mrf.mxu0  ;;  %v1280_v15 = vor.u32 %v1279_v50, %v1275_v42  ;;  %v1659_v0 = vrot.slane %v1523_v37, 5  ;;  %v1860_v36 = vld [vmem:[#allocation2 + $0x74] sm:$0x1]  ;;  %v6323_v49 = vld [vmem:[#allocation3 + $0x248] sm:$0xf] }
 0x10c   : > { %v8213_v38 = vpop.f32.mrf.mxu2  ;;  %v1271_v16 = vrot.slane %v1270_v3, 4  ;;  %v1025_v29 = vld [vmem:[#allocation2 + $0x74] sm:$0x1]  ;;  %v6970_v26 = vld [vmem:[#allocation3 + $0x268] sm:$0xf0]  ;;  %v2094_v39 = vshll.u32 %v1860_v36, 16 }
 0x10d   : > { %v6962_v60 = vld [vmem:[#allocation3 + $0x228] sm:$0xf0]  ;;  %v1281_v32 = vrot.slane %v1280_v15, 4  ;;  %v1660_v19 = vsel %vm7949_vm11, %v5986_v58, %v1659_v0  ;;  %v1661_v46 = vrot.slane %v1659_v0, 4  ;;  %v1283_v59 = vshll.u32 %v1025_v29, 16 }
 0x10e   : > { %v8219_v61 = vpop.f32.mrf.mxu3  ;;  %v6296_v14 = vor.u32 %v6962_v60, %v6295_v13  ;;  %v1276_v50 = vsel %vm7958_vm12, %v1271_v16, %v1275_v42  ;;  %v1524_v37 = vld [vmem:[#allocation2 + $0x74] sm:$0x1]  ;;  %1756 = vst [vmem:[#allocation3 + $0x290] sm:$0xf] %v1660_v19  ;;  %v1789_v48 = vld [vmem:[#allocation2 + $0x7c] sm:$0xf] }
 0x10f   : > { %8861 = vst [vmem:[#allocation10_spill] sm:$0xff] %v8219_v61  ;;  %v6317_v63 = vld [vmem:[#allocation3 + $0x264] sm:$0xf0]  ;;  %v5005_v53 = vpop.f32.mrf.mxu1  ;;  %v1662_v61 = vrot.slane %v1524_v37, 5  ;;  %v6966_v2 = vld [vmem:[#allocation3 + $0x24c] sm:$0xf] }
 0x110   : > { %v6320_v3 = vor.u32 %v6965_v1, %v6317_v63  ;;  %1481 = vst [vmem:[#allocation3 + $0x28c] sm:$0xf] %v1276_v50  ;;  %v5006_v15 = vadd.f32 %v5005_v53, %v8087_v47  ;;  %v2096_v58 = vrot.slane %v2094_v39, 5  ;;  %v1285_v0 = vrot.slane %v1283_v59, 5  ;;  %v887_v13 = vld [vmem:[#allocation2 + $0x80] sm:$0x1] }
 0x111   : > { %1820 = vst [vmem:[#allocation3 + $0x294] sm:$0xf] %v1788_v21  ;;  %v1663_v60 = vsel %vm7949_vm11, %v1661_v46, %v1662_v61  ;;  %v888_v42 = vsel %vm7969_vm13, %v663_v52, %v887_v13  ;;  %v1861_v16 = vld [vmem:[#allocation2 + $0x78] sm:$0xf]  ;;  %v1862_v36 = vld [vmem:[#allocation2 + $0x7c] sm:$0xf] }
 0x112   : > { %1821 = vst [vmem:[#allocation3 + $0x2b8] sm:$0xf] %v1789_v48  ;;  %v6325_v63 = vld [vmem:[#allocation3 + $0x26c] sm:$0xf0]  ;;  %v2097_v47 = vsel %vm7958_vm12, %v2092_v12, %v2096_v58  ;;  %v1286_v21 = vsel %vm7958_vm12, %v1281_v32, %v1285_v0  ;;  %v2099_v29 = vshrl.u32 %v1861_v16, 16  ;;  %v2102_v19 = vshll.u32 %v1861_v16, 16 }
 0x113   : > { %1757 = vst [vmem:[#allocation3 + $0x2b4] sm:$0xf] %v1663_v60  ;;  %v6324_v48 = vor.u32 %v6970_v26, %v6323_v49  ;;  %v2108_v61 = vshll.u32 %v1862_v36, 16  ;;  %v2112_v52 = vshrl.u32 %v1862_v36, 16  ;;  %v1026_v46 = vld [vmem:[#allocation2 + $0x78] sm:$0xf]  ;;  %v8238_v37 = vpop.f32.mrf.mxu0  ;;  %v6328_v12 = vor.u32 %v6966_v2, %v6325_v63 }
 0x114   : > { %5306 = vmatmul.bf16.gmra.mxu0 %v6296_v14  ;;  %v8230_v1 = vpop.f32.mrf.mxu2  ;;  %2315 = vst [vmem:[#allocation3 + $0x274] sm:$0xf] %v2097_v47  ;;  %v2101_v14 = vrot.slane %v2099_v29, 4  ;;  %v2104_v50 = vrot.slane %v2102_v19, 5  ;;  %v1027_v59 = vld [vmem:[#allocation2 + $0x7c] sm:$0xf] }
 0x115   : > { %8862 = vst [vmem:[#allocation11_spill] sm:$0xff] %v8230_v1  ;;  %5044 = vmatmul.bf16.gmra.mxu1 %v6320_v3  ;;  %v2110_v32 = vrot.slane %v2108_v61, 5  ;;  %v2114_v53 = vrot.slane %v2112_v52, 4  ;;  %v1288_v0 = vshrl.u32 %v1026_v46, 16  ;;  %v1291_v3 = vshll.u32 %v1026_v46, 16 }
 0x116   : > { %v8236_v39 = vpop.f32.mrf.mxu3  ;;  %1482 = vst [vmem:[#allocation3 + $0x2b0] sm:$0xf] %v1286_v21  ;;  %v2105_v58 = vor.u32 %v2104_v50, %v2101_v14  ;;  %v1297_v26 = vshll.u32 %v1027_v59, 16  ;;  %v1301_v60 = vshrl.u32 %v1027_v59, 16  ;;  %v1525_v16 = vld [vmem:[#allocation2 + $0x78] sm:$0xe] }
 0x117   : > { %8863 = vst [vmem:[#allocation12_spill] sm:$0xff] %v8236_v39  ;;  %v5007_v49 = vpop.f32.mrf.mxu1  ;;  %v2115_v13 = vor.u32 %v2114_v53, %v2110_v32  ;;  %v1290_v21 = vrot.slane %v1288_v0, 4  ;;  %v1293_v29 = vrot.slane %v1291_v3, 5  ;;  %v6331_v2 = vld [vmem:[#allocation3 + $0x250] sm:$0xf]  ;;  %v5987_v50 = vrot.slane %v1525_v16, 9 }
 0x118   : > { %889 = vst [vmem:[#allocation2 + $0x80] sm:$0x1] %v888_v42  ;;  %v8241_v36 = vadd.f32 %v5007_v49, %v8108_v45  ;;  %v2106_v47 = vrot.slane %v2105_v58, 4  ;;  %v1299_v42 = vrot.slane %v1297_v26, 5  ;;  %v1303_v63 = vrot.slane %v1301_v60, 4 }
 0x119   : > { %5133 = vmatmul.bf16.gmra.mxu2 %v6324_v48  ;;  %v6974_v52 = vld [vmem:[#allocation3 + $0x28c] sm:$0xf]  ;;  %v1294_v46 = vor.u32 %v1293_v29, %v1290_v21  ;;  %v1526_v14 = vld [vmem:[#allocation2 + $0x7c] sm:$0xf]  ;;  %v2116_v49 = vrot.slane %v2115_v13, 4 }
 0x11a   : > { %v2111_v48 = vsel %vm7958_vm12, %v2106_v47, %v2110_v32  ;;  %v1304_v45 = vor.u32 %v1303_v63, %v1299_v42  ;;  %v1666_v58 = vrot.slane %v1526_v14, 5  ;;  %v6359_v32 = vld [vmem:[#allocation3 + $0x290] sm:$0xf]  ;;  %v6979_v47 = vld [vmem:[#allocation3 + $0x2b0] sm:$0xf0] }
 0x11b   : > { %5222 = vmatmul.bf16.gmra.mxu3 %v6328_v12  ;;  %v6971_v19 = vld [vmem:[#allocation3 + $0x270] sm:$0xf0]  ;;  %2316 = vst [vmem:[#allocation3 + $0x298] sm:$0xf] %v2111_v48  ;;  %v1295_v60 = vrot.slane %v1294_v46, 4  ;;  %v7087_v46 = vld [vmem:[%s8842_s3 + $0x190] sm:$0xff] }
 0x11c   : > { %v5094_v61 = vpop.f32.mrf.mxu2  ;;  %v6332_v0 = vor.u32 %v6971_v19, %v6331_v2  ;;  %v1305_v24 = vrot.slane %v1304_v45, 4  ;;  %v1667_v16 = vsel %vm7949_vm11, %v5987_v50, %v1666_v58  ;;  %v1668_v21 = vrot.slane %v1666_v58, 4  ;;  %v1790_v48 = vld [vmem:[#allocation2 + $0x84] sm:$0xf]  ;;  %5446 = vmatpush.bf16.msra.mxu2 %v7087_v46  ;;  %v2603_v31 = vld [vmem:[#allocation2 + $0x18] sm:$0xf] }
 0x11d   : > { %v5095_v59 = vadd.f32 %v5094_v61, %v5006_v15  ;;  %v6353_v53 = vld [vmem:[#allocation3 + $0x2ac] sm:$0xf0]  ;;  %v1300_v15 = vsel %vm7958_vm12, %v1295_v60, %v1299_v42  ;;  %v680_v2 = vrot.slane %v7895_v56, 4  ;;  %v6361_v42 = vld [vmem:[#allocation3 + $0x2b4] sm:$0xf0] }
 0x11e   : > { %v5183_v3 = vpop.f32.mrf.mxu3  ;;  %v6356_v63 = vor.u32 %v6974_v52, %v6353_v53  ;;  %1483 = vst [vmem:[#allocation3 + $0x2d4] sm:$0xf] %v1300_v15  ;;  %v1864_v45 = vld [vmem:[#allocation2 + $0x84] sm:$0xf]  ;;  %v1865_v53 = vld [vmem:[#allocation2 + $0x88] sm:$0xf] }
 0x11f   : > { %v1863_v12 = vld [vmem:[#allocation2 + $0x80] sm:$0x1]  ;;  %v5184_v39 = vadd.f32 %v5183_v3, %v5095_v59  ;;  %v6975_v59 = vld [vmem:[#allocation3 + $0x294] sm:$0xf]  ;;  %1758 = vst [vmem:[#allocation3 + $0x2d8] sm:$0xf] %v1667_v16 }
 0x120   : > { %v1028_v26 = vld [vmem:[#allocation2 + $0x80] sm:$0x1]  ;;  %v2118_v8 = vshll.u32 %v1863_v12, 16  ;;  %v5272_v13 = vpop.f32.mrf.mxu0  ;;  %v2123_v58 = vshrl.u32 %v1864_v45, 16  ;;  %v6360_v12 = vor.u32 %v6979_v47, %v6359_v32  ;;  %v2126_v60 = vshll.u32 %v1864_v45, 16  ;;  %v7095_v16 = vld [vmem:[%s8842_s3 + $0x1d0] sm:$0xff] }
 0x121   : > { %v1307_v30 = vshll.u32 %v1028_v26, 16  ;;  %v1527_v1 = vld [vmem:[#allocation2 + $0x80] sm:$0x1]  ;;  %v5010_v14 = vpop.f32.mrf.mxu1  ;;  %v8255_v56 = vadd.f32 %v5272_v13, %v5184_v39  ;;  %v1791_v26 = vld [vmem:[#allocation2 + $0x88] sm:$0xf]  ;;  %v2132_v39 = vshll.u32 %v1865_v53, 16  ;;  %v6364_v13 = vor.u32 %v6975_v59, %v6361_v42  ;;  %5535 = vmatpush.bf16.msra.mxu3 %v7095_v16 }
 0x122   : > { %v1669_v29 = vrot.slane %v1527_v1, 5  ;;  %v2120_v19 = vrot.slane %v2118_v8, 5  ;;  %v894_v1 = vld [vmem:[#allocation2 + $0x8c] sm:$0x1]  ;;  %v5011_v8 = vadd.f32 %v5010_v14, %v8138_v55  ;;  %1822 = vst [vmem:[#allocation3 + $0x2dc] sm:$0xf] %v1790_v48 }
 0x123   : > { %v1309_v61 = vrot.slane %v1307_v30, 5  ;;  %v895_v55 = vsel %vm7969_vm13, %v680_v2, %v894_v1  ;;  %v2128_v47 = vrot.slane %v2126_v60, 5  ;;  %1823 = vst [vmem:[#allocation3 + $0x300] sm:$0xf] %v1791_v26  ;;  %v1030_v2 = vld [vmem:[#allocation2 + $0x88] sm:$0xf] }
 0x124   : > { %v1670_v50 = vsel %vm7949_vm11, %v1668_v21, %v1669_v29  ;;  %v2121_v30 = vsel %vm7958_vm12, %v2116_v49, %v2120_v19  ;;  %5311 = vmatmul.bf16.gmra.mxu0 %v6332_v0  ;;  %v5096_v3 = vpop.f32.mrf.mxu2  ;;  %v2125_v49 = vrot.slane %v2123_v58, 4  ;;  %v7079_v0 = vld [vmem:[%s8842_s3 + $0x150] sm:$0xff]  ;;  %v2134_v21 = vrot.slane %v2132_v39, 5  ;;  %896 = vst [vmem:[#allocation2 + $0x8c] sm:$0x1] %v895_v55 }
 0x125   : > { %v1310_v52 = vsel %vm7958_vm12, %v1305_v24, %v1309_v61  ;;  %1759 = vst [vmem:[#allocation3 + $0x2fc] sm:$0xf] %v1670_v50  ;;  %v5097_v15 = vadd.f32 %v5096_v3, %v8241_v36  ;;  %5049 = vmatmul.bf16.gmra.mxu1 %v6356_v63  ;;  %v2136_v24 = vshrl.u32 %v1865_v53, 16  ;;  %v1029_v36 = vld [vmem:[#allocation2 + $0x84] sm:$0xf]  ;;  %v1321_v14 = vshll.u32 %v1030_v2, 16 }
 0x126   : > { %2317 = vst [vmem:[#allocation3 + $0x2bc] sm:$0xf] %v2121_v30  ;;  %v5185_v32 = vpop.f32.mrf.mxu3  ;;  %5357 = vmatpush.bf16.msra.mxu1 %v7079_v0  ;;  %v1312_v19 = vshrl.u32 %v1029_v36, 16  ;;  %v2129_v61 = vor.u32 %v2128_v47, %v2125_v49  ;;  %v1315_v46 = vshll.u32 %v1029_v36, 16  ;;  %v7103_v48 = vld [vmem:[%s8842_s3 + $0x210] sm:$0xff]  ;;  %v1325_v30 = vshrl.u32 %v1030_v2, 16 }
 0x127   : > { %1484 = vst [vmem:[#allocation3 + $0x2f8] sm:$0xf] %v1310_v52  ;;  %v5186_v29 = vadd.f32 %v5185_v32, %v5097_v15  ;;  %v2138_v63 = vrot.slane %v2136_v24, 4  ;;  %v1323_v53 = vrot.slane %v1321_v14, 5  ;;  %v6367_v3 = vld [vmem:[#allocation3 + $0x298] sm:$0xf]  ;;  %5624 = vmatpush.bf16.msra.mxu0 %v7103_v48 }
 0x128   : > { %v5274_v50 = vpop.f32.mrf.mxu0  ;;  %v1314_v45 = vrot.slane %v1312_v19, 4  ;;  %v2130_v42 = vrot.slane %v2129_v61, 4  ;;  %v1317_v52 = vrot.slane %v1315_v46, 5  ;;  %v1327_v60 = vrot.slane %v1325_v30, 4  ;;  %v1529_v24 = vld [vmem:[#allocation2 + $0x88] sm:$0xf] }
 0x129   : > { %5138 = vmatmul.bf16.gmra.mxu2 %v6360_v12  ;;  %v2139_v1 = vor.u32 %v2138_v63, %v2134_v21  ;;  %v5012_v59 = vpop.f32.mrf.mxu1  ;;  %v8274_v58 = vadd.f32 %v5274_v50, %v5186_v29  ;;  %v1528_v12 = vld [vmem:[#allocation2 + $0x84] sm:$0xe]  ;;  %v6983_v32 = vld [vmem:[#allocation3 + $0x2d4] sm:$0xf]  ;;  %v1673_v36 = vrot.slane %v1529_v24, 5 }
 0x12a   : > { %v5013_v26 = vadd.f32 %v5012_v59, %v8148_v54  ;;  %v2135_v55 = vsel %vm7958_vm12, %v2130_v42, %v2134_v21  ;;  %v1318_v49 = vor.u32 %v1317_v52, %v1314_v45  ;;  %v5988_v16 = vrot.slane %v1528_v12, 9  ;;  %v8279_v63 = vld [vmem:[#allocation3 + $0x2d8] sm:$0xf]  ;;  %2635 = vst [vmem:[#allocation3 + $0x18] sm:$0xf] %v2603_v31 }
 0x12b   : > { %5227 = vmatmul.bf16.gmra.mxu3 %v6364_v13  ;;  %2318 = vst [vmem:[#allocation3 + $0x2e0] sm:$0xf] %v2135_v55  ;;  %v1328_v47 = vor.u32 %v1327_v60, %v1323_v53  ;;  %v2140_v2 = vrot.slane %v2139_v1, 4  ;;  %v1792_v61 = vld [vmem:[#allocation2 + $0x90] sm:$0xf]  ;;  %v1675_v52 = vrot.slane %v1673_v36, 4 }
 0x12c   : > { %v5099_v15 = vpop.f32.mrf.mxu2  ;;  %v8281_v54 = vld [vmem:[#allocation3 + $0x2f8] sm:$0xf0]  ;;  %v1319_v19 = vrot.slane %v1318_v49, 4  ;;  %v1866_v21 = vld [vmem:[#allocation2 + $0x8c] sm:$0x1]  ;;  %v697_v60 = vrot.slane %v7508_v44, 4 }
 0x12d   : > { %v6980_v39 = vld [vmem:[#allocation3 + $0x2b8] sm:$0xf0]  ;;  %v5100_v0 = vadd.f32 %v5099_v15, %v5011_v8  ;;  %v1031_v50 = vld [vmem:[#allocation2 + $0x8c] sm:$0x1]  ;;  %v1329_v48 = vrot.slane %v1328_v47, 4  ;;  %v1674_v8 = vsel %vm7949_vm11, %v5988_v16, %v1673_v36  ;;  %v2142_v45 = vshll.u32 %v1866_v21, 16 }
 0x12e   : > { %v5188_v29 = vpop.f32.mrf.mxu3  ;;  %v6389_v13 = vld [vmem:[#allocation3 + $0x2f4] sm:$0xf0]  ;;  %v6368_v46 = vor.u32 %v6980_v39, %v6367_v3  ;;  %v1324_v30 = vsel %vm7958_vm12, %v1319_v19, %v1323_v53  ;;  %v1331_v59 = vshll.u32 %v1031_v50, 16  ;;  %v1530_v42 = vld [vmem:[#allocation2 + $0x8c] sm:$0x1]  ;;  %v6396_v47 = vor.u32 %v8281_v54, %v8279_v63 }
 0x12f   : > { %v5189_v14 = vadd.f32 %v5188_v29, %v5100_v0  ;;  %v6392_v12 = vor.u32 %v6983_v32, %v6389_v13  ;;  %v6984_v15 = vld [vmem:[#allocation3 + $0x2dc] sm:$0xf]  ;;  %v6397_v3 = vld [vmem:[#allocation3 + $0x2fc] sm:$0xf0]  ;;  %1485 = vst [vmem:[#allocation3 + $0x31c] sm:$0xf] %v1324_v30 }
 0x130   : > { %v1676_v39 = vrot.slane %v1530_v42, 5  ;;  %v2144_v49 = vrot.slane %v2142_v45, 5  ;;  %v1333_v24 = vrot.slane %v1331_v59, 5  ;;  %1760 = vst [vmem:[#allocation3 + $0x320] sm:$0xf] %v1674_v8  ;;  %v6400_v45 = vor.u32 %v6984_v15, %v6397_v3 }
 0x131   : > { %v5277_v1 = vpop.f32.mrf.mxu0  ;;  %v901_v16 = vld [vmem:[#allocation2 + $0x98] sm:$0x1]  ;;  %1824 = vst [vmem:[#allocation3 + $0x324] sm:$0xf] %v1792_v61  ;;  %v1867_v32 = vld [vmem:[#allocation2 + $0x90] sm:$0xf] }
 0x132   : > { %v5015_v55 = vpop.f32.mrf.mxu1  ;;  %v8288_v0 = vadd.f32 %v5277_v1, %v5189_v14  ;;  %v1677_v44 = vsel %vm7949_vm11, %v1675_v52, %v1676_v39  ;;  %v1868_v36 = vld [vmem:[#allocation2 + $0x94] sm:$0xf]  ;;  %v2145_v13 = vsel %vm7958_vm12, %v2140_v2, %v2144_v49  ;;  %v1334_v19 = vsel %vm7958_vm12, %v1329_v48, %v1333_v24 }
 0x133   : > { %v5016_v53 = vadd.f32 %v5015_v55, %v8169_v33  ;;  %1761 = vst [vmem:[#allocation3 + $0x344] sm:$0xf] %v1677_v44  ;;  %v1793_v14 = vld [vmem:[#allocation2 + $0x94] sm:$0xf]  ;;  %v2147_v33 = vshrl.u32 %v1867_v32, 16  ;;  %v2150_v21 = vshll.u32 %v1867_v32, 16  ;;  %v902_v63 = vsel %vm7969_vm13, %v697_v60, %v901_v16 }
 0x134   : > { %5316 = vmatmul.bf16.gmra.mxu0 %v6368_v46  ;;  %v5101_v29 = vpop.f32.mrf.mxu2  ;;  %2319 = vst [vmem:[#allocation3 + $0x304] sm:$0xf] %v2145_v13  ;;  %v2156_v54 = vshll.u32 %v1868_v36, 16  ;;  %v2160_v61 = vshrl.u32 %v1868_v36, 16  ;;  %v1032_v46 = vld [vmem:[#allocation2 + $0x90] sm:$0xf] }
 0x135   : > { %v5102_v50 = vadd.f32 %v5101_v29, %v5013_v26  ;;  %5054 = vmatmul.bf16.gmra.mxu1 %v6392_v12  ;;  %1486 = vst [vmem:[#allocation3 + $0x340] sm:$0xf] %v1334_v19  ;;  %v2149_v2 = vrot.slane %v2147_v33, 4  ;;  %v2152_v30 = vrot.slane %v2150_v21, 5  ;;  %v1033_v59 = vld [vmem:[#allocation2 + $0x94] sm:$0xf] }
 0x136   : > { %v5190_v8 = vpop.f32.mrf.mxu3  ;;  %1825 = vst [vmem:[#allocation3 + $0x348] sm:$0xf] %v1793_v14  ;;  %v2158_v42 = vrot.slane %v2156_v54, 5  ;;  %v2162_v52 = vrot.slane %v2160_v61, 4  ;;  %v1336_v1 = vshrl.u32 %v1032_v46, 16  ;;  %v1339_v12 = vshll.u32 %v1032_v46, 16 }
 0x137   : > { %v5191_v48 = vadd.f32 %v5190_v8, %v5102_v50  ;;  %903 = vst [vmem:[#allocation2 + $0x98] sm:$0x1] %v902_v63  ;;  %v2153_v26 = vor.u32 %v2152_v30, %v2149_v2  ;;  %v1345_v39 = vshll.u32 %v1033_v59, 16  ;;  %v1349_v24 = vshrl.u32 %v1033_v59, 16  ;;  %v1531_v16 = vld [vmem:[#allocation2 + $0x90] sm:$0xe] }
 0x138   : > { %v2163_v60 = vor.u32 %v2162_v52, %v2158_v42  ;;  %v1338_v49 = vrot.slane %v1336_v1, 4  ;;  %v1341_v44 = vrot.slane %v1339_v12, 5  ;;  %v5989_v36 = vrot.slane %v1531_v16, 9  ;;  %v6403_v29 = vld [vmem:[#allocation3 + $0x2e0] sm:$0xf] }
 0x139   : > { %v5279_v55 = vpop.f32.mrf.mxu0  ;;  %5143 = vmatmul.bf16.gmra.mxu2 %v6396_v47  ;;  %v2154_v3 = vrot.slane %v2153_v26, 4  ;;  %v1347_v32 = vrot.slane %v1345_v39, 5  ;;  %v1351_v19 = vrot.slane %v1349_v24, 4  ;;  %v1532_v14 = vld [vmem:[#allocation2 + $0x94] sm:$0xf]  ;;  %v714_v47 = vrot.slane %v7668_v25, 4 }
 0x13a   : > { %v5017_v15 = vpop.f32.mrf.mxu1  ;;  %v8304_v33 = vadd.f32 %v5279_v55, %v5191_v48  ;;  %v6992_v50 = vld [vmem:[#allocation3 + $0x31c] sm:$0xf]  ;;  %v1342_v54 = vor.u32 %v1341_v44, %v1338_v49  ;;  %v1680_v61 = vrot.slane %v1532_v14, 5  ;;  %v1794_v46 = vld [vmem:[#allocation2 + $0x9c] sm:$0xf]  ;;  %v2164_v59 = vrot.slane %v2163_v60, 4 }
 0x13b   : > { %5232 = vmatmul.bf16.gmra.mxu3 %v6400_v45  ;;  %v8302_v13 = vadd.f32 %v5017_v15, %v8187_v7  ;;  %v2159_v63 = vsel %vm7958_vm12, %v2154_v3, %v2158_v42  ;;  %v6989_v8 = vld [vmem:[#allocation3 + $0x300] sm:$0xf0]  ;;  %v1352_v7 = vor.u32 %v1351_v19, %v1347_v32  ;;  %v1795_v25 = vld [vmem:[#allocation2 + $0xa0] sm:$0xf]  ;;  %1826 = vst [vmem:[#allocation3 + $0x36c] sm:$0xf] %v1794_v46 }
 0x13c   : > { %v5104_v21 = vpop.f32.mrf.mxu2  ;;  %v6425_v2 = vld [vmem:[#allocation3 + $0x33c] sm:$0xf0]  ;;  %2320 = vst [vmem:[#allocation3 + $0x328] sm:$0xf] %v2159_v63  ;;  %v1343_v52 = vrot.slane %v1342_v54, 4  ;;  %v1681_v48 = vsel %vm7949_vm11, %v5989_v36, %v1680_v61  ;;  %v1682_v39 = vrot.slane %v1680_v61, 4  ;;  %v6404_v55 = vor.u32 %v6989_v8, %v6403_v29 }
 0x13d   : > { %v5105_v45 = vadd.f32 %v5104_v21, %v5016_v53  ;;  %v1353_v42 = vrot.slane %v1352_v7, 4  ;;  %v6431_v49 = vld [vmem:[#allocation3 + $0x320] sm:$0xf]  ;;  %v6997_v24 = vld [vmem:[#allocation3 + $0x340] sm:$0xf0]  ;;  %v6428_v44 = vor.u32 %v6992_v50, %v6425_v2  ;;  %v7086_v19 = vld [vmem:[%s8842_s3 + $0x188] sm:$0xff] }
 0x13e   : > { %v5193_v30 = vpop.f32.mrf.mxu3  ;;  %v1869_v26 = vld [vmem:[#allocation2 + $0x98] sm:$0x1]  ;;  %v1348_v16 = vsel %vm7958_vm12, %v1343_v52, %v1347_v32  ;;  %1762 = vst [vmem:[#allocation3 + $0x368] sm:$0xf] %v1681_v48  ;;  %v908_v14 = vld [vmem:[#allocation2 + $0xa4] sm:$0x1]  ;;  %5447 = vmatpush.bf16.msra.mxu2 %v7086_v19 }
 0x13f   : > { %v5194_v1 = vadd.f32 %v5193_v30, %v5105_v45  ;;  %v1034_v12 = vld [vmem:[#allocation2 + $0x98] sm:$0x1]  ;;  %v2166_v53 = vshll.u32 %v1869_v26, 16  ;;  %1487 = vst [vmem:[#allocation3 + $0x364] sm:$0xf] %v1348_v16  ;;  %v909_v32 = vsel %vm7969_vm13, %v714_v47, %v908_v14  ;;  %v6432_v26 = vor.u32 %v6997_v24, %v6431_v49 }
 0x140   : > { %v1355_v15 = vshll.u32 %v1034_v12, 16  ;;  %v1533_v60 = vld [vmem:[#allocation2 + $0x98] sm:$0x1]  ;;  %v6993_v29 = vld [vmem:[#allocation3 + $0x324] sm:$0xf] }
 0x141   : > { %v5282_v3 = vpop.f32.mrf.mxu0  ;;  %v1683_v36 = vrot.slane %v1533_v60, 5  ;;  %v2168_v63 = vrot.slane %v2166_v53, 5  ;;  %1827 = vst [vmem:[#allocation3 + $0x390] sm:$0xf] %v1795_v25  ;;  %v1870_v61 = vld [vmem:[#allocation2 + $0x9c] sm:$0xf] }
 0x142   : > { %v5020_v21 = vpop.f32.mrf.mxu1  ;;  %v1357_v54 = vrot.slane %v1355_v15, 5  ;;  %v8318_v46 = vadd.f32 %v5282_v3, %v5194_v1  ;;  %910 = vst [vmem:[#allocation2 + $0xa4] sm:$0x1] %v909_v32  ;;  %v1871_v45 = vld [vmem:[#allocation2 + $0xa0] sm:$0xf]  ;;  %v2171_v2 = vshrl.u32 %v1870_v61, 16 }
 0x143   : > { %v8321_v50 = vadd.f32 %v5020_v21, %v8217_v51  ;;  %v1684_v8 = vsel %vm7949_vm11, %v1682_v39, %v1683_v36  ;;  %v2174_v7 = vshll.u32 %v1870_v61, 16  ;;  %v6433_v52 = vld [vmem:[#allocation3 + $0x344] sm:$0xf0]  ;;  %v2169_v47 = vsel %vm7958_vm12, %v2164_v59, %v2168_v63  ;;  %v7094_v59 = vld [vmem:[%s8842_s3 + $0x1c8] sm:$0xff]  ;;  %v1035_v3 = vld [vmem:[#allocation2 + $0x9c] sm:$0xf] }
 0x144   : > { %5321 = vmatmul.bf16.gmra.mxu0 %v6404_v55  ;;  %v5106_v30 = vpop.f32.mrf.mxu2  ;;  %v1358_v48 = vsel %vm7958_vm12, %v1353_v42, %v1357_v54  ;;  %1763 = vst [vmem:[#allocation3 + $0x38c] sm:$0xf] %v1684_v8  ;;  %v2180_v51 = vshll.u32 %v1871_v45, 16  ;;  %v2184_v25 = vshrl.u32 %v1871_v45, 16  ;;  %v2173_v12 = vrot.slane %v2171_v2, 4  ;;  %v7078_v42 = vld [vmem:[%s8842_s3 + $0x148] sm:$0xff]  ;;  %5536 = vmatpush.bf16.msra.mxu3 %v7094_v59 }
 0x145   : > { %v5107_v1 = vadd.f32 %v5106_v30, %v8302_v13  ;;  %5059 = vmatmul.bf16.gmra.mxu1 %v6428_v44  ;;  %2321 = vst [vmem:[#allocation3 + $0x34c] sm:$0xf] %v2169_v47  ;;  %v2176_v39 = vrot.slane %v2174_v7, 5  ;;  %v6436_v60 = vor.u32 %v6993_v29, %v6433_v52  ;;  %v1036_v49 = vld [vmem:[#allocation2 + $0xa0] sm:$0xf]  ;;  %v1360_v44 = vshrl.u32 %v1035_v3, 16 }
 0x146   : > { %v5195_v53 = vpop.f32.mrf.mxu3  ;;  %1488 = vst [vmem:[#allocation3 + $0x388] sm:$0xf] %v1358_v48  ;;  %v2182_v55 = vrot.slane %v2180_v51, 5  ;;  %v2186_v16 = vrot.slane %v2184_v25, 4  ;;  %5358 = vmatpush.bf16.msra.mxu1 %v7078_v42  ;;  %v1363_v36 = vshll.u32 %v1035_v3, 16  ;;  %v1369_v19 = vshll.u32 %v1036_v49, 16 }
 0x147   : > { %v5196_v15 = vadd.f32 %v5195_v53, %v5107_v1  ;;  %v2177_v13 = vor.u32 %v2176_v39, %v2173_v12  ;;  %v7102_v63 = vld [vmem:[%s8842_s3 + $0x208] sm:$0xff]  ;;  %v1373_v54 = vshrl.u32 %v1036_v49, 16  ;;  %v731_v29 = vrot.slane %v7805_v57, 4  ;;  %v8341_v2 = vld [vmem:[%s7385_s27 + $0x78] sm:$0xff]   ;;  %v6439_v30 = vld [vmem:[#allocation3 + $0x328] sm:$0xf] }
 0x148   : > { %v2187_v24 = vor.u32 %v2186_v16, %v2182_v55  ;;  %v1362_v45 = vrot.slane %v1360_v44, 4  ;;  %5625 = vmatpush.bf16.msra.mxu0 %v7102_v63  ;;  %v1365_v25 = vrot.slane %v1363_v36, 5  ;;  %v1534_v1 = vld [vmem:[#allocation2 + $0x9c] sm:$0xe]  ;;  %v1371_v53 = vrot.slane %v1369_v19, 5 }
 0x149   : > { %v5284_v14 = vpop.f32.mrf.mxu0  ;;  %5148 = vmatmul.bf16.gmra.mxu2 %v6432_v26  ;;  %v2178_v21 = vrot.slane %v2177_v13, 4  ;;  %v1872_v61 = vld [vmem:[#allocation2 + $0xa4] sm:$0x1]  ;;  %v7001_v39 = vld [vmem:[#allocation3 + $0x364] sm:$0xf]  ;;  %v1375_v16 = vrot.slane %v1373_v54, 4  ;;  %v7171_v13 = vunpack.c.l.bf16 %v8341_v2 }
 0x14a   : > { %v5022_v32 = vpop.f32.mrf.mxu1  ;;  %v2188_v8 = vrot.slane %v2187_v24, 4  ;;  %v8343_v7 = vadd.f32 %v5284_v14, %v5196_v15  ;;  %v2190_v48 = vshll.u32 %v1872_v61, 16  ;;  %v1037_v51 = vld [vmem:[#allocation2 + $0xa4] sm:$0x1]  ;;  %v5990_v44 = vrot.slane %v1534_v1, 9 }
 0x14b   : > { %5237 = vmatmul.bf16.gmra.mxu3 %v6436_v60  ;;  %v8346_v52 = vadd.f32 %v5022_v32, %v8238_v37  ;;  %v2183_v47 = vsel %vm7958_vm12, %v2178_v21, %v2182_v55  ;;  %v1366_v37 = vor.u32 %v1365_v25, %v1362_v45  ;;  %v1535_v60 = vld [vmem:[#allocation2 + $0xa0] sm:$0xf]  ;;  %v1376_v3 = vor.u32 %v1375_v16, %v1371_v53  ;;  %v1536_v24 = vld [vmem:[#allocation2 + $0xa4] sm:$0x1]  ;;  %v1796_v36 = vld [vmem:[#allocation2 + $0xa8] sm:$0xf] }
 0x14c   : > { %v6998_v26 = vld [vmem:[#allocation3 + $0x348] sm:$0xf0]  ;;  %v5109_v12 = vpop.f32.mrf.mxu2  ;;  %2322 = vst [vmem:[#allocation3 + $0x370] sm:$0xf] %v2183_v47  ;;  %v2192_v15 = vrot.slane %v2190_v48, 5  ;;  %v1379_v49 = vshll.u32 %v1037_v51, 16  ;;  %v7172_v14 = vunpack.c.h.bf16 %v8341_v2 }
 0x14d   : > { %v5110_v59 = vadd.f32 %v5109_v12, %v8321_v50  ;;  %v6461_v42 = vld [vmem:[#allocation3 + $0x384] sm:$0xf0]  ;;  %v8355_v19 = vld [vmem:[#allocation3 + $0x388] sm:$0xf0]  ;;  %v1367_v54 = vrot.slane %v1366_v37, 4  ;;  %v1687_v32 = vrot.slane %v1535_v60, 5  ;;  %v6440_v45 = vor.u32 %v6998_v26, %v6439_v30 }
 0x14e   : > { %v5198_v55 = vpop.f32.mrf.mxu3  ;;  %v8353_v63 = vld [vmem:[#allocation3 + $0x368] sm:$0xf]  ;;  %v2193_v50 = vsel %vm7958_vm12, %v2188_v8, %v2192_v15  ;;  %v1797_v61 = vld [vmem:[#allocation2 + $0xac] sm:$0xf]  ;;  %1828 = vst [vmem:[#allocation3 + $0x3b4] sm:$0xf] %v1796_v36  ;;  %v6464_v1 = vor.u32 %v7001_v39, %v6461_v42 }
 0x14f   : > { %v5199_v21 = vadd.f32 %v5198_v55, %v5110_v59  ;;  %2323 = vst [vmem:[#allocation3 + $0x394] sm:$0xf] %v2193_v50  ;;  %v1377_v47 = vrot.slane %v1376_v3, 4  ;;  %v1381_v48 = vrot.slane %v1379_v49, 5  ;;  %v1690_v51 = vrot.slane %v1536_v24, 5 }
 0x150   : > { %v7002_v2 = vld [vmem:[#allocation3 + $0x36c] sm:$0xf]  ;;  %v1372_v12 = vsel %vm7958_vm12, %v1367_v54, %v1371_v53  ;;  %v1688_v16 = vsel %vm7949_vm11, %v5990_v44, %v1687_v32  ;;  %v1689_v59 = vrot.slane %v1687_v32, 4  ;;  %1829 = vst [vmem:[#allocation3 + $0x3d8] sm:$0xf] %v1797_v61  ;;  %v6468_v24 = vor.u32 %v8355_v19, %v8353_v63 }
 0x151   : > { %v5287_v25 = vpop.f32.mrf.mxu0  ;;  %v915_v8 = vld [vmem:[#allocation2 + $0xb0] sm:$0x1]  ;;  %v1382_v30 = vsel %vm7958_vm12, %v1377_v47, %v1381_v48  ;;  %1489 = vst [vmem:[#allocation3 + $0x3ac] sm:$0xf] %v1372_v12  ;;  %v1873_v26 = vld [vmem:[#allocation2 + $0xa8] sm:$0xf] }
 0x152   : > { %v5025_v15 = vpop.f32.mrf.mxu1  ;;  %v1874_v37 = vld [vmem:[#allocation2 + $0xac] sm:$0xf]  ;;  %v8365_v60 = vadd.f32 %v5287_v25, %v5199_v21  ;;  %v6469_v39 = vld [vmem:[#allocation3 + $0x38c] sm:$0xf0]  ;;  %1490 = vst [vmem:[#allocation3 + $0x3d0] sm:$0xf] %v1382_v30  ;;  %v1691_v53 = vsel %vm7949_vm11, %v1689_v59, %v1690_v51  ;;  %v916_v42 = vsel %vm7969_vm13, %v731_v29, %v915_v8 }
 0x153   : > { %v2195_v55 = vshrl.u32 %v1873_v26, 16  ;;  %v2198_v3 = vshll.u32 %v1873_v26, 16  ;;  %1764 = vst [vmem:[#allocation3 + $0x3b0] sm:$0xf] %v1688_v16  ;;  %v2204_v44 = vshll.u32 %v1874_v37, 16  ;;  %v2208_v36 = vshrl.u32 %v1874_v37, 16 }
 0x154   : > { %5326 = vmatmul.bf16.gmra.mxu0 %v6440_v45  ;;  %v5111_v49 = vpop.f32.mrf.mxu2  ;;  %v1038_v21 = vld [vmem:[#allocation2 + $0xa8] sm:$0xf]  ;;  %v7320_v50 = vld [vmem:[%s8840_s1] ss:$0 sm:$0xff]  ;;  %1765 = vst [vmem:[#allocation3 + $0x3d4] sm:$0xf] %v1691_v53  ;;  %v6472_v48 = vor.u32 %v7002_v2, %v6469_v39 }
 0x155   : > { %v335_v54 = vmul.f32 %v7320_v50, %v7171_v13  ;;  %v5112_v57 = vadd.f32 %v5111_v49, %v8346_v52  ;;  %5064 = vmatmul.bf16.gmra.mxu1 %v6464_v1  ;;  %v2197_v29 = vrot.slane %v2195_v55, 4  ;;  %v2200_v32 = vrot.slane %v2198_v3, 5  ;;  %v1039_v61 = vld [vmem:[#allocation2 + $0xac] sm:$0xf]  ;;  %917 = vst [vmem:[#allocation2 + $0xb0] sm:$0x1] %v916_v42 }
 0x156   : > { %v336_v45 = vmul.f32 %v7320_v50, %v7172_v14  ;;  %v5200_v47 = vpop.f32.mrf.mxu3  ;;  %v2206_v63 = vrot.slane %v2204_v44, 5  ;;  %v2210_v19 = vrot.slane %v2208_v36, 4  ;;  %v1384_v12 = vshrl.u32 %v1038_v21, 16  ;;  %v1537_v59 = vld [vmem:[#allocation2 + $0xa8] sm:$0xe] }
 0x157   : > { %v5201_v51 = vadd.f32 %v5200_v47, %v5112_v57  ;;  %v2201_v25 = vor.u32 %v2200_v32, %v2197_v29  ;;  %v1387_v16 = vshll.u32 %v1038_v21, 16  ;;  %v1393_v13 = vshll.u32 %v1039_v61, 16  ;;  %v7321_v52 = vld [vmem:[%s8841_s2] ss:$0 sm:$0xff]  ;;  %v1538_v39 = vld [vmem:[#allocation2 + $0xac] sm:$0xf] }
 0x158   : > { %v2211_v8 = vor.u32 %v2210_v19, %v2206_v63  ;;  %v1397_v30 = vshrl.u32 %v1039_v61, 16  ;;  %v8382_v1 = vadd.f32 %v7321_v52, %v335_v54  ;;  %v1386_v26 = vrot.slane %v1384_v12, 4  ;;  %v6475_v21 = vld [vmem:[#allocation3 + $0x370] sm:$0xf]  ;;  %v7007_v50 = vld [vmem:[#allocation3 + $0x390] sm:$0xf0] }
 0x159   : > { %v5289_v14 = vpop.f32.mrf.mxu0  ;;  %5153 = vmatmul.bf16.gmra.mxu2 %v6468_v24  ;;  %v2202_v2 = vrot.slane %v2201_v25, 4  ;;  %v1389_v37 = vrot.slane %v1387_v16, 5  ;;  %v8384_v53 = vadd.f32 %v7321_v52, %v336_v45  ;;  %v748_v42 = vrot.slane %v7908_v23, 4  ;;  %v8390_v32 = vld [vmem:[#allocation3 + $0x3ac] sm:$0xf] }
 0x15a   : > { %v5027_v55 = vpop.f32.mrf.mxu1  ;;  %v1395_v3 = vrot.slane %v1393_v13, 5  ;;  %v1399_v49 = vrot.slane %v1397_v30, 4  ;;  %v5991_v44 = vrot.slane %v1537_v59, 9  ;;  %v5026_v36 = vadd.f32 %v5025_v15, %v8070_v40  ;;  %v8392_v61 = vld [vmem:[#allocation3 + $0x3cc] sm:$0xf0]  ;;  %v7077_v23 = vld [vmem:[%s8842_s3 + $0x140] sm:$0xff] }
 0x15b   : > { %5242 = vmatmul.bf16.gmra.mxu3 %v6472_v48  ;;  %v2207_v24 = vsel %vm7958_vm12, %v2202_v2, %v2206_v63  ;;  %v2212_v54 = vrot.slane %v2211_v8, 4  ;;  %v1390_v57 = vor.u32 %v1389_v37, %v1386_v26  ;;  %v1694_v47 = vrot.slane %v1538_v39, 5  ;;  %v1798_v19 = vld [vmem:[#allocation2 + $0xb4] sm:$0xf]  ;;  %v8400_v37 = vld [vmem:[#allocation3 + $0x3b0] sm:$0xf]  ;;  %5359 = vmatpush.bf16.msra.mxu1 %v7077_v23 }
 0x15c   : > { %v5114_v29 = vpop.f32.mrf.mxu2  ;;  %2324 = vst [vmem:[#allocation3 + $0x3b8] sm:$0xf] %v2207_v24  ;;  %v1400_v45 = vor.u32 %v1399_v49, %v1395_v3  ;;  %v403_v25 = vmax.f32 %v8382_v1, 0.0  ;;  %v8395_v40 = vadd.f32 %v5289_v14, %v5201_v51  ;;  %v1875_v48 = vld [vmem:[#allocation2 + $0xb0] sm:$0x1]  ;;  %v404_v63 = vmax.f32 %v8384_v53, 0.0 }
 0x15d   : > { %v5115_v15 = vadd.f32 %v5114_v29, %v5026_v36  ;;  %v1040_v12 = vld [vmem:[#allocation2 + $0xb0] sm:$0x1]  ;;  %v1391_v16 = vrot.slane %v1390_v57, 4  ;;  %v2214_v8 = vshll.u32 %v1875_v48, 16  ;;  %v1695_v2 = vsel %vm7949_vm11, %v5991_v44, %v1694_v47  ;;  %v8402_v39 = vld [vmem:[#allocation3 + $0x3d0] sm:$0xf0] }
 0x15e   : > { %v5203_v59 = vpop.f32.mrf.mxu3  ;;  %v1401_v13 = vrot.slane %v1400_v45, 4  ;;  %v1403_v30 = vshll.u32 %v1040_v12, 16  ;;  %v1539_v52 = vld [vmem:[#allocation2 + $0xb0] sm:$0x1]  ;;  %v1696_v14 = vrot.slane %v1694_v47, 4  ;;  %v6476_v24 = vor.u32 %v7007_v50, %v6475_v21  ;;  %v7085_v21 = vld [vmem:[%s8842_s3 + $0x180] sm:$0xff] }
 0x15f   : > { %v5204_v26 = vadd.f32 %v5203_v59, %v5115_v15  ;;  %v1396_v51 = vsel %vm7958_vm12, %v1391_v16, %v1395_v3  ;;  %v1697_v49 = vrot.slane %v1539_v52, 5  ;;  %1766 = vst [vmem:[#allocation3 + $0x3f8] sm:$0xf] %v1695_v2  ;;  %v922_v36 = vld [vmem:[#allocation2 + $0xbc] sm:$0x1]  ;;  %v2216_v57 = vrot.slane %v2214_v8, 5  ;;  %5448 = vmatpush.bf16.msra.mxu2 %v7085_v21 }
 0x160   : > { %v1405_v29 = vrot.slane %v1403_v30, 5  ;;  %1491 = vst [vmem:[#allocation3 + $0x3f4] sm:$0xf] %v1396_v51  ;;  %v1799_v45 = vld [vmem:[#allocation2 + $0xb8] sm:$0xf]  ;;  %v5028_v44 = vadd.f32 %v5027_v55, %v8082_v22  ;;  %v6500_v15 = vor.u32 %v8390_v32, %v8392_v61 }
 0x161   : > { %v1876_v48 = vld [vmem:[#allocation2 + $0xb4] sm:$0xf]  ;;  %v5292_v12 = vpop.f32.mrf.mxu0  ;;  %v8409_v59 = vld [vmem:[#allocation3 + $0x3b4] sm:$0xf]  ;;  %v1698_v3 = vsel %vm7949_vm11, %v1696_v14, %v1697_v49  ;;  %1830 = vst [vmem:[#allocation3 + $0x3fc] sm:$0xf] %v1798_v19  ;;  %v2217_v8 = vsel %vm7958_vm12, %v2212_v54, %v2216_v57  ;;  %v923_v19 = vsel %vm7969_vm13, %v748_v42, %v922_v36 }
 0x162   : > { %v1877_v50 = vld [vmem:[#allocation2 + $0xb8] sm:$0xf]  ;;  %v2219_v47 = vshrl.u32 %v1876_v48, 16  ;;  %v5030_v16 = vpop.f32.mrf.mxu1  ;;  %v1406_v22 = vsel %vm7958_vm12, %v1401_v13, %v1405_v29  ;;  %1767 = vst [vmem:[#allocation3 + $0x41c] sm:$0xf] %v1698_v3  ;;  %v2222_v55 = vshll.u32 %v1876_v48, 16  ;;  %v8424_v51 = vadd.f32 %v5292_v12, %v5204_v26 }
 0x163   : > { %v2228_v32 = vshll.u32 %v1877_v50, 16  ;;  %v1041_v61 = vld [vmem:[#allocation2 + $0xb4] sm:$0xf]  ;;  %v6505_v30 = vld [vmem:[#allocation3 + $0x3d4] sm:$0xf0]  ;;  %v2232_v2 = vshrl.u32 %v1877_v50, 16  ;;  %v6504_v13 = vor.u32 %v8402_v39, %v8400_v37  ;;  %v8437_v37 = vpack.c.bf16 %v403_v25, %v403_v25 }
 0x164   : > { %2325 = vst [vmem:[#allocation3 + $0x3dc] sm:$0xf] %v2217_v8  ;;  %v2221_v52 = vrot.slane %v2219_v47, 4  ;;  %5331 = vmatmul.bf16.gmra.mxu0 %v6476_v24  ;;  %v5116_v54 = vpop.f32.mrf.mxu2  ;;  %v2224_v14 = vrot.slane %v2222_v55, 5  ;;  %v7093_v57 = vld [vmem:[%s8842_s3 + $0x1c0] sm:$0xff]  ;;  %v1408_v24 = vshrl.u32 %v1041_v61, 16  ;;  %v6508_v29 = vor.u32 %v8409_v59, %v6505_v30 }
 0x165   : > { %1492 = vst [vmem:[#allocation3 + $0x418] sm:$0xf] %v1406_v22  ;;  %v2230_v49 = vrot.slane %v2228_v32, 5  ;;  %v5117_v42 = vadd.f32 %v5116_v54, %v5028_v44  ;;  %5069 = vmatmul.bf16.gmra.mxu1 %v6500_v15  ;;  %v2234_v26 = vrot.slane %v2232_v2, 4  ;;  %v1042_v36 = vld [vmem:[#allocation2 + $0xb8] sm:$0xf]  ;;  %5537 = vmatpush.bf16.msra.mxu3 %v7093_v57  ;;  %v8452_v32 = vpack.c.bf16 %v404_v63, %v404_v63 }
 0x166   : > { %1831 = vst [vmem:[#allocation3 + $0x420] sm:$0xf] %v1799_v45  ;;  %v5205_v39 = vpop.f32.mrf.mxu3  ;;  %v2225_v48 = vor.u32 %v2224_v14, %v2221_v52  ;;  %v1411_v12 = vshll.u32 %v1041_v61, 16  ;;  %v1417_v3 = vshll.u32 %v1042_v36, 16  ;;  %v1410_v15 = vrot.slane %v1408_v24, 4  ;;  %v7101_v59 = vld [vmem:[%s8842_s3 + $0x200] sm:$0xff] }
 0x167   : > { %924 = vst [vmem:[#allocation2 + $0xbc] sm:$0x1] %v923_v19  ;;  %v8440_v44 = vadd.f32 %v5205_v39, %v5117_v42  ;;  %v2235_v45 = vor.u32 %v2234_v26, %v2230_v49  ;;  %v1421_v21 = vshrl.u32 %v1042_v36, 16  ;;  %v1540_v50 = vld [vmem:[#allocation2 + $0xb4] sm:$0xe]  ;;  %v750_v61 = vshrl.u32 %v8437_v37, 16  ;;  %5626 = vmatpush.bf16.msra.mxu0 %v7101_v59 }
 0x168   : > { %v2226_v47 = vrot.slane %v2225_v48, 4  ;;  %v1413_v1 = vrot.slane %v1411_v12, 5  ;;  %v1419_v8 = vrot.slane %v1417_v3, 5  ;;  %v8444_v22 = vld [vmem:[#allocation3 + $0x3b8] sm:$0xf]  ;;  %v5031_v14 = vadd.f32 %v5030_v16, %v8099_v20 }
 0x169   : > { %v8442_v25 = vpop.f32.mrf.mxu0  ;;  %5158 = vmatmul.bf16.gmra.mxu2 %v6504_v13  ;;  %v1423_v55 = vrot.slane %v1421_v21, 4  ;;  %v1541_v54 = vld [vmem:[#allocation2 + $0xb8] sm:$0xf]  ;;  %v5992_v13 = vrot.slane %v1540_v50, 9  ;;  %v8460_v57 = vld [vmem:[#allocation3 + $0x3f4] sm:$0xf] }
 0x16a   : > { %v5032_v19 = vpop.f32.mrf.mxu1  ;;  %v2231_v52 = vsel %vm7958_vm12, %v2226_v47, %v2230_v49  ;;  %v1414_v2 = vor.u32 %v1413_v1, %v1410_v15  ;;  %v2236_v53 = vrot.slane %v2235_v45, 4  ;;  %v753_v23 = vshll.u32 %v8437_v37, 16  ;;  %v925_v1 = vld [vmem:[#allocation2 + $0xc0] sm:$0xf]  ;;  %v6539_v59 = vld [vmem:[#allocation3 + $0x3f8] sm:$0xf] }
 0x16b   : > { %v8455_v30 = vld [vmem:[#allocation3 + $0x3d8] sm:$0xf0]  ;;  %5247 = vmatmul.bf16.gmra.mxu3 %v6508_v29  ;;  %2326 = vst [vmem:[#allocation3 + $0x400] sm:$0xf] %v2231_v52  ;;  %v1424_v63 = vor.u32 %v1423_v55, %v1419_v8  ;;  %v1701_v24 = vrot.slane %v1541_v54, 5  ;;  %v752_v39 = vrot.slane %v750_v61, 7  ;;  %v5033_v20 = vadd.f32 %v5032_v19, %v8117_v11 }
 0x16c   : > { %v6512_v42 = vor.u32 %v8455_v30, %v8444_v22  ;;  %v5119_v26 = vpop.f32.mrf.mxu2  ;;  %v6533_v36 = vld [vmem:[#allocation3 + $0x414] sm:$0xf0]  ;;  %v1415_v49 = vrot.slane %v1414_v2, 4  ;;  %v758_v3 = vshrl.u32 %v8452_v32, 16  ;;  %v2667_v30 = vld [vmem:[#allocation2 + $0x18] sm:$0xf]  ;;  %v8483_v35 = vadd.f32 %v8442_v25, %v8440_v44 }
 0x16d   : > { %v5120_v48 = vadd.f32 %v5119_v26, %v5031_v14  ;;  %v1425_v12 = vrot.slane %v1424_v63, 4  ;;  %v1702_v47 = vsel %vm7949_vm11, %v5992_v13, %v1701_v24  ;;  %v1703_v11 = vrot.slane %v1701_v24, 4  ;;  %v7024_v14 = vld [vmem:[#allocation3 + $0x418] sm:$0xf0]  ;;  %v2668_v25 = vld [vmem:[#allocation2 + $0x1c] sm:$0xf] }
 0x16e   : > { %v1878_v16 = vld [vmem:[#allocation2 + $0xbc] sm:$0x1]  ;;  %v5208_v45 = vpop.f32.mrf.mxu3  ;;  %v1420_v37 = vsel %vm7958_vm12, %v1415_v49, %v1419_v8  ;;  %v755_v61 = vor.u32 %v753_v23, %v752_v39  ;;  %v6536_v19 = vor.u32 %v8460_v57, %v6533_v36  ;;  %1768 = vst [vmem:[#allocation3 + $0x440] sm:$0xf] %v1702_v47  ;;  %v760_v54 = vrot.slane %v758_v3, 7 }
 0x16f   : > { %v1043_v29 = vld [vmem:[#allocation2 + $0xbc] sm:$0x1]  ;;  %v2238_v15 = vshll.u32 %v1878_v16, 16  ;;  %v5209_v22 = vadd.f32 %v5208_v45, %v5120_v48  ;;  %1493 = vst [vmem:[#allocation3 + $0x43c] sm:$0xf] %v1420_v37  ;;  %v756_v26 = vrot.slane %v752_v39, 4 }
 0x170   : > { %v1427_v21 = vshll.u32 %v1043_v29, 16  ;;  %v1542_v50 = vld [vmem:[#allocation2 + $0xbc] sm:$0x1]  ;;  %v7020_v63 = vld [vmem:[#allocation3 + $0x3fc] sm:$0xf]  ;;  %v761_v49 = vshll.u32 %v8452_v32, 16  ;;  %v926_v24 = vsel %vm7443_vm5, %v755_v61, %v925_v1 }
 0x171   : > { %v1704_v55 = vrot.slane %v1542_v50, 5  ;;  %v2240_v52 = vrot.slane %v2238_v15, 5  ;;  %v5297_v8 = vpop.f32.mrf.mxu0  ;;  %v929_v23 = vld [vmem:[#allocation2 + $0xc8] sm:$0x1]  ;;  %v6541_v16 = vld [vmem:[#allocation3 + $0x41c] sm:$0xf0] }
 0x172   : > { %v1429_v2 = vrot.slane %v1427_v21, 5  ;;  %v5035_v48 = vpop.f32.mrf.mxu1  ;;  %v765_v29 = vrot.slane %v760_v54, 4  ;;  %v2716_v3 = vshrl.u32 %v2667_v30, 16  ;;  %v763_v45 = vor.u32 %v761_v49, %v760_v54  ;;  %v2331_v39 = vld [vmem:[#allocation2 + $0x10] sm:$0xf] }
 0x173   : > { %v1705_v13 = vsel %vm7949_vm11, %v1703_v11, %v1704_v55  ;;  %v2241_v57 = vsel %vm7958_vm12, %v2236_v53, %v2240_v52  ;;  %v2719_v15 = vshll.u32 %v2667_v30, 16  ;;  %v8485_v32 = vadd.f32 %v5297_v8, %v5209_v22  ;;  %v2332_v50 = vld [vmem:[#allocation2 + $0x14] sm:$0x1]  ;;  %927 = vst [vmem:[#allocation2 + $0xc0] sm:$0xf] %v926_v24 }
 0x174   : > { %v1430_v36 = vsel %vm7958_vm12, %v1425_v12, %v1429_v2  ;;  %1769 = vst [vmem:[#allocation3 + $0x464] sm:$0xf] %v1705_v13  ;;  %5336 = vmatmul.bf16.gmra.mxu0 %v6512_v42  ;;  %v5121_v37 = vpop.f32.mrf.mxu2  ;;  %v6540_v21 = vor.u32 %v7024_v14, %v6539_v59  ;;  %v930_v53 = vsel %vm7969_vm13, %v765_v29, %v929_v23  ;;  %v2330_v12 = vld [vmem:[#allocation2 + $0xc] sm:$0xe]  ;;  %v2428_v44 = vrot.slane %v2331_v39, 5 }
 0x175   : > { %2327 = vst [vmem:[#allocation3 + $0x424] sm:$0xf] %v2241_v57  ;;  %v5122_v47 = vadd.f32 %v5121_v37, %v5033_v20  ;;  %5074 = vmatmul.bf16.gmra.mxu1 %v6536_v19  ;;  %v764_v1 = vsel %vm7434_vm4, %v756_v26, %v763_v45  ;;  %v5993_v11 = vrot.slane %v2330_v12, 9  ;;  %v6544_v55 = vor.u32 %v7020_v63, %v6541_v16  ;;  %v2669_v59 = vld [vmem:[#allocation2 + $0x20] sm:$0x1] }
 0x176   : > { %1494 = vst [vmem:[#allocation3 + $0x460] sm:$0xf] %v1430_v36  ;;  %v5210_v22 = vpop.f32.mrf.mxu3  ;;  %v2431_v42 = vrot.slane %v2332_v50, 5  ;;  %v2718_v61 = vrot.slane %v2716_v3, 4  ;;  %v2430_v20 = vrot.slane %v2428_v44, 4  ;;  %v2721_v19 = vrot.slane %v2719_v15, 5 }
 0x177   : > { %928 = vst [vmem:[#allocation2 + $0xc4] sm:$0xf] %v764_v1  ;;  %v5211_v30 = vadd.f32 %v5210_v22, %v5122_v47  ;;  %v2429_v28 = vsel %vm7949_vm11, %v5993_v11, %v2428_v44  ;;  %v8493_v52 = vld [vmem:[#allocation2 + $0x1c] sm:$0xf]  ;;  %v2725_v63 = vshll.u32 %v2668_v25, 16  ;;  %v2729_v13 = vshrl.u32 %v2668_v25, 16 }
 0x178   : > { %931 = vst [vmem:[#allocation2 + $0xc8] sm:$0x1] %v930_v53  ;;  %v2604_v2 = vld [vmem:[#allocation2 + $0x1c] sm:$0xf]  ;;  %v2432_v8 = vsel %vm7949_vm11, %v2430_v20, %v2431_v42  ;;  %v2722_v14 = vor.u32 %v2721_v19, %v2718_v61  ;;  %v2735_v49 = vshll.u32 %v2669_v59, 16  ;;  %v5036_v23 = vadd.f32 %v5035_v48, %v8142_v6 }
 0x179   : > { %2570 = vst [vmem:[#allocation3 + $0x14] sm:$0xf] %v2429_v28  ;;  %v5299_v54 = vpop.f32.mrf.mxu0  ;;  %5163 = vmatmul.bf16.gmra.mxu2 %v6540_v21  ;;  %v6547_v16 = vld [vmem:[#allocation3 + $0x400] sm:$0xf]  ;;  %v2727_v29 = vrot.slane %v2725_v63, 5  ;;  %v3261_v3 = vrot.slane %v8493_v52, 5 }
 0x17a   : > { %v5037_v26 = vpop.f32.mrf.mxu1  ;;  %2571 = vst [vmem:[#allocation3 + $0x38] sm:$0xf] %v2432_v8  ;;  %v8497_v24 = vadd.f32 %v5299_v54, %v5211_v30  ;;  %v2723_v36 = vrot.slane %v2722_v14, 4  ;;  %v7028_v39 = vld [vmem:[#allocation3 + $0x43c] sm:$0xf]  ;;  %v2731_v53 = vrot.slane %v2729_v13, 4 }
 0x17b   : > { %5252 = vmatmul.bf16.gmra.mxu3 %v6544_v55  ;;  %2636 = vst [vmem:[#allocation3 + $0x3c] sm:$0xf] %v2604_v2  ;;  %v1800_v37 = vld [vmem:[#allocation2 + $0xc0] sm:$0xf]  ;;  %v2737_v12 = vrot.slane %v2735_v49, 5 }
 0x17c   : > { %v7025_v57 = vld [vmem:[#allocation3 + $0x420] sm:$0xf0]  ;;  %v5124_v45 = vpop.f32.mrf.mxu2  ;;  %v1879_v21 = vld [vmem:[#allocation2 + $0xc0] sm:$0xf]  ;;  %1832 = vst [vmem:[#allocation3 + $0x444] sm:$0xf] %v1800_v37  ;;  %v2728_v25 = vsel %vm7958_vm12, %v2723_v36, %v2727_v29  ;;  %v2732_v22 = vor.u32 %v2731_v53, %v2727_v29 }
 0x17d   : > { %v6569_v15 = vld [vmem:[#allocation3 + $0x45c] sm:$0xf0]  ;;  %v5125_v50 = vadd.f32 %v5124_v45, %v5036_v23  ;;  %v2243_v11 = vshrl.u32 %v1879_v21, 16  ;;  %v2246_v44 = vshll.u32 %v1879_v21, 16  ;;  %v6548_v30 = vor.u32 %v7025_v57, %v6547_v16  ;;  %v7033_v54 = vld [vmem:[#allocation3 + $0x460] sm:$0xf0] }
 0x17e   : > { %v1801_v47 = vld [vmem:[#allocation2 + $0xc4] sm:$0xf]  ;;  %v5213_v6 = vpop.f32.mrf.mxu3  ;;  %v2733_v19 = vrot.slane %v2732_v22, 4  ;;  %v6572_v31 = vor.u32 %v7028_v39, %v6569_v15  ;;  %v6575_v2 = vld [vmem:[#allocation3 + $0x440] sm:$0xf]  ;;  %v3263_v36 = vrot.slane %v3261_v3, 4  ;;  %v5038_v16 = vadd.f32 %v5037_v26, %v8157_v34 }
 0x17f   : > { %v1880_v1 = vld [vmem:[#allocation2 + $0xc4] sm:$0xf]  ;;  %1833 = vst [vmem:[#allocation3 + $0x468] sm:$0xf] %v1801_v47  ;;  %v1881_v48 = vld [vmem:[#allocation2 + $0xc8] sm:$0x1]  ;;  %v5214_v55 = vadd.f32 %v5213_v6, %v5125_v50  ;;  %v6576_v21 = vor.u32 %v7033_v54, %v6575_v2 }
 0x180   : > { %v2252_v42 = vshll.u32 %v1880_v1, 16  ;;  %v2256_v59 = vshrl.u32 %v1880_v1, 16  ;;  %v2262_v61 = vshll.u32 %v1881_v48, 16  ;;  %v2245_v28 = vrot.slane %v2243_v11, 4  ;;  %3131 = vst [vmem:[#allocation3 + $0x1c] sm:$0xf] %v2728_v25 }
 0x181   : > { %v2248_v20 = vrot.slane %v2246_v44, 5  ;;  %v5302_v52 = vpop.f32.mrf.mxu0  ;;  %v2738_v49 = vsel %vm7958_vm12, %v2733_v19, %v2737_v12  ;;  %v3163_v23 = vld [vmem:[#allocation2 + $0x18] sm:$0xe]  ;;  %v3165_v39 = vld [vmem:[#allocation2 + $0x20] sm:$0x1] }
 0x182   : > { %v2254_v8 = vrot.slane %v2252_v42, 5  ;;  %v2258_v14 = vrot.slane %v2256_v59, 4  ;;  %v5040_v63 = vpop.f32.mrf.mxu1  ;;  %v8505_v29 = vadd.f32 %v5302_v52, %v5214_v55  ;;  %v2264_v45 = vrot.slane %v2262_v61, 5  ;;  %3132 = vst [vmem:[#allocation3 + $0x40] sm:$0xf] %v2738_v49 }
 0x183   : > { %v2249_v13 = vor.u32 %v2248_v20, %v2245_v28  ;;  %v6009_v15 = vrot.slane %v3163_v23, 9  ;;  %v7029_v53 = vld [vmem:[#allocation3 + $0x444] sm:$0xf]  ;;  %v3264_v47 = vrot.slane %v3165_v39, 5  ;;  %v2333_v1 = vld [vmem:[#allocation2 + $0x18] sm:$0xe]  ;;  %v5041_v49 = vadd.f32 %v5040_v63, %v8176_v18 }
 0x184   : > { %v2259_v57 = vor.u32 %v2258_v14, %v2254_v8  ;;  %5341 = vmatmul.bf16.gmra.mxu0 %v6548_v30  ;;  %v5126_v37 = vpop.f32.mrf.mxu2  ;;  %v2334_v34 = vld [vmem:[#allocation2 + $0x1c] sm:$0xf]  ;;  %v5994_v26 = vrot.slane %v2333_v1, 9  ;;  %v2335_v55 = vld [vmem:[#allocation2 + $0x20] sm:$0x1] }
 0x185   : > { %v2250_v50 = vrot.slane %v2249_v13, 4  ;;  %v5127_v12 = vadd.f32 %v5126_v37, %v5038_v16  ;;  %5079 = vmatmul.bf16.gmra.mxu1 %v6572_v31  ;;  %v3262_v11 = vsel %vm7949_vm11, %v6009_v15, %v3261_v3  ;;  %v3265_v22 = vsel %vm7949_vm11, %v3263_v36, %v3264_v47  ;;  %v2605_v52 = vld [vmem:[#allocation2 + $0x24] sm:$0xf]  ;;  %v2671_v14 = vld [vmem:[#allocation2 + $0x28] sm:$0xf] }
 0x186   : > { %v6577_v6 = vld [vmem:[#allocation3 + $0x464] sm:$0xf0]  ;;  %v2260_v48 = vrot.slane %v2259_v57, 4  ;;  %v5215_v44 = vpop.f32.mrf.mxu3  ;;  %3403 = vst [vmem:[#allocation3 + $0x20] sm:$0xf] %v3262_v11  ;;  %v2435_v42 = vrot.slane %v2334_v34, 5 }
 0x187   : > { %v2255_v25 = vsel %vm7958_vm12, %v2250_v50, %v2254_v8  ;;  %v5216_v59 = vadd.f32 %v5215_v44, %v5127_v12  ;;  %v6580_v61 = vor.u32 %v7029_v53, %v6577_v6  ;;  %v2438_v28 = vrot.slane %v2335_v55, 5  ;;  %3404 = vst [vmem:[#allocation3 + $0x44] sm:$0xf] %v3265_v22  ;;  %v2670_v31 = vld [vmem:[#allocation2 + $0x24] sm:$0xf] }
 0x188   : > { %v2265_v30 = vsel %vm7958_vm12, %v2260_v48, %v2264_v45  ;;  %2328 = vst [vmem:[#allocation3 + $0x448] sm:$0xf] %v2255_v25  ;;  %v2436_v3 = vsel %vm7949_vm11, %v5994_v26, %v2435_v42  ;;  %v2437_v20 = vrot.slane %v2435_v42, 4  ;;  %v2606_v8 = vld [vmem:[#allocation2 + $0x28] sm:$0xf]  ;;  %v2740_v36 = vshrl.u32 %v2670_v31, 16 }
 0x189   : > { %2329 = vst [vmem:[#allocation3 + $0x46c] sm:$0xf] %v2265_v30  ;;  %v5304_v19 = vpop.f32.mrf.mxu0  ;;  %5168 = vmatmul.bf16.gmra.mxu2 %v6576_v21  ;;  %v2672_v23 = vld [vmem:[#allocation2 + $0x2c] sm:$0x1]  ;;  %v2743_v16 = vshll.u32 %v2670_v31, 16  ;;  %v2749_v39 = vshll.u32 %v2671_v14, 16 }
 0x18a   : > { %v5042_v2 = vpop.f32.mrf.mxu1  ;;  %v2439_v54 = vsel %vm7949_vm11, %v2437_v20, %v2438_v28  ;;  %2572 = vst [vmem:[#allocation3 + $0x5c] sm:$0xf] %v2436_v3  ;;  %v8520_v13 = vadd.f32 %v5304_v19, %v5216_v59  ;;  %v6895_v45 = vld [vmem:[#allocation3 + $0x14] sm:$0xf]  ;;  %v2753_v15 = vshrl.u32 %v2671_v14, 16  ;;  %v2759_v37 = vshll.u32 %v2672_v23, 16 }
 0x18b   : > { %5257 = vmatmul.bf16.gmra.mxu3 %v6580_v61  ;;  %2573 = vst [vmem:[#allocation3 + $0x80] sm:$0xf] %v2439_v54  ;;  %v6045_v53 = vld [vmem:[#allocation3 + $0x34] sm:$0xf0]  ;;  %v2742_v50 = vrot.slane %v2740_v36, 4  ;;  %v2745_v47 = vrot.slane %v2743_v16, 5  ;;  %v5043_v36 = vadd.f32 %v5042_v2, %v8207_v43 }
 0x18c   : > { %v5129_v57 = vpop.f32.mrf.mxu2  ;;  %2637 = vst [vmem:[#allocation3 + $0x60] sm:$0xf] %v2605_v52  ;;  %v2751_v6 = vrot.slane %v2749_v39, 5  ;;  %v2755_v18 = vrot.slane %v2753_v15, 4  ;;  %v2761_v63 = vrot.slane %v2759_v37, 5  ;;  %v6048_v30 = vor.u32 %v6895_v45, %v6045_v53 }
 0x18d   : > { %v5130_v21 = vadd.f32 %v5129_v57, %v5041_v49  ;;  %2638 = vst [vmem:[#allocation3 + $0x84] sm:$0xf] %v2606_v8  ;;  %v2746_v34 = vor.u32 %v2745_v47, %v2742_v50  ;;  %v3166_v26 = vld [vmem:[#allocation2 + $0x24] sm:$0xe]  ;;  %v3167_v44 = vld [vmem:[#allocation2 + $0x28] sm:$0xf] }
 0x18e   : > { %v5218_v12 = vpop.f32.mrf.mxu3  ;;  %v2756_v22 = vor.u32 %v2755_v18, %v2751_v6  ;;  %v3168_v55 = vld [vmem:[#allocation2 + $0x2c] sm:$0x1]  ;;  %v6010_v42 = vrot.slane %v3166_v26, 9  ;;  %v3268_v59 = vrot.slane %v3167_v44, 5  ;;  %v6051_v28 = vld [vmem:[#allocation3 + $0x18] sm:$0xf] }
 0x18f   : > { %v6583_v1 = vld [vmem:[#allocation3 + $0x448] sm:$0xf]  ;;  %v5219_v11 = vadd.f32 %v5218_v12, %v5130_v21  ;;  %v6900_v3 = vld [vmem:[#allocation3 + $0x38] sm:$0xf0]  ;;  %v2747_v20 = vrot.slane %v2746_v34, 4  ;;  %v3271_v19 = vrot.slane %v3168_v55, 5 }
 0x190   : > { %v7034_v48 = vld [vmem:[#allocation3 + $0x468] sm:$0xf0]  ;;  %v6896_v31 = vld [vmem:[#allocation3 + $0x1c] sm:$0xf]  ;;  %v2757_v54 = vrot.slane %v2756_v22, 4  ;;  %v3269_v8 = vsel %vm7949_vm11, %v6010_v42, %v3268_v59  ;;  %v3270_v14 = vrot.slane %v3268_v59, 4  ;;  %v6052_v43 = vor.u32 %v6900_v3, %v6051_v28 }
 0x191   : > { %v6584_v25 = vor.u32 %v7034_v48, %v6583_v1  ;;  %v5307_v61 = vpop.f32.mrf.mxu0  ;;  %v2337_v49 = vld [vmem:[#allocation2 + $0x28] sm:$0xf]  ;;  %v2752_v16 = vsel %vm7958_vm12, %v2747_v20, %v2751_v6  ;;  %3405 = vst [vmem:[#allocation3 + $0x68] sm:$0xf] %v3269_v8  ;;  %v2673_v45 = vld [vmem:[#allocation2 + $0x30] sm:$0xf] }
 0x192   : > { %v5045_v52 = vpop.f32.mrf.mxu1  ;;  %v8525_v23 = vadd.f32 %v5307_v61, %v5219_v11  ;;  %v2442_v57 = vrot.slane %v2337_v49, 5  ;;  %v6053_v15 = vld [vmem:[#allocation3 + $0x3c] sm:$0xf0]  ;;  %v2762_v37 = vsel %vm7958_vm12, %v2757_v54, %v2761_v63  ;;  %3133 = vst [vmem:[#allocation3 + $0x64] sm:$0xf] %v2752_v16  ;;  %v3272_v21 = vsel %vm7949_vm11, %v3270_v14, %v3271_v19 }
 0x193   : > { %v2336_v53 = vld [vmem:[#allocation2 + $0x24] sm:$0xe]  ;;  %3134 = vst [vmem:[#allocation3 + $0x88] sm:$0xf] %v2762_v37  ;;  %v2338_v2 = vld [vmem:[#allocation2 + $0x2c] sm:$0x1]  ;;  %v6056_v34 = vor.u32 %v6896_v31, %v6053_v15  ;;  %v5046_v8 = vadd.f32 %v5045_v52, %v8097_v41 }
 0x194   : > { %5346 = vmatmul.bf16.gmra.mxu0 %v6584_v25  ;;  %v5131_v39 = vpop.f32.mrf.mxu2  ;;  %v5995_v47 = vrot.slane %v2336_v53, 9  ;;  %v2444_v1 = vrot.slane %v2442_v57, 4  ;;  %3406 = vst [vmem:[#allocation3 + $0x8c] sm:$0xf] %v3272_v21  ;;  %v2445_v6 = vrot.slane %v2338_v2, 5  ;;  %v2764_v48 = vshrl.u32 %v2673_v45, 16 }
 0x195   : > { %v5132_v50 = vadd.f32 %v5131_v39, %v5043_v36  ;;  %5360 = vmatmul.bf16.vlgmr.msra.gmra.mxu1 %v6048_v30  ;;  %v2674_v18 = vld [vmem:[#allocation2 + $0x34] sm:$0xf]  ;;  %v2607_v26 = vld [vmem:[#allocation2 + $0x30] sm:$0xf]  ;;  %v2675_v25 = vld [vmem:[#allocation2 + $0x38] sm:$0x1] }
 0x196   : > { %v5220_v12 = vpop.f32.mrf.mxu3  ;;  %v2443_v63 = vsel %vm7949_vm11, %v5995_v47, %v2442_v57  ;;  %v2608_v44 = vld [vmem:[#allocation2 + $0x34] sm:$0xf]  ;;  %v2446_v22 = vsel %vm7949_vm11, %v2444_v1, %v2445_v6  ;;  %v2766_v55 = vrot.slane %v2764_v48, 4  ;;  %v2767_v42 = vshll.u32 %v2673_v45, 16  ;;  %2639 = vst [vmem:[#allocation3 + $0xa8] sm:$0xf] %v2607_v26 }
 0x197   : > { %v5221_v11 = vadd.f32 %v5220_v12, %v5132_v50  ;;  %2574 = vst [vmem:[#allocation3 + $0xa4] sm:$0xf] %v2443_v63  ;;  %v2773_v59 = vshll.u32 %v2674_v18, 16  ;;  %v2777_v30 = vshrl.u32 %v2674_v18, 16  ;;  %v2783_v28 = vshll.u32 %v2675_v25, 16 }
 0x198   : > { %2575 = vst [vmem:[#allocation3 + $0xc8] sm:$0xf] %v2446_v22  ;;  %v2769_v20 = vrot.slane %v2767_v42, 5  ;;  %v3169_v31 = vld [vmem:[#allocation2 + $0x30] sm:$0xe] }
 0x199   : > { %v5309_v61 = vpop.f32.mrf.mxu0  ;;  %5449 = vmatmul.bf16.vlgmr.msra.gmra.mxu2 %v6052_v43  ;;  %v2775_v19 = vrot.slane %v2773_v59, 5  ;;  %v6059_v14 = vld [vmem:[#allocation3 + $0x20] sm:$0xf]  ;;  %2640 = vst [vmem:[#allocation3 + $0xcc] sm:$0xf] %v2608_v44  ;;  %v2779_v49 = vrot.slane %v2777_v30, 4 }
 0x19a   : > { %v5047_v3 = vpop.f32.mrf.mxu1  ;;  %v8538_v54 = vadd.f32 %v5309_v61, %v5221_v11  ;;  %v6901_v36 = vld [vmem:[#allocation3 + $0x40] sm:$0xf0]  ;;  %v2770_v57 = vor.u32 %v2769_v20, %v2766_v55  ;;  %v3170_v45 = vld [vmem:[#allocation2 + $0x34] sm:$0xf]  ;;  %v3171_v39 = vld [vmem:[#allocation2 + $0x38] sm:$0x1] }
 0x19b   : > { %5538 = vmatmul.bf16.vlgmr.msra.gmra.mxu3 %v6056_v34  ;;  %v6904_v37 = vld [vmem:[#allocation3 + $0x5c] sm:$0xf]  ;;  %v6081_v21 = vld [vmem:[#allocation3 + $0x7c] sm:$0xf0]  ;;  %v2780_v53 = vor.u32 %v2779_v49, %v2775_v19  ;;  %v2785_v50 = vrot.slane %v2783_v28, 5  ;;  %v6011_v43 = vrot.slane %v3169_v31, 9  ;;  %v6060_v52 = vor.u32 %v6901_v36, %v6059_v14 }
 0x19c   : > { %v5134_v16 = vpop.f32.mrf.mxu2  ;;  %v2771_v47 = vrot.slane %v2770_v57, 4  ;;  %v3275_v1 = vrot.slane %v3170_v45, 5  ;;  %v3278_v12 = vrot.slane %v3171_v39, 5  ;;  %v2676_v41 = vld [vmem:[#allocation2 + $0x3c] sm:$0xf]  ;;  %v6084_v22 = vor.u32 %v6904_v37, %v6081_v21 }
 0x19d   : > { %v5135_v15 = vadd.f32 %v5134_v16, %v5046_v8  ;;  %v2781_v18 = vrot.slane %v2780_v53, 4  ;;  %v2677_v48 = vld [vmem:[#allocation2 + $0x40] sm:$0xf]  ;;  %v2788_v11 = vshrl.u32 %v2676_v41, 16  ;;  %v2791_v44 = vshll.u32 %v2676_v41, 16 }
 0x19e   : > { %v5223_v2 = vpop.f32.mrf.mxu3  ;;  %v2776_v34 = vsel %vm7958_vm12, %v2771_v47, %v2775_v19  ;;  %v3276_v63 = vsel %vm7949_vm11, %v6011_v43, %v3275_v1  ;;  %v3277_v26 = vrot.slane %v3275_v1, 4  ;;  %v6087_v55 = vld [vmem:[#allocation3 + $0x60] sm:$0xf]  ;;  %v6909_v42 = vld [vmem:[#allocation3 + $0x80] sm:$0xf0]  ;;  %v2797_v8 = vshll.u32 %v2677_v48, 16 }
 0x19f   : > { %v5224_v6 = vadd.f32 %v5223_v2, %v5135_v15  ;;  %v2786_v59 = vsel %vm7958_vm12, %v2781_v18, %v2785_v50  ;;  %3135 = vst [vmem:[#allocation3 + $0xac] sm:$0xf] %v2776_v34  ;;  %v6905_v30 = vld [vmem:[#allocation3 + $0x64] sm:$0xf]  ;;  %v6089_v28 = vld [vmem:[#allocation3 + $0x84] sm:$0xf0]  ;;  %v5048_v49 = vadd.f32 %v5047_v3, %v8115_v10  ;;  %v6088_v39 = vor.u32 %v6909_v42, %v6087_v55 }
 0x1a0   : > { %3136 = vst [vmem:[#allocation3 + $0xd0] sm:$0xf] %v2786_v59  ;;  %v3279_v20 = vsel %vm7949_vm11, %v3277_v26, %v3278_v12  ;;  %v2340_v19 = vld [vmem:[#allocation2 + $0x34] sm:$0xf]  ;;  %v2790_v31 = vrot.slane %v2788_v11, 4  ;;  %v2793_v57 = vrot.slane %v2791_v44, 5 }
 0x1a1   : > { %v5312_v25 = vpop.f32.mrf.mxu0  ;;  %3407 = vst [vmem:[#allocation3 + $0xb0] sm:$0xf] %v3276_v63  ;;  %v2449_v36 = vrot.slane %v2340_v19, 5  ;;  %v2678_v16 = vld [vmem:[#allocation2 + $0x44] sm:$0x1]  ;;  %v2799_v1 = vrot.slane %v2797_v8, 5 }
 0x1a2   : > { %v5050_v61 = vpop.f32.mrf.mxu1  ;;  %v8549_v14 = vadd.f32 %v5312_v25, %v5224_v6  ;;  %3408 = vst [vmem:[#allocation3 + $0xd4] sm:$0xf] %v3279_v20  ;;  %v2339_v15 = vld [vmem:[#allocation2 + $0x30] sm:$0xe]  ;;  %v2341_v37 = vld [vmem:[#allocation2 + $0x38] sm:$0x1]  ;;  %v2794_v47 = vor.u32 %v2793_v57, %v2790_v31  ;;  %v6092_v6 = vor.u32 %v6905_v30, %v6089_v28 }
 0x1a3   : > { %v5996_v53 = vrot.slane %v2339_v15, 9  ;;  %v2451_v50 = vrot.slane %v2449_v36, 4  ;;  %v2452_v43 = vrot.slane %v2341_v37, 5  ;;  %v2801_v12 = vshrl.u32 %v2677_v48, 16  ;;  %v3172_v3 = vld [vmem:[#allocation2 + $0x3c] sm:$0xe] }
 0x1a4   : > { %5627 = vmatmul.bf16.vlgmr.msra.gmra.mxu0 %v6060_v52  ;;  %v5136_v45 = vpop.f32.mrf.mxu2  ;;  %v2807_v10 = vshll.u32 %v2678_v16, 16  ;;  %v2609_v11 = vld [vmem:[#allocation2 + $0x3c] sm:$0xf]  ;;  %v2610_v34 = vld [vmem:[#allocation2 + $0x40] sm:$0xf]  ;;  %v2795_v26 = vrot.slane %v2794_v47, 4  ;;  %v5051_v20 = vadd.f32 %v5050_v61, %v8140_v4 }
 0x1a5   : > { %v5137_v21 = vadd.f32 %v5136_v45, %v5048_v49  ;;  %5365 = vmatmul.bf16.gmra.mxu1 %v6084_v22  ;;  %v2450_v52 = vsel %vm7949_vm11, %v5996_v53, %v2449_v36  ;;  %v2453_v18 = vsel %vm7949_vm11, %v2451_v50, %v2452_v43  ;;  %v3173_v63 = vld [vmem:[#allocation2 + $0x40] sm:$0xf]  ;;  %v2803_v44 = vrot.slane %v2801_v12, 4  ;;  %v3174_v25 = vld [vmem:[#allocation2 + $0x44] sm:$0x1] }
 0x1a6   : > { %v5225_v2 = vpop.f32.mrf.mxu3  ;;  %2576 = vst [vmem:[#allocation3 + $0xec] sm:$0xf] %v2450_v52  ;;  %v6012_v48 = vrot.slane %v3172_v3, 9  ;;  %v2800_v42 = vsel %vm7958_vm12, %v2795_v26, %v2799_v1  ;;  %v2809_v30 = vrot.slane %v2807_v10, 5  ;;  %v3282_v28 = vrot.slane %v3173_v63, 5 }
 0x1a7   : > { %v5226_v41 = vadd.f32 %v5225_v2, %v5137_v21  ;;  %2577 = vst [vmem:[#allocation3 + $0x110] sm:$0xf] %v2453_v18  ;;  %v2804_v59 = vor.u32 %v2803_v44, %v2799_v1  ;;  %v3285_v19 = vrot.slane %v3174_v25, 5  ;;  %v6095_v57 = vld [vmem:[#allocation3 + $0x68] sm:$0xf] }
 0x1a8   : > { %2641 = vst [vmem:[#allocation3 + $0xf0] sm:$0xf] %v2609_v11  ;;  %v3283_v36 = vsel %vm7949_vm11, %v6012_v48, %v3282_v28  ;;  %v3284_v16 = vrot.slane %v3282_v28, 4  ;;  %v6910_v45 = vld [vmem:[#allocation3 + $0x88] sm:$0xf0] }
 0x1a9   : > { %v5314_v22 = vpop.f32.mrf.mxu0  ;;  %5454 = vmatmul.bf16.gmra.mxu2 %v6088_v39  ;;  %2642 = vst [vmem:[#allocation3 + $0x114] sm:$0xf] %v2610_v34  ;;  %v2805_v49 = vrot.slane %v2804_v59, 4  ;;  %v6913_v37 = vld [vmem:[#allocation3 + $0xa4] sm:$0xf]  ;;  %v6096_v1 = vor.u32 %v6910_v45, %v6095_v57 }
 0x1aa   : > { %v5052_v55 = vpop.f32.mrf.mxu1  ;;  %v8559_v31 = vadd.f32 %v5314_v22, %v5226_v41  ;;  %3137 = vst [vmem:[#allocation3 + $0xf4] sm:$0xf] %v2800_v42  ;;  %v6117_v21 = vld [vmem:[#allocation3 + $0xc4] sm:$0xf0]  ;;  %v3286_v61 = vsel %vm7949_vm11, %v3284_v16, %v3285_v19  ;;  %v2679_v53 = vld [vmem:[#allocation2 + $0x48] sm:$0xf] }
 0x1ab   : > { %5543 = vmatmul.bf16.gmra.mxu3 %v6092_v6  ;;  %3409 = vst [vmem:[#allocation3 + $0xf8] sm:$0xf] %v3283_v36  ;;  %v2810_v4 = vsel %vm7958_vm12, %v2805_v49, %v2809_v30  ;;  %v2680_v43 = vld [vmem:[#allocation2 + $0x4c] sm:$0xf]  ;;  %v2812_v2 = vshrl.u32 %v2679_v53, 16  ;;  %v2815_v47 = vshll.u32 %v2679_v53, 16  ;;  %v6120_v10 = vor.u32 %v6913_v37, %v6117_v21 }
 0x1ac   : > { %v5139_v8 = vpop.f32.mrf.mxu2  ;;  %3138 = vst [vmem:[#allocation3 + $0x118] sm:$0xf] %v2810_v4  ;;  %v6123_v3 = vld [vmem:[#allocation3 + $0xa8] sm:$0xf]  ;;  %v6918_v41 = vld [vmem:[#allocation3 + $0xc8] sm:$0xf0]  ;;  %v5053_v44 = vadd.f32 %v5052_v55, %v8155_v62 }
 0x1ad   : > { %v5140_v39 = vadd.f32 %v5139_v8, %v5051_v20  ;;  %3410 = vst [vmem:[#allocation3 + $0x11c] sm:$0xf] %v3286_v61  ;;  %v2814_v6 = vrot.slane %v2812_v2, 4  ;;  %v2817_v52 = vrot.slane %v2815_v47, 5  ;;  %v2343_v11 = vld [vmem:[#allocation2 + $0x40] sm:$0xf]  ;;  %v6124_v30 = vor.u32 %v6918_v41, %v6123_v3 }
 0x1ae   : > { %v5228_v15 = vpop.f32.mrf.mxu3  ;;  %v2821_v34 = vshll.u32 %v2680_v43, 16  ;;  %v2825_v63 = vshrl.u32 %v2680_v43, 16  ;;  %v6914_v25 = vld [vmem:[#allocation3 + $0xac] sm:$0xf]  ;;  %v2456_v22 = vrot.slane %v2343_v11, 5 }
 0x1af   : > { %v5229_v50 = vadd.f32 %v5228_v15, %v5140_v39  ;;  %v2681_v48 = vld [vmem:[#allocation2 + $0x50] sm:$0x1]  ;;  %v2818_v42 = vor.u32 %v2817_v52, %v2814_v6  ;;  %v6125_v28 = vld [vmem:[#allocation3 + $0xcc] sm:$0xf0]  ;;  %v2342_v20 = vld [vmem:[#allocation2 + $0x3c] sm:$0xe] }
 0x1b0   : > { %v2344_v19 = vld [vmem:[#allocation2 + $0x44] sm:$0x1]  ;;  %v5997_v49 = vrot.slane %v2342_v20, 9  ;;  %v2458_v36 = vrot.slane %v2456_v22, 4  ;;  %v2823_v39 = vrot.slane %v2821_v34, 5  ;;  %v2827_v15 = vrot.slane %v2825_v63, 4 }
 0x1b1   : > { %v5317_v12 = vpop.f32.mrf.mxu0  ;;  %v2459_v16 = vrot.slane %v2344_v19, 5  ;;  %v2819_v45 = vrot.slane %v2818_v42, 4  ;;  %v2831_v62 = vshll.u32 %v2681_v48, 16  ;;  %v3176_v55 = vld [vmem:[#allocation2 + $0x4c] sm:$0xf]  ;;  %v6128_v21 = vor.u32 %v6914_v25, %v6125_v28 }
 0x1b2   : > { %v5055_v18 = vpop.f32.mrf.mxu1  ;;  %v8567_v26 = vadd.f32 %v5317_v12, %v5229_v50  ;;  %v2457_v4 = vsel %vm7949_vm11, %v5997_v49, %v2456_v22  ;;  %v2611_v53 = vld [vmem:[#allocation2 + $0x48] sm:$0xf]  ;;  %v2612_v50 = vld [vmem:[#allocation2 + $0x4c] sm:$0xf]  ;;  %v2828_v43 = vor.u32 %v2827_v15, %v2823_v39  ;;  %v3289_v41 = vrot.slane %v3176_v55, 5 }
 0x1b3   : > { %v2460_v61 = vsel %vm7949_vm11, %v2458_v36, %v2459_v16  ;;  %2578 = vst [vmem:[#allocation3 + $0x134] sm:$0xf] %v2457_v4  ;;  %v2833_v2 = vrot.slane %v2831_v62, 5  ;;  %v3175_v47 = vld [vmem:[#allocation2 + $0x48] sm:$0xe]  ;;  %v2824_v12 = vsel %vm7958_vm12, %v2819_v45, %v2823_v39  ;;  %v5056_v63 = vadd.f32 %v5055_v18, %v8171_v5 }
 0x1b4   : > { %5632 = vmatmul.bf16.gmra.mxu0 %v6096_v1  ;;  %v5141_v59 = vpop.f32.mrf.mxu2  ;;  %2579 = vst [vmem:[#allocation3 + $0x158] sm:$0xf] %v2460_v61  ;;  %v6013_v3 = vrot.slane %v3175_v47, 9  ;;  %v2829_v52 = vrot.slane %v2828_v43, 4  ;;  %v3291_v25 = vrot.slane %v3289_v41, 4 }
 0x1b5   : > { %v5142_v8 = vadd.f32 %v5141_v59, %v5053_v44  ;;  %5370 = vmatmul.bf16.gmra.mxu1 %v6120_v10  ;;  %v3177_v10 = vld [vmem:[#allocation2 + $0x50] sm:$0x1]  ;;  %2643 = vst [vmem:[#allocation3 + $0x138] sm:$0xf] %v2611_v53  ;;  %v6131_v22 = vld [vmem:[#allocation3 + $0xb0] sm:$0xf] }
 0x1b6   : > { %v5230_v57 = vpop.f32.mrf.mxu3  ;;  %v3292_v11 = vrot.slane %v3177_v10, 5  ;;  %2644 = vst [vmem:[#allocation3 + $0x15c] sm:$0xf] %v2612_v50  ;;  %v3290_v44 = vsel %vm7949_vm11, %v6013_v3, %v3289_v41  ;;  %v2834_v42 = vsel %vm7958_vm12, %v2829_v52, %v2833_v2  ;;  %v6919_v59 = vld [vmem:[#allocation3 + $0xd0] sm:$0xf0] }
 0x1b7   : > { %v5231_v37 = vadd.f32 %v5230_v57, %v5142_v8  ;;  %3139 = vst [vmem:[#allocation3 + $0x13c] sm:$0xf] %v2824_v12  ;;  %v6922_v28 = vld [vmem:[#allocation3 + $0xec] sm:$0xf]  ;;  %v6153_v18 = vld [vmem:[#allocation3 + $0x10c] sm:$0xf0]  ;;  %v6132_v57 = vor.u32 %v6919_v59, %v6131_v22 }
 0x1b8   : > { %3140 = vst [vmem:[#allocation3 + $0x160] sm:$0xf] %v2834_v42  ;;  %v3293_v20 = vsel %vm7949_vm11, %v3291_v25, %v3292_v11  ;;  %v2682_v19 = vld [vmem:[#allocation2 + $0x54] sm:$0xf]  ;;  %v2683_v49 = vld [vmem:[#allocation2 + $0x58] sm:$0xf]  ;;  %v6156_v39 = vor.u32 %v6922_v28, %v6153_v18 }
 0x1b9   : > { %v5319_v1 = vpop.f32.mrf.mxu0  ;;  %5459 = vmatmul.bf16.gmra.mxu2 %v6124_v30  ;;  %3411 = vst [vmem:[#allocation3 + $0x140] sm:$0xf] %v3290_v44  ;;  %v2836_v36 = vshrl.u32 %v2682_v19, 16  ;;  %v2839_v16 = vshll.u32 %v2682_v19, 16  ;;  %v6159_v15 = vld [vmem:[#allocation3 + $0xf0] sm:$0xf] }
 0x1ba   : > { %v5057_v6 = vpop.f32.mrf.mxu1  ;;  %v8576_v34 = vadd.f32 %v5319_v1, %v5231_v37  ;;  %3412 = vst [vmem:[#allocation3 + $0x164] sm:$0xf] %v3293_v20  ;;  %v2346_v4 = vld [vmem:[#allocation2 + $0x4c] sm:$0xf]  ;;  %v2845_v61 = vshll.u32 %v2683_v49, 16  ;;  %v2849_v53 = vshrl.u32 %v2683_v49, 16 }
 0x1bb   : > { %5548 = vmatmul.bf16.gmra.mxu3 %v6128_v21  ;;  %v2838_v62 = vrot.slane %v2836_v36, 4  ;;  %v2841_v55 = vrot.slane %v2839_v16, 5  ;;  %v6927_v21 = vld [vmem:[#allocation3 + $0x110] sm:$0xf0]  ;;  %v5058_v43 = vadd.f32 %v5057_v6, %v8191_v9  ;;  %v6161_v47 = vld [vmem:[#allocation3 + $0x114] sm:$0xf0] }
 0x1bc   : > { %v5144_v48 = vpop.f32.mrf.mxu2  ;;  %v6923_v2 = vld [vmem:[#allocation3 + $0xf4] sm:$0xf]  ;;  %v2463_v1 = vrot.slane %v2346_v4, 5  ;;  %v2345_v3 = vld [vmem:[#allocation2 + $0x48] sm:$0xe]  ;;  %v2847_v59 = vrot.slane %v2845_v61, 5 }
 0x1bd   : > { %v5145_v30 = vadd.f32 %v5144_v48, %v5056_v63  ;;  %v2842_v12 = vor.u32 %v2841_v55, %v2838_v62  ;;  %v2347_v41 = vld [vmem:[#allocation2 + $0x50] sm:$0x1]  ;;  %v2684_v52 = vld [vmem:[#allocation2 + $0x5c] sm:$0x1]  ;;  %v6160_v63 = vor.u32 %v6927_v21, %v6159_v15  ;;  %v5998_v44 = vrot.slane %v2345_v3, 9 }
 0x1be   : > { %v5233_v5 = vpop.f32.mrf.mxu3  ;;  %v2465_v25 = vrot.slane %v2463_v1, 4  ;;  %v2466_v48 = vrot.slane %v2347_v41, 5  ;;  %v3179_v9 = vld [vmem:[#allocation2 + $0x58] sm:$0xf]  ;;  %v6164_v28 = vor.u32 %v6923_v2, %v6161_v47  ;;  %v2855_v19 = vshll.u32 %v2684_v52, 16 }
 0x1bf   : > { %v5234_v8 = vadd.f32 %v5233_v5, %v5145_v30  ;;  %v2843_v42 = vrot.slane %v2842_v12, 4  ;;  %v2851_v30 = vrot.slane %v2849_v53, 4  ;;  %v2464_v20 = vsel %vm7949_vm11, %v5998_v44, %v2463_v1  ;;  %v2613_v5 = vld [vmem:[#allocation2 + $0x54] sm:$0xf]  ;;  %v2614_v18 = vld [vmem:[#allocation2 + $0x58] sm:$0xf] }
 0x1c0   : > { %2580 = vst [vmem:[#allocation3 + $0x17c] sm:$0xf] %v2464_v20  ;;  %v3178_v16 = vld [vmem:[#allocation2 + $0x54] sm:$0xe]  ;;  %v3296_v62 = vrot.slane %v3179_v9, 5 }
 0x1c1   : > { %v5322_v45 = vpop.f32.mrf.mxu0  ;;  %v2848_v49 = vsel %vm7958_vm12, %v2843_v42, %v2847_v59  ;;  %v2852_v36 = vor.u32 %v2851_v30, %v2847_v59  ;;  %v6014_v15 = vrot.slane %v3178_v16, 9  ;;  %2645 = vst [vmem:[#allocation3 + $0x180] sm:$0xf] %v2613_v5  ;;  %v6167_v47 = vld [vmem:[#allocation3 + $0xf8] sm:$0xf] }
 0x1c2   : > { %v5060_v37 = vpop.f32.mrf.mxu1  ;;  %v8585_v50 = vadd.f32 %v5322_v45, %v5234_v8  ;;  %v2467_v8 = vsel %vm7949_vm11, %v2465_v25, %v2466_v48  ;;  %2646 = vst [vmem:[#allocation3 + $0x1a4] sm:$0xf] %v2614_v18  ;;  %v3298_v2 = vrot.slane %v3296_v62, 4  ;;  %v6931_v41 = vld [vmem:[#allocation3 + $0x134] sm:$0xf] }
 0x1c3   : > { %2581 = vst [vmem:[#allocation3 + $0x1a0] sm:$0xf] %v2467_v8  ;;  %v2853_v4 = vrot.slane %v2852_v36, 4  ;;  %v5061_v53 = vadd.f32 %v5060_v37, %v8213_v38  ;;  %v6189_v37 = vld [vmem:[#allocation3 + $0x154] sm:$0xf0] }
 0x1c4   : > { %5637 = vmatmul.bf16.gmra.mxu0 %v6132_v57  ;;  %v5146_v10 = vpop.f32.mrf.mxu2  ;;  %v3180_v57 = vld [vmem:[#allocation2 + $0x5c] sm:$0x1]  ;;  %3141 = vst [vmem:[#allocation3 + $0x184] sm:$0xf] %v2848_v49  ;;  %v2686_v44 = vld [vmem:[#allocation2 + $0x64] sm:$0xf]  ;;  %v6192_v59 = vor.u32 %v6931_v41, %v6189_v37 }
 0x1c5   : > { %v5147_v11 = vadd.f32 %v5146_v10, %v5058_v43  ;;  %5375 = vmatmul.bf16.gmra.mxu1 %v6156_v39  ;;  %v2857_v39 = vrot.slane %v2855_v19, 5  ;;  %v3299_v55 = vrot.slane %v3180_v57, 5  ;;  %v3297_v43 = vsel %vm7949_vm11, %v6014_v15, %v3296_v62  ;;  %v6928_v10 = vld [vmem:[#allocation3 + $0x118] sm:$0xf0]  ;;  %v6195_v30 = vld [vmem:[#allocation3 + $0x138] sm:$0xf] }
 0x1c6   : > { %v5235_v22 = vpop.f32.mrf.mxu3  ;;  %3413 = vst [vmem:[#allocation3 + $0x188] sm:$0xf] %v3297_v43  ;;  %v6168_v48 = vor.u32 %v6928_v10, %v6167_v47  ;;  %v6936_v20 = vld [vmem:[#allocation3 + $0x158] sm:$0xf0]  ;;  %v2349_v5 = vld [vmem:[#allocation2 + $0x58] sm:$0xf] }
 0x1c7   : > { %v5236_v6 = vadd.f32 %v5235_v22, %v5147_v11  ;;  %v2858_v12 = vsel %vm7958_vm12, %v2853_v4, %v2857_v39  ;;  %v3300_v52 = vsel %vm7949_vm11, %v3298_v2, %v3299_v55  ;;  %v2685_v11 = vld [vmem:[#allocation2 + $0x60] sm:$0xf]  ;;  %v2869_v18 = vshll.u32 %v2686_v44, 16  ;;  %v8864_v49 = vld [vmem:[#allocation11_spill] sm:$0xff]  ;;  %v6197_v57 = vld [vmem:[#allocation3 + $0x15c] sm:$0xf0] }
 0x1c8   : > { %3142 = vst [vmem:[#allocation3 + $0x1a8] sm:$0xf] %v2858_v12  ;;  %v2860_v25 = vshrl.u32 %v2685_v11, 16  ;;  %v2863_v22 = vshll.u32 %v2685_v11, 16  ;;  %v2873_v19 = vshrl.u32 %v2686_v44, 16  ;;  %v6196_v43 = vor.u32 %v6936_v20, %v6195_v30 }
 0x1c9   : > { %v5324_v45 = vpop.f32.mrf.mxu0  ;;  %5464 = vmatmul.bf16.gmra.mxu2 %v6160_v63  ;;  %3414 = vst [vmem:[#allocation3 + $0x1ac] sm:$0xf] %v3300_v52  ;;  %v6932_v16 = vld [vmem:[#allocation3 + $0x13c] sm:$0xf]  ;;  %v2350_v55 = vld [vmem:[#allocation2 + $0x5c] sm:$0x1] }
 0x1ca   : > { %v5062_v21 = vpop.f32.mrf.mxu1  ;;  %v8594_v61 = vadd.f32 %v5324_v45, %v5236_v6  ;;  %v2862_v9 = vrot.slane %v2860_v25, 4  ;;  %v2865_v6 = vrot.slane %v2863_v22, 5  ;;  %v2470_v45 = vrot.slane %v2349_v5, 5  ;;  %v2348_v62 = vld [vmem:[#allocation2 + $0x54] sm:$0xe] }
 0x1cb   : > { %5553 = vmatmul.bf16.gmra.mxu3 %v6164_v28  ;;  %v5063_v36 = vadd.f32 %v5062_v21, %v8864_v49  ;;  %v2687_v4 = vld [vmem:[#allocation2 + $0x68] sm:$0x1]  ;;  %v5999_v2 = vrot.slane %v2348_v62, 9  ;;  %v2473_v12 = vrot.slane %v2350_v55, 5  ;;  %v2875_v41 = vrot.slane %v2873_v19, 4 }
 0x1cc   : > { %v5149_v1 = vpop.f32.mrf.mxu2  ;;  %v2866_v39 = vor.u32 %v2865_v6, %v2862_v9  ;;  %v2472_v47 = vrot.slane %v2470_v45, 4  ;;  %v3182_v21 = vld [vmem:[#allocation2 + $0x64] sm:$0xf]  ;;  %v2615_v11 = vld [vmem:[#allocation2 + $0x60] sm:$0xf]  ;;  %v2879_v44 = vshll.u32 %v2687_v4, 16 }
 0x1cd   : > { %v5150_v3 = vadd.f32 %v5149_v1, %v5061_v53  ;;  %v2471_v37 = vsel %vm7949_vm11, %v5999_v2, %v2470_v45  ;;  %v3303_v20 = vrot.slane %v3182_v21, 5  ;;  %2647 = vst [vmem:[#allocation3 + $0x1c8] sm:$0xf] %v2615_v11  ;;  %v6937_v55 = vld [vmem:[#allocation3 + $0x160] sm:$0xf0] }
 0x1ce   : > { %v5238_v38 = vpop.f32.mrf.mxu3  ;;  %v2867_v10 = vrot.slane %v2866_v39, 4  ;;  %v2474_v25 = vsel %vm7949_vm11, %v2472_v47, %v2473_v12  ;;  %2582 = vst [vmem:[#allocation3 + $0x1c4] sm:$0xf] %v2471_v37  ;;  %v2881_v9 = vrot.slane %v2879_v44, 5  ;;  %v6203_v39 = vld [vmem:[#allocation3 + $0x140] sm:$0xf] }
 0x1cf   : > { %v5239_v63 = vadd.f32 %v5238_v38, %v5150_v3  ;;  %v2871_v3 = vrot.slane %v2869_v18, 5  ;;  %v6200_v38 = vor.u32 %v6932_v16, %v6197_v57  ;;  %2583 = vst [vmem:[#allocation3 + $0x1e8] sm:$0xf] %v2474_v25  ;;  %v3305_v45 = vrot.slane %v3303_v20, 4  ;;  %v6225_v2 = vld [vmem:[#allocation3 + $0x19c] sm:$0xf0] }
 0x1d0   : > { %v2688_v47 = vld [vmem:[#allocation2 + $0x6c] sm:$0xf]  ;;  %v2689_v12 = vld [vmem:[#allocation2 + $0x70] sm:$0xf]  ;;  %v6945_v44 = vld [vmem:[#allocation3 + $0x1a0] sm:$0xf0] }
 0x1d1   : > { %v5327_v42 = vpop.f32.mrf.mxu0  ;;  %v2872_v22 = vsel %vm7958_vm12, %v2867_v10, %v2871_v3  ;;  %v2884_v10 = vshrl.u32 %v2688_v47, 16  ;;  %v2352_v25 = vld [vmem:[#allocation2 + $0x64] sm:$0xf] }
 0x1d2   : > { %v5065_v28 = vpop.f32.mrf.mxu1  ;;  %v8603_v8 = vadd.f32 %v5327_v42, %v5239_v63  ;;  %v2616_v63 = vld [vmem:[#allocation2 + $0x64] sm:$0xf]  ;;  %v3181_v42 = vld [vmem:[#allocation2 + $0x60] sm:$0xe]  ;;  %3143 = vst [vmem:[#allocation3 + $0x1cc] sm:$0xf] %v2872_v22 }
 0x1d3   : > { %v6015_v6 = vrot.slane %v3181_v42, 9  ;;  %2648 = vst [vmem:[#allocation3 + $0x1ec] sm:$0xf] %v2616_v63  ;;  %v2886_v37 = vrot.slane %v2884_v10, 4  ;;  %v2893_v22 = vshll.u32 %v2689_v12, 16 }
 0x1d4   : > { %5642 = vmatmul.bf16.gmra.mxu0 %v6168_v48  ;;  %v5151_v15 = vpop.f32.mrf.mxu2  ;;  %v2876_v48 = vor.u32 %v2875_v41, %v2871_v3  ;;  %v2887_v3 = vshll.u32 %v2688_v47, 16  ;;  %v6204_v41 = vor.u32 %v6937_v55, %v6203_v39  ;;  %v2618_v10 = vld [vmem:[#allocation2 + $0x70] sm:$0xf] }
 0x1d5   : > { %v5152_v53 = vadd.f32 %v5151_v15, %v5063_v36  ;;  %5380 = vmatmul.bf16.gmra.mxu1 %v6192_v59  ;;  %v3183_v59 = vld [vmem:[#allocation2 + $0x68] sm:$0x1]  ;;  %v8865_v36 = vld [vmem:[#allocation4_spill] sm:$0xff]  ;;  %v3304_v57 = vsel %vm7949_vm11, %v6015_v6, %v3303_v20  ;;  %v6233_v6 = vld [vmem:[#allocation3 + $0x1a4] sm:$0xf0]  ;;  %v2477_v20 = vrot.slane %v2352_v25, 5 }
 0x1d6   : > { %v5240_v1 = vpop.f32.mrf.mxu3  ;;  %v3306_v5 = vrot.slane %v3183_v59, 5  ;;  %v2877_v19 = vrot.slane %v2876_v48, 4  ;;  %v5066_v16 = vadd.f32 %v5065_v28, %v8865_v36  ;;  %3415 = vst [vmem:[#allocation3 + $0x1d0] sm:$0xf] %v3304_v57  ;;  %v2889_v11 = vrot.slane %v2887_v3, 5  ;;  %v8866_v59 = vld [vmem:[#allocation5_spill] sm:$0xff] }
 0x1d7   : > { %v5241_v52 = vadd.f32 %v5240_v1, %v5152_v53  ;;  %v6940_v53 = vld [vmem:[#allocation3 + $0x17c] sm:$0xf]  ;;  %v2897_v48 = vshrl.u32 %v2689_v12, 16  ;;  %v2351_v36 = vld [vmem:[#allocation2 + $0x60] sm:$0xe] }
 0x1d8   : > { %v2882_v62 = vsel %vm7958_vm12, %v2877_v19, %v2881_v9  ;;  %v6941_v9 = vld [vmem:[#allocation3 + $0x184] sm:$0xf]  ;;  %v2690_v57 = vld [vmem:[#allocation2 + $0x74] sm:$0x1]  ;;  %v2617_v12 = vld [vmem:[#allocation2 + $0x6c] sm:$0xf] }
 0x1d9   : > { %v5329_v30 = vpop.f32.mrf.mxu0  ;;  %5469 = vmatmul.bf16.gmra.mxu2 %v6196_v43  ;;  %3144 = vst [vmem:[#allocation3 + $0x1f0] sm:$0xf] %v2882_v62  ;;  %v3307_v43 = vsel %vm7949_vm11, %v3305_v45, %v3306_v5  ;;  %v2890_v5 = vor.u32 %v2889_v11, %v2886_v37  ;;  %v2479_v62 = vrot.slane %v2477_v20, 4  ;;  %v6236_v47 = vor.u32 %v6941_v9, %v6233_v6  ;;  %v3186_v37 = vld [vmem:[#allocation2 + $0x74] sm:$0x1]  ;;  %v8867_v6 = vld [vmem:[#allocation6_spill] sm:$0xff] }
 0x1da   : > { %v5067_v18 = vpop.f32.mrf.mxu1  ;;  %v8612_v49 = vadd.f32 %v5329_v30, %v5241_v52  ;;  %3416 = vst [vmem:[#allocation3 + $0x1f4] sm:$0xf] %v3307_v43  ;;  %v6228_v52 = vor.u32 %v6940_v53, %v6225_v2  ;;  %v2895_v43 = vrot.slane %v2893_v22, 5  ;;  %v2903_v3 = vshll.u32 %v2690_v57, 16 }
 0x1db   : > { %5558 = vmatmul.bf16.gmra.mxu3 %v6200_v38  ;;  %v6231_v38 = vld [vmem:[#allocation3 + $0x180] sm:$0xf]  ;;  %v5068_v30 = vadd.f32 %v5067_v18, %v8866_v59  ;;  %v2891_v53 = vrot.slane %v2890_v5, 4  ;;  %v3185_v18 = vld [vmem:[#allocation2 + $0x70] sm:$0xf] }
 0x1dc   : > { %v5154_v15 = vpop.f32.mrf.mxu2  ;;  %v6232_v39 = vor.u32 %v6945_v44, %v6231_v38  ;;  %v3184_v38 = vld [vmem:[#allocation2 + $0x6c] sm:$0xe]  ;;  %v2905_v44 = vrot.slane %v2903_v3, 5  ;;  %v3310_v22 = vrot.slane %v3185_v18, 5  ;;  %2649 = vst [vmem:[#allocation3 + $0x210] sm:$0xf] %v2617_v12 }
 0x1dd   : > { %v5155_v4 = vadd.f32 %v5154_v15, %v5066_v16  ;;  %v2353_v16 = vld [vmem:[#allocation2 + $0x68] sm:$0x1]  ;;  %v6000_v15 = vrot.slane %v2351_v36, 9  ;;  %v6016_v25 = vrot.slane %v3184_v38, 9  ;;  %2650 = vst [vmem:[#allocation3 + $0x234] sm:$0xf] %v2618_v10 }
 0x1de   : > { %v5243_v28 = vpop.f32.mrf.mxu3  ;;  %v6239_v36 = vld [vmem:[#allocation3 + $0x188] sm:$0xf] }
 0x1df   : > { %v5244_v1 = vadd.f32 %v5243_v28, %v5155_v4  ;;  %v2480_v4 = vrot.slane %v2353_v16, 5  ;;  %v2899_v28 = vrot.slane %v2897_v48, 4  ;;  %v3313_v48 = vrot.slane %v3186_v37, 5  ;;  %v6267_v12 = vld [vmem:[#allocation3 + $0x1c8] sm:$0xf] }
 0x1e0   : > { %v3311_v5 = vsel %vm7949_vm11, %v6016_v25, %v3310_v22 }
 0x1e1   : > { %v5332_v21 = vpop.f32.mrf.mxu0  ;;  %3417 = vst [vmem:[#allocation3 + $0x218] sm:$0xf] %v3311_v5  ;;  %v2354_v5 = vld [vmem:[#allocation2 + $0x6c] sm:$0xe] }
 0x1e2   : > { %v5070_v63 = vpop.f32.mrf.mxu1  ;;  %v8621_v42 = vadd.f32 %v5332_v21, %v5244_v1  ;;  %v2478_v1 = vsel %vm7949_vm11, %v6000_v15, %v2477_v20  ;;  %v2896_v21 = vsel %vm7958_vm12, %v2891_v53, %v2895_v43  ;;  %v6949_v15 = vld [vmem:[#allocation3 + $0x1c4] sm:$0xf] }
 0x1e3   : > { %2584 = vst [vmem:[#allocation3 + $0x20c] sm:$0xf] %v2478_v1  ;;  %v5071_v20 = vadd.f32 %v5070_v63, %v8867_v6 }
 0x1e4   : > { %5647 = vmatmul.bf16.gmra.mxu0 %v6204_v41  ;;  %v5156_v19 = vpop.f32.mrf.mxu2  ;;  %v2481_v41 = vsel %vm7949_vm11, %v2479_v62, %v2480_v4  ;;  %3145 = vst [vmem:[#allocation3 + $0x214] sm:$0xf] %v2896_v21  ;;  %v2691_v4 = vld [vmem:[#allocation2 + $0x78] sm:$0xf]  ;;  %v6954_v21 = vld [vmem:[#allocation3 + $0x1e8] sm:$0xf0] }
 0x1e5   : > { %v5157_v45 = vadd.f32 %v5156_v19, %v5068_v30  ;;  %5385 = vmatmul.bf16.gmra.mxu1 %v6228_v52  ;;  %v2900_v52 = vor.u32 %v2899_v28, %v2895_v43  ;;  %2585 = vst [vmem:[#allocation3 + $0x230] sm:$0xf] %v2481_v41  ;;  %v3312_v19 = vrot.slane %v3310_v22, 4  ;;  %v2692_v43 = vld [vmem:[#allocation2 + $0x7c] sm:$0xf]  ;;  %v2908_v28 = vshrl.u32 %v2691_v4, 16 }
 0x1e6   : > { %v5245_v55 = vpop.f32.mrf.mxu3  ;;  %v2911_v18 = vshll.u32 %v2691_v4, 16  ;;  %v2917_v38 = vshll.u32 %v2692_v43, 16  ;;  %v2921_v37 = vshrl.u32 %v2692_v43, 16  ;;  %v6950_v22 = vld [vmem:[#allocation3 + $0x1cc] sm:$0xf] }
 0x1e7   : > { %v5246_v2 = vadd.f32 %v5245_v55, %v5157_v45  ;;  %v2901_v30 = vrot.slane %v2900_v52, 4  ;;  %v6946_v45 = vld [vmem:[#allocation3 + $0x1a8] sm:$0xf0]  ;;  %v3314_v62 = vsel %vm7949_vm11, %v3312_v19, %v3313_v48  ;;  %v6261_v55 = vld [vmem:[#allocation3 + $0x1e4] sm:$0xf0]  ;;  %v2910_v10 = vrot.slane %v2908_v28, 4 }
 0x1e8   : > { %3418 = vst [vmem:[#allocation3 + $0x23c] sm:$0xf] %v3314_v62  ;;  %v6264_v1 = vor.u32 %v6949_v15, %v6261_v55  ;;  %v2913_v3 = vrot.slane %v2911_v18, 5  ;;  %v2355_v52 = vld [vmem:[#allocation2 + $0x70] sm:$0xf]  ;;  %v2919_v55 = vrot.slane %v2917_v38, 5 }
 0x1e9   : > { %v5334_v11 = vpop.f32.mrf.mxu0  ;;  %5474 = vmatmul.bf16.gmra.mxu2 %v6232_v39  ;;  %v2906_v57 = vsel %vm7958_vm12, %v2901_v30, %v2905_v44  ;;  %v8868_v44 = vld [vmem:[#allocation7_spill] sm:$0xff]  ;;  %v6269_v48 = vld [vmem:[#allocation3 + $0x1ec] sm:$0xf0]  ;;  %v2484_v30 = vrot.slane %v2355_v52, 5  ;;  %v2923_v4 = vrot.slane %v2921_v37, 4 }
 0x1ea   : > { %v5072_v59 = vpop.f32.mrf.mxu1  ;;  %v8630_v9 = vadd.f32 %v5334_v11, %v5246_v2  ;;  %3146 = vst [vmem:[#allocation3 + $0x238] sm:$0xf] %v2906_v57  ;;  %v6240_v2 = vor.u32 %v6946_v45, %v6239_v36  ;;  %v2914_v6 = vor.u32 %v2913_v3, %v2910_v10  ;;  %v2356_v19 = vld [vmem:[#allocation2 + $0x74] sm:$0x1]  ;;  %v2693_v36 = vld [vmem:[#allocation2 + $0x80] sm:$0x1]  ;;  %v6268_v57 = vor.u32 %v6954_v21, %v6267_v12 }
 0x1eb   : > { %5563 = vmatmul.bf16.gmra.mxu3 %v6236_v47  ;;  %v5073_v25 = vadd.f32 %v5072_v59, %v8868_v44  ;;  %v6001_v45 = vrot.slane %v2354_v5, 9  ;;  %v2487_v62 = vrot.slane %v2356_v19, 5  ;;  %v3188_v59 = vld [vmem:[#allocation2 + $0x7c] sm:$0xf]  ;;  %v6272_v43 = vor.u32 %v6950_v22, %v6269_v48  ;;  %v2619_v18 = vld [vmem:[#allocation2 + $0x78] sm:$0xf] }
 0x1ec   : > { %v5159_v16 = vpop.f32.mrf.mxu2  ;;  %v2924_v10 = vor.u32 %v2923_v4, %v2919_v55  ;;  %v3187_v3 = vld [vmem:[#allocation2 + $0x78] sm:$0xe]  ;;  %v3189_v21 = vld [vmem:[#allocation2 + $0x80] sm:$0x1]  ;;  %v3317_v44 = vrot.slane %v3188_v59, 5 }
 0x1ed   : > { %v5160_v39 = vadd.f32 %v5159_v16, %v5071_v20  ;;  %v2485_v28 = vsel %vm7949_vm11, %v6001_v45, %v2484_v30  ;;  %v6017_v37 = vrot.slane %v3187_v3, 9  ;;  %2651 = vst [vmem:[#allocation3 + $0x258] sm:$0xf] %v2619_v18  ;;  %v6955_v45 = vld [vmem:[#allocation3 + $0x1f0] sm:$0xf0] }
 0x1ee   : > { %v5248_v63 = vpop.f32.mrf.mxu3  ;;  %2586 = vst [vmem:[#allocation3 + $0x254] sm:$0xf] %v2485_v28  ;;  %v2925_v48 = vrot.slane %v2924_v10, 4  ;;  %v3319_v19 = vrot.slane %v3317_v44, 4  ;;  %v2695_v59 = vld [vmem:[#allocation2 + $0x88] sm:$0xf] }
 0x1ef   : > { %v5249_v53 = vadd.f32 %v5248_v63, %v5160_v39  ;;  %v2486_v39 = vrot.slane %v2484_v30, 4  ;;  %v2915_v63 = vrot.slane %v2914_v6, 4  ;;  %v8869_v6 = vld [vmem:[#allocation8_spill] sm:$0xff]  ;;  %v3318_v5 = vsel %vm7949_vm11, %v6017_v37, %v3317_v44  ;;  %v6963_v3 = vld [vmem:[#allocation3 + $0x230] sm:$0xf0]  ;;  %v8870_v44 = vld [vmem:[#allocation9_spill] sm:$0xff] }
 0x1f0   : > { %3419 = vst [vmem:[#allocation3 + $0x260] sm:$0xf] %v3318_v5 }
 0x1f1   : > { %v5337_v47 = vpop.f32.mrf.mxu0  ;;  %v2920_v12 = vsel %vm7958_vm12, %v2915_v63, %v2919_v55  ;;  %v6297_v63 = vld [vmem:[#allocation3 + $0x22c] sm:$0xf0]  ;;  %v2694_v55 = vld [vmem:[#allocation2 + $0x84] sm:$0xf] }
 0x1f2   : > { %v5075_v41 = vpop.f32.mrf.mxu1  ;;  %v8639_v11 = vadd.f32 %v5337_v47, %v5249_v53  ;;  %v2927_v47 = vshll.u32 %v2693_v36, 16  ;;  %v6275_v36 = vld [vmem:[#allocation3 + $0x1d0] sm:$0xf]  ;;  %3147 = vst [vmem:[#allocation3 + $0x25c] sm:$0xf] %v2920_v12 }
 0x1f3   : > { %v6276_v28 = vor.u32 %v6955_v45, %v6275_v36  ;;  %v2357_v36 = vld [vmem:[#allocation2 + $0x78] sm:$0xe] }
 0x1f4   : > { %5652 = vmatmul.bf16.gmra.mxu0 %v6240_v2  ;;  %v5161_v20 = vpop.f32.mrf.mxu2  ;;  %v2620_v2 = vld [vmem:[#allocation2 + $0x7c] sm:$0xf]  ;;  %v2929_v38 = vrot.slane %v2927_v47, 5  ;;  %v6303_v47 = vld [vmem:[#allocation3 + $0x210] sm:$0xf] }
 0x1f5   : > { %v5162_v16 = vadd.f32 %v5161_v20, %v5073_v25  ;;  %5390 = vmatmul.bf16.gmra.mxu1 %v6264_v1  ;;  %v2488_v1 = vsel %vm7949_vm11, %v2486_v39, %v2487_v62  ;;  %v3320_v25 = vrot.slane %v3189_v21, 5  ;;  %v5076_v20 = vadd.f32 %v5075_v41, %v8869_v6  ;;  %2652 = vst [vmem:[#allocation3 + $0x27c] sm:$0xf] %v2620_v2  ;;  %v2358_v21 = vld [vmem:[#allocation2 + $0x7c] sm:$0xf] }
 0x1f6   : > { %v5250_v15 = vpop.f32.mrf.mxu3  ;;  %2587 = vst [vmem:[#allocation3 + $0x278] sm:$0xf] %v2488_v1  ;;  %v6305_v6 = vld [vmem:[#allocation3 + $0x234] sm:$0xf0] }
 0x1f7   : > { %v5251_v53 = vadd.f32 %v5250_v15, %v5162_v16  ;;  %v6958_v15 = vld [vmem:[#allocation3 + $0x20c] sm:$0xf]  ;;  %v3321_v62 = vsel %vm7949_vm11, %v3319_v19, %v3320_v25 }
 0x1f8   : > { %3420 = vst [vmem:[#allocation3 + $0x284] sm:$0xf] %v3321_v62  ;;  %v6300_v2 = vor.u32 %v6958_v15, %v6297_v63  ;;  %v6002_v15 = vrot.slane %v2357_v36, 9  ;;  %v8871_v36 = vld [vmem:[#allocation10_spill] sm:$0xff] }
 0x1f9   : > { %v5339_v52 = vpop.f32.mrf.mxu0  ;;  %5479 = vmatmul.bf16.gmra.mxu2 %v6268_v57  ;;  %v2930_v57 = vsel %vm7958_vm12, %v2925_v48, %v2929_v38  ;;  %v2945_v38 = vshrl.u32 %v2695_v59, 16  ;;  %v6959_v48 = vld [vmem:[#allocation3 + $0x214] sm:$0xf] }
 0x1fa   : > { %v5077_v22 = vpop.f32.mrf.mxu1  ;;  %v8648_v30 = vadd.f32 %v5339_v52, %v5251_v53  ;;  %3148 = vst [vmem:[#allocation3 + $0x280] sm:$0xf] %v2930_v57  ;;  %v2932_v53 = vshrl.u32 %v2694_v55, 16  ;;  %v2941_v52 = vshll.u32 %v2695_v59, 16  ;;  %v2696_v57 = vld [vmem:[#allocation2 + $0x8c] sm:$0x1] }
 0x1fb   : > { %5568 = vmatmul.bf16.gmra.mxu3 %v6272_v43  ;;  %v2935_v43 = vshll.u32 %v2694_v55, 16  ;;  %v5078_v25 = vadd.f32 %v5077_v22, %v8870_v44  ;;  %v2947_v59 = vrot.slane %v2945_v38, 4  ;;  %v3191_v22 = vld [vmem:[#allocation2 + $0x88] sm:$0xf] }
 0x1fc   : > { %v5164_v16 = vpop.f32.mrf.mxu2  ;;  %v2934_v1 = vrot.slane %v2932_v53, 4 }
 0x1fd   : > { %v5165_v39 = vadd.f32 %v5164_v16, %v5076_v20  ;;  %v2937_v12 = vrot.slane %v2935_v43, 5  ;;  %v2491_v20 = vrot.slane %v2358_v21, 5  ;;  %v2359_v16 = vld [vmem:[#allocation2 + $0x80] sm:$0x1]  ;;  %v6308_v43 = vor.u32 %v6959_v48, %v6305_v6  ;;  %v3190_v21 = vld [vmem:[#allocation2 + $0x84] sm:$0xe] }
 0x1fe   : > { %v5253_v41 = vpop.f32.mrf.mxu3  ;;  %v2494_v63 = vrot.slane %v2359_v16, 5  ;;  %v3324_v48 = vrot.slane %v3191_v22, 5  ;;  %v2697_v22 = vld [vmem:[#allocation2 + $0x90] sm:$0xf] }
 0x1ff   : > { %v5254_v4 = vadd.f32 %v5253_v41, %v5165_v39  ;;  %v2938_v5 = vor.u32 %v2937_v12, %v2934_v1  ;;  %v6304_v39 = vor.u32 %v6963_v3, %v6303_v47  ;;  %v2493_v62 = vrot.slane %v2491_v20, 4  ;;  %v2622_v1 = vld [vmem:[#allocation2 + $0x88] sm:$0xf] }
 0x200   : > { %v2951_v12 = vshll.u32 %v2696_v57, 16  ;;  %2654 = vst [vmem:[#allocation3 + $0x2c4] sm:$0xf] %v2622_v1 }
 0x201   : > { %v5342_v18 = vpop.f32.mrf.mxu0  ;;  %v2939_v55 = vrot.slane %v2938_v5, 4 }
 0x202   : > { %v5080_v10 = vpop.f32.mrf.mxu1  ;;  %v8657_v37 = vadd.f32 %v5342_v18, %v5254_v4  ;;  %v2943_v4 = vrot.slane %v2941_v52, 5  ;;  %v2621_v18 = vld [vmem:[#allocation2 + $0x84] sm:$0xf]  ;;  %v3192_v52 = vld [vmem:[#allocation2 + $0x8c] sm:$0x1]  ;;  %v2953_v44 = vrot.slane %v2951_v12, 5 }
 0x203   : > { %v3327_v6 = vrot.slane %v3192_v52, 5  ;;  %2653 = vst [vmem:[#allocation3 + $0x2a0] sm:$0xf] %v2621_v18  ;;  %v5081_v16 = vadd.f32 %v5080_v10, %v8871_v36  ;;  %v2959_v18 = vshll.u32 %v2697_v22, 16 }
 0x204   : > { %5657 = vmatmul.bf16.gmra.mxu0 %v6276_v28  ;;  %v5166_v19 = vpop.f32.mrf.mxu2  ;;  %v2492_v28 = vsel %vm7949_vm11, %v6002_v15, %v2491_v20  ;;  %v2944_v47 = vsel %vm7958_vm12, %v2939_v55, %v2943_v4  ;;  %v2948_v3 = vor.u32 %v2947_v59, %v2943_v4  ;;  %v6311_v15 = vld [vmem:[#allocation3 + $0x218] sm:$0xf]  ;;  %v6967_v55 = vld [vmem:[#allocation3 + $0x254] sm:$0xf] }
 0x205   : > { %v5167_v45 = vadd.f32 %v5166_v19, %v5078_v25  ;;  %5395 = vmatmul.bf16.gmra.mxu1 %v6300_v2  ;;  %v2495_v2 = vsel %vm7949_vm11, %v2493_v62, %v2494_v63  ;;  %2588 = vst [vmem:[#allocation3 + $0x29c] sm:$0xf] %v2492_v28  ;;  %v6018_v25 = vrot.slane %v3190_v21, 9  ;;  %v6333_v59 = vld [vmem:[#allocation3 + $0x274] sm:$0xf0]  ;;  %v2956_v28 = vshrl.u32 %v2697_v22, 16 }
 0x206   : > { %v5255_v41 = vpop.f32.mrf.mxu3  ;;  %2589 = vst [vmem:[#allocation3 + $0x2c0] sm:$0xf] %v2495_v2  ;;  %v2949_v5 = vrot.slane %v2948_v3, 4  ;;  %v6336_v2 = vor.u32 %v6967_v55, %v6333_v59  ;;  %v2961_v21 = vrot.slane %v2959_v18, 5 }
 0x207   : > { %v5256_v53 = vadd.f32 %v5255_v41, %v5167_v45  ;;  %v3325_v57 = vsel %vm7949_vm11, %v6018_v25, %v3324_v48  ;;  %v3326_v45 = vrot.slane %v3324_v48, 4  ;;  %3149 = vst [vmem:[#allocation3 + $0x2a4] sm:$0xf] %v2944_v47  ;;  %v6964_v41 = vld [vmem:[#allocation3 + $0x238] sm:$0xf0]  ;;  %v2958_v3 = vrot.slane %v2956_v28, 4 }
 0x208   : > { %v2954_v62 = vsel %vm7958_vm12, %v2949_v5, %v2953_v44  ;;  %3421 = vst [vmem:[#allocation3 + $0x2a8] sm:$0xf] %v3325_v57  ;;  %v6312_v1 = vor.u32 %v6964_v41, %v6311_v15  ;;  %v6339_v47 = vld [vmem:[#allocation3 + $0x258] sm:$0xf]  ;;  %v2361_v44 = vld [vmem:[#allocation2 + $0x88] sm:$0xf] }
 0x209   : > { %v5344_v38 = vpop.f32.mrf.mxu0  ;;  %5484 = vmatmul.bf16.gmra.mxu2 %v6304_v39  ;;  %3150 = vst [vmem:[#allocation3 + $0x2c8] sm:$0xf] %v2954_v62  ;;  %v3328_v4 = vsel %vm7949_vm11, %v3326_v45, %v3327_v6  ;;  %v8873_v5 = vld [vmem:[#allocation12_spill] sm:$0xff]  ;;  %v2498_v45 = vrot.slane %v2361_v44, 5  ;;  %v2360_v62 = vld [vmem:[#allocation2 + $0x84] sm:$0xe] }
 0x20a   : > { %v5082_v20 = vpop.f32.mrf.mxu1  ;;  %v8666_v19 = vadd.f32 %v5344_v38, %v5256_v53  ;;  %3422 = vst [vmem:[#allocation3 + $0x2cc] sm:$0xf] %v3328_v4  ;;  %v6972_v38 = vld [vmem:[#allocation3 + $0x278] sm:$0xf0]  ;;  %v6341_v57 = vld [vmem:[#allocation3 + $0x27c] sm:$0xf0] }
 0x20b   : > { %5573 = vmatmul.bf16.gmra.mxu3 %v6308_v43  ;;  %v2698_v43 = vld [vmem:[#allocation2 + $0x94] sm:$0xf]  ;;  %v5083_v36 = vadd.f32 %v5082_v20, %v8873_v5  ;;  %v2362_v41 = vld [vmem:[#allocation2 + $0x8c] sm:$0x1]  ;;  %v6340_v4 = vor.u32 %v6972_v38, %v6339_v47  ;;  %v2500_v59 = vrot.slane %v2498_v45, 4 }
 0x20c   : > { %v5169_v39 = vpop.f32.mrf.mxu2  ;;  %v2965_v25 = vshll.u32 %v2698_v43, 16  ;;  %v2969_v48 = vshrl.u32 %v2698_v43, 16  ;;  %v2501_v43 = vrot.slane %v2362_v41, 5  ;;  %v3194_v20 = vld [vmem:[#allocation2 + $0x94] sm:$0xf] }
 0x20d   : > { %v5170_v63 = vadd.f32 %v5169_v39, %v5081_v16  ;;  %v6968_v16 = vld [vmem:[#allocation3 + $0x25c] sm:$0xf]  ;;  %v2962_v39 = vor.u32 %v2961_v21, %v2958_v3  ;;  %v2623_v3 = vld [vmem:[#allocation2 + $0x90] sm:$0xf] }
 0x20e   : > { %v5258_v10 = vpop.f32.mrf.mxu3  ;;  %v2967_v28 = vrot.slane %v2965_v25, 5  ;;  %v2971_v18 = vrot.slane %v2969_v48, 4  ;;  %v6344_v5 = vor.u32 %v6968_v16, %v6341_v57  ;;  %v2624_v21 = vld [vmem:[#allocation2 + $0x94] sm:$0xf]  ;;  %v3195_v25 = vld [vmem:[#allocation2 + $0x98] sm:$0x1] }
 0x20f   : > { %v5259_v53 = vadd.f32 %v5258_v10, %v5170_v63  ;;  %v2699_v63 = vld [vmem:[#allocation2 + $0x98] sm:$0x1]  ;;  %v6003_v10 = vrot.slane %v2360_v62, 9  ;;  %2655 = vst [vmem:[#allocation3 + $0x2e8] sm:$0xf] %v2623_v3 }
 0x210   : > { %v2975_v44 = vshll.u32 %v2699_v63, 16  ;;  %v2972_v38 = vor.u32 %v2971_v18, %v2967_v28  ;;  %2656 = vst [vmem:[#allocation3 + $0x30c] sm:$0xf] %v2624_v21 }
 0x211   : > { %v5347_v12 = vpop.f32.mrf.mxu0 }
 0x212   : > { %v5361_v52 = vpop.f32.mrf.mxu1  ;;  %v8675_v6 = vadd.f32 %v5347_v12, %v5259_v53  ;;  %v2963_v53 = vrot.slane %v2962_v39, 4  ;;  %v2977_v16 = vrot.slane %v2975_v44, 5  ;;  %v3331_v39 = vrot.slane %v3194_v20, 5  ;;  %v6369_v20 = vld [vmem:[#allocation3 + $0x2bc] sm:$0xf0] }
 0x213   : > { %v2973_v62 = vrot.slane %v2972_v38, 4 }
 0x214   : > { %8872 = vst [vmem:[#allocation11_spill] sm:$0xff] %v8675_v6  ;;  %5662 = vmatmul.bf16.gmra.mxu0 %v6312_v1  ;;  %v5171_v15 = vpop.f32.mrf.mxu2  ;;  %v2499_v1 = vsel %vm7949_vm11, %v6003_v10, %v2498_v45  ;;  %v2968_v47 = vsel %vm7958_vm12, %v2963_v53, %v2967_v28  ;;  %v3334_v45 = vrot.slane %v3195_v25, 5  ;;  %v6347_v10 = vld [vmem:[#allocation3 + $0x260] sm:$0xf]  ;;  %v6976_v53 = vld [vmem:[#allocation3 + $0x29c] sm:$0xf] }
 0x215   : > { %v5172_v55 = vadd.f32 %v5171_v15, %v5083_v36  ;;  %5400 = vmatmul.bf16.gmra.mxu1 %v6336_v2  ;;  %v2502_v2 = vsel %vm7949_vm11, %v2500_v59, %v2501_v43  ;;  %2590 = vst [vmem:[#allocation3 + $0x2e4] sm:$0xf] %v2499_v1  ;;  %v3193_v36 = vld [vmem:[#allocation2 + $0x90] sm:$0xe]  ;;  %v6973_v43 = vld [vmem:[#allocation3 + $0x280] sm:$0xf0]  ;;  %v6372_v38 = vor.u32 %v6976_v53, %v6369_v20 }
 0x216   : > { %v5260_v22 = vpop.f32.mrf.mxu3  ;;  %2591 = vst [vmem:[#allocation3 + $0x308] sm:$0xf] %v2502_v2  ;;  %v6019_v57 = vrot.slane %v3193_v36, 9  ;;  %v2701_v1 = vld [vmem:[#allocation2 + $0xa0] sm:$0xf]  ;;  %v6348_v44 = vor.u32 %v6973_v43, %v6347_v10 }
 0x217   : > { %v5261_v12 = vadd.f32 %v5260_v22, %v5172_v55  ;;  %v3333_v55 = vrot.slane %v3331_v39, 4  ;;  %3151 = vst [vmem:[#allocation3 + $0x2ec] sm:$0xf] %v2968_v47  ;;  %v5362_v22 = vadd.f32 %v5361_v52, %v8255_v56  ;;  %v6375_v2 = vld [vmem:[#allocation3 + $0x2a0] sm:$0xf] }
 0x218   : > { %v3332_v63 = vsel %vm7949_vm11, %v6019_v57, %v3331_v39  ;;  %v6981_v56 = vld [vmem:[#allocation3 + $0x2c0] sm:$0xf0]  ;;  %v2364_v57 = vld [vmem:[#allocation2 + $0x94] sm:$0xf]  ;;  %v2989_v39 = vshll.u32 %v2701_v1, 16 }
 0x219   : > { %v5349_v48 = vpop.f32.mrf.mxu0  ;;  %5489 = vmatmul.bf16.gmra.mxu2 %v6340_v4  ;;  %v2978_v4 = vsel %vm7958_vm12, %v2973_v62, %v2977_v16  ;;  %v3335_v28 = vsel %vm7949_vm11, %v3333_v55, %v3334_v45  ;;  %3423 = vst [vmem:[#allocation3 + $0x2f0] sm:$0xf] %v3332_v63  ;;  %v6977_v52 = vld [vmem:[#allocation3 + $0x2a4] sm:$0xf]  ;;  %v6377_v16 = vld [vmem:[#allocation3 + $0x2c4] sm:$0xf0]  ;;  %v6376_v10 = vor.u32 %v6981_v56, %v6375_v2 }
 0x21a   : > { %v5363_v15 = vpop.f32.mrf.mxu1  ;;  %v8684_v41 = vadd.f32 %v5349_v48, %v5261_v12  ;;  %3152 = vst [vmem:[#allocation3 + $0x310] sm:$0xf] %v2978_v4  ;;  %v2700_v12 = vld [vmem:[#allocation2 + $0x9c] sm:$0xf]  ;;  %v2993_v45 = vshrl.u32 %v2701_v1, 16  ;;  %v2505_v55 = vrot.slane %v2364_v57, 5  ;;  %v6380_v20 = vor.u32 %v6977_v52, %v6377_v16 }
 0x21b   : > { %5578 = vmatmul.bf16.gmra.mxu3 %v6344_v5  ;;  %3424 = vst [vmem:[#allocation3 + $0x314] sm:$0xf] %v3335_v28  ;;  %v2980_v3 = vshrl.u32 %v2700_v12, 16  ;;  %v2983_v21 = vshll.u32 %v2700_v12, 16  ;;  %v5364_v63 = vadd.f32 %v5363_v15, %v8274_v58  ;;  %v2365_v43 = vld [vmem:[#allocation2 + $0x98] sm:$0x1] }
 0x21c   : > { %8874 = vst [vmem:[#allocation4_spill] sm:$0xff] %v8684_v41  ;;  %v5450_v59 = vpop.f32.mrf.mxu2  ;;  %v2702_v53 = vld [vmem:[#allocation2 + $0xa4] sm:$0x1]  ;;  %v2508_v41 = vrot.slane %v2365_v43, 5  ;;  %v2991_v1 = vrot.slane %v2989_v39, 5 }
 0x21d   : > { %v5451_v5 = vadd.f32 %v5450_v59, %v5362_v22  ;;  %v2982_v36 = vrot.slane %v2980_v3, 4  ;;  %v2985_v25 = vrot.slane %v2983_v21, 5  ;;  %v2363_v22 = vld [vmem:[#allocation2 + $0x90] sm:$0xe]  ;;  %v2507_v3 = vrot.slane %v2505_v55, 4 }
 0x21e   : > { %v5539_v18 = vpop.f32.mrf.mxu3  ;;  %v6004_v12 = vrot.slane %v2363_v22, 9  ;;  %v2625_v2 = vld [vmem:[#allocation2 + $0x9c] sm:$0xf]  ;;  %v2626_v56 = vld [vmem:[#allocation2 + $0xa0] sm:$0xf] }
 0x21f   : > { %v5540_v62 = vadd.f32 %v5539_v18, %v5451_v5  ;;  %v2986_v59 = vor.u32 %v2985_v25, %v2982_v36  ;;  %v2995_v18 = vrot.slane %v2993_v45, 4  ;;  %v3197_v5 = vld [vmem:[#allocation2 + $0xa0] sm:$0xf]  ;;  %v2999_v36 = vshll.u32 %v2702_v53, 16  ;;  %v3196_v16 = vld [vmem:[#allocation2 + $0x9c] sm:$0xe] }
 0x220   : > { %v3198_v57 = vld [vmem:[#allocation2 + $0xa4] sm:$0x1]  ;;  %v6020_v45 = vrot.slane %v3196_v16, 9  ;;  %2657 = vst [vmem:[#allocation3 + $0x330] sm:$0xf] %v2625_v2 }
 0x221   : > { %v5628_v47 = vpop.f32.mrf.mxu0  ;;  %v2987_v6 = vrot.slane %v2986_v59, 4  ;;  %v2996_v25 = vor.u32 %v2995_v18, %v2991_v1  ;;  %2658 = vst [vmem:[#allocation3 + $0x354] sm:$0xf] %v2626_v56  ;;  %v6411_v16 = vld [vmem:[#allocation3 + $0x2e8] sm:$0xf] }
 0x222   : > { %v5366_v48 = vpop.f32.mrf.mxu1  ;;  %v5629_v58 = vadd.f32 %v5628_v47, %v5540_v62  ;;  %v3001_v47 = vrot.slane %v2999_v36, 5  ;;  %v3338_v62 = vrot.slane %v3197_v5, 5  ;;  %v6985_v5 = vld [vmem:[#allocation3 + $0x2e4] sm:$0xf] }
 0x223   : > { %v2992_v52 = vsel %vm7958_vm12, %v2987_v6, %v2991_v1  ;;  %v5367_v6 = vadd.f32 %v5366_v48, %v8288_v0  ;;  %v6982_v1 = vld [vmem:[#allocation3 + $0x2c8] sm:$0xf0] }
 0x224   : > { %5667 = vmatmul.bf16.gmra.mxu0 %v6348_v44  ;;  %v5452_v4 = vpop.f32.mrf.mxu2  ;;  %v2506_v44 = vsel %vm7949_vm11, %v6004_v12, %v2505_v55  ;;  %v3340_v22 = vrot.slane %v3338_v62, 4  ;;  %3153 = vst [vmem:[#allocation3 + $0x334] sm:$0xf] %v2992_v52 }
 0x225   : > { %v5453_v28 = vadd.f32 %v5452_v4, %v5364_v63  ;;  %5405 = vmatmul.bf16.gmra.mxu1 %v6372_v38  ;;  %v2509_v38 = vsel %vm7949_vm11, %v2507_v3, %v2508_v41  ;;  %2592 = vst [vmem:[#allocation3 + $0x32c] sm:$0xf] %v2506_v44  ;;  %v3341_v63 = vrot.slane %v3198_v57, 5  ;;  %v2997_v4 = vrot.slane %v2996_v25, 4  ;;  %v2703_v44 = vld [vmem:[#allocation2 + $0xa8] sm:$0xf] }
 0x226   : > { %v5541_v21 = vpop.f32.mrf.mxu3  ;;  %2593 = vst [vmem:[#allocation3 + $0x350] sm:$0xf] %v2509_v38  ;;  %v5745_v41 = vmul.f32 %v5629_v58, %v5629_v58  ;;  %v3004_v56 = vshrl.u32 %v2703_v44, 16  ;;  %v3007_v36 = vshll.u32 %v2703_v44, 16  ;;  %v2705_v44 = vld [vmem:[#allocation2 + $0xb0] sm:$0x1] }
 0x227   : > { %v5542_v15 = vadd.f32 %v5541_v21, %v5453_v28  ;;  %v3002_v3 = vsel %vm7958_vm12, %v2997_v4, %v3001_v47  ;;  %v6383_v21 = vld [vmem:[#allocation3 + $0x2a8] sm:$0xf]  ;;  %v3342_v0 = vsel %vm7949_vm11, %v3340_v22, %v3341_v63 }
 0x228   : > { %3154 = vst [vmem:[#allocation3 + $0x358] sm:$0xf] %v3002_v3  ;;  %v6384_v38 = vor.u32 %v6982_v1, %v6383_v21  ;;  %v3006_v57 = vrot.slane %v3004_v56, 4  ;;  %v2367_v63 = vld [vmem:[#allocation2 + $0xa0] sm:$0xf] }
 0x229   : > { %v5630_v39 = vpop.f32.mrf.mxu0  ;;  %5494 = vmatmul.bf16.gmra.mxu2 %v6376_v10  ;;  %v3339_v10 = vsel %vm7949_vm11, %v6020_v45, %v3338_v62  ;;  %3426 = vst [vmem:[#allocation3 + $0x35c] sm:$0xf] %v3342_v0  ;;  %v6990_v62 = vld [vmem:[#allocation3 + $0x308] sm:$0xf0]  ;;  %v2366_v3 = vld [vmem:[#allocation2 + $0x9c] sm:$0xe] }
 0x22a   : > { %v5631_v55 = vadd.f32 %v5630_v39, %v5542_v15  ;;  %v5368_v59 = vpop.f32.mrf.mxu1  ;;  %v6405_v15 = vld [vmem:[#allocation3 + $0x304] sm:$0xf0]  ;;  %3425 = vst [vmem:[#allocation3 + $0x338] sm:$0xf] %v3339_v10  ;;  %v3009_v39 = vrot.slane %v3007_v36, 5  ;;  %v2512_v10 = vrot.slane %v2367_v63, 5  ;;  %v6412_v0 = vor.u32 %v6990_v62, %v6411_v16 }
 0x22b   : > { %5583 = vmatmul.bf16.gmra.mxu3 %v6380_v20  ;;  %v6408_v25 = vor.u32 %v6985_v5, %v6405_v15  ;;  %v5369_v4 = vadd.f32 %v5368_v59, %v8304_v33  ;;  %v2368_v21 = vld [vmem:[#allocation2 + $0xa4] sm:$0x1]  ;;  %v3199_v16 = vld [vmem:[#allocation2 + $0xa8] sm:$0xe]  ;;  %v3023_v63 = vshll.u32 %v2705_v44, 16 }
 0x22c   : > { %v5708_v43 = vadd.f32 %v5631_v55, %v5629_v58  ;;  %v5746_v53 = vmul.f32 %v5631_v55, %v5631_v55  ;;  %v7176_v28 = vpack.c.bf16 %v5631_v55, %v5629_v58  ;;  %v5455_v12 = vpop.f32.mrf.mxu2  ;;  %v2704_v58 = vld [vmem:[#allocation2 + $0xac] sm:$0xf]  ;;  %v3010_v22 = vor.u32 %v3009_v39, %v3006_v57 }
 0x22d   : > { %v5456_v18 = vadd.f32 %v5455_v12, %v5367_v6  ;;  %v3013_v55 = vshll.u32 %v2704_v58, 16  ;;  %v6413_v6 = vld [vmem:[#allocation3 + $0x30c] sm:$0xf0]  ;;  %v3017_v1 = vshrl.u32 %v2704_v58, 16  ;;  %v2514_v5 = vrot.slane %v2512_v10, 4 }
 0x22e   : > { %v5777_v48 = vadd.f32 %v5746_v53, %v5745_v41  ;;  %7177 = vst [vmem:[%s8705_s9] sm:$0xff] %v7176_v28   ;;  %v5544_v20 = vpop.f32.mrf.mxu3  ;;  %v6986_v41 = vld [vmem:[#allocation3 + $0x2ec] sm:$0xf]  ;;  %v2515_v15 = vrot.slane %v2368_v21, 5  ;;  %v2628_v57 = vld [vmem:[#allocation2 + $0xac] sm:$0xf] }
 0x22f   : > { %v5545_v2 = vadd.f32 %v5544_v20, %v5456_v18  ;;  %v6005_v20 = vrot.slane %v2366_v3, 9  ;;  %v3015_v56 = vrot.slane %v3013_v55, 5  ;;  %v3200_v39 = vld [vmem:[#allocation2 + $0xac] sm:$0xf]  ;;  %v3201_v55 = vld [vmem:[#allocation2 + $0xb0] sm:$0x1] }
 0x230   : > { %v2516_v58 = vsel %vm7949_vm11, %v2514_v5, %v2515_v15  ;;  %2660 = vst [vmem:[#allocation3 + $0x39c] sm:$0xf] %v2628_v57  ;;  %v3348_v3 = vrot.slane %v3201_v55, 5  ;;  %v6419_v5 = vld [vmem:[#allocation3 + $0x2f0] sm:$0xf] }
 0x231   : > { %v5633_v52 = vpop.f32.mrf.mxu0  ;;  %2595 = vst [vmem:[#allocation3 + $0x398] sm:$0xf] %v2516_v58  ;;  %v2707_v57 = vld [vmem:[#allocation2 + $0xb8] sm:$0xf] }
 0x232   : > { %v8715_v47 = vadd.f32 %v5633_v52, %v5545_v2  ;;  %v5371_v45 = vpop.f32.mrf.mxu1  ;;  %v3011_v2 = vrot.slane %v3010_v22, 4  ;;  %v2627_v52 = vld [vmem:[#allocation2 + $0xa8] sm:$0xf]  ;;  %v3345_v22 = vrot.slane %v3200_v39, 5  ;;  %v3037_v55 = vshll.u32 %v2707_v57, 16 }
 0x233   : > { %2659 = vst [vmem:[#allocation3 + $0x378] sm:$0xf] %v2627_v52 }
 0x234   : > { %5672 = vmatmul.bf16.gmra.mxu0 %v6384_v38  ;;  %v5709_v53 = vadd.f32 %v5708_v43, %v8715_v47  ;;  %v5747_v28 = vmul.f32 %v8715_v47, %v8715_v47  ;;  %v5457_v12 = vpop.f32.mrf.mxu2  ;;  %v6416_v43 = vor.u32 %v6986_v41, %v6413_v6  ;;  %v2513_v38 = vsel %vm7949_vm11, %v6005_v20, %v2512_v10 }
 0x235   : > { %v5458_v18 = vadd.f32 %v5457_v12, %v5369_v4  ;;  %5410 = vmatmul.bf16.gmra.mxu1 %v6408_v25  ;;  %2594 = vst [vmem:[#allocation3 + $0x374] sm:$0xf] %v2513_v38  ;;  %v3019_v25 = vrot.slane %v3017_v1, 4  ;;  %v3016_v62 = vsel %vm7958_vm12, %v3011_v2, %v3015_v56  ;;  %v6021_v4 = vrot.slane %v3199_v16, 9  ;;  %v2706_v38 = vld [vmem:[#allocation2 + $0xb4] sm:$0xf] }
 0x236   : > { %v5778_v33 = vadd.f32 %v5777_v48, %v5747_v28  ;;  %v5546_v59 = vpop.f32.mrf.mxu3  ;;  %v5372_v28 = vadd.f32 %v5371_v45, %v8318_v46  ;;  %v3025_v12 = vrot.slane %v3023_v63, 5  ;;  %3155 = vst [vmem:[#allocation3 + $0x37c] sm:$0xf] %v3016_v62  ;;  %v3347_v2 = vrot.slane %v3345_v22, 4  ;;  %v6447_v62 = vld [vmem:[#allocation3 + $0x330] sm:$0xf] }
 0x237   : > { %v5547_v36 = vadd.f32 %v5546_v59, %v5458_v18  ;;  %v3020_v10 = vor.u32 %v3019_v25, %v3015_v56  ;;  %v6991_v59 = vld [vmem:[#allocation3 + $0x310] sm:$0xf0]  ;;  %v3346_v44 = vsel %vm7949_vm11, %v6021_v4, %v3345_v22  ;;  %v6994_v56 = vld [vmem:[#allocation3 + $0x32c] sm:$0xf]  ;;  %v3031_v25 = vshll.u32 %v2706_v38, 16 }
 0x238   : > { %v6420_v52 = vor.u32 %v6991_v59, %v6419_v5  ;;  %3427 = vst [vmem:[#allocation3 + $0x380] sm:$0xf] %v3346_v44  ;;  %v6999_v63 = vld [vmem:[#allocation3 + $0x350] sm:$0xf0]  ;;  %v2369_v59 = vld [vmem:[#allocation2 + $0xa8] sm:$0xe] }
 0x239   : > { %v5635_v48 = vpop.f32.mrf.mxu0  ;;  %5499 = vmatmul.bf16.gmra.mxu2 %v6412_v0  ;;  %v3021_v20 = vrot.slane %v3020_v10, 4  ;;  %v3041_v10 = vshrl.u32 %v2707_v57, 16  ;;  %v6448_v5 = vor.u32 %v6999_v63, %v6447_v62  ;;  %v3033_v44 = vrot.slane %v3031_v25, 5 }
 0x23a   : > { %v5636_v41 = vadd.f32 %v5635_v48, %v5547_v36  ;;  %v5373_v6 = vpop.f32.mrf.mxu1  ;;  %v6441_v36 = vld [vmem:[#allocation3 + $0x34c] sm:$0xf0] }
 0x23b   : > { %5588 = vmatmul.bf16.gmra.mxu3 %v6416_v43  ;;  %v6444_v58 = vor.u32 %v6994_v56, %v6441_v36  ;;  %v5374_v4 = vadd.f32 %v5373_v6, %v8343_v7  ;;  %v3039_v7 = vrot.slane %v3037_v55, 5  ;;  %v2708_v36 = vld [vmem:[#allocation2 + $0xbc] sm:$0x1]  ;;  %v3203_v55 = vld [vmem:[#allocation2 + $0xb8] sm:$0xf] }
 0x23c   : > { %v5710_v21 = vadd.f32 %v5709_v53, %v5636_v41  ;;  %v5748_v1 = vmul.f32 %v5636_v41, %v5636_v41  ;;  %v7181_v18 = vpack.c.bf16 %v5636_v41, %v8715_v47  ;;  %v5460_v0 = vpop.f32.mrf.mxu2  ;;  %v3026_v53 = vsel %vm7958_vm12, %v3021_v20, %v3025_v12  ;;  %v2370_v41 = vld [vmem:[#allocation2 + $0xac] sm:$0xf] }
 0x23d   : > { %v5461_v15 = vadd.f32 %v5460_v0, %v5372_v28  ;;  %3156 = vst [vmem:[#allocation3 + $0x3a0] sm:$0xf] %v3026_v53  ;;  %v3349_v47 = vsel %vm7949_vm11, %v3347_v2, %v3348_v3  ;;  %v6995_v3 = vld [vmem:[#allocation3 + $0x334] sm:$0xf]  ;;  %v3047_v63 = vshll.u32 %v2708_v36, 16 }
 0x23e   : > { %v5779_v46 = vadd.f32 %v5778_v33, %v5748_v1  ;;  %7268 = vst [vmem:[%s8705_s9 + $0x8] sm:$0xff] %v7181_v18   ;;  %v5549_v45 = vpop.f32.mrf.mxu3  ;;  %v3028_v33 = vshrl.u32 %v2706_v38, 16  ;;  %v6449_v1 = vld [vmem:[#allocation3 + $0x354] sm:$0xf0]  ;;  %v2519_v18 = vrot.slane %v2370_v41, 5  ;;  %v3043_v38 = vrot.slane %v3041_v10, 4 }
 0x23f   : > { %v5550_v43 = vadd.f32 %v5549_v45, %v5461_v15  ;;  %3428 = vst [vmem:[#allocation3 + $0x3a4] sm:$0xf] %v3349_v47  ;;  %v2371_v15 = vld [vmem:[#allocation2 + $0xb0] sm:$0x1]  ;;  %v6006_v45 = vrot.slane %v2369_v59, 9 }
 0x240   : > { %v3030_v0 = vrot.slane %v3028_v33, 4  ;;  %v2521_v56 = vrot.slane %v2519_v18, 4  ;;  %v2630_v33 = vld [vmem:[#allocation2 + $0xb8] sm:$0xf]  ;;  %v3044_v62 = vor.u32 %v3043_v38, %v3039_v7  ;;  %v3204_v10 = vld [vmem:[#allocation2 + $0xbc] sm:$0x1] }
 0x241   : > { %v5638_v39 = vpop.f32.mrf.mxu0  ;;  %v2520_v57 = vsel %vm7949_vm11, %v6006_v45, %v2519_v18  ;;  %2662 = vst [vmem:[#allocation3 + $0x3e4] sm:$0xf] %v2630_v33  ;;  %v7000_v45 = vld [vmem:[#allocation3 + $0x358] sm:$0xf0]  ;;  %v7003_v36 = vld [vmem:[#allocation3 + $0x374] sm:$0xf] }
 0x242   : > { %v8736_v16 = vadd.f32 %v5638_v39, %v5550_v43  ;;  %v5376_v48 = vpop.f32.mrf.mxu1  ;;  %v6452_v43 = vor.u32 %v6995_v3, %v6449_v1  ;;  %v3034_v47 = vor.u32 %v3033_v44, %v3030_v0  ;;  %2596 = vst [vmem:[#allocation3 + $0x3bc] sm:$0xf] %v2520_v57  ;;  %v3045_v18 = vrot.slane %v3044_v62, 4  ;;  %v2710_v38 = vld [vmem:[#allocation2 + $0xc4] sm:$0xf] }
 0x243   : > { %v5377_v3 = vadd.f32 %v5376_v48, %v8365_v60  ;;  %v3049_v0 = vrot.slane %v3047_v63, 5  ;;  %v6483_v57 = vld [vmem:[#allocation3 + $0x378] sm:$0xf]  ;;  %v3065_v62 = vshrl.u32 %v2710_v38, 16 }
 0x244   : > { %5677 = vmatmul.bf16.gmra.mxu0 %v6420_v52  ;;  %v5711_v22 = vadd.f32 %v5710_v21, %v8736_v16  ;;  %v5749_v28 = vmul.f32 %v8736_v16, %v8736_v16  ;;  %v5462_v12 = vpop.f32.mrf.mxu2  ;;  %v2522_v21 = vrot.slane %v2371_v15, 5  ;;  %v3202_v52 = vld [vmem:[#allocation2 + $0xb4] sm:$0xe]  ;;  %v6455_v15 = vld [vmem:[#allocation3 + $0x338] sm:$0xf] }
 0x245   : > { %v5463_v20 = vadd.f32 %v5462_v12, %v5374_v4  ;;  %5415 = vmatmul.bf16.gmra.mxu1 %v6444_v58  ;;  %v2629_v58 = vld [vmem:[#allocation2 + $0xb4] sm:$0xf]  ;;  %v3352_v12 = vrot.slane %v3203_v55, 5  ;;  %v3050_v48 = vsel %vm7958_vm12, %v3045_v18, %v3049_v0 }
 0x246   : > { %v5780_v6 = vadd.f32 %v5779_v46, %v5749_v28  ;;  %v5551_v2 = vpop.f32.mrf.mxu3  ;;  %v2523_v39 = vsel %vm7949_vm11, %v2521_v56, %v2522_v21  ;;  %v3035_v46 = vrot.slane %v3034_v47, 4  ;;  %v6022_v28 = vrot.slane %v3202_v52, 9  ;;  %2661 = vst [vmem:[#allocation3 + $0x3c0] sm:$0xf] %v2629_v58  ;;  %v2709_v47 = vld [vmem:[#allocation2 + $0xc0] sm:$0xf] }
 0x247   : > { %v5552_v53 = vadd.f32 %v5551_v2, %v5463_v20  ;;  %2597 = vst [vmem:[#allocation3 + $0x3e0] sm:$0xf] %v2523_v39  ;;  %v3355_v56 = vrot.slane %v3204_v10, 5  ;;  %v6456_v52 = vor.u32 %v7000_v45, %v6455_v15  ;;  %v3052_v39 = vshrl.u32 %v2709_v47, 16  ;;  %v2374_v45 = vld [vmem:[#allocation2 + $0xbc] sm:$0x1] }
 0x248   : > { %v3040_v1 = vsel %vm7958_vm12, %v3035_v46, %v3039_v7  ;;  %v3353_v2 = vsel %vm7949_vm11, %v6022_v28, %v3352_v12  ;;  %v3354_v7 = vrot.slane %v3352_v12, 4  ;;  %3158 = vst [vmem:[#allocation3 + $0x3e8] sm:$0xf] %v3050_v48  ;;  %v3055_v58 = vshll.u32 %v2709_v47, 16  ;;  %v7008_v46 = vld [vmem:[#allocation3 + $0x398] sm:$0xf0] }
 0x249   : > { %v5640_v25 = vpop.f32.mrf.mxu0  ;;  %5504 = vmatmul.bf16.gmra.mxu2 %v6448_v5  ;;  %3157 = vst [vmem:[#allocation3 + $0x3c4] sm:$0xf] %v3040_v1  ;;  %v2373_v12 = vld [vmem:[#allocation2 + $0xb8] sm:$0xf]  ;;  %v6484_v0 = vor.u32 %v7008_v46, %v6483_v57  ;;  %v3206_v46 = vld [vmem:[#allocation2 + $0xc4] sm:$0xf] }
 0x24a   : > { %v5641_v4 = vadd.f32 %v5640_v25, %v5552_v53  ;;  %v5378_v41 = vpop.f32.mrf.mxu1  ;;  %v6477_v53 = vld [vmem:[#allocation3 + $0x394] sm:$0xf0]  ;;  %3429 = vst [vmem:[#allocation3 + $0x3c8] sm:$0xf] %v3353_v2  ;;  %v3057_v10 = vrot.slane %v3055_v58, 5  ;;  %v2526_v15 = vrot.slane %v2373_v12, 5 }
 0x24b   : > { %5593 = vmatmul.bf16.gmra.mxu3 %v6452_v43  ;;  %v3356_v43 = vsel %vm7949_vm11, %v3354_v7, %v3355_v56  ;;  %v6480_v25 = vor.u32 %v7003_v36, %v6477_v53  ;;  %v5379_v28 = vadd.f32 %v5378_v41, %v8395_v40  ;;  %v2372_v2 = vld [vmem:[#allocation2 + $0xb4] sm:$0xe]  ;;  %v3067_v7 = vrot.slane %v3065_v62, 4  ;;  %v2711_v36 = vld [vmem:[#allocation2 + $0xc8] sm:$0x1] }
 0x24c   : > { %v5712_v20 = vadd.f32 %v5711_v22, %v5641_v4  ;;  %v5750_v5 = vmul.f32 %v5641_v4, %v5641_v4  ;;  %v7186_v59 = vpack.c.bf16 %v5641_v4, %v8736_v16  ;;  %v5465_v44 = vpop.f32.mrf.mxu2  ;;  %3430 = vst [vmem:[#allocation3 + $0x3ec] sm:$0xf] %v3356_v43  ;;  %v3054_v4 = vrot.slane %v3052_v39, 4  ;;  %v2631_v39 = vld [vmem:[#allocation2 + $0xc0] sm:$0xf] }
 0x24d   : > { %v5466_v60 = vadd.f32 %v5465_v44, %v5377_v3  ;;  %v6007_v56 = vrot.slane %v2372_v2, 9  ;;  %v2632_v58 = vld [vmem:[#allocation2 + $0xc4] sm:$0xf]  ;;  %v3359_v12 = vrot.slane %v3206_v46, 5  ;;  %2663 = vst [vmem:[#allocation3 + $0x408] sm:$0xf] %v2631_v39 }
 0x24e   : > { %v5781_v21 = vadd.f32 %v5780_v6, %v5750_v5  ;;  %7269 = vst [vmem:[%s8705_s9 + $0x10] sm:$0xff] %v7186_v59   ;;  %v5554_v22 = vpop.f32.mrf.mxu3  ;;  %v3061_v6 = vshll.u32 %v2710_v38, 16  ;;  %v7004_v5 = vld [vmem:[#allocation3 + $0x37c] sm:$0xf]  ;;  %v6485_v59 = vld [vmem:[#allocation3 + $0x39c] sm:$0xf0] }
 0x24f   : > { %v5555_v16 = vadd.f32 %v5554_v22, %v5466_v60  ;;  %v3058_v60 = vor.u32 %v3057_v10, %v3054_v4  ;;  %v2528_v22 = vrot.slane %v2526_v15, 4  ;;  %v3205_v38 = vld [vmem:[#allocation2 + $0xc0] sm:$0xe]  ;;  %v3207_v10 = vld [vmem:[#allocation2 + $0xc8] sm:$0x1] }
 0x250   : > { %v3063_v48 = vrot.slane %v3061_v6, 5  ;;  %2664 = vst [vmem:[#allocation3 + $0x42c] sm:$0xf] %v2632_v58 }
 0x251   : > { %v5643_v33 = vpop.f32.mrf.mxu0  ;;  %v3059_v43 = vrot.slane %v3058_v60, 4 }
 0x252   : > { %v8757_v63 = vadd.f32 %v5643_v33, %v5555_v16  ;;  %v5381_v55 = vpop.f32.mrf.mxu1  ;;  %v6488_v16 = vor.u32 %v7004_v5, %v6485_v59  ;;  %v3068_v47 = vor.u32 %v3067_v7, %v3063_v48 }
 0x253   : > { %v3064_v4 = vsel %vm7958_vm12, %v3059_v43, %v3063_v48 }
 0x254   : > { %5682 = vmatmul.bf16.gmra.mxu0 %v6456_v52  ;;  %v5713_v3 = vadd.f32 %v5712_v20, %v8757_v63  ;;  %v5751_v1 = vmul.f32 %v8757_v63, %v8757_v63  ;;  %v5467_v18 = vpop.f32.mrf.mxu2  ;;  %v2529_v20 = vrot.slane %v2374_v45, 5  ;;  %v2527_v52 = vsel %vm7949_vm11, %v6007_v56, %v2526_v15  ;;  %v7009_v45 = vld [vmem:[#allocation3 + $0x3a0] sm:$0xf0]  ;;  %3159 = vst [vmem:[#allocation3 + $0x40c] sm:$0xf] %v3064_v4 }
 0x255   : > { %v5468_v44 = vadd.f32 %v5467_v18, %v5379_v28  ;;  %5420 = vmatmul.bf16.gmra.mxu1 %v6480_v25  ;;  %2598 = vst [vmem:[#allocation3 + $0x404] sm:$0xf] %v2527_v52  ;;  %v3071_v25 = vshll.u32 %v2711_v36, 16  ;;  %v6023_v28 = vrot.slane %v3205_v38, 9  ;;  %v6513_v56 = vld [vmem:[#allocation3 + $0x3dc] sm:$0xf0] }
 0x256   : > { %v5782_v40 = vadd.f32 %v5781_v21, %v5751_v1  ;;  %v5556_v41 = vpop.f32.mrf.mxu3  ;;  %v2530_v57 = vsel %vm7949_vm11, %v2528_v22, %v2529_v20  ;;  %v3069_v21 = vrot.slane %v3068_v47, 4  ;;  %v5382_v1 = vadd.f32 %v5381_v55, %v8424_v51  ;;  %v2712_v20 = vld [vmem:[#allocation2 + $0xcc] sm:$0xf]  ;;  %v2713_v36 = vld [vmem:[#allocation2 + $0xd0] sm:$0xf] }
 0x257   : > { %v5557_v53 = vadd.f32 %v5556_v41, %v5468_v44  ;;  %2599 = vst [vmem:[#allocation3 + $0x428] sm:$0xf] %v2530_v57  ;;  %v3073_v18 = vrot.slane %v3071_v25, 5  ;;  %v6491_v44 = vld [vmem:[#allocation3 + $0x380] sm:$0xf]  ;;  %v3360_v51 = vsel %vm7949_vm11, %v6023_v28, %v3359_v12  ;;  %v3361_v55 = vrot.slane %v3359_v12, 4 }
 0x258   : > { %3431 = vst [vmem:[#allocation3 + $0x410] sm:$0xf] %v3360_v51  ;;  %v3076_v43 = vshrl.u32 %v2712_v20, 16  ;;  %v3079_v47 = vshll.u32 %v2712_v20, 16  ;;  %v7017_v57 = vld [vmem:[#allocation3 + $0x3e0] sm:$0xf0] }
 0x259   : > { %v5645_v33 = vpop.f32.mrf.mxu0  ;;  %5509 = vmatmul.bf16.gmra.mxu2 %v6484_v0  ;;  %v3362_v0 = vrot.slane %v3207_v10, 5  ;;  %v3074_v48 = vsel %vm7958_vm12, %v3069_v21, %v3073_v18  ;;  %v3089_v39 = vshrl.u32 %v2713_v36, 16  ;;  %v6521_v18 = vld [vmem:[#allocation3 + $0x3e4] sm:$0xf0] }
 0x25a   : > { %v5646_v6 = vadd.f32 %v5645_v33, %v5557_v53  ;;  %v5383_v62 = vpop.f32.mrf.mxu1  ;;  %3160 = vst [vmem:[#allocation3 + $0x430] sm:$0xf] %v3074_v48  ;;  %v6492_v53 = vor.u32 %v7009_v45, %v6491_v44  ;;  %v3078_v21 = vrot.slane %v3076_v43, 4  ;;  %v3081_v25 = vrot.slane %v3079_v47, 5  ;;  %v2377_v44 = vld [vmem:[#allocation2 + $0xc8] sm:$0x1] }
 0x25b   : > { %5598 = vmatmul.bf16.gmra.mxu3 %v6488_v16  ;;  %v6519_v16 = vld [vmem:[#allocation3 + $0x3c0] sm:$0xf]  ;;  %v5384_v46 = vadd.f32 %v5383_v62, %v8483_v35 }
 0x25c   : > { %v5714_v5 = vadd.f32 %v5713_v3, %v5646_v6  ;;  %v5752_v59 = vmul.f32 %v5646_v6, %v5646_v6  ;;  %v7191_v15 = vpack.c.bf16 %v5646_v6, %v8757_v63  ;;  %v5470_v2 = vpop.f32.mrf.mxu2  ;;  %v7012_v3 = vld [vmem:[#allocation3 + $0x3bc] sm:$0xf]  ;;  %v3363_v63 = vsel %vm7949_vm11, %v3361_v55, %v3362_v0  ;;  %v2376_v6 = vld [vmem:[#allocation2 + $0xc4] sm:$0xf] }
 0x25d   : > { %v5471_v60 = vadd.f32 %v5470_v2, %v5382_v1  ;;  %v6516_v52 = vor.u32 %v7012_v3, %v6513_v56  ;;  %3432 = vst [vmem:[#allocation3 + $0x434] sm:$0xf] %v3363_v63  ;;  %v6520_v12 = vor.u32 %v7017_v57, %v6519_v16  ;;  %v7013_v1 = vld [vmem:[#allocation3 + $0x3c4] sm:$0xf]  ;;  %v2533_v0 = vrot.slane %v2376_v6, 5 }
 0x25e   : > { %v5783_v7 = vadd.f32 %v5782_v40, %v5752_v59  ;;  %7270 = vst [vmem:[%s8705_s9 + $0x18] sm:$0xff] %v7191_v15   ;;  %v5559_v41 = vpop.f32.mrf.mxu3  ;;  %v3085_v40 = vshll.u32 %v2713_v36, 16  ;;  %v2375_v15 = vld [vmem:[#allocation2 + $0xc0] sm:$0xe]  ;;  %v3082_v2 = vor.u32 %v3081_v25, %v3078_v21  ;;  %v2714_v55 = vld [vmem:[#allocation2 + $0xd4] sm:$0x1]  ;;  %v6524_v3 = vor.u32 %v7013_v1, %v6521_v18 }
 0x25f   : > { %v5560_v22 = vadd.f32 %v5559_v41, %v5471_v60  ;;  %v3091_v60 = vrot.slane %v3089_v39, 4  ;;  %v6008_v48 = vrot.slane %v2375_v15, 9  ;;  %v2535_v51 = vrot.slane %v2533_v0, 4  ;;  %v3208_v63 = vld [vmem:[#allocation2 + $0xcc] sm:$0xe] }
 0x260   : > { %v3087_v45 = vrot.slane %v3085_v40, 5  ;;  %v3083_v56 = vrot.slane %v3082_v2, 4  ;;  %v2634_v16 = vld [vmem:[#allocation2 + $0xd0] sm:$0xf]  ;;  %v3095_v47 = vshll.u32 %v2714_v55, 16  ;;  %v6024_v21 = vrot.slane %v3208_v63, 9 }
 0x261   : > { %v5648_v38 = vpop.f32.mrf.mxu0  ;;  %v2534_v20 = vsel %vm7949_vm11, %v6008_v48, %v2533_v0  ;;  %v3210_v39 = vld [vmem:[#allocation2 + $0xd4] sm:$0x1]  ;;  %v6527_v18 = vld [vmem:[#allocation3 + $0x3c8] sm:$0xf]  ;;  %2666 = vst [vmem:[#allocation3 + $0x474] sm:$0xf] %v2634_v16 }
 0x262   : > { %v8778_v58 = vadd.f32 %v5648_v38, %v5560_v22  ;;  %v5386_v33 = vpop.f32.mrf.mxu1  ;;  %v3092_v22 = vor.u32 %v3091_v60, %v3087_v45  ;;  %2600 = vst [vmem:[#allocation3 + $0x44c] sm:$0xf] %v2534_v20  ;;  %v3209_v38 = vld [vmem:[#allocation2 + $0xd0] sm:$0xf]  ;;  %v3088_v40 = vsel %vm7958_vm12, %v3083_v56, %v3087_v45  ;;  %v3097_v6 = vrot.slane %v3095_v47, 5 }
 0x263   : > { %v3366_v25 = vrot.slane %v3209_v38, 5  ;;  %3161 = vst [vmem:[#allocation3 + $0x454] sm:$0xf] %v3088_v40  ;;  %v6549_v60 = vld [vmem:[#allocation3 + $0x424] sm:$0xf0] }
 0x264   : > { %5687 = vmatmul.bf16.gmra.mxu0 %v6492_v53  ;;  %v5715_v4 = vadd.f32 %v5714_v5, %v8778_v58  ;;  %v5753_v10 = vmul.f32 %v8778_v58, %v8778_v58  ;;  %v5472_v28 = vpop.f32.mrf.mxu2  ;;  %v2536_v5 = vrot.slane %v2377_v44, 5  ;;  %v2633_v53 = vld [vmem:[#allocation2 + $0xcc] sm:$0xf]  ;;  %v7022_v20 = vld [vmem:[#allocation3 + $0x40c] sm:$0xf] }
 0x265   : > { %v5473_v59 = vadd.f32 %v5472_v28, %v5384_v46  ;;  %5425 = vmatmul.bf16.gmra.mxu1 %v6516_v52  ;;  %v5387_v46 = vadd.f32 %v5386_v33, %v8485_v32  ;;  %2665 = vst [vmem:[#allocation3 + $0x450] sm:$0xf] %v2633_v53  ;;  %v3367_v32 = vsel %vm7949_vm11, %v6024_v21, %v3366_v25  ;;  %v3368_v33 = vrot.slane %v3366_v25, 4 }
 0x266   : > { %v5784_v35 = vadd.f32 %v5783_v7, %v5753_v10  ;;  %v5561_v62 = vpop.f32.mrf.mxu3  ;;  %v2537_v36 = vsel %vm7949_vm11, %v2535_v51, %v2536_v5  ;;  %v3093_v7 = vrot.slane %v3092_v22, 4  ;;  %v3369_v10 = vrot.slane %v3210_v39, 5  ;;  %3433 = vst [vmem:[#allocation3 + $0x458] sm:$0xf] %v3367_v32 }
 0x267   : > { %v5562_v41 = vadd.f32 %v5561_v62, %v5473_v59  ;;  %2601 = vst [vmem:[#allocation3 + $0x470] sm:$0xf] %v2537_v36  ;;  %v7018_v59 = vld [vmem:[#allocation3 + $0x3e8] sm:$0xf0]  ;;  %v6557_v36 = vld [vmem:[#allocation3 + $0x42c] sm:$0xf0] }
 0x268   : > { %v3098_v44 = vsel %vm7958_vm12, %v3093_v7, %v3097_v6  ;;  %v6528_v48 = vor.u32 %v7018_v59, %v6527_v18  ;;  %v6560_v47 = vor.u32 %v7022_v20, %v6557_v36  ;;  %v7027_v6 = vld [vmem:[#allocation3 + $0x430] sm:$0xf0] }
 0x269   : > { %v5650_v43 = vpop.f32.mrf.mxu0  ;;  %5514 = vmatmul.bf16.gmra.mxu2 %v6520_v12  ;;  %3162 = vst [vmem:[#allocation3 + $0x478] sm:$0xf] %v3098_v44 }
 0x26a   : > { %v5651_v52 = vadd.f32 %v5650_v43, %v5562_v41  ;;  %v5388_v57 = vpop.f32.mrf.mxu1  ;;  %v6555_v41 = vld [vmem:[#allocation3 + $0x408] sm:$0xf] }
 0x26b   : > { %5603 = vmatmul.bf16.gmra.mxu3 %v6524_v3  ;;  %v7026_v3 = vld [vmem:[#allocation3 + $0x428] sm:$0xf0] }
 0x26c   : > { %v5716_v28 = vadd.f32 %v5715_v4, %v5651_v52  ;;  %v5754_v12 = vmul.f32 %v5651_v52, %v5651_v52  ;;  %v7196_v1 = vpack.c.bf16 %v5651_v52, %v8778_v58  ;;  %v5475_v0 = vpop.f32.mrf.mxu2  ;;  %v7021_v4 = vld [vmem:[#allocation3 + $0x404] sm:$0xf]  ;;  %v3370_v58 = vsel %vm7949_vm11, %v3368_v33, %v3369_v10 }
 0x26d   : > { %v5476_v15 = vadd.f32 %v5475_v0, %v5387_v46  ;;  %v6552_v27 = vor.u32 %v7021_v4, %v6549_v60  ;;  %3434 = vst [vmem:[#allocation3 + $0x47c] sm:$0xf] %v3370_v58  ;;  %v6556_v17 = vor.u32 %v7026_v3, %v6555_v41  ;;  %v6563_v46 = vld [vmem:[#allocation3 + $0x410] sm:$0xf]  ;;  %v7031_v58 = vld [vmem:[#allocation3 + $0x454] sm:$0xf] }
 0x26e   : > { %v5785_v2 = vadd.f32 %v5784_v35, %v5754_v12  ;;  %7271 = vst [vmem:[%s8705_s9 + $0x20] sm:$0xff] %v7196_v1   ;;  %v5564_v45 = vpop.f32.mrf.mxu3  ;;  %v5389_v35 = vadd.f32 %v5388_v57, %v8497_v24  ;;  %v7030_v1 = vld [vmem:[#allocation3 + $0x44c] sm:$0xf]  ;;  %v6585_v18 = vld [vmem:[#allocation3 + $0x46c] sm:$0xf0]  ;;  %v6564_v59 = vor.u32 %v7027_v6, %v6563_v46 }
 0x26f   : > { %v5565_v62 = vadd.f32 %v5564_v45, %v5476_v15  ;;  %v6588_v44 = vor.u32 %v7030_v1, %v6585_v18 }
 0x271   : > { %v5653_v51 = vpop.f32.mrf.mxu0 }
 0x272   : > { %v5654_v5 = vadd.f32 %v5653_v51, %v5565_v62  ;;  %v5391_v55 = vpop.f32.mrf.mxu1 }
 0x273   : > { %v5392_v24 = vadd.f32 %v5391_v55, %v8505_v29  ;;  %v6591_v29 = vld [vmem:[#allocation3 + $0x450] sm:$0xf] }
 0x274   : > { %5692 = vmatmul.bf16.gmra.mxu0 %v6528_v48  ;;  %v5717_v56 = vadd.f32 %v5716_v28, %v5654_v5  ;;  %v5755_v22 = vmul.f32 %v5654_v5, %v5654_v5  ;;  %v5477_v63 = vpop.f32.mrf.mxu2  ;;  %v6593_v48 = vld [vmem:[#allocation3 + $0x474] sm:$0xf0] }
 0x275   : > { %v5478_v53 = vadd.f32 %v5477_v63, %v5389_v35  ;;  %5430 = vmatmul.bf16.gmra.mxu1 %v6552_v27  ;;  %v6596_v3 = vor.u32 %v7031_v58, %v6593_v48 }
 0x276   : > { %v5786_v16 = vadd.f32 %v5785_v2, %v5755_v22  ;;  %v5566_v43 = vpop.f32.mrf.mxu3  ;;  %v7035_v2 = vld [vmem:[#allocation3 + $0x470] sm:$0xf0] }
 0x277   : > { %v5567_v7 = vadd.f32 %v5566_v43, %v5478_v53  ;;  %v6592_v27 = vor.u32 %v7035_v2, %v6591_v29 }
 0x279   : > { %v5655_v38 = vpop.f32.mrf.mxu0  ;;  %5519 = vmatmul.bf16.gmra.mxu2 %v6556_v17  ;;  %v6599_v17 = vld [vmem:[#allocation3 + $0x458] sm:$0xf] }
 0x27a   : > { %v5656_v52 = vadd.f32 %v5655_v38, %v5567_v7  ;;  %v5393_v40 = vpop.f32.mrf.mxu1 }
 0x27b   : > { %5608 = vmatmul.bf16.gmra.mxu3 %v6560_v47  ;;  %v5394_v45 = vadd.f32 %v5393_v40, %v8520_v13 }
 0x27c   : > { %v5718_v57 = vadd.f32 %v5717_v56, %v5656_v52  ;;  %v5756_v39 = vmul.f32 %v5656_v52, %v5656_v52  ;;  %v7201_v21 = vpack.c.bf16 %v5656_v52, %v5654_v5  ;;  %v5480_v25 = vpop.f32.mrf.mxu2 }
 0x27d   : > { %v5481_v10 = vadd.f32 %v5480_v25, %v5392_v24 }
 0x27e   : > { %v5787_v28 = vadd.f32 %v5786_v16, %v5756_v39  ;;  %7272 = vst [vmem:[%s8705_s9 + $0x28] sm:$0xff] %v7201_v21   ;;  %v5569_v12 = vpop.f32.mrf.mxu3  ;;  %v7036_v16 = vld [vmem:[#allocation3 + $0x478] sm:$0xf0] }
 0x27f   : > { %v5570_v0 = vadd.f32 %v5569_v12, %v5481_v10  ;;  %v6600_v52 = vor.u32 %v7036_v16, %v6599_v17 }
 0x281   : > { %v5658_v15 = vpop.f32.mrf.mxu0 }
 0x282   : > { %v5659_v32 = vadd.f32 %v5658_v15, %v5570_v0  ;;  %v5396_v33 = vpop.f32.mrf.mxu1 }
 0x283   : > { %v5397_v13 = vadd.f32 %v5396_v33, %v8525_v23 }
 0x284   : > { %5697 = vmatmul.bf16.gmra.mxu0 %v6564_v59  ;;  %v5719_v4 = vadd.f32 %v5718_v57, %v5659_v32  ;;  %v5757_v60 = vmul.f32 %v5659_v32, %v5659_v32  ;;  %v5482_v62 = vpop.f32.mrf.mxu2 }
 0x285   : > { %v5483_v51 = vadd.f32 %v5482_v62, %v5394_v45  ;;  %5435 = vmatmul.bf16.gmra.mxu1 %v6588_v44 }
 0x286   : > { %v5788_v5 = vadd.f32 %v5787_v28, %v5757_v60  ;;  %v5571_v55 = vpop.f32.mrf.mxu3 }
 0x287   : > { %v5572_v41 = vadd.f32 %v5571_v55, %v5483_v51 }
 0x289   : > { %v5660_v35 = vpop.f32.mrf.mxu0  ;;  %5524 = vmatmul.bf16.gmra.mxu2 %v6592_v27 }
 0x28a   : > { %v5661_v56 = vadd.f32 %v5660_v35, %v5572_v41  ;;  %v5398_v22 = vpop.f32.mrf.mxu1 }
 0x28b   : > { %5613 = vmatmul.bf16.gmra.mxu3 %v6596_v3  ;;  %v5399_v39 = vadd.f32 %v5398_v22, %v8538_v54 }
 0x28c   : > { %v5720_v63 = vadd.f32 %v5719_v4, %v5661_v56  ;;  %v5758_v20 = vmul.f32 %v5661_v56, %v5661_v56  ;;  %v7206_v36 = vpack.c.bf16 %v5661_v56, %v5659_v32  ;;  %v5485_v53 = vpop.f32.mrf.mxu2 }
 0x28d   : > { %v5486_v43 = vadd.f32 %v5485_v53, %v5397_v13 }
 0x28e   : > { %v5789_v7 = vadd.f32 %v5788_v5, %v5758_v20  ;;  %7273 = vst [vmem:[%s8705_s9 + $0x30] sm:$0xff] %v7206_v36   ;;  %v5574_v47 = vpop.f32.mrf.mxu3 }
 0x28f   : > { %v5575_v38 = vadd.f32 %v5574_v47, %v5486_v43 }
 0x291   : > { %v5663_v40 = vpop.f32.mrf.mxu0 }
 0x292   : > { %v5664_v24 = vadd.f32 %v5663_v40, %v5575_v38  ;;  %v5401_v57 = vpop.f32.mrf.mxu1 }
 0x293   : > { %v5402_v0 = vadd.f32 %v5401_v57, %v8549_v14 }
 0x294   : > { %5702 = vmatmul.bf16.gmra.mxu0 %v6600_v52  ;;  %v5721_v23 = vadd.f32 %v5720_v63, %v5664_v24  ;;  %v5759_v21 = vmul.f32 %v5664_v24, %v5664_v24  ;;  %v5487_v25 = vpop.f32.mrf.mxu2 }
 0x295   : > { %v5488_v46 = vadd.f32 %v5487_v25, %v5399_v39 }
 0x296   : > { %v5790_v6 = vadd.f32 %v5789_v7, %v5759_v21  ;;  %v5576_v10 = vpop.f32.mrf.mxu3 }
 0x297   : > { %v5577_v28 = vadd.f32 %v5576_v10, %v5488_v46 }
 0x299   : > { %v5665_v12 = vpop.f32.mrf.mxu0 }
 0x29a   : > { %v5666_v1 = vadd.f32 %v5665_v12, %v5577_v28  ;;  %v5403_v18 = vpop.f32.mrf.mxu1 }
 0x29b   : > { %v5404_v62 = vadd.f32 %v5403_v18, %v8559_v31 }
 0x29c   : > { %v5722_v59 = vadd.f32 %v5721_v23, %v5666_v1  ;;  %v5760_v15 = vmul.f32 %v5666_v1, %v5666_v1  ;;  %v7211_v44 = vpack.c.bf16 %v5666_v1, %v5664_v24  ;;  %v5490_v32 = vpop.f32.mrf.mxu2 }
 0x29d   : > { %v5491_v33 = vadd.f32 %v5490_v32, %v5402_v0 }
 0x29e   : > { %v5791_v54 = vadd.f32 %v5790_v6, %v5760_v15  ;;  %7274 = vst [vmem:[%s8705_s9 + $0x38] sm:$0xff] %v7211_v44   ;;  %v5579_v29 = vpop.f32.mrf.mxu3 }
 0x29f   : > { %v5580_v2 = vadd.f32 %v5579_v29, %v5491_v33 }
 0x2a1   : > { %v5668_v45 = vpop.f32.mrf.mxu0 }
 0x2a2   : > { %v5669_v4 = vadd.f32 %v5668_v45, %v5580_v2  ;;  %v5406_v60 = vpop.f32.mrf.mxu1 }
 0x2a3   : > { %v5407_v56 = vadd.f32 %v5406_v60, %v8567_v26 }
 0x2a4   : > { %v5723_v58 = vadd.f32 %v5722_v59, %v5669_v4  ;;  %v5761_v48 = vmul.f32 %v5669_v4, %v5669_v4  ;;  %v5492_v51 = vpop.f32.mrf.mxu2 }
 0x2a5   : > { %v5493_v27 = vadd.f32 %v5492_v51, %v5404_v62 }
 0x2a6   : > { %v5792_v14 = vadd.f32 %v5791_v54, %v5761_v48  ;;  %v5581_v5 = vpop.f32.mrf.mxu3 }
 0x2a7   : > { %v5582_v55 = vadd.f32 %v5581_v5, %v5493_v27 }
 0x2a9   : > { %v5670_v41 = vpop.f32.mrf.mxu0 }
 0x2aa   : > { %v5671_v3 = vadd.f32 %v5670_v41, %v5582_v55  ;;  %v5408_v35 = vpop.f32.mrf.mxu1 }
 0x2ab   : > { %v5409_v47 = vadd.f32 %v5408_v35, %v8576_v34 }
 0x2ac   : > { %v5724_v22 = vadd.f32 %v5723_v58, %v5671_v3  ;;  %v5762_v13 = vmul.f32 %v5671_v3, %v5671_v3  ;;  %v7216_v63 = vpack.c.bf16 %v5671_v3, %v5669_v4  ;;  %v5495_v20 = vpop.f32.mrf.mxu2 }
 0x2ad   : > { %v5496_v36 = vadd.f32 %v5495_v20, %v5407_v56 }
 0x2ae   : > { %v5793_v53 = vadd.f32 %v5792_v14, %v5762_v13  ;;  %7275 = vst [vmem:[%s8705_s9 + $0x40] sm:$0xff] %v7216_v63   ;;  %v5584_v31 = vpop.f32.mrf.mxu3 }
 0x2af   : > { %v5585_v17 = vadd.f32 %v5584_v31, %v5496_v36 }
 0x2b1   : > { %v5673_v16 = vpop.f32.mrf.mxu0 }
 0x2b2   : > { %v5674_v43 = vadd.f32 %v5673_v16, %v5585_v17  ;;  %v5411_v7 = vpop.f32.mrf.mxu1 }
 0x2b3   : > { %v5412_v46 = vadd.f32 %v5411_v7, %v8585_v50 }
 0x2b4   : > { %v5725_v38 = vadd.f32 %v5724_v22, %v5674_v43  ;;  %v5763_v52 = vmul.f32 %v5674_v43, %v5674_v43  ;;  %v5497_v40 = vpop.f32.mrf.mxu2 }
 0x2b5   : > { %v5498_v24 = vadd.f32 %v5497_v40, %v5409_v47 }
 0x2b6   : > { %v5794_v26 = vadd.f32 %v5793_v53, %v5763_v52  ;;  %v5586_v57 = vpop.f32.mrf.mxu3 }
 0x2b7   : > { %v5587_v39 = vadd.f32 %v5586_v57, %v5498_v24 }
 0x2b9   : > { %v5675_v23 = vpop.f32.mrf.mxu0 }
 0x2ba   : > { %v5676_v21 = vadd.f32 %v5675_v23, %v5587_v39  ;;  %v5413_v25 = vpop.f32.mrf.mxu1 }
 0x2bb   : > { %v5414_v32 = vadd.f32 %v5413_v25, %v8594_v61 }
 0x2bc   : > { %v5726_v6 = vadd.f32 %v5725_v38, %v5676_v21  ;;  %v5764_v10 = vmul.f32 %v5676_v21, %v5676_v21  ;;  %v7221_v28 = vpack.c.bf16 %v5676_v21, %v5674_v43  ;;  %v5500_v12 = vpop.f32.mrf.mxu2 }
 0x2bd   : > { %v5501_v1 = vadd.f32 %v5500_v12, %v5412_v46 }
 0x2be   : > { %v5795_v18 = vadd.f32 %v5794_v26, %v5764_v10  ;;  %7276 = vst [vmem:[%s8705_s9 + $0x48] sm:$0xff] %v7221_v28   ;;  %v5589_v34 = vpop.f32.mrf.mxu3 }
 0x2bf   : > { %v5590_v0 = vadd.f32 %v5589_v34, %v5501_v1 }
 0x2c1   : > { %v5678_v59 = vpop.f32.mrf.mxu0 }
 0x2c2   : > { %v5679_v15 = vadd.f32 %v5678_v59, %v5590_v0  ;;  %v5416_v44 = vpop.f32.mrf.mxu1 }
 0x2c3   : > { %v5417_v48 = vadd.f32 %v5416_v44, %v8603_v8 }
 0x2c4   : > { %v5727_v33 = vadd.f32 %v5726_v6, %v5679_v15  ;;  %v5765_v54 = vmul.f32 %v5679_v15, %v5679_v15  ;;  %v5502_v29 = vpop.f32.mrf.mxu2 }
 0x2c5   : > { %v5503_v2 = vadd.f32 %v5502_v29, %v5414_v32 }
 0x2c6   : > { %v5796_v50 = vadd.f32 %v5795_v18, %v5765_v54  ;;  %v5591_v45 = vpop.f32.mrf.mxu3 }
 0x2c7   : > { %v5592_v4 = vadd.f32 %v5591_v45, %v5503_v2 }
 0x2c9   : > { %v5680_v60 = vpop.f32.mrf.mxu0 }
 0x2ca   : > { %v5681_v62 = vadd.f32 %v5680_v60, %v5592_v4  ;;  %v5418_v58 = vpop.f32.mrf.mxu1 }
 0x2cb   : > { %v5419_v13 = vadd.f32 %v5418_v58, %v8612_v49 }
 0x2cc   : > { %v5728_v51 = vadd.f32 %v5727_v33, %v5681_v62  ;;  %v5766_v27 = vmul.f32 %v5681_v62, %v5681_v62  ;;  %v7226_v14 = vpack.c.bf16 %v5681_v62, %v5679_v15  ;;  %v5505_v5 = vpop.f32.mrf.mxu2 }
 0x2cd   : > { %v5506_v55 = vadd.f32 %v5505_v5, %v5417_v48 }
 0x2ce   : > { %v5797_v41 = vadd.f32 %v5796_v50, %v5766_v27  ;;  %7277 = vst [vmem:[%s8705_s9 + $0x50] sm:$0xff] %v7226_v14   ;;  %v5594_v61 = vpop.f32.mrf.mxu3 }
 0x2cf   : > { %v5595_v3 = vadd.f32 %v5594_v61, %v5506_v55 }
 0x2d1   : > { %v5683_v35 = vpop.f32.mrf.mxu0 }
 0x2d2   : > { %v5684_v56 = vadd.f32 %v5683_v35, %v5595_v3  ;;  %v5421_v22 = vpop.f32.mrf.mxu1 }
 0x2d3   : > { %v5422_v47 = vadd.f32 %v5421_v22, %v8621_v42 }
 0x2d4   : > { %v5729_v63 = vadd.f32 %v5728_v51, %v5684_v56  ;;  %v5767_v20 = vmul.f32 %v5684_v56, %v5684_v56  ;;  %v5507_v36 = vpop.f32.mrf.mxu2 }
 0x2d5   : > { %v5508_v53 = vadd.f32 %v5507_v36, %v5419_v13 }
 0x2d6   : > { %v5798_v8 = vadd.f32 %v5797_v41, %v5767_v20  ;;  %v5596_v31 = vpop.f32.mrf.mxu3 }
 0x2d7   : > { %v5597_v17 = vadd.f32 %v5596_v31, %v5508_v53 }
 0x2d9   : > { %v5685_v16 = vpop.f32.mrf.mxu0 }
 0x2da   : > { %v5686_v43 = vadd.f32 %v5685_v16, %v5597_v17  ;;  %v5423_v7 = vpop.f32.mrf.mxu1 }
 0x2db   : > { %v5424_v46 = vadd.f32 %v5423_v7, %v8630_v9 }
 0x2dc   : > { %v5730_v38 = vadd.f32 %v5729_v63, %v5686_v43  ;;  %v5768_v52 = vmul.f32 %v5686_v43, %v5686_v43  ;;  %v7231_v40 = vpack.c.bf16 %v5686_v43, %v5684_v56  ;;  %v5510_v24 = vpop.f32.mrf.mxu2 }
 0x2dd   : > { %v5511_v26 = vadd.f32 %v5510_v24, %v5422_v47 }
 0x2de   : > { %v5799_v57 = vadd.f32 %v5798_v8, %v5768_v52  ;;  %7278 = vst [vmem:[%s8705_s9 + $0x58] sm:$0xff] %v7231_v40   ;;  %v5599_v49 = vpop.f32.mrf.mxu3 }
 0x2df   : > { %v5600_v39 = vadd.f32 %v5599_v49, %v5511_v26  ;;  %v8875_v26 = vld [vmem:[#allocation11_spill] sm:$0xff] }
 0x2e1   : > { %v5688_v23 = vpop.f32.mrf.mxu0 }
 0x2e2   : > { %v5689_v21 = vadd.f32 %v5688_v23, %v5600_v39  ;;  %v5426_v25 = vpop.f32.mrf.mxu1 }
 0x2e3   : > { %v5427_v15 = vadd.f32 %v5426_v25, %v8639_v11 }
 0x2e4   : > { %v5731_v6 = vadd.f32 %v5730_v38, %v5689_v21  ;;  %v5769_v10 = vmul.f32 %v5689_v21, %v5689_v21  ;;  %v5512_v28 = vpop.f32.mrf.mxu2 }
 0x2e5   : > { %v5513_v12 = vadd.f32 %v5512_v28, %v5424_v46 }
 0x2e6   : > { %v5800_v42 = vadd.f32 %v5799_v57, %v5769_v10  ;;  %v5601_v1 = vpop.f32.mrf.mxu3 }
 0x2e7   : > { %v5602_v18 = vadd.f32 %v5601_v1, %v5513_v12 }
 0x2e9   : > { %v5690_v34 = vpop.f32.mrf.mxu0 }
 0x2ea   : > { %v5691_v0 = vadd.f32 %v5690_v34, %v5602_v18  ;;  %v5428_v59 = vpop.f32.mrf.mxu1 }
 0x2eb   : > { %v5429_v62 = vadd.f32 %v5428_v59, %v8648_v30 }
 0x2ec   : > { %v5732_v44 = vadd.f32 %v5731_v6, %v5691_v0  ;;  %v5770_v32 = vmul.f32 %v5691_v0, %v5691_v0  ;;  %v7236_v33 = vpack.c.bf16 %v5691_v0, %v5689_v21  ;;  %v5515_v54 = vpop.f32.mrf.mxu2 }
 0x2ed   : > { %v5516_v29 = vadd.f32 %v5515_v54, %v5427_v15 }
 0x2ee   : > { %v5801_v2 = vadd.f32 %v5800_v42, %v5770_v32  ;;  %7279 = vst [vmem:[%s8705_s9 + $0x60] sm:$0xff] %v7236_v33   ;;  %v5604_v9 = vpop.f32.mrf.mxu3  ;;  %v8876_v42 = vld [vmem:[#allocation4_spill] sm:$0xff] }
 0x2ef   : > { %v5605_v50 = vadd.f32 %v5604_v9, %v5516_v29 }
 0x2f1   : > { %v5693_v45 = vpop.f32.mrf.mxu0 }
 0x2f2   : > { %v5694_v4 = vadd.f32 %v5693_v45, %v5605_v50  ;;  %v5431_v60 = vpop.f32.mrf.mxu1 }
 0x2f3   : > { %v5432_v61 = vadd.f32 %v5431_v60, %v8657_v37 }
 0x2f4   : > { %v5733_v58 = vadd.f32 %v5732_v44, %v5694_v4  ;;  %v5771_v48 = vmul.f32 %v5694_v4, %v5694_v4  ;;  %v5517_v51 = vpop.f32.mrf.mxu2 }
 0x2f5   : > { %v5518_v27 = vadd.f32 %v5517_v51, %v5429_v62 }
 0x2f6   : > { %v5802_v11 = vadd.f32 %v5801_v2, %v5771_v48  ;;  %v5606_v14 = vpop.f32.mrf.mxu3 }
 0x2f7   : > { %v5607_v5 = vadd.f32 %v5606_v14, %v5518_v27 }
 0x2f9   : > { %v5695_v55 = vpop.f32.mrf.mxu0 }
 0x2fa   : > { %v5696_v41 = vadd.f32 %v5695_v55, %v5607_v5  ;;  %v5433_v13 = vpop.f32.mrf.mxu1 }
 0x2fb   : > { %v5434_v31 = vadd.f32 %v5433_v13, %v8666_v19 }
 0x2fc   : > { %v5734_v3 = vadd.f32 %v5733_v58, %v5696_v41  ;;  %v5772_v35 = vmul.f32 %v5696_v41, %v5696_v41  ;;  %v7241_v56 = vpack.c.bf16 %v5696_v41, %v5694_v4  ;;  %v5520_v22 = vpop.f32.mrf.mxu2 }
 0x2fd   : > { %v5521_v63 = vadd.f32 %v5520_v22, %v5432_v61 }
 0x2fe   : > { %v5803_v20 = vadd.f32 %v5802_v11, %v5772_v35  ;;  %7280 = vst [vmem:[%s8705_s9 + $0x68] sm:$0xff] %v7241_v56   ;;  %v5609_v30 = vpop.f32.mrf.mxu3 }
 0x2ff   : > { %v5610_v36 = vadd.f32 %v5609_v30, %v5521_v63 }
 0x301   : > { %v5698_v53 = vpop.f32.mrf.mxu0 }
 0x302   : > { %v5699_v8 = vadd.f32 %v5698_v53, %v5610_v36  ;;  %v5436_v38 = vpop.f32.mrf.mxu1 }
 0x303   : > { %v5437_v57 = vadd.f32 %v5436_v38, %v8875_v26 }
 0x304   : > { %v5735_v17 = vadd.f32 %v5734_v3, %v5699_v8  ;;  %v5773_v16 = vmul.f32 %v5699_v8, %v5699_v8  ;;  %v5522_v43 = vpop.f32.mrf.mxu2 }
 0x305   : > { %v5523_v7 = vadd.f32 %v5522_v43, %v5434_v31 }
 0x306   : > { %v5804_v37 = vadd.f32 %v5803_v20, %v5773_v16  ;;  %v5611_v47 = vpop.f32.mrf.mxu3 }
 0x307   : > { %v5612_v52 = vadd.f32 %v5611_v47, %v5523_v7 }
 0x309   : > { %v5700_v40 = vpop.f32.mrf.mxu0 }
 0x30a   : > { %v5701_v24 = vadd.f32 %v5700_v40, %v5612_v52  ;;  %v5438_v10 = vpop.f32.mrf.mxu1 }
 0x30b   : > { %v5439_v1 = vadd.f32 %v5438_v10, %v8876_v42 }
 0x30c   : > { %v5736_v49 = vadd.f32 %v5735_v17, %v5701_v24  ;;  %v5774_v39 = vmul.f32 %v5701_v24, %v5701_v24  ;;  %v7246_v23 = vpack.c.bf16 %v5701_v24, %v5699_v8  ;;  %v5525_v21 = vpop.f32.mrf.mxu2 }
 0x30d   : > { %v5526_v25 = vadd.f32 %v5525_v21, %v5437_v57 }
 0x30e   : > { %v5805_v46 = vadd.f32 %v5804_v37, %v5774_v39  ;;  %7281 = vst [vmem:[%s8705_s9 + $0x70] sm:$0xff] %v7246_v23   ;;  %v5614_v19 = vpop.f32.mrf.mxu3 }
 0x30f   : > { %v5615_v6 = vadd.f32 %v5614_v19, %v5526_v25 }
 0x311   : > { %v5703_v28 = vpop.f32.mrf.mxu0 }
 0x312   : > { %v5704_v12 = vadd.f32 %v5703_v28, %v5615_v6 }
 0x314   : > { %v5737_v18 = vadd.f32 %v5736_v49, %v5704_v12  ;;  %v5775_v34 = vmul.f32 %v5704_v12, %v5704_v12  ;;  %v5527_v0 = vpop.f32.mrf.mxu2 }
 0x315   : > { %v5528_v59 = vadd.f32 %v5527_v0, %v5439_v1 }
 0x316   : > { %v5806_v15 = vadd.f32 %v5805_v46, %v5775_v34  ;;  %v5616_v44 = vpop.f32.mrf.mxu3 }
 0x317   : > { %v5617_v32 = vadd.f32 %v5616_v44, %v5528_v59 }
 0x319   : > { %v5705_v33 = vpop.f32.mrf.mxu0 }
 0x31a   : > { %v5706_v54 = vadd.f32 %v5705_v33, %v5617_v32 }
 0x31c   : > { %v5738_v29 = vadd.f32 %v5737_v18, %v5706_v54  ;;  %v5776_v2 = vmul.f32 %v5706_v54, %v5706_v54  ;;  %v7251_v9 = vpack.c.bf16 %v5706_v54, %v5704_v12 }
 0x31e   : > { %v5739_v50 = vrot.slane %v5738_v29, 4  ;;  %v5807_v45 = vadd.f32 %v5806_v15, %v5776_v2  ;;  %7282 = vst [vmem:[%s8705_s9 + $0x78] sm:$0xff] %v7251_v9  }
 0x320   : > { %v5740_v4 = vadd.f32 %v5739_v50, %v5738_v29  ;;  %v5808_v60 = vrot.slane %v5807_v45, 4 }
 0x322   : > { %v5741_v62 = vrot.slane %v5740_v4, 2  ;;  %v5809_v58 = vadd.f32 %v5808_v60, %v5807_v45 }
 0x324   : > { %v5742_v48 = vadd.f32 %v5741_v62, %v5740_v4  ;;  %v5810_v51 = vrot.slane %v5809_v58, 2 }
 0x326   : > { %v5743_v27 = vrot.slane %v5742_v48, 1  ;;  %v5811_v11 = vadd.f32 %v5810_v51, %v5809_v58 }
 0x328   : > { %v5812_v14 = vrot.slane %v5811_v11, 1  ;;  %v5744_v5 = vadd.f32 %v5743_v27, %v5742_v48 }
 0x32a   : > { %v5813_v55 = vadd.f32 %v5812_v14, %v5811_v11 }
 0x32c   : > { %v5815_v41 = vsel %vm822_vm7, %v5744_v5, %v5813_v55 }
 0x32d   : > { %5816 = vst [vmem:[%s235_s12] sm:$0x3] %v5815_v41 }
 0x32e PF: > { %s16_s18 = sadd.s32 1, %s7328_s18  }
 0x32f   : > { %p13_p4 = scmp.ge.s32.totalorder %s16_s18, 4  }
 0x331   :  { %15 = sbr.rel (!%p13_p4) target bundleno = 1 (0x1), region = 80 }

</bundles_post_ra>
